<compile_context>
chip_gen: v7x
topology: tpu7x:2x2x1
jax: 0.10.0
libtpu: 0.0.40
codegen_flags: <defaults>
</compile_context>

<pallas_src>
import jax
import jax.numpy as jnp
from jax import lax
from jax.experimental import pallas as pl
from jax.experimental.pallas import tpu as pltpu

LANE = 128     # lane width: pad output channels to a multiple of 128
STEM_K = 32    # stem im2col depth: 9 taps * 3 channels = 27, padded to 32


def _round_up(n, m):
    return ((n + m - 1) // m) * m


def _conv_stage(s_ref, w_ref, b_ref, hc, wc):
    """3x3 / stride-2 conv + bias + SiLU on a zero-ringed VMEM scratch.

    s_ref : (hc+2, wc+2, cin_p) f32 scratch holding the spatially padded input.
    w_ref : (9*cin_p, cout_p)   bf16 weights, rows ordered (di, dj, cin).
    b_ref : (1, cout_p)         f32 bias.
    Returns the (hc//2 * wc//2, cout_p) f32 activation.
    """
    cin_p = s_ref.shape[-1]
    cout_p = w_ref.shape[-1]
    ho, wo = hc // 2, wc // 2
    hq, wq = ho + 1, wo + 1
    m = ho * wo

    # 4 stride-2 phases of the padded input: ph[r][s][i, j, :] = xpad[2i+r, 2j+s, :].
    # Cast to bf16 after the strided read so the MXU sees bf16 operands.
    ph = [[s_ref[pl.ds(r, hq, 2), pl.ds(s, wq, 2), :].astype(jnp.bfloat16)
           for s in range(2)] for r in range(2)]

    # 9 taps as contiguous offset slices of the phases:
    #   tap(di, dj) at output (a, c) = xpad[2a+di, 2c+dj]
    #                                = ph[di%2][dj%2][a + di//2, c + dj//2]
    taps = []
    for di in range(3):
        qi, ri = di // 2, di % 2
        for dj in range(3):
            qj, rj = dj // 2, dj % 2
            tap = ph[ri][rj][qi:qi + ho, qj:qj + wo, :]
            taps.append(tap.reshape(m, cin_p))

    # Accumulated dots over tap pairs (K = 2*cin_p = 256); the (m, 9*cin_p)
    # im2col slab is never materialized.
    acc = None
    g = 0
    while g < 9:
        n = 2 if g + 2 <= 9 else 1
        a = taps[g] if n == 1 else jnp.concatenate(taps[g:g + n], axis=-1)
        d = jnp.dot(a, w_ref[pl.ds(g * cin_p, n * cin_p), :],
                    preferred_element_type=jnp.float32)
        acc = d if acc is None else acc + d
        g += n

    acc = acc + b_ref[...]                     # (m, cout_p) + (1, cout_p)
    return acc * jax.nn.sigmoid(acc)           # SiLU in f32


def _make_fused_kernel(h1, w1):
    """Fused kernel: stem matmul + 4 conv stages, one image per grid step."""

    def kernel(a0_ref, w0_ref, b0_ref,
               w1_ref, b1_ref, w2_ref, b2_ref, w3_ref, b3_ref, w4_ref, b4_ref,
               c2_ref, c3_ref, c4_ref, c5_ref,
               s1_ref, s2_ref, s3_ref, s4_ref):
        w_refs = (w1_ref, w2_ref, w3_ref, w4_ref)
        b_refs = (b1_ref, b2_ref, b3_ref, b4_ref)
        o_refs = (c2_ref, c3_ref, c4_ref, c5_ref)
        s_refs = (s1_ref, s2_ref, s3_ref, s4_ref)

        # ---- stem: 3x3/s2 conv as one small matmul on the im2col'd image.
        a0 = a0_ref[0]                                           # (h1*w1, 32) bf16
        acc = jnp.dot(a0, w0_ref[...], preferred_element_type=jnp.float32)
        acc = acc + b0_ref[...]
        act = acc * jax.nn.sigmoid(acc)                          # (h1*w1, 128) f32

        # ---- 4 downsampling stages; intermediates stay in VMEM.
        hc, wc = h1, w1
        for i in range(4):
            s_ref = s_refs[i]
            cin_p = s_ref.shape[-1]
            # Zero-ringed padded input; re-zeroed every grid step (cheap, and
            # megacore-safe since scratch is per-core and never carried over).
            s_ref[...] = jnp.zeros_like(s_ref)
            s_ref[pl.ds(1, hc), pl.ds(1, wc), :] = act.reshape(hc, wc, cin_p)
            act = _conv_stage(s_ref, w_refs[i], b_refs[i], hc, wc)
            o_refs[i][0] = act                                   # f32 output block
            hc, wc = hc // 2, wc // 2

    return kernel


def efficientnet_backbone_fused(x_nchw, stem_w, stem_b, stage_ws, stage_bs):
    """Run the fused backbone. Returns 4 arrays (B, M_i, cout_p_i) f32."""
    B, C, H, W = x_nchw.shape
    assert C == 3 and H % 32 == 0 and W % 32 == 0
    h1, w1 = H // 2, W // 2

    # Cheap stem im2col in XLA: 9 strided slices of the padded 3-channel image
    # (~2x the 48 KiB/img input), K padded 27 -> 32, bf16.
    xh = jnp.transpose(x_nchw, (0, 2, 3, 1))                     # NHWC
    xp = jnp.pad(xh, ((0, 0), (1, 1), (1, 1), (0, 0)))
    taps = [xp[:, di:di + H:2, dj:dj + W:2, :]
            for di in range(3) for dj in range(3)]
    a0 = jnp.concatenate(taps, axis=-1).reshape(B, h1 * w1, 27)
    a0 = jnp.pad(a0, ((0, 0), (0, 0), (0, STEM_K - 27))).astype(jnp.bfloat16)

    # Per-stage output / scratch geometry.
    out_shape, out_specs, scratch = [], [], []
    hc, wc = h1, w1
    for wm in stage_ws:
        cin_p = wm.shape[0] // 9
        scratch.append(pltpu.VMEM((hc + 2, wc + 2, cin_p), jnp.float32))
        hc, wc = hc // 2, wc // 2
        cout_p = wm.shape[-1]
        out_shape.append(jax.ShapeDtypeStruct((B, hc * wc, cout_p), jnp.float32))
        out_specs.append(pl.BlockSpec((1, hc * wc, cout_p), lambda b: (b, 0, 0)))

    def const_spec(shape):
        return pl.BlockSpec(shape, lambda b: tuple(0 for _ in shape))

    in_specs = [pl.BlockSpec((1, h1 * w1, STEM_K), lambda b: (b, 0, 0)),
                const_spec(stem_w.shape), const_spec(stem_b.shape)]
    args = [a0, stem_w, stem_b]
    for wm, bm in zip(stage_ws, stage_bs):
        in_specs += [const_spec(wm.shape), const_spec(bm.shape)]
        args += [wm, bm]

    return pl.pallas_call(
        _make_fused_kernel(h1, w1),
        out_shape=tuple(out_shape),
        grid=(B,),
        in_specs=in_specs,
        out_specs=out_specs,
        scratch_shapes=scratch,
        compiler_params=pltpu.CompilerParams(
            dimension_semantics=("parallel",),
            # budget: ~1.8 MiB bf16 weights (double-buffered ~3.5 MiB) +
            # 0.13 MiB im2col block + ~0.9 MiB ring scratches + small f32
            # temporaries  <<  32 MiB (safe under v7x's 64 MiB physical VMEM).
            vmem_limit_bytes=32 * 1024 * 1024,
        ),
    )(*args)


class EfficientNetBackbonePallas:
    """Basic EfficientNet-style backbone: stem + 4 stride-2 stages, fused into
    one Pallas kernel.  Features at strides 4/8/16/32, channels [24,40,112,320]."""

    OUT_CHANNELS = [24, 40, 112, 320]

    def __init__(self, key):
        chs = [3, 32, 24, 40, 112, 320]     # stem 3->32, then the 4 stages
        keys = jax.random.split(key, len(chs) - 1)
        self.raw = []                       # bf16-rounded f32 weights for reference
        self.stage_ws, self.stage_bs = [], []
        for i, (k, (ci, co)) in enumerate(zip(keys, zip(chs[:-1], chs[1:]))):
            kw, kb = jax.random.split(k)
            std = (2.0 / (ci * 9)) ** 0.5
            w = jax.random.normal(kw, (3, 3, ci, co), jnp.float32) * std
            b = jax.random.normal(kb, (co,), jnp.float32) * 0.01
            w = w.astype(jnp.bfloat16).astype(jnp.float32)   # values the kernel sees
            self.raw.append((w, b))
            co_p = _round_up(co, LANE)
            if i == 0:
                # stem: K = 27 rows padded to 32; only Cout padded to 128 lanes.
                wm = jnp.zeros((STEM_K, co_p), jnp.float32)
                wm = wm.at[:27, :co].set(w.reshape(27, co))
                self.stem_w = wm.astype(jnp.bfloat16)
                self.stem_b = jnp.zeros((1, co_p), jnp.float32).at[0, :co].set(b)
            else:
                ci_p = _round_up(ci, LANE)
                wp = jnp.zeros((3, 3, ci_p, co_p), jnp.float32)
                wp = wp.at[:, :, :ci, :co].set(w)
                self.stage_ws.append(wp.reshape(9 * ci_p, co_p).astype(jnp.bfloat16))
                self.stage_bs.append(
                    jnp.zeros((1, co_p), jnp.float32).at[0, :co].set(b))

    @property
    def out_channels(self):
        return self.OUT_CHANNELS

    def __call__(self, x_nchw):
        B, _, H, W = x_nchw.shape
        outs = efficientnet_backbone_fused(
            x_nchw, self.stem_w, self.stem_b, self.stage_ws, self.stage_bs)
        feats = {}
        h, w = H // 4, W // 4
        for name, y, co in zip(("C2", "C3", "C4", "C5"), outs, self.OUT_CHANNELS):
            f = y.reshape(B, h, w, -1)[..., :co]        # drop channel padding
            feats[name] = jnp.transpose(f, (0, 3, 1, 2))   # NCHW, f32
            h, w = h // 2, w // 2
        return feats

    def reference(self, x_nchw):
        """Pure-JAX (lax.conv) reference with the same synthetic weights."""
        y = x_nchw
        names = (None, "C2", "C3", "C4", "C5")
        feats = {}
        for i, (w, b) in enumerate(self.raw):
            y = lax.conv_general_dilated(
                y, w, window_strides=(2, 2), padding=((1, 1), (1, 1)),
                dimension_numbers=("NCHW", "HWIO", "NCHW"))
            y = y + b.reshape(1, -1, 1, 1)
            y = y * jax.nn.sigmoid(y)
            if names[i]:
                feats[names[i]] = y
        return feats


if __name__ == "__main__":
    key = jax.random.PRNGKey(0)
    k_params, k_input = jax.random.split(key)

    model = EfficientNetBackbonePallas(k_params)

    # RGB image batch, NCHW, small but deep enough for stride-32 features.
    x = jax.random.normal(k_input, (2, 3, 64, 64), jnp.float32)

    fwd = jax.jit(model.__call__)
    features = fwd(x)
    features = jax.tree_util.tree_map(jax.block_until_ready, features)

    ref = jax.jit(model.reference)(x)

    expected = {
        'C2': (2, 24, 16, 16),
        'C3': (2, 40, 8, 8),
        'C4': (2, 112, 4, 4),
        'C5': (2, 320, 2, 2),
    }
    for name, shape in expected.items():
        assert features[name].shape == shape, (name, features[name].shape)
        assert bool(jnp.all(jnp.isfinite(features[name]))), name
        scale = float(jnp.max(jnp.abs(ref[name]))) + 1e-6
        err = float(jnp.max(jnp.abs(features[name] - ref[name]))) / scale
        # only bf16 rounding of activations differs from the f32 reference
        assert err < 0.08, (name, err)

    print("KERNEL_OK")
</pallas_src>

<mosaic_0001>
module attributes {stable_mosaic.version = 11 : i64} {
  func.func @kernel(%arg0: i32, %arg1: memref<1x1024x32xbf16, #tpu.memory_space<vmem>>, %arg2: memref<32x128xbf16, #tpu.memory_space<vmem>>, %arg3: memref<1x128xf32, #tpu.memory_space<vmem>>, %arg4: memref<1152x128xbf16, #tpu.memory_space<vmem>>, %arg5: memref<1x128xf32, #tpu.memory_space<vmem>>, %arg6: memref<1152x128xbf16, #tpu.memory_space<vmem>>, %arg7: memref<1x128xf32, #tpu.memory_space<vmem>>, %arg8: memref<1152x128xbf16, #tpu.memory_space<vmem>>, %arg9: memref<1x128xf32, #tpu.memory_space<vmem>>, %arg10: memref<1152x384xbf16, #tpu.memory_space<vmem>>, %arg11: memref<1x384xf32, #tpu.memory_space<vmem>>, %arg12: memref<1x256x128xf32, #tpu.memory_space<vmem>>, %arg13: memref<1x64x128xf32, #tpu.memory_space<vmem>>, %arg14: memref<1x16x128xf32, #tpu.memory_space<vmem>>, %arg15: memref<1x4x384xf32, #tpu.memory_space<vmem>>, %arg16: memref<34x34x128xf32, #tpu.memory_space<vmem>>, %arg17: memref<18x18x128xf32, #tpu.memory_space<vmem>>, %arg18: memref<10x10x128xf32, #tpu.memory_space<vmem>>, %arg19: memref<6x6x128xf32, #tpu.memory_space<vmem>>) attributes {dimension_semantics = [#tpu.dimension_semantics<parallel>], iteration_bounds = array<i64: 2>, scalar_prefetch = 0 : i64, scratch_operands = 4 : i64, tpu.core_type = #tpu.core_type<tc>, window_params = [{transform_indices = @transform_0, window_bounds = array<i64: 1, 1024, 32>}, {pipeline_mode = #tpu.pipeline_mode<synchronous>, transform_indices = @transform_1, window_bounds = array<i64: 32, 128>}, {pipeline_mode = #tpu.pipeline_mode<synchronous>, transform_indices = @transform_2, window_bounds = array<i64: 1, 128>}, {pipeline_mode = #tpu.pipeline_mode<synchronous>, transform_indices = @transform_3, window_bounds = array<i64: 1152, 128>}, {pipeline_mode = #tpu.pipeline_mode<synchronous>, transform_indices = @transform_4, window_bounds = array<i64: 1, 128>}, {pipeline_mode = #tpu.pipeline_mode<synchronous>, transform_indices = @transform_5, window_bounds = array<i64: 1152, 128>}, {pipeline_mode = #tpu.pipeline_mode<synchronous>, transform_indices = @transform_6, window_bounds = array<i64: 1, 128>}, {pipeline_mode = #tpu.pipeline_mode<synchronous>, transform_indices = @transform_7, window_bounds = array<i64: 1152, 128>}, {pipeline_mode = #tpu.pipeline_mode<synchronous>, transform_indices = @transform_8, window_bounds = array<i64: 1, 128>}, {pipeline_mode = #tpu.pipeline_mode<synchronous>, transform_indices = @transform_9, window_bounds = array<i64: 1152, 384>}, {pipeline_mode = #tpu.pipeline_mode<synchronous>, transform_indices = @transform_10, window_bounds = array<i64: 1, 384>}, {transform_indices = @transform_11, window_bounds = array<i64: 1, 256, 128>}, {transform_indices = @transform_12, window_bounds = array<i64: 1, 64, 128>}, {transform_indices = @transform_13, window_bounds = array<i64: 1, 16, 128>}, {transform_indices = @transform_14, window_bounds = array<i64: 1, 4, 384>}]} {
    %c0 = arith.constant 0 : index
    %c0_0 = arith.constant 0 : index
    %c0_1 = arith.constant 0 : index
    %0 = vector.load %arg1[%c0, %c0_0, %c0_1] : memref<1x1024x32xbf16, #tpu.memory_space<vmem>>, vector<1x1024x32xbf16>
    %1 = vector.shape_cast %0 : vector<1x1024x32xbf16> to vector<1024x32xbf16>
    %c0_2 = arith.constant 0 : index
    %c0_3 = arith.constant 0 : index
    %2 = vector.load %arg2[%c0_2, %c0_3] : memref<32x128xbf16, #tpu.memory_space<vmem>>, vector<32x128xbf16>
    %cst = arith.constant dense<0.000000e+00> : vector<1024x128xf32>
    %3 = tpu.matmul %1, %2, %cst {dimension_numbers = #tpu.dot_dimension_numbers<[1], [0], [0], [1], [0, 0, 1, 1], [], []>} : vector<1024x32xbf16>, vector<32x128xbf16>, vector<1024x128xf32> -> vector<1024x128xf32>
    %c0_4 = arith.constant 0 : index
    %c0_5 = arith.constant 0 : index
    %4 = vector.load %arg3[%c0_4, %c0_5] : memref<1x128xf32, #tpu.memory_space<vmem>>, vector<1x128xf32>
    %5 = vector.broadcast %4 : vector<1x128xf32> to vector<1024x128xf32>
    %6 = arith.addf %3, %5 : vector<1024x128xf32>
    %7 = arith.negf %6 : vector<1024x128xf32>
    %8 = math.exp %7 : vector<1024x128xf32>
    %cst_6 = arith.constant 1.000000e+00 : f32
    %9 = vector.broadcast %cst_6 : f32 to vector<1024x128xf32>
    %10 = arith.addf %9, %8 : vector<1024x128xf32>
    %11 = arith.divf %9, %10 : vector<1024x128xf32>
    %12 = arith.mulf %6, %11 : vector<1024x128xf32>
    %cst_7 = arith.constant 0.000000e+00 : f32
    %13 = vector.broadcast %cst_7 : f32 to vector<34x34x128xf32>
    %c0_8 = arith.constant 0 : index
    %c0_9 = arith.constant 0 : index
    %c0_10 = arith.constant 0 : index
    %14 = vector.load %arg16[%c0_8, %c0_9, %c0_10] : memref<34x34x128xf32, #tpu.memory_space<vmem>>, vector<34x34x128xf32>
    tpu.vector_store %arg16[%c0_8, %c0_9, %c0_10], %13 {strides = array<i32>} : memref<34x34x128xf32, #tpu.memory_space<vmem>>, vector<34x34x128xf32>,
    %15 = vector.shape_cast %12 : vector<1024x128xf32> to vector<32x32x128xf32>
    %c1 = arith.constant 1 : index
    %c1_11 = arith.constant 1 : index
    %c0_12 = arith.constant 0 : index
    %16 = vector.load %arg16[%c1, %c1_11, %c0_12] : memref<34x34x128xf32, #tpu.memory_space<vmem>>, vector<32x32x128xf32>
    tpu.vector_store %arg16[%c1, %c1_11, %c0_12], %15 {strides = array<i32>} : memref<34x34x128xf32, #tpu.memory_space<vmem>>, vector<32x32x128xf32>,
    %c0_13 = arith.constant 0 : index
    %c0_14 = arith.constant 0 : index
    %c0_15 = arith.constant 0 : index
    %17 = tpu.strided_load %arg16[%c0_13, %c0_14, %c0_15] {strides = array<i32: 2, 2, 1>} : memref<34x34x128xf32, #tpu.memory_space<vmem>>, vector<17x17x128xf32>
    %18 = arith.truncf %17 : vector<17x17x128xf32> to vector<17x17x128xbf16>
    %c0_16 = arith.constant 0 : index
    %c1_17 = arith.constant 1 : index
    %c0_18 = arith.constant 0 : index
    %19 = tpu.strided_load %arg16[%c0_16, %c1_17, %c0_18] {strides = array<i32: 2, 2, 1>} : memref<34x34x128xf32, #tpu.memory_space<vmem>>, vector<17x17x128xf32>
    %20 = arith.truncf %19 : vector<17x17x128xf32> to vector<17x17x128xbf16>
    %c1_19 = arith.constant 1 : index
    %c0_20 = arith.constant 0 : index
    %c0_21 = arith.constant 0 : index
    %21 = tpu.strided_load %arg16[%c1_19, %c0_20, %c0_21] {strides = array<i32: 2, 2, 1>} : memref<34x34x128xf32, #tpu.memory_space<vmem>>, vector<17x17x128xf32>
    %22 = arith.truncf %21 : vector<17x17x128xf32> to vector<17x17x128xbf16>
    %c1_22 = arith.constant 1 : index
    %c1_23 = arith.constant 1 : index
    %c0_24 = arith.constant 0 : index
    %23 = tpu.strided_load %arg16[%c1_22, %c1_23, %c0_24] {strides = array<i32: 2, 2, 1>} : memref<34x34x128xf32, #tpu.memory_space<vmem>>, vector<17x17x128xf32>
    %24 = arith.truncf %23 : vector<17x17x128xf32> to vector<17x17x128xbf16>
    %25 = vector.extract_strided_slice %18 {offsets = [0, 0, 0], sizes = [16, 16, 128], strides = [1, 1, 1]} : vector<17x17x128xbf16> to vector<16x16x128xbf16>
    %26 = vector.shape_cast %25 : vector<16x16x128xbf16> to vector<256x128xbf16>
    %27 = vector.extract_strided_slice %20 {offsets = [0, 0, 0], sizes = [16, 16, 128], strides = [1, 1, 1]} : vector<17x17x128xbf16> to vector<16x16x128xbf16>
    %28 = vector.shape_cast %27 : vector<16x16x128xbf16> to vector<256x128xbf16>
    %29 = vector.extract_strided_slice %18 {offsets = [0, 1, 0], sizes = [16, 16, 128], strides = [1, 1, 1]} : vector<17x17x128xbf16> to vector<16x16x128xbf16>
    %30 = vector.shape_cast %29 : vector<16x16x128xbf16> to vector<256x128xbf16>
    %31 = vector.extract_strided_slice %22 {offsets = [0, 0, 0], sizes = [16, 16, 128], strides = [1, 1, 1]} : vector<17x17x128xbf16> to vector<16x16x128xbf16>
    %32 = vector.shape_cast %31 : vector<16x16x128xbf16> to vector<256x128xbf16>
    %33 = vector.extract_strided_slice %24 {offsets = [0, 0, 0], sizes = [16, 16, 128], strides = [1, 1, 1]} : vector<17x17x128xbf16> to vector<16x16x128xbf16>
    %34 = vector.shape_cast %33 : vector<16x16x128xbf16> to vector<256x128xbf16>
    %35 = vector.extract_strided_slice %22 {offsets = [0, 1, 0], sizes = [16, 16, 128], strides = [1, 1, 1]} : vector<17x17x128xbf16> to vector<16x16x128xbf16>
    %36 = vector.shape_cast %35 : vector<16x16x128xbf16> to vector<256x128xbf16>
    %37 = vector.extract_strided_slice %18 {offsets = [1, 0, 0], sizes = [16, 16, 128], strides = [1, 1, 1]} : vector<17x17x128xbf16> to vector<16x16x128xbf16>
    %38 = vector.shape_cast %37 : vector<16x16x128xbf16> to vector<256x128xbf16>
    %39 = vector.extract_strided_slice %20 {offsets = [1, 0, 0], sizes = [16, 16, 128], strides = [1, 1, 1]} : vector<17x17x128xbf16> to vector<16x16x128xbf16>
    %40 = vector.shape_cast %39 : vector<16x16x128xbf16> to vector<256x128xbf16>
    %41 = vector.extract_strided_slice %18 {offsets = [1, 1, 0], sizes = [16, 16, 128], strides = [1, 1, 1]} : vector<17x17x128xbf16> to vector<16x16x128xbf16>
    %42 = vector.shape_cast %41 : vector<16x16x128xbf16> to vector<256x128xbf16>
    %43 = tpu.concatenate %26, %28 in 1 : vector<256x128xbf16>, vector<256x128xbf16> -> vector<256x256xbf16>
    %c0_25 = arith.constant 0 : index
    %c0_26 = arith.constant 0 : index
    %44 = vector.load %arg4[%c0_25, %c0_26] : memref<1152x128xbf16, #tpu.memory_space<vmem>>, vector<256x128xbf16>
    %cst_27 = arith.constant dense<0.000000e+00> : vector<256x128xf32>
    %45 = tpu.matmul %43, %44, %cst_27 {dimension_numbers = #tpu.dot_dimension_numbers<[1], [0], [0], [1], [0, 0, 1, 1], [], []>} : vector<256x256xbf16>, vector<256x128xbf16>, vector<256x128xf32> -> vector<256x128xf32>
    %46 = tpu.concatenate %30, %32 in 1 : vector<256x128xbf16>, vector<256x128xbf16> -> vector<256x256xbf16>
    %c256 = arith.constant 256 : index
    %c0_28 = arith.constant 0 : index
    %47 = vector.load %arg4[%c256, %c0_28] : memref<1152x128xbf16, #tpu.memory_space<vmem>>, vector<256x128xbf16>
    %cst_29 = arith.constant dense<0.000000e+00> : vector<256x128xf32>
    %48 = tpu.matmul %46, %47, %cst_29 {dimension_numbers = #tpu.dot_dimension_numbers<[1], [0], [0], [1], [0, 0, 1, 1], [], []>} : vector<256x256xbf16>, vector<256x128xbf16>, vector<256x128xf32> -> vector<256x128xf32>
    %49 = arith.addf %45, %48 : vector<256x128xf32>
    %50 = tpu.concatenate %34, %36 in 1 : vector<256x128xbf16>, vector<256x128xbf16> -> vector<256x256xbf16>
    %c512 = arith.constant 512 : index
    %c0_30 = arith.constant 0 : index
    %51 = vector.load %arg4[%c512, %c0_30] : memref<1152x128xbf16, #tpu.memory_space<vmem>>, vector<256x128xbf16>
    %cst_31 = arith.constant dense<0.000000e+00> : vector<256x128xf32>
    %52 = tpu.matmul %50, %51, %cst_31 {dimension_numbers = #tpu.dot_dimension_numbers<[1], [0], [0], [1], [0, 0, 1, 1], [], []>} : vector<256x256xbf16>, vector<256x128xbf16>, vector<256x128xf32> -> vector<256x128xf32>
    %53 = arith.addf %49, %52 : vector<256x128xf32>
    %54 = tpu.concatenate %38, %40 in 1 : vector<256x128xbf16>, vector<256x128xbf16> -> vector<256x256xbf16>
    %c768 = arith.constant 768 : index
    %c0_32 = arith.constant 0 : index
    %55 = vector.load %arg4[%c768, %c0_32] : memref<1152x128xbf16, #tpu.memory_space<vmem>>, vector<256x128xbf16>
    %cst_33 = arith.constant dense<0.000000e+00> : vector<256x128xf32>
    %56 = tpu.matmul %54, %55, %cst_33 {dimension_numbers = #tpu.dot_dimension_numbers<[1], [0], [0], [1], [0, 0, 1, 1], [], []>} : vector<256x256xbf16>, vector<256x128xbf16>, vector<256x128xf32> -> vector<256x128xf32>
    %57 = arith.addf %53, %56 : vector<256x128xf32>
    %c1024 = arith.constant 1024 : index
    %c0_34 = arith.constant 0 : index
    %58 = vector.load %arg4[%c1024, %c0_34] : memref<1152x128xbf16, #tpu.memory_space<vmem>>, vector<128x128xbf16>
    %cst_35 = arith.constant dense<0.000000e+00> : vector<256x128xf32>
    %59 = tpu.matmul %42, %58, %cst_35 {dimension_numbers = #tpu.dot_dimension_numbers<[1], [0], [0], [1], [0, 0, 1, 1], [], []>} : vector<256x128xbf16>, vector<128x128xbf16>, vector<256x128xf32> -> vector<256x128xf32>
    %60 = arith.addf %57, %59 : vector<256x128xf32>
    %c0_36 = arith.constant 0 : index
    %c0_37 = arith.constant 0 : index
    %61 = vector.load %arg5[%c0_36, %c0_37] : memref<1x128xf32, #tpu.memory_space<vmem>>, vector<1x128xf32>
    %62 = vector.broadcast %61 : vector<1x128xf32> to vector<256x128xf32>
    %63 = arith.addf %60, %62 : vector<256x128xf32>
    %64 = arith.negf %63 : vector<256x128xf32>
    %65 = math.exp %64 : vector<256x128xf32>
    %cst_38 = arith.constant 1.000000e+00 : f32
    %66 = vector.broadcast %cst_38 : f32 to vector<256x128xf32>
    %67 = arith.addf %66, %65 : vector<256x128xf32>
    %68 = arith.divf %66, %67 : vector<256x128xf32>
    %69 = arith.mulf %63, %68 : vector<256x128xf32>
    %c0_39 = arith.constant 0 : index
    %c0_40 = arith.constant 0 : index
    %c0_41 = arith.constant 0 : index
    %70 = vector.load %arg12[%c0_39, %c0_40, %c0_41] : memref<1x256x128xf32, #tpu.memory_space<vmem>>, vector<1x256x128xf32>
    %71 = vector.shape_cast %70 : vector<1x256x128xf32> to vector<256x128xf32>
    %72 = vector.shape_cast %69 : vector<256x128xf32> to vector<1x256x128xf32>
    tpu.vector_store %arg12[%c0_39, %c0_40, %c0_41], %72 {strides = array<i32>} : memref<1x256x128xf32, #tpu.memory_space<vmem>>, vector<1x256x128xf32>,
    %cst_42 = arith.constant 0.000000e+00 : f32
    %73 = vector.broadcast %cst_42 : f32 to vector<18x18x128xf32>
    %c0_43 = arith.constant 0 : index
    %c0_44 = arith.constant 0 : index
    %c0_45 = arith.constant 0 : index
    %74 = vector.load %arg17[%c0_43, %c0_44, %c0_45] : memref<18x18x128xf32, #tpu.memory_space<vmem>>, vector<18x18x128xf32>
    tpu.vector_store %arg17[%c0_43, %c0_44, %c0_45], %73 {strides = array<i32>} : memref<18x18x128xf32, #tpu.memory_space<vmem>>, vector<18x18x128xf32>,
    %75 = vector.shape_cast %69 : vector<256x128xf32> to vector<16x16x128xf32>
    %c1_46 = arith.constant 1 : index
    %c1_47 = arith.constant 1 : index
    %c0_48 = arith.constant 0 : index
    %76 = vector.load %arg17[%c1_46, %c1_47, %c0_48] : memref<18x18x128xf32, #tpu.memory_space<vmem>>, vector<16x16x128xf32>
    tpu.vector_store %arg17[%c1_46, %c1_47, %c0_48], %75 {strides = array<i32>} : memref<18x18x128xf32, #tpu.memory_space<vmem>>, vector<16x16x128xf32>,
    %c0_49 = arith.constant 0 : index
    %c0_50 = arith.constant 0 : index
    %c0_51 = arith.constant 0 : index
    %77 = tpu.strided_load %arg17[%c0_49, %c0_50, %c0_51] {strides = array<i32: 2, 2, 1>} : memref<18x18x128xf32, #tpu.memory_space<vmem>>, vector<9x9x128xf32>
    %78 = arith.truncf %77 : vector<9x9x128xf32> to vector<9x9x128xbf16>
    %c0_52 = arith.constant 0 : index
    %c1_53 = arith.constant 1 : index
    %c0_54 = arith.constant 0 : index
    %79 = tpu.strided_load %arg17[%c0_52, %c1_53, %c0_54] {strides = array<i32: 2, 2, 1>} : memref<18x18x128xf32, #tpu.memory_space<vmem>>, vector<9x9x128xf32>
    %80 = arith.truncf %79 : vector<9x9x128xf32> to vector<9x9x128xbf16>
    %c1_55 = arith.constant 1 : index
    %c0_56 = arith.constant 0 : index
    %c0_57 = arith.constant 0 : index
    %81 = tpu.strided_load %arg17[%c1_55, %c0_56, %c0_57] {strides = array<i32: 2, 2, 1>} : memref<18x18x128xf32, #tpu.memory_space<vmem>>, vector<9x9x128xf32>
    %82 = arith.truncf %81 : vector<9x9x128xf32> to vector<9x9x128xbf16>
    %c1_58 = arith.constant 1 : index
    %c1_59 = arith.constant 1 : index
    %c0_60 = arith.constant 0 : index
    %83 = tpu.strided_load %arg17[%c1_58, %c1_59, %c0_60] {strides = array<i32: 2, 2, 1>} : memref<18x18x128xf32, #tpu.memory_space<vmem>>, vector<9x9x128xf32>
    %84 = arith.truncf %83 : vector<9x9x128xf32> to vector<9x9x128xbf16>
    %85 = vector.extract_strided_slice %78 {offsets = [0, 0, 0], sizes = [8, 8, 128], strides = [1, 1, 1]} : vector<9x9x128xbf16> to vector<8x8x128xbf16>
    %86 = vector.shape_cast %85 : vector<8x8x128xbf16> to vector<64x128xbf16>
    %87 = vector.extract_strided_slice %80 {offsets = [0, 0, 0], sizes = [8, 8, 128], strides = [1, 1, 1]} : vector<9x9x128xbf16> to vector<8x8x128xbf16>
    %88 = vector.shape_cast %87 : vector<8x8x128xbf16> to vector<64x128xbf16>
    %89 = vector.extract_strided_slice %78 {offsets = [0, 1, 0], sizes = [8, 8, 128], strides = [1, 1, 1]} : vector<9x9x128xbf16> to vector<8x8x128xbf16>
    %90 = vector.shape_cast %89 : vector<8x8x128xbf16> to vector<64x128xbf16>
    %91 = vector.extract_strided_slice %82 {offsets = [0, 0, 0], sizes = [8, 8, 128], strides = [1, 1, 1]} : vector<9x9x128xbf16> to vector<8x8x128xbf16>
    %92 = vector.shape_cast %91 : vector<8x8x128xbf16> to vector<64x128xbf16>
    %93 = vector.extract_strided_slice %84 {offsets = [0, 0, 0], sizes = [8, 8, 128], strides = [1, 1, 1]} : vector<9x9x128xbf16> to vector<8x8x128xbf16>
    %94 = vector.shape_cast %93 : vector<8x8x128xbf16> to vector<64x128xbf16>
    %95 = vector.extract_strided_slice %82 {offsets = [0, 1, 0], sizes = [8, 8, 128], strides = [1, 1, 1]} : vector<9x9x128xbf16> to vector<8x8x128xbf16>
    %96 = vector.shape_cast %95 : vector<8x8x128xbf16> to vector<64x128xbf16>
    %97 = vector.extract_strided_slice %78 {offsets = [1, 0, 0], sizes = [8, 8, 128], strides = [1, 1, 1]} : vector<9x9x128xbf16> to vector<8x8x128xbf16>
    %98 = vector.shape_cast %97 : vector<8x8x128xbf16> to vector<64x128xbf16>
    %99 = vector.extract_strided_slice %80 {offsets = [1, 0, 0], sizes = [8, 8, 128], strides = [1, 1, 1]} : vector<9x9x128xbf16> to vector<8x8x128xbf16>
    %100 = vector.shape_cast %99 : vector<8x8x128xbf16> to vector<64x128xbf16>
    %101 = vector.extract_strided_slice %78 {offsets = [1, 1, 0], sizes = [8, 8, 128], strides = [1, 1, 1]} : vector<9x9x128xbf16> to vector<8x8x128xbf16>
    %102 = vector.shape_cast %101 : vector<8x8x128xbf16> to vector<64x128xbf16>
    %103 = tpu.concatenate %86, %88 in 1 : vector<64x128xbf16>, vector<64x128xbf16> -> vector<64x256xbf16>
    %c0_61 = arith.constant 0 : index
    %c0_62 = arith.constant 0 : index
    %104 = vector.load %arg6[%c0_61, %c0_62] : memref<1152x128xbf16, #tpu.memory_space<vmem>>, vector<256x128xbf16>
    %cst_63 = arith.constant dense<0.000000e+00> : vector<64x128xf32>
    %105 = tpu.matmul %103, %104, %cst_63 {dimension_numbers = #tpu.dot_dimension_numbers<[1], [0], [0], [1], [0, 0, 1, 1], [], []>} : vector<64x256xbf16>, vector<256x128xbf16>, vector<64x128xf32> -> vector<64x128xf32>
    %106 = tpu.concatenate %90, %92 in 1 : vector<64x128xbf16>, vector<64x128xbf16> -> vector<64x256xbf16>
    %c256_64 = arith.constant 256 : index
    %c0_65 = arith.constant 0 : index
    %107 = vector.load %arg6[%c256_64, %c0_65] : memref<1152x128xbf16, #tpu.memory_space<vmem>>, vector<256x128xbf16>
    %cst_66 = arith.constant dense<0.000000e+00> : vector<64x128xf32>
    %108 = tpu.matmul %106, %107, %cst_66 {dimension_numbers = #tpu.dot_dimension_numbers<[1], [0], [0], [1], [0, 0, 1, 1], [], []>} : vector<64x256xbf16>, vector<256x128xbf16>, vector<64x128xf32> -> vector<64x128xf32>
    %109 = arith.addf %105, %108 : vector<64x128xf32>
    %110 = tpu.concatenate %94, %96 in 1 : vector<64x128xbf16>, vector<64x128xbf16> -> vector<64x256xbf16>
    %c512_67 = arith.constant 512 : index
    %c0_68 = arith.constant 0 : index
    %111 = vector.load %arg6[%c512_67, %c0_68] : memref<1152x128xbf16, #tpu.memory_space<vmem>>, vector<256x128xbf16>
    %cst_69 = arith.constant dense<0.000000e+00> : vector<64x128xf32>
    %112 = tpu.matmul %110, %111, %cst_69 {dimension_numbers = #tpu.dot_dimension_numbers<[1], [0], [0], [1], [0, 0, 1, 1], [], []>} : vector<64x256xbf16>, vector<256x128xbf16>, vector<64x128xf32> -> vector<64x128xf32>
    %113 = arith.addf %109, %112 : vector<64x128xf32>
    %114 = tpu.concatenate %98, %100 in 1 : vector<64x128xbf16>, vector<64x128xbf16> -> vector<64x256xbf16>
    %c768_70 = arith.constant 768 : index
    %c0_71 = arith.constant 0 : index
    %115 = vector.load %arg6[%c768_70, %c0_71] : memref<1152x128xbf16, #tpu.memory_space<vmem>>, vector<256x128xbf16>
    %cst_72 = arith.constant dense<0.000000e+00> : vector<64x128xf32>
    %116 = tpu.matmul %114, %115, %cst_72 {dimension_numbers = #tpu.dot_dimension_numbers<[1], [0], [0], [1], [0, 0, 1, 1], [], []>} : vector<64x256xbf16>, vector<256x128xbf16>, vector<64x128xf32> -> vector<64x128xf32>
    %117 = arith.addf %113, %116 : vector<64x128xf32>
    %c1024_73 = arith.constant 1024 : index
    %c0_74 = arith.constant 0 : index
    %118 = vector.load %arg6[%c1024_73, %c0_74] : memref<1152x128xbf16, #tpu.memory_space<vmem>>, vector<128x128xbf16>
    %cst_75 = arith.constant dense<0.000000e+00> : vector<64x128xf32>
    %119 = tpu.matmul %102, %118, %cst_75 {dimension_numbers = #tpu.dot_dimension_numbers<[1], [0], [0], [1], [0, 0, 1, 1], [], []>} : vector<64x128xbf16>, vector<128x128xbf16>, vector<64x128xf32> -> vector<64x128xf32>
    %120 = arith.addf %117, %119 : vector<64x128xf32>
    %c0_76 = arith.constant 0 : index
    %c0_77 = arith.constant 0 : index
    %121 = vector.load %arg7[%c0_76, %c0_77] : memref<1x128xf32, #tpu.memory_space<vmem>>, vector<1x128xf32>
    %122 = vector.broadcast %121 : vector<1x128xf32> to vector<64x128xf32>
    %123 = arith.addf %120, %122 : vector<64x128xf32>
    %124 = arith.negf %123 : vector<64x128xf32>
    %125 = math.exp %124 : vector<64x128xf32>
    %cst_78 = arith.constant 1.000000e+00 : f32
    %126 = vector.broadcast %cst_78 : f32 to vector<64x128xf32>
    %127 = arith.addf %126, %125 : vector<64x128xf32>
    %128 = arith.divf %126, %127 : vector<64x128xf32>
    %129 = arith.mulf %123, %128 : vector<64x128xf32>
    %c0_79 = arith.constant 0 : index
    %c0_80 = arith.constant 0 : index
    %c0_81 = arith.constant 0 : index
    %130 = vector.load %arg13[%c0_79, %c0_80, %c0_81] : memref<1x64x128xf32, #tpu.memory_space<vmem>>, vector<1x64x128xf32>
    %131 = vector.shape_cast %130 : vector<1x64x128xf32> to vector<64x128xf32>
    %132 = vector.shape_cast %129 : vector<64x128xf32> to vector<1x64x128xf32>
    tpu.vector_store %arg13[%c0_79, %c0_80, %c0_81], %132 {strides = array<i32>} : memref<1x64x128xf32, #tpu.memory_space<vmem>>, vector<1x64x128xf32>,
    %cst_82 = arith.constant 0.000000e+00 : f32
    %133 = vector.broadcast %cst_82 : f32 to vector<10x10x128xf32>
    %c0_83 = arith.constant 0 : index
    %c0_84 = arith.constant 0 : index
    %c0_85 = arith.constant 0 : index
    %134 = vector.load %arg18[%c0_83, %c0_84, %c0_85] : memref<10x10x128xf32, #tpu.memory_space<vmem>>, vector<10x10x128xf32>
    tpu.vector_store %arg18[%c0_83, %c0_84, %c0_85], %133 {strides = array<i32>} : memref<10x10x128xf32, #tpu.memory_space<vmem>>, vector<10x10x128xf32>,
    %135 = vector.shape_cast %129 : vector<64x128xf32> to vector<8x8x128xf32>
    %c1_86 = arith.constant 1 : index
    %c1_87 = arith.constant 1 : index
    %c0_88 = arith.constant 0 : index
    %136 = vector.load %arg18[%c1_86, %c1_87, %c0_88] : memref<10x10x128xf32, #tpu.memory_space<vmem>>, vector<8x8x128xf32>
    tpu.vector_store %arg18[%c1_86, %c1_87, %c0_88], %135 {strides = array<i32>} : memref<10x10x128xf32, #tpu.memory_space<vmem>>, vector<8x8x128xf32>,
    %c0_89 = arith.constant 0 : index
    %c0_90 = arith.constant 0 : index
    %c0_91 = arith.constant 0 : index
    %137 = tpu.strided_load %arg18[%c0_89, %c0_90, %c0_91] {strides = array<i32: 2, 2, 1>} : memref<10x10x128xf32, #tpu.memory_space<vmem>>, vector<5x5x128xf32>
    %138 = arith.truncf %137 : vector<5x5x128xf32> to vector<5x5x128xbf16>
    %c0_92 = arith.constant 0 : index
    %c1_93 = arith.constant 1 : index
    %c0_94 = arith.constant 0 : index
    %139 = tpu.strided_load %arg18[%c0_92, %c1_93, %c0_94] {strides = array<i32: 2, 2, 1>} : memref<10x10x128xf32, #tpu.memory_space<vmem>>, vector<5x5x128xf32>
    %140 = arith.truncf %139 : vector<5x5x128xf32> to vector<5x5x128xbf16>
    %c1_95 = arith.constant 1 : index
    %c0_96 = arith.constant 0 : index
    %c0_97 = arith.constant 0 : index
    %141 = tpu.strided_load %arg18[%c1_95, %c0_96, %c0_97] {strides = array<i32: 2, 2, 1>} : memref<10x10x128xf32, #tpu.memory_space<vmem>>, vector<5x5x128xf32>
    %142 = arith.truncf %141 : vector<5x5x128xf32> to vector<5x5x128xbf16>
    %c1_98 = arith.constant 1 : index
    %c1_99 = arith.constant 1 : index
    %c0_100 = arith.constant 0 : index
    %143 = tpu.strided_load %arg18[%c1_98, %c1_99, %c0_100] {strides = array<i32: 2, 2, 1>} : memref<10x10x128xf32, #tpu.memory_space<vmem>>, vector<5x5x128xf32>
    %144 = arith.truncf %143 : vector<5x5x128xf32> to vector<5x5x128xbf16>
    %145 = vector.extract_strided_slice %138 {offsets = [0, 0, 0], sizes = [4, 4, 128], strides = [1, 1, 1]} : vector<5x5x128xbf16> to vector<4x4x128xbf16>
    %146 = vector.shape_cast %145 : vector<4x4x128xbf16> to vector<16x128xbf16>
    %147 = vector.extract_strided_slice %140 {offsets = [0, 0, 0], sizes = [4, 4, 128], strides = [1, 1, 1]} : vector<5x5x128xbf16> to vector<4x4x128xbf16>
    %148 = vector.shape_cast %147 : vector<4x4x128xbf16> to vector<16x128xbf16>
    %149 = vector.extract_strided_slice %138 {offsets = [0, 1, 0], sizes = [4, 4, 128], strides = [1, 1, 1]} : vector<5x5x128xbf16> to vector<4x4x128xbf16>
    %150 = vector.shape_cast %149 : vector<4x4x128xbf16> to vector<16x128xbf16>
    %151 = vector.extract_strided_slice %142 {offsets = [0, 0, 0], sizes = [4, 4, 128], strides = [1, 1, 1]} : vector<5x5x128xbf16> to vector<4x4x128xbf16>
    %152 = vector.shape_cast %151 : vector<4x4x128xbf16> to vector<16x128xbf16>
    %153 = vector.extract_strided_slice %144 {offsets = [0, 0, 0], sizes = [4, 4, 128], strides = [1, 1, 1]} : vector<5x5x128xbf16> to vector<4x4x128xbf16>
    %154 = vector.shape_cast %153 : vector<4x4x128xbf16> to vector<16x128xbf16>
    %155 = vector.extract_strided_slice %142 {offsets = [0, 1, 0], sizes = [4, 4, 128], strides = [1, 1, 1]} : vector<5x5x128xbf16> to vector<4x4x128xbf16>
    %156 = vector.shape_cast %155 : vector<4x4x128xbf16> to vector<16x128xbf16>
    %157 = vector.extract_strided_slice %138 {offsets = [1, 0, 0], sizes = [4, 4, 128], strides = [1, 1, 1]} : vector<5x5x128xbf16> to vector<4x4x128xbf16>
    %158 = vector.shape_cast %157 : vector<4x4x128xbf16> to vector<16x128xbf16>
    %159 = vector.extract_strided_slice %140 {offsets = [1, 0, 0], sizes = [4, 4, 128], strides = [1, 1, 1]} : vector<5x5x128xbf16> to vector<4x4x128xbf16>
    %160 = vector.shape_cast %159 : vector<4x4x128xbf16> to vector<16x128xbf16>
    %161 = vector.extract_strided_slice %138 {offsets = [1, 1, 0], sizes = [4, 4, 128], strides = [1, 1, 1]} : vector<5x5x128xbf16> to vector<4x4x128xbf16>
    %162 = vector.shape_cast %161 : vector<4x4x128xbf16> to vector<16x128xbf16>
    %163 = tpu.concatenate %146, %148 in 1 : vector<16x128xbf16>, vector<16x128xbf16> -> vector<16x256xbf16>
    %c0_101 = arith.constant 0 : index
    %c0_102 = arith.constant 0 : index
    %164 = vector.load %arg8[%c0_101, %c0_102] : memref<1152x128xbf16, #tpu.memory_space<vmem>>, vector<256x128xbf16>
    %cst_103 = arith.constant dense<0.000000e+00> : vector<16x128xf32>
    %165 = tpu.matmul %163, %164, %cst_103 {dimension_numbers = #tpu.dot_dimension_numbers<[1], [0], [0], [1], [0, 0, 1, 1], [], []>} : vector<16x256xbf16>, vector<256x128xbf16>, vector<16x128xf32> -> vector<16x128xf32>
    %166 = tpu.concatenate %150, %152 in 1 : vector<16x128xbf16>, vector<16x128xbf16> -> vector<16x256xbf16>
    %c256_104 = arith.constant 256 : index
    %c0_105 = arith.constant 0 : index
    %167 = vector.load %arg8[%c256_104, %c0_105] : memref<1152x128xbf16, #tpu.memory_space<vmem>>, vector<256x128xbf16>
    %cst_106 = arith.constant dense<0.000000e+00> : vector<16x128xf32>
    %168 = tpu.matmul %166, %167, %cst_106 {dimension_numbers = #tpu.dot_dimension_numbers<[1], [0], [0], [1], [0, 0, 1, 1], [], []>} : vector<16x256xbf16>, vector<256x128xbf16>, vector<16x128xf32> -> vector<16x128xf32>
    %169 = arith.addf %165, %168 : vector<16x128xf32>
    %170 = tpu.concatenate %154, %156 in 1 : vector<16x128xbf16>, vector<16x128xbf16> -> vector<16x256xbf16>
    %c512_107 = arith.constant 512 : index
    %c0_108 = arith.constant 0 : index
    %171 = vector.load %arg8[%c512_107, %c0_108] : memref<1152x128xbf16, #tpu.memory_space<vmem>>, vector<256x128xbf16>
    %cst_109 = arith.constant dense<0.000000e+00> : vector<16x128xf32>
    %172 = tpu.matmul %170, %171, %cst_109 {dimension_numbers = #tpu.dot_dimension_numbers<[1], [0], [0], [1], [0, 0, 1, 1], [], []>} : vector<16x256xbf16>, vector<256x128xbf16>, vector<16x128xf32> -> vector<16x128xf32>
    %173 = arith.addf %169, %172 : vector<16x128xf32>
    %174 = tpu.concatenate %158, %160 in 1 : vector<16x128xbf16>, vector<16x128xbf16> -> vector<16x256xbf16>
    %c768_110 = arith.constant 768 : index
    %c0_111 = arith.constant 0 : index
    %175 = vector.load %arg8[%c768_110, %c0_111] : memref<1152x128xbf16, #tpu.memory_space<vmem>>, vector<256x128xbf16>
    %cst_112 = arith.constant dense<0.000000e+00> : vector<16x128xf32>
    %176 = tpu.matmul %174, %175, %cst_112 {dimension_numbers = #tpu.dot_dimension_numbers<[1], [0], [0], [1], [0, 0, 1, 1], [], []>} : vector<16x256xbf16>, vector<256x128xbf16>, vector<16x128xf32> -> vector<16x128xf32>
    %177 = arith.addf %173, %176 : vector<16x128xf32>
    %c1024_113 = arith.constant 1024 : index
    %c0_114 = arith.constant 0 : index
    %178 = vector.load %arg8[%c1024_113, %c0_114] : memref<1152x128xbf16, #tpu.memory_space<vmem>>, vector<128x128xbf16>
    %cst_115 = arith.constant dense<0.000000e+00> : vector<16x128xf32>
    %179 = tpu.matmul %162, %178, %cst_115 {dimension_numbers = #tpu.dot_dimension_numbers<[1], [0], [0], [1], [0, 0, 1, 1], [], []>} : vector<16x128xbf16>, vector<128x128xbf16>, vector<16x128xf32> -> vector<16x128xf32>
    %180 = arith.addf %177, %179 : vector<16x128xf32>
    %c0_116 = arith.constant 0 : index
    %c0_117 = arith.constant 0 : index
    %181 = vector.load %arg9[%c0_116, %c0_117] : memref<1x128xf32, #tpu.memory_space<vmem>>, vector<1x128xf32>
    %182 = vector.broadcast %181 : vector<1x128xf32> to vector<16x128xf32>
    %183 = arith.addf %180, %182 : vector<16x128xf32>
    %184 = arith.negf %183 : vector<16x128xf32>
    %185 = math.exp %184 : vector<16x128xf32>
    %cst_118 = arith.constant 1.000000e+00 : f32
    %186 = vector.broadcast %cst_118 : f32 to vector<16x128xf32>
    %187 = arith.addf %186, %185 : vector<16x128xf32>
    %188 = arith.divf %186, %187 : vector<16x128xf32>
    %189 = arith.mulf %183, %188 : vector<16x128xf32>
    %c0_119 = arith.constant 0 : index
    %c0_120 = arith.constant 0 : index
    %c0_121 = arith.constant 0 : index
    %190 = vector.load %arg14[%c0_119, %c0_120, %c0_121] : memref<1x16x128xf32, #tpu.memory_space<vmem>>, vector<1x16x128xf32>
    %191 = vector.shape_cast %190 : vector<1x16x128xf32> to vector<16x128xf32>
    %192 = vector.shape_cast %189 : vector<16x128xf32> to vector<1x16x128xf32>
    tpu.vector_store %arg14[%c0_119, %c0_120, %c0_121], %192 {strides = array<i32>} : memref<1x16x128xf32, #tpu.memory_space<vmem>>, vector<1x16x128xf32>,
    %cst_122 = arith.constant 0.000000e+00 : f32
    %193 = vector.broadcast %cst_122 : f32 to vector<6x6x128xf32>
    %c0_123 = arith.constant 0 : index
    %c0_124 = arith.constant 0 : index
    %c0_125 = arith.constant 0 : index
    %194 = vector.load %arg19[%c0_123, %c0_124, %c0_125] : memref<6x6x128xf32, #tpu.memory_space<vmem>>, vector<6x6x128xf32>
    tpu.vector_store %arg19[%c0_123, %c0_124, %c0_125], %193 {strides = array<i32>} : memref<6x6x128xf32, #tpu.memory_space<vmem>>, vector<6x6x128xf32>,
    %195 = vector.shape_cast %189 : vector<16x128xf32> to vector<4x4x128xf32>
    %c1_126 = arith.constant 1 : index
    %c1_127 = arith.constant 1 : index
    %c0_128 = arith.constant 0 : index
    %196 = vector.load %arg19[%c1_126, %c1_127, %c0_128] : memref<6x6x128xf32, #tpu.memory_space<vmem>>, vector<4x4x128xf32>
    tpu.vector_store %arg19[%c1_126, %c1_127, %c0_128], %195 {strides = array<i32>} : memref<6x6x128xf32, #tpu.memory_space<vmem>>, vector<4x4x128xf32>,
    %c0_129 = arith.constant 0 : index
    %c0_130 = arith.constant 0 : index
    %c0_131 = arith.constant 0 : index
    %197 = tpu.strided_load %arg19[%c0_129, %c0_130, %c0_131] {strides = array<i32: 2, 2, 1>} : memref<6x6x128xf32, #tpu.memory_space<vmem>>, vector<3x3x128xf32>
    %198 = arith.truncf %197 : vector<3x3x128xf32> to vector<3x3x128xbf16>
    %c0_132 = arith.constant 0 : index
    %c1_133 = arith.constant 1 : index
    %c0_134 = arith.constant 0 : index
    %199 = tpu.strided_load %arg19[%c0_132, %c1_133, %c0_134] {strides = array<i32: 2, 2, 1>} : memref<6x6x128xf32, #tpu.memory_space<vmem>>, vector<3x3x128xf32>
    %200 = arith.truncf %199 : vector<3x3x128xf32> to vector<3x3x128xbf16>
    %c1_135 = arith.constant 1 : index
    %c0_136 = arith.constant 0 : index
    %c0_137 = arith.constant 0 : index
    %201 = tpu.strided_load %arg19[%c1_135, %c0_136, %c0_137] {strides = array<i32: 2, 2, 1>} : memref<6x6x128xf32, #tpu.memory_space<vmem>>, vector<3x3x128xf32>
    %202 = arith.truncf %201 : vector<3x3x128xf32> to vector<3x3x128xbf16>
    %c1_138 = arith.constant 1 : index
    %c1_139 = arith.constant 1 : index
    %c0_140 = arith.constant 0 : index
    %203 = tpu.strided_load %arg19[%c1_138, %c1_139, %c0_140] {strides = array<i32: 2, 2, 1>} : memref<6x6x128xf32, #tpu.memory_space<vmem>>, vector<3x3x128xf32>
    %204 = arith.truncf %203 : vector<3x3x128xf32> to vector<3x3x128xbf16>
    %205 = vector.extract_strided_slice %198 {offsets = [0, 0, 0], sizes = [2, 2, 128], strides = [1, 1, 1]} : vector<3x3x128xbf16> to vector<2x2x128xbf16>
    %206 = vector.shape_cast %205 : vector<2x2x128xbf16> to vector<4x128xbf16>
    %207 = vector.extract_strided_slice %200 {offsets = [0, 0, 0], sizes = [2, 2, 128], strides = [1, 1, 1]} : vector<3x3x128xbf16> to vector<2x2x128xbf16>
    %208 = vector.shape_cast %207 : vector<2x2x128xbf16> to vector<4x128xbf16>
    %209 = vector.extract_strided_slice %198 {offsets = [0, 1, 0], sizes = [2, 2, 128], strides = [1, 1, 1]} : vector<3x3x128xbf16> to vector<2x2x128xbf16>
    %210 = vector.shape_cast %209 : vector<2x2x128xbf16> to vector<4x128xbf16>
    %211 = vector.extract_strided_slice %202 {offsets = [0, 0, 0], sizes = [2, 2, 128], strides = [1, 1, 1]} : vector<3x3x128xbf16> to vector<2x2x128xbf16>
    %212 = vector.shape_cast %211 : vector<2x2x128xbf16> to vector<4x128xbf16>
    %213 = vector.extract_strided_slice %204 {offsets = [0, 0, 0], sizes = [2, 2, 128], strides = [1, 1, 1]} : vector<3x3x128xbf16> to vector<2x2x128xbf16>
    %214 = vector.shape_cast %213 : vector<2x2x128xbf16> to vector<4x128xbf16>
    %215 = vector.extract_strided_slice %202 {offsets = [0, 1, 0], sizes = [2, 2, 128], strides = [1, 1, 1]} : vector<3x3x128xbf16> to vector<2x2x128xbf16>
    %216 = vector.shape_cast %215 : vector<2x2x128xbf16> to vector<4x128xbf16>
    %217 = vector.extract_strided_slice %198 {offsets = [1, 0, 0], sizes = [2, 2, 128], strides = [1, 1, 1]} : vector<3x3x128xbf16> to vector<2x2x128xbf16>
    %218 = vector.shape_cast %217 : vector<2x2x128xbf16> to vector<4x128xbf16>
    %219 = vector.extract_strided_slice %200 {offsets = [1, 0, 0], sizes = [2, 2, 128], strides = [1, 1, 1]} : vector<3x3x128xbf16> to vector<2x2x128xbf16>
    %220 = vector.shape_cast %219 : vector<2x2x128xbf16> to vector<4x128xbf16>
    %221 = vector.extract_strided_slice %198 {offsets = [1, 1, 0], sizes = [2, 2, 128], strides = [1, 1, 1]} : vector<3x3x128xbf16> to vector<2x2x128xbf16>
    %222 = vector.shape_cast %221 : vector<2x2x128xbf16> to vector<4x128xbf16>
    %223 = tpu.concatenate %206, %208 in 1 : vector<4x128xbf16>, vector<4x128xbf16> -> vector<4x256xbf16>
    %c0_141 = arith.constant 0 : index
    %c0_142 = arith.constant 0 : index
    %224 = vector.load %arg10[%c0_141, %c0_142] : memref<1152x384xbf16, #tpu.memory_space<vmem>>, vector<256x384xbf16>
    %cst_143 = arith.constant dense<0.000000e+00> : vector<4x384xf32>
    %225 = tpu.matmul %223, %224, %cst_143 {dimension_numbers = #tpu.dot_dimension_numbers<[1], [0], [0], [1], [0, 0, 1, 1], [], []>} : vector<4x256xbf16>, vector<256x384xbf16>, vector<4x384xf32> -> vector<4x384xf32>
    %226 = tpu.concatenate %210, %212 in 1 : vector<4x128xbf16>, vector<4x128xbf16> -> vector<4x256xbf16>
    %c256_144 = arith.constant 256 : index
    %c0_145 = arith.constant 0 : index
    %227 = vector.load %arg10[%c256_144, %c0_145] : memref<1152x384xbf16, #tpu.memory_space<vmem>>, vector<256x384xbf16>
    %cst_146 = arith.constant dense<0.000000e+00> : vector<4x384xf32>
    %228 = tpu.matmul %226, %227, %cst_146 {dimension_numbers = #tpu.dot_dimension_numbers<[1], [0], [0], [1], [0, 0, 1, 1], [], []>} : vector<4x256xbf16>, vector<256x384xbf16>, vector<4x384xf32> -> vector<4x384xf32>
    %229 = arith.addf %225, %228 : vector<4x384xf32>
    %230 = tpu.concatenate %214, %216 in 1 : vector<4x128xbf16>, vector<4x128xbf16> -> vector<4x256xbf16>
    %c512_147 = arith.constant 512 : index
    %c0_148 = arith.constant 0 : index
    %231 = vector.load %arg10[%c512_147, %c0_148] : memref<1152x384xbf16, #tpu.memory_space<vmem>>, vector<256x384xbf16>
    %cst_149 = arith.constant dense<0.000000e+00> : vector<4x384xf32>
    %232 = tpu.matmul %230, %231, %cst_149 {dimension_numbers = #tpu.dot_dimension_numbers<[1], [0], [0], [1], [0, 0, 1, 1], [], []>} : vector<4x256xbf16>, vector<256x384xbf16>, vector<4x384xf32> -> vector<4x384xf32>
    %233 = arith.addf %229, %232 : vector<4x384xf32>
    %234 = tpu.concatenate %218, %220 in 1 : vector<4x128xbf16>, vector<4x128xbf16> -> vector<4x256xbf16>
    %c768_150 = arith.constant 768 : index
    %c0_151 = arith.constant 0 : index
    %235 = vector.load %arg10[%c768_150, %c0_151] : memref<1152x384xbf16, #tpu.memory_space<vmem>>, vector<256x384xbf16>
    %cst_152 = arith.constant dense<0.000000e+00> : vector<4x384xf32>
    %236 = tpu.matmul %234, %235, %cst_152 {dimension_numbers = #tpu.dot_dimension_numbers<[1], [0], [0], [1], [0, 0, 1, 1], [], []>} : vector<4x256xbf16>, vector<256x384xbf16>, vector<4x384xf32> -> vector<4x384xf32>
    %237 = arith.addf %233, %236 : vector<4x384xf32>
    %c1024_153 = arith.constant 1024 : index
    %c0_154 = arith.constant 0 : index
    %238 = vector.load %arg10[%c1024_153, %c0_154] : memref<1152x384xbf16, #tpu.memory_space<vmem>>, vector<128x384xbf16>
    %cst_155 = arith.constant dense<0.000000e+00> : vector<4x384xf32>
    %239 = tpu.matmul %222, %238, %cst_155 {dimension_numbers = #tpu.dot_dimension_numbers<[1], [0], [0], [1], [0, 0, 1, 1], [], []>} : vector<4x128xbf16>, vector<128x384xbf16>, vector<4x384xf32> -> vector<4x384xf32>
    %240 = arith.addf %237, %239 : vector<4x384xf32>
    %c0_156 = arith.constant 0 : index
    %c0_157 = arith.constant 0 : index
    %241 = vector.load %arg11[%c0_156, %c0_157] : memref<1x384xf32, #tpu.memory_space<vmem>>, vector<1x384xf32>
    %242 = vector.broadcast %241 : vector<1x384xf32> to vector<4x384xf32>
    %243 = arith.addf %240, %242 : vector<4x384xf32>
    %244 = arith.negf %243 : vector<4x384xf32>
    %245 = math.exp %244 : vector<4x384xf32>
    %cst_158 = arith.constant 1.000000e+00 : f32
    %246 = vector.broadcast %cst_158 : f32 to vector<4x384xf32>
    %247 = arith.addf %246, %245 : vector<4x384xf32>
    %248 = arith.divf %246, %247 : vector<4x384xf32>
    %249 = arith.mulf %243, %248 : vector<4x384xf32>
    %c0_159 = arith.constant 0 : index
    %c0_160 = arith.constant 0 : index
    %c0_161 = arith.constant 0 : index
    %250 = vector.load %arg15[%c0_159, %c0_160, %c0_161] : memref<1x4x384xf32, #tpu.memory_space<vmem>>, vector<1x4x384xf32>
    %251 = vector.shape_cast %250 : vector<1x4x384xf32> to vector<4x384xf32>
    %252 = vector.shape_cast %249 : vector<4x384xf32> to vector<1x4x384xf32>
    tpu.vector_store %arg15[%c0_159, %c0_160, %c0_161], %252 {strides = array<i32>} : memref<1x4x384xf32, #tpu.memory_space<vmem>>, vector<1x4x384xf32>,
    return
  }
  func.func @transform_0(%arg0: i32) -> (i32, i32, i32) {
    %c0_i32 = arith.constant 0 : i32
    %c0_i32_0 = arith.constant 0 : i32
    %c0_i32_1 = arith.constant 0 : i32
    return %arg0, %c0_i32, %c0_i32_0 : i32, i32, i32
  }
  func.func @transform_1(%arg0: i32) -> (i32, i32) {
    %c0_i32 = arith.constant 0 : i32
    %c0_i32_0 = arith.constant 0 : i32
    %c0_i32_1 = arith.constant 0 : i32
    return %c0_i32, %c0_i32_0 : i32, i32
  }
  func.func @transform_2(%arg0: i32) -> (i32, i32) {
    %c0_i32 = arith.constant 0 : i32
    %c0_i32_0 = arith.constant 0 : i32
    %c0_i32_1 = arith.constant 0 : i32
    return %c0_i32, %c0_i32_0 : i32, i32
  }
  func.func @transform_3(%arg0: i32) -> (i32, i32) {
    %c0_i32 = arith.constant 0 : i32
    %c0_i32_0 = arith.constant 0 : i32
    %c0_i32_1 = arith.constant 0 : i32
    return %c0_i32, %c0_i32_0 : i32, i32
  }
  func.func @transform_4(%arg0: i32) -> (i32, i32) {
    %c0_i32 = arith.constant 0 : i32
    %c0_i32_0 = arith.constant 0 : i32
    %c0_i32_1 = arith.constant 0 : i32
    return %c0_i32, %c0_i32_0 : i32, i32
  }
  func.func @transform_5(%arg0: i32) -> (i32, i32) {
    %c0_i32 = arith.constant 0 : i32
    %c0_i32_0 = arith.constant 0 : i32
    %c0_i32_1 = arith.constant 0 : i32
    return %c0_i32, %c0_i32_0 : i32, i32
  }
  func.func @transform_6(%arg0: i32) -> (i32, i32) {
    %c0_i32 = arith.constant 0 : i32
    %c0_i32_0 = arith.constant 0 : i32
    %c0_i32_1 = arith.constant 0 : i32
    return %c0_i32, %c0_i32_0 : i32, i32
  }
  func.func @transform_7(%arg0: i32) -> (i32, i32) {
    %c0_i32 = arith.constant 0 : i32
    %c0_i32_0 = arith.constant 0 : i32
    %c0_i32_1 = arith.constant 0 : i32
    return %c0_i32, %c0_i32_0 : i32, i32
  }
  func.func @transform_8(%arg0: i32) -> (i32, i32) {
    %c0_i32 = arith.constant 0 : i32
    %c0_i32_0 = arith.constant 0 : i32
    %c0_i32_1 = arith.constant 0 : i32
    return %c0_i32, %c0_i32_0 : i32, i32
  }
  func.func @transform_9(%arg0: i32) -> (i32, i32) {
    %c0_i32 = arith.constant 0 : i32
    %c0_i32_0 = arith.constant 0 : i32
    %c0_i32_1 = arith.constant 0 : i32
    return %c0_i32, %c0_i32_0 : i32, i32
  }
  func.func @transform_10(%arg0: i32) -> (i32, i32) {
    %c0_i32 = arith.constant 0 : i32
    %c0_i32_0 = arith.constant 0 : i32
    %c0_i32_1 = arith.constant 0 : i32
    return %c0_i32, %c0_i32_0 : i32, i32
  }
  func.func @transform_11(%arg0: i32) -> (i32, i32, i32) {
    %c0_i32 = arith.constant 0 : i32
    %c0_i32_0 = arith.constant 0 : i32
    %c0_i32_1 = arith.constant 0 : i32
    return %arg0, %c0_i32, %c0_i32_0 : i32, i32, i32
  }
  func.func @transform_12(%arg0: i32) -> (i32, i32, i32) {
    %c0_i32 = arith.constant 0 : i32
    %c0_i32_0 = arith.constant 0 : i32
    %c0_i32_1 = arith.constant 0 : i32
    return %arg0, %c0_i32, %c0_i32_0 : i32, i32, i32
  }
  func.func @transform_13(%arg0: i32) -> (i32, i32, i32) {
    %c0_i32 = arith.constant 0 : i32
    %c0_i32_0 = arith.constant 0 : i32
    %c0_i32_1 = arith.constant 0 : i32
    return %arg0, %c0_i32, %c0_i32_0 : i32, i32, i32
  }
  func.func @transform_14(%arg0: i32) -> (i32, i32, i32) {
    %c0_i32 = arith.constant 0 : i32
    %c0_i32_0 = arith.constant 0 : i32
    %c0_i32_1 = arith.constant 0 : i32
    return %arg0, %c0_i32, %c0_i32_0 : i32, i32, i32
  }
}

</mosaic_0001>

<bundles_post_ra>
// kernel: a_call__.1
= control target key start
LH: loop header
LB: loop body
LE: loop exit
PB: predicated region body
PF: predicated region fallthrough
CT: control target
= control target key end

     0   :  { %s14499_s29 = smov 0   ;;  %s18430_s0 = inlined_call_operand.vmem [shape: bf16[2,1024,32], index: 0, kind: input, shape index: {}]   ;;  %s18431_s1 = inlined_call_operand.vmem [shape: bf16[32,128], index: 1, kind: input, shape index: {}]   ;;  %s18432_s2 = inlined_call_operand.vmem [shape: f32[1,128], index: 2, kind: input, shape index: {}]   ;;  %s18433_s3 = inlined_call_operand.vmem [shape: bf16[1152,128], index: 3, kind: input, shape index: {}]   ;;  %s18434_s4 = inlined_call_operand.vmem [shape: f32[1,128], index: 4, kind: input, shape index: {}]   ;;  %s18435_s5 = inlined_call_operand.vmem [shape: bf16[1152,128], index: 5, kind: input, shape index: {}]   ;;  %s18436_s6 = inlined_call_operand.vmem [shape: f32[1,128], index: 6, kind: input, shape index: {}]   ;;  %s18437_s7 = inlined_call_operand.vmem [shape: bf16[1152,128], index: 7, kind: input, shape index: {}]   ;;  %s18438_s8 = inlined_call_operand.vmem [shape: f32[1,128], index: 8, kind: input, shape index: {}]   ;;  %s18439_s9 = inlined_call_operand.vmem [shape: bf16[1152,384], index: 9, kind: input, shape index: {}]   ;;  %s18440_s10 = inlined_call_operand.vmem [shape: f32[1,384], index: 10, kind: input, shape index: {}]   ;;  %s18441_s11 = inlined_call_operand.vmem [shape: f32[2,256,128], index: 11, kind: output, shape index: {0}]   ;;  %s18442_s12 = inlined_call_operand.vmem [shape: f32[2,64,128], index: 12, kind: output, shape index: {1}]   ;;  %s18443_s13 = inlined_call_operand.vmem [shape: f32[2,16,128], index: 13, kind: output, shape index: {2}]   ;;  %s18444_s14 = inlined_call_operand.vmem [shape: f32[2,4,384], index: 14, kind: output, shape index: {3}]  }
   0x1 LB: > { %s11069_s30 = sadd.s32 4294967295, %s14417_s29   ;;  %p11073_p0 = scmp.ge.s32.totalorder %s14417_s29, 1  ;;  %s14417_s29 = sphi %s14499_s29, %s25_s29  }
   0x2   : > { %p419_p1 = scmp.lt.s32.totalorder %s14417_s29, 3 }
   0x4   : > { %p420_p2 = pnand %p11073_p0, %p419_p1 }
   0x6   : > { %423 = sbr.rel (%p420_p2) target bundleno = 2152 (0x868), region = 64 }
   0xd   : > { %v13141_v0 = vld [vmem:[%s18431_s1] sm:$0xff]   ;;  %p480_p3 = scmp.lt.s32.totalorder %s11069_s30, 1  ;;  %v13142_v1 = vld [vmem:[%s18431_s1 + $0x8] sm:$0xff]   ;;  %vm977_vm0 = vcmask 261120   ;;  %v13212_v41 = vld [vmem:[%s18433_s3 + $0x150] sm:$0xff]   ;;  %v14419_v45 = vmov 0.0  }
   0xe   : > { %12883 = vmatprep.subr.bf16.mxu0 %v13141_v0  ;;  %v13202_v31 = vld [vmem:[%s18433_s3 + $0x140] sm:$0xff]   ;;  %v13207_v36 = vld [vmem:[%s18433_s3 + $0x148] sm:$0xff]   ;;  %v14611_v42 = vld [vmem:[%s18433_s3 + $0xd0] sm:$0xff]   ;;  %2618 = vst [vmem:[#allocation2 + $0x38] sm:$0xff] %v14419_v45  ;;  %vm3337_vm1 = vsmask.f32 7424 }
   0xf   : > { %s18573_s30 = smov (!%p480_p3, %s11069_s30), 1  ;;  %12884 = vmatpush3.bf16.msra.mxu0 %v13141_v0  ;;  %v13204_v32 = vld [vmem:[%s18433_s3 + $0xc0] sm:$0xff]   ;;  %v13208_v38 = vld [vmem:[%s18433_s3 + $0xc8] sm:$0xff]   ;;  %v14616_v43 = vld [vmem:[%s18433_s3 + $0x110] sm:$0xff]   ;;  %2619 = vst [vmem:[#allocation2 + $0x40] sm:$0xff] %v14419_v45  ;;  %vm14421_vm12 = vmmov 0  }
  0x10   : > { %12885 = vmatprep.subr.bf16.mxu0 %v13142_v1  ;;  %s11917_s19 = sshll.u32 %s18573_s30, 9  ;;  %v13205_v33 = vld [vmem:[%s18433_s3 + $0x100] sm:$0xff]   ;;  %12045 = vmatprep.subr.bf16.mxu1 %v13204_v32  ;;  %v13209_v39 = vld [vmem:[%s18433_s3 + $0x108] sm:$0xff]   ;;  %v14622_v44 = vld [vmem:[%s18433_s3 + $0x90] sm:$0xff]   ;;  %2611 = vst [vmem:[#allocation2] sm:$0xff] %v14419_v45  ;;  %s11918_s21 = sshll.u32 %s18573_s30, 8 }
  0x11   : > { %s14519_s22 = scalar_lea.vmem %s18430_s0, %s11917_s19  ;;  %v13206_v34 = vld [vmem:[%s18433_s3 + $0x80] sm:$0xff]   ;;  %v13210_v40 = vld [vmem:[%s18433_s3 + $0x88] sm:$0xff]   ;;  %2612 = vst [vmem:[#allocation2 + $0x8] sm:$0xff] %v14419_v45  ;;  %2613 = vst [vmem:[#allocation2 + $0x10] sm:$0xff] %v14419_v45  ;;  %s16680_s28 = scalar_lea.vmem %s18441_s11, %s11918_s21  ;;  %vm5834_vm2 = vsmask.f32 3328 }
  0x12   : > { %v13143_v2 = vld [vmem:[%s14519_s22] sm:$0xff]   ;;  %v13144_v3 = vld [vmem:[%s14519_s22 + $0x8] sm:$0xff]   ;;  %v13145_v4 = vld [vmem:[%s14519_s22 + $0x10] sm:$0xff]   ;;  %12046 = vmatpush3.bf16.msra.mxu1 %v13206_v34  ;;  %2614 = vst [vmem:[#allocation2 + $0x18] sm:$0xff] %v14419_v45  ;;  %vm5835_vm3 = vsmask.f32 7440 }
  0x13   : > { %12886 = vmatpush3.bf16.msra.mxu0 %v13142_v1  ;;  %12887 = vmatprep.mubr.msk.bf16.mxu0 %vm977_vm0, %v13143_v2  ;;  %v13146_v5 = vld [vmem:[%s14519_s22 + $0x18] sm:$0xff]   ;;  %v13147_v6 = vld [vmem:[%s14519_s22 + $0x20] sm:$0xff]   ;;  %v13148_v7 = vld [vmem:[%s14519_s22 + $0x28] sm:$0xff]   ;;  %2615 = vst [vmem:[#allocation2 + $0x20] sm:$0x3] %v14419_v45  ;;  %s11919_s25 = sshll.u32 %s18573_s30, 6 }
  0x14   : > { %v13149_v8 = vld [vmem:[%s14519_s22 + $0x30] sm:$0xff]   ;;  %v13150_v9 = vld [vmem:[%s14519_s22 + $0x38] sm:$0xff]   ;;  %v13151_v10 = vld [vmem:[%s14519_s22 + $0x40] sm:$0xff]   ;;  %12269 = vmatprep.subr.bf16.mxu0 %v13202_v31  ;;  %12047 = vmatprep.subr.bf16.mxu1 %v13208_v38  ;;  %2616 = vst [vmem:[#allocation2 + $0x28] sm:$0xff] %v14419_v45  ;;  %s17400_s15 = scalar_lea.vmem %s18442_s12, %s11919_s25  ;;  %vm7364_vm5 = vsmask.f32 1280 }
  0x15   : > { %v13152_v11 = vld [vmem:[%s14519_s22 + $0x48] sm:$0xff]   ;;  %v13153_v12 = vld [vmem:[%s14519_s22 + $0x50] sm:$0xff]   ;;  %v13154_v13 = vld [vmem:[%s14519_s22 + $0x58] sm:$0xff]   ;;  %2617 = vst [vmem:[#allocation2 + $0x30] sm:$0xff] %v14419_v45  ;;  %vm7365_vm6 = vsmask.f32 3336 }
  0x16   : > { %12888 = vmatmul.mubr.msk.bf16.vlgmr.msra.gmra.mrb[0].mxu0 %vm977_vm0, %v13144_v3  ;;  %v13155_v14 = vld [vmem:[%s14519_s22 + $0x60] sm:$0xff]   ;;  %v13156_v15 = vld [vmem:[%s14519_s22 + $0x68] sm:$0xff]   ;;  %v13157_v16 = vld [vmem:[%s14519_s22 + $0x70] sm:$0xff]   ;;  %12048 = vmatpush3.bf16.msra.mxu1 %v13210_v40  ;;  %2620 = vst [vmem:[#allocation2 + $0x48] sm:$0x3] %v14419_v45  ;;  %s11920_s25 = sshll.u32 %s18573_s30, 4 }
  0x17   : > { %12891 = vmatprep.mubr.msk.bf16.mxu0 %vm977_vm0, %v13145_v4  ;;  %v13158_v17 = vld [vmem:[%s14519_s22 + $0x78] sm:$0xff]   ;;  %v13159_v18 = vld [vmem:[%s14519_s22 + $0x80] sm:$0xff]   ;;  %v13160_v19 = vld [vmem:[%s14519_s22 + $0x88] sm:$0xff]   ;;  %12270 = vmatpush3.bf16.msra.mxu0 %v13205_v33  ;;  %2621 = vst [vmem:[#allocation2 + $0x50] sm:$0xff] %v14419_v45  ;;  %vm7367_vm7 = vsmask.f32 5392 }
  0x18   : > { %v13161_v20 = vld [vmem:[%s14519_s22 + $0x90] sm:$0xff]   ;;  %v13162_v21 = vld [vmem:[%s14519_s22 + $0x98] sm:$0xff]   ;;  %v13163_v22 = vld [vmem:[%s14519_s22 + $0xa0] sm:$0xff]   ;;  %12271 = vmatprep.subr.bf16.mxu0 %v13207_v36  ;;  %2622 = vst [vmem:[#allocation2 + $0x58] sm:$0xff] %v14419_v45  ;;  %12049 = vmatprep.subr.bf16.mxu1 %v14611_v42  ;;  %vm7369_vm8 = vsmask.f32 7448 }
  0x19   : > { %v13164_v23 = vld [vmem:[%s14519_s22 + $0xa8] sm:$0xff]   ;;  %v13165_v24 = vld [vmem:[%s14519_s22 + $0xb0] sm:$0xff]   ;;  %v13166_v25 = vld [vmem:[%s14519_s22 + $0xb8] sm:$0xff]   ;;  %2623 = vst [vmem:[#allocation2 + $0x60] sm:$0xff] %v14419_v45  ;;  %vm8616_vm13 = vsmask.f32 256 }
  0x1a   : > { %v13167_v26 = vld [vmem:[%s14519_s22 + $0xc0] sm:$0xff]   ;;  %v13168_v27 = vld [vmem:[%s14519_s22 + $0xc8] sm:$0xff]   ;;  %v13169_v28 = vld [vmem:[%s14519_s22 + $0xd0] sm:$0xff]   ;;  %2624 = vst [vmem:[#allocation2 + $0x68] sm:$0xff] %v14419_v45  ;;  %12050 = vmatpush3.bf16.msra.mxu1 %v14622_v44  ;;  %vm8617_vm14 = vsmask.f32 1284 }
  0x1b   : > { %v13170_v29 = vld [vmem:[%s14519_s22 + $0xd8] sm:$0xff]   ;;  %v13171_v30 = vld [vmem:[%s14519_s22 + $0xe0] sm:$0xff]   ;;  %v13172_v35 = vld [vmem:[%s14519_s22 + $0xe8] sm:$0xff]   ;;  %12272 = vmatpush3.bf16.msra.mxu0 %v13209_v39  ;;  %2625 = vst [vmem:[#allocation2 + $0x70] sm:$0x3] %v14419_v45  ;;  %s13127_s27 = smul.u32 12, %s18573_s30 }
  0x1c   : > { %v13173_v37 = vld [vmem:[%s14519_s22 + $0xf0] sm:$0xff]   ;;  %12273 = vmatprep.subr.bf16.mxu0 %v13212_v41  ;;  %2626 = vst [vmem:[#allocation2 + $0x78] sm:$0xff] %v14419_v45  ;;  %2627 = vst [vmem:[#allocation2 + $0x80] sm:$0xff] %v14419_v45  ;;  %v13174_v46 = vld [vmem:[%s14519_s22 + $0xf8] sm:$0xff]  }
  0x1d   : > { %2628 = vst [vmem:[#allocation2 + $0x88] sm:$0xff] %v14419_v45  ;;  %2629 = vst [vmem:[#allocation2 + $0x90] sm:$0xff] %v14419_v45  ;;  %v13175_v47 = vld [vmem:[%s14519_s22 + $0x100] sm:$0xff]   ;;  %v13217_v48 = vld [vmem:[%s18433_s3 + $0x158] sm:$0xff]   ;;  %s504_s17 = scalar_lea.vmem %s18444_s14, %s13127_s27 }
  0x1e   : > { %12892 = vmatmul.mubr.msk.bf16.gmra.mrb[4].mxu0 %vm977_vm0, %v13146_v5  ;;  %2630 = vst [vmem:[#allocation2 + $0x98] sm:$0x3] %v14419_v45  ;;  %2631 = vst [vmem:[#allocation2 + $0xa0] sm:$0xff] %v14419_v45  ;;  %v13218_v49 = vld [vmem:[%s18433_s3 + $0xd8] sm:$0xff]   ;;  %v13221_v52 = vld [vmem:[%s18433_s3 + $0x160] sm:$0xff]  }
  0x1f   : > { %12895 = vmatprep.mubr.msk.bf16.mxu0 %vm977_vm0, %v13147_v6  ;;  %2632 = vst [vmem:[#allocation2 + $0xa8] sm:$0xff] %v14419_v45  ;;  %2633 = vst [vmem:[#allocation2 + $0xb0] sm:$0xff] %v14419_v45  ;;  %12274 = vmatpush3.bf16.msra.mxu0 %v14616_v43  ;;  %v13219_v50 = vld [vmem:[%s18433_s3 + $0x118] sm:$0xff]   ;;  %v13222_v53 = vld [vmem:[%s18433_s3 + $0xe0] sm:$0xff]  }
  0x20   : > { %2634 = vst [vmem:[#allocation2 + $0xb8] sm:$0xff] %v14419_v45  ;;  %2635 = vst [vmem:[#allocation2 + $0xc0] sm:$0x3] %v14419_v45  ;;  %12275 = vmatprep.subr.bf16.mxu0 %v13217_v48  ;;  %v13220_v51 = vld [vmem:[%s18433_s3 + $0x98] sm:$0xff]   ;;  %12051 = vmatprep.subr.bf16.mxu1 %v13218_v49  ;;  %v13223_v54 = vld [vmem:[%s18433_s3 + $0x120] sm:$0xff]  }
  0x21   : > { %2636 = vst [vmem:[#allocation2 + $0xc8] sm:$0xff] %v14419_v45  ;;  %2637 = vst [vmem:[#allocation2 + $0xd0] sm:$0xff] %v14419_v45  ;;  %12052 = vmatpush3.bf16.msra.mxu1 %v13220_v51  ;;  %v13224_v55 = vld [vmem:[%s18433_s3 + $0xa0] sm:$0xff]   ;;  %v13176_v56 = vld [vmem:[%s14519_s22 + $0x108] sm:$0xff]  }
  0x22   : > { %2638 = vst [vmem:[#allocation2 + $0xd8] sm:$0xff] %v14419_v45  ;;  %2639 = vst [vmem:[#allocation2 + $0xe0] sm:$0xff] %v14419_v45  ;;  %12053 = vmatprep.subr.bf16.mxu1 %v13222_v53  ;;  %v13177_v57 = vld [vmem:[%s14519_s22 + $0x110] sm:$0xff]   ;;  %v13225_v58 = vld [vmem:[%s18433_s3 + $0x168] sm:$0xff]  }
  0x23   : > { %2640 = vst [vmem:[#allocation2 + $0xe8] sm:$0x3] %v14419_v45  ;;  %2641 = vst [vmem:[#allocation2 + $0xf0] sm:$0xff] %v14419_v45  ;;  %12276 = vmatpush3.bf16.msra.mxu0 %v13219_v50  ;;  %v13226_v59 = vld [vmem:[%s18433_s3 + $0xe8] sm:$0xff]   ;;  %v13231_v62 = vld [vmem:[%s18433_s3 + $0x170] sm:$0xff]  }
  0x24   : > { %2642 = vst [vmem:[#allocation2 + $0xf8] sm:$0xff] %v14419_v45  ;;  %2643 = vst [vmem:[#allocation2 + $0x100] sm:$0xff] %v14419_v45  ;;  %12277 = vmatprep.subr.bf16.mxu0 %v13221_v52  ;;  %v13227_v60 = vld [vmem:[%s18433_s3 + $0x128] sm:$0xff]   ;;  %v13232_v63 = vld [vmem:[%s18433_s3 + $0xf0] sm:$0xff]  }
  0x25   : > { %2644 = vst [vmem:[#allocation2 + $0x108] sm:$0xff] %v14419_v45  ;;  %2645 = vst [vmem:[#allocation2 + $0x110] sm:$0x3] %v14419_v45  ;;  %12054 = vmatpush3.bf16.msra.mxu1 %v13224_v55  ;;  %v13228_v61 = vld [vmem:[%s18433_s3 + $0xa8] sm:$0xff]   ;;  %v13233_v0 = vld [vmem:[%s18433_s3 + $0x130] sm:$0xff]  }
  0x26   : > { %12896 = vmatmul.mubr.msk.bf16.gmra.mrb[8].mxu0 %vm977_vm0, %v13148_v7  ;;  %2646 = vst [vmem:[#allocation2 + $0x118] sm:$0xff] %v14419_v45  ;;  %2647 = vst [vmem:[#allocation2 + $0x120] sm:$0xff] %v14419_v45  ;;  %12055 = vmatprep.subr.bf16.mxu1 %v13226_v59  ;;  %v13234_v1 = vld [vmem:[%s18433_s3 + $0xb0] sm:$0xff]   ;;  %v13178_v2 = vld [vmem:[%s14519_s22 + $0x118] sm:$0xff]  }
  0x27   : > { %12899 = vmatprep.mubr.msk.bf16.mxu0 %vm977_vm0, %v13149_v8  ;;  %2648 = vst [vmem:[#allocation2 + $0x128] sm:$0xff] %v14419_v45  ;;  %2649 = vst [vmem:[#allocation2 + $0x130] sm:$0xff] %v14419_v45  ;;  %12278 = vmatpush3.bf16.msra.mxu0 %v13223_v54  ;;  %v2910_v3 = vld [vmem:[#allocation2] ss:$2 sm:$0xff]  ;;  %v2912_v4 = vld [vmem:[#allocation2 + $0x10] ss:$2 sm:$0xff] }
  0x28   : > { %2650 = vst [vmem:[#allocation2 + $0x138] sm:$0x3] %v14419_v45  ;;  %2651 = vst [vmem:[#allocation2 + $0x140] sm:$0xff] %v14419_v45  ;;  %12279 = vmatprep.subr.bf16.mxu0 %v13225_v58  ;;  %v13235_v5 = vld [vmem:[%s18433_s3 + $0x178] sm:$0xff]   ;;  %v13179_v6 = vld [vmem:[%s14519_s22 + $0x120] sm:$0xff]  }
  0x29   : > { %2652 = vst [vmem:[#allocation2 + $0x148] sm:$0xff] %v14419_v45  ;;  %2653 = vst [vmem:[#allocation2 + $0x150] sm:$0xff] %v14419_v45  ;;  %12056 = vmatpush3.bf16.msra.mxu1 %v13228_v61  ;;  %v13236_v7 = vld [vmem:[%s18433_s3 + $0xf8] sm:$0xff]   ;;  %v13199_v33 = vld [vmem:[%s14519_s22 + $0x1c0] sm:$0xff]  }
  0x2a   : > { %2654 = vst [vmem:[#allocation2 + $0x158] sm:$0xff] %v14419_v45  ;;  %2655 = vst [vmem:[#allocation2 + $0x160] sm:$0x3] %v14419_v45  ;;  %12057 = vmatprep.subr.bf16.mxu1 %v13232_v63  ;;  %v13237_v8 = vld [vmem:[%s18433_s3 + $0x138] sm:$0xff]   ;;  %v13201_v50 = vld [vmem:[%s14519_s22 + $0x1d0] sm:$0xff]  }
  0x2b   : > { %2656 = vst [vmem:[#allocation2 + $0x168] sm:$0xff] %v14419_v45  ;;  %2657 = vst [vmem:[#allocation2 + $0x170] sm:$0xff] %v14419_v45  ;;  %12280 = vmatpush3.bf16.msra.mxu0 %v13227_v60  ;;  %v13198_v31 = vld [vmem:[%s14519_s22 + $0x1b8] sm:$0xff]  }
  0x2c   : > { %2658 = vst [vmem:[#allocation2 + $0x178] sm:$0xff] %v14419_v45  ;;  %2659 = vst [vmem:[#allocation2 + $0x180] sm:$0xff] %v14419_v45  ;;  %12281 = vmatprep.subr.bf16.mxu0 %v13231_v62 }
  0x2d   : > { %2660 = vst [vmem:[#allocation2 + $0x188] sm:$0x3] %v14419_v45  ;;  %2661 = vst [vmem:[#allocation2 + $0x190] sm:$0xff] %v14419_v45  ;;  %12058 = vmatpush3.bf16.msra.mxu1 %v13234_v1 }
  0x2e   : > { %12900 = vmatmul.mubr.msk.bf16.gmra.mrb[12].mxu0 %vm977_vm0, %v13150_v9  ;;  %2662 = vst [vmem:[#allocation2 + $0x198] sm:$0xff] %v14419_v45  ;;  %2663 = vst [vmem:[#allocation2 + $0x1a0] sm:$0xff] %v14419_v45  ;;  %v13238_v9 = vld [vmem:[%s18433_s3 + $0xb8] sm:$0xff]   ;;  %12059 = vmatprep.subr.bf16.mxu1 %v13236_v7 }
  0x2f   : > { %12903 = vmatprep.mubr.msk.bf16.mxu0 %vm977_vm0, %v13151_v10  ;;  %2664 = vst [vmem:[#allocation2 + $0x1a8] sm:$0xff] %v14419_v45  ;;  %2665 = vst [vmem:[#allocation2 + $0x1b0] sm:$0x3] %v14419_v45  ;;  %12282 = vmatpush3.bf16.msra.mxu0 %v13233_v0  ;;  %v14937_v10 = vpack.c.bf16 %v2912_v4, %v2910_v3  ;;  %v13203_v0 = vld [vmem:[%s14519_s22 + $0x1d8] sm:$0xff]  }
  0x30   : > { %2666 = vst [vmem:[#allocation2 + $0x1b8] sm:$0xff] %v14419_v45  ;;  %2667 = vst [vmem:[#allocation2 + $0x1c0] sm:$0xff] %v14419_v45  ;;  %12283 = vmatprep.subr.bf16.mxu0 %v13235_v5  ;;  %v13211_v5 = vld [vmem:[%s14519_s22 + $0x1e0] sm:$0xff]  }
  0x31   : > { %2668 = vst [vmem:[#allocation2 + $0x1c8] sm:$0xff] %v14419_v45  ;;  %2669 = vst [vmem:[#allocation2 + $0x1d0] sm:$0xff] %v14419_v45  ;;  %12060 = vmatpush3.bf16.msra.mxu1 %v13238_v9 }
  0x32   : > { %2670 = vst [vmem:[#allocation2 + $0x1d8] sm:$0x3] %v14419_v45  ;;  %2671 = vst [vmem:[#allocation2 + $0x1e0] sm:$0xff] %v14419_v45 }
  0x33   : > { %2672 = vst [vmem:[#allocation2 + $0x1e8] sm:$0xff] %v14419_v45  ;;  %2673 = vst [vmem:[#allocation2 + $0x1f0] sm:$0xff] %v14419_v45  ;;  %12284 = vmatpush3.bf16.msra.mxu0 %v13237_v8 }
  0x34   : > { %2674 = vst [vmem:[#allocation2 + $0x1f8] sm:$0xff] %v14419_v45  ;;  %2675 = vst [vmem:[#allocation2 + $0x200] sm:$0x3] %v14419_v45 }
  0x35   : > { %2676 = vst [vmem:[#allocation2 + $0x208] sm:$0xff] %v14419_v45  ;;  %2677 = vst [vmem:[#allocation2 + $0x210] sm:$0xff] %v14419_v45 }
  0x36   : > { %12904 = vmatmul.mubr.msk.bf16.gmra.mrb[16].mxu0 %vm977_vm0, %v13152_v11  ;;  %2678 = vst [vmem:[#allocation2 + $0x218] sm:$0xff] %v14419_v45  ;;  %2679 = vst [vmem:[#allocation2 + $0x220] sm:$0xff] %v14419_v45  ;;  %v13180_v11 = vld [vmem:[%s14519_s22 + $0x128] sm:$0xff]  }
  0x37   : > { %12907 = vmatprep.mubr.msk.bf16.mxu0 %vm977_vm0, %v13153_v12  ;;  %2680 = vst [vmem:[#allocation2 + $0x228] sm:$0x3] %v14419_v45  ;;  %2681 = vst [vmem:[#allocation2 + $0x230] sm:$0xff] %v14419_v45  ;;  %v3341_v12 = vshll.u32 %v14937_v10, 16 }
  0x38   : > { %2682 = vst [vmem:[#allocation2 + $0x238] sm:$0xff] %v14419_v45  ;;  %2683 = vst [vmem:[#allocation2 + $0x240] sm:$0xff] %v14419_v45 }
  0x39   : > { %2684 = vst [vmem:[#allocation2 + $0x248] sm:$0xff] %v14419_v45  ;;  %2685 = vst [vmem:[#allocation2 + $0x250] sm:$0x3] %v14419_v45  ;;  %v15005_v48 = vrot.slane %v3341_v12, 1 }
  0x3a   : > { %2686 = vst [vmem:[#allocation2 + $0x258] sm:$0xff] %v14419_v45  ;;  %2687 = vst [vmem:[#allocation2 + $0x260] sm:$0xff] %v14419_v45 }
  0x3b   : > { %2688 = vst [vmem:[#allocation2 + $0x268] sm:$0xff] %v14419_v45  ;;  %2689 = vst [vmem:[#allocation2 + $0x270] sm:$0xff] %v14419_v45 }
  0x3c   : > { %2690 = vst [vmem:[#allocation2 + $0x278] sm:$0x3] %v14419_v45  ;;  %2691 = vst [vmem:[#allocation2 + $0x280] sm:$0xff] %v14419_v45 }
  0x3d   : > { %2692 = vst [vmem:[#allocation2 + $0x288] sm:$0xff] %v14419_v45  ;;  %2693 = vst [vmem:[#allocation2 + $0x290] sm:$0xff] %v14419_v45 }
  0x3e   : > { %12908 = vmatmul.mubr.msk.bf16.gmra.mrb[20].mxu0 %vm977_vm0, %v13154_v13  ;;  %2694 = vst [vmem:[#allocation2 + $0x298] sm:$0xff] %v14419_v45  ;;  %2695 = vst [vmem:[#allocation2 + $0x2a0] sm:$0x3] %v14419_v45  ;;  %v13181_v13 = vld [vmem:[%s14519_s22 + $0x130] sm:$0xff]  }
  0x3f   : > { %12911 = vmatprep.mubr.msk.bf16.mxu0 %vm977_vm0, %v13155_v14  ;;  %2696 = vst [vmem:[#allocation2 + $0x2a8] sm:$0xff] %v14419_v45  ;;  %2697 = vst [vmem:[#allocation2 + $0x2b0] sm:$0xff] %v14419_v45  ;;  %v13182_v14 = vld [vmem:[%s14519_s22 + $0x138] sm:$0xff]  }
  0x40   : > { %2698 = vst [vmem:[#allocation2 + $0x2b8] sm:$0xff] %v14419_v45  ;;  %2699 = vst [vmem:[#allocation2 + $0x2c0] sm:$0xff] %v14419_v45 }
  0x41   : > { %2700 = vst [vmem:[#allocation2 + $0x2c8] sm:$0x3] %v14419_v45  ;;  %2701 = vst [vmem:[#allocation2 + $0x2d0] sm:$0xff] %v14419_v45 }
  0x42   : > { %2702 = vst [vmem:[#allocation2 + $0x2d8] sm:$0xff] %v14419_v45  ;;  %2703 = vst [vmem:[#allocation2 + $0x2e0] sm:$0xff] %v14419_v45 }
  0x43   : > { %2704 = vst [vmem:[#allocation2 + $0x2e8] sm:$0xff] %v14419_v45  ;;  %2705 = vst [vmem:[#allocation2 + $0x2f0] sm:$0x3] %v14419_v45 }
  0x44   : > { %2706 = vst [vmem:[#allocation2 + $0x2f8] sm:$0xff] %v14419_v45  ;;  %2707 = vst [vmem:[#allocation2 + $0x300] sm:$0xff] %v14419_v45 }
  0x45   : > { %2708 = vst [vmem:[#allocation2 + $0x308] sm:$0xff] %v14419_v45  ;;  %2709 = vst [vmem:[#allocation2 + $0x310] sm:$0xff] %v14419_v45 }
  0x46   : > { %12912 = vmatmul.mubr.msk.bf16.gmra.mrb[24].mxu0 %vm977_vm0, %v13156_v15  ;;  %2710 = vst [vmem:[#allocation2 + $0x318] sm:$0x3] %v14419_v45  ;;  %2711 = vst [vmem:[#allocation2 + $0x320] sm:$0xff] %v14419_v45  ;;  %v13183_v15 = vld [vmem:[%s14519_s22 + $0x140] sm:$0xff]  }
  0x47   : > { %12915 = vmatprep.mubr.msk.bf16.mxu0 %vm977_vm0, %v13157_v16  ;;  %2712 = vst [vmem:[#allocation2 + $0x328] sm:$0xff] %v14419_v45  ;;  %2713 = vst [vmem:[#allocation2 + $0x330] sm:$0xff] %v14419_v45  ;;  %v13184_v16 = vld [vmem:[%s14519_s22 + $0x148] sm:$0xff]  }
  0x48   : > { %2714 = vst [vmem:[#allocation2 + $0x338] sm:$0xff] %v14419_v45  ;;  %2715 = vst [vmem:[#allocation2 + $0x340] sm:$0x3] %v14419_v45 }
  0x49   : > { %2716 = vst [vmem:[#allocation2 + $0x348] sm:$0xff] %v14419_v45  ;;  %2717 = vst [vmem:[#allocation2 + $0x350] sm:$0xff] %v14419_v45 }
  0x4a   : > { %2718 = vst [vmem:[#allocation2 + $0x358] sm:$0xff] %v14419_v45  ;;  %2719 = vst [vmem:[#allocation2 + $0x360] sm:$0xff] %v14419_v45 }
  0x4b   : > { %2720 = vst [vmem:[#allocation2 + $0x368] sm:$0x3] %v14419_v45  ;;  %2721 = vst [vmem:[#allocation2 + $0x370] sm:$0xff] %v14419_v45 }
  0x4c   : > { %2722 = vst [vmem:[#allocation2 + $0x378] sm:$0xff] %v14419_v45  ;;  %2723 = vst [vmem:[#allocation2 + $0x380] sm:$0xff] %v14419_v45 }
  0x4d   : > { %2724 = vst [vmem:[#allocation2 + $0x388] sm:$0xff] %v14419_v45  ;;  %2725 = vst [vmem:[#allocation2 + $0x390] sm:$0x3] %v14419_v45 }
  0x4e   : > { %12916 = vmatmul.mubr.msk.bf16.gmra.mrb[28].mxu0 %vm977_vm0, %v13158_v17  ;;  %2726 = vst [vmem:[#allocation2 + $0x398] sm:$0xff] %v14419_v45  ;;  %2727 = vst [vmem:[#allocation2 + $0x3a0] sm:$0xff] %v14419_v45  ;;  %v13185_v17 = vld [vmem:[%s14519_s22 + $0x150] sm:$0xff]  }
  0x4f   : > { %12919 = vmatprep.mubr.msk.bf16.mxu0 %vm977_vm0, %v13159_v18  ;;  %2728 = vst [vmem:[#allocation2 + $0x3a8] sm:$0xff] %v14419_v45  ;;  %2729 = vst [vmem:[#allocation2 + $0x3b0] sm:$0xff] %v14419_v45  ;;  %v13186_v18 = vld [vmem:[%s14519_s22 + $0x158] sm:$0xff]  }
  0x50   : > { %2730 = vst [vmem:[#allocation2 + $0x3b8] sm:$0x3] %v14419_v45  ;;  %2731 = vst [vmem:[#allocation2 + $0x3c0] sm:$0xff] %v14419_v45 }
  0x51   : > { %2732 = vst [vmem:[#allocation2 + $0x3c8] sm:$0xff] %v14419_v45  ;;  %2733 = vst [vmem:[#allocation2 + $0x3d0] sm:$0xff] %v14419_v45 }
  0x52   : > { %2734 = vst [vmem:[#allocation2 + $0x3d8] sm:$0xff] %v14419_v45  ;;  %2735 = vst [vmem:[#allocation2 + $0x3e0] sm:$0x3] %v14419_v45 }
  0x53   : > { %2736 = vst [vmem:[#allocation2 + $0x3e8] sm:$0xff] %v14419_v45  ;;  %2737 = vst [vmem:[#allocation2 + $0x3f0] sm:$0xff] %v14419_v45 }
  0x54   : > { %2738 = vst [vmem:[#allocation2 + $0x3f8] sm:$0xff] %v14419_v45  ;;  %2739 = vst [vmem:[#allocation2 + $0x400] sm:$0xff] %v14419_v45 }
  0x55   : > { %2740 = vst [vmem:[#allocation2 + $0x408] sm:$0x3] %v14419_v45  ;;  %2741 = vst [vmem:[#allocation2 + $0x410] sm:$0xff] %v14419_v45 }
  0x56   : > { %12920 = vmatmul.mubr.msk.bf16.gmra.mrb[32].mxu0 %vm977_vm0, %v13160_v19  ;;  %2742 = vst [vmem:[#allocation2 + $0x418] sm:$0xff] %v14419_v45  ;;  %2743 = vst [vmem:[#allocation2 + $0x420] sm:$0xff] %v14419_v45  ;;  %v13187_v19 = vld [vmem:[%s14519_s22 + $0x160] sm:$0xff]  }
  0x57   : > { %12923 = vmatprep.mubr.msk.bf16.mxu0 %vm977_vm0, %v13161_v20  ;;  %2744 = vst [vmem:[#allocation2 + $0x428] sm:$0xff] %v14419_v45  ;;  %2745 = vst [vmem:[#allocation2 + $0x430] sm:$0x3] %v14419_v45  ;;  %v13188_v20 = vld [vmem:[%s14519_s22 + $0x168] sm:$0xff]  }
  0x58   : > { %2746 = vst [vmem:[#allocation2 + $0x438] sm:$0xff] %v14419_v45  ;;  %2747 = vst [vmem:[#allocation2 + $0x440] sm:$0xff] %v14419_v45 }
  0x59   : > { %2748 = vst [vmem:[#allocation2 + $0x448] sm:$0xff] %v14419_v45  ;;  %2749 = vst [vmem:[#allocation2 + $0x450] sm:$0xff] %v14419_v45 }
  0x5a   : > { %2750 = vst [vmem:[#allocation2 + $0x458] sm:$0x3] %v14419_v45  ;;  %2751 = vst [vmem:[#allocation2 + $0x460] sm:$0xff] %v14419_v45 }
  0x5b   : > { %2752 = vst [vmem:[#allocation2 + $0x468] sm:$0xff] %v14419_v45  ;;  %2753 = vst [vmem:[#allocation2 + $0x470] sm:$0xff] %v14419_v45 }
  0x5c   : > { %2754 = vst [vmem:[#allocation2 + $0x478] sm:$0xff] %v14419_v45  ;;  %2755 = vst [vmem:[#allocation2 + $0x480] sm:$0x3] %v14419_v45 }
  0x5d   : > { %2756 = vst [vmem:[#allocation2 + $0x488] sm:$0xff] %v14419_v45  ;;  %2757 = vst [vmem:[#allocation2 + $0x490] sm:$0xff] %v14419_v45 }
  0x5e   : > { %12924 = vmatmul.mubr.msk.bf16.gmra.mrb[36].mxu0 %vm977_vm0, %v13162_v21  ;;  %2758 = vst [vmem:[#allocation2 + $0x498] sm:$0xff] %v14419_v45  ;;  %2759 = vst [vmem:[#allocation2 + $0x4a0] sm:$0xff] %v14419_v45  ;;  %v13189_v21 = vld [vmem:[%s14519_s22 + $0x170] sm:$0xff]  }
  0x5f   : > { %12927 = vmatprep.mubr.msk.bf16.mxu0 %vm977_vm0, %v13163_v22  ;;  %2760 = vst [vmem:[#allocation2 + $0x4a8] sm:$0x3] %v14419_v45  ;;  %2761 = vst [vmem:[#allocation2 + $0x4b0] sm:$0xff] %v14419_v45  ;;  %v13190_v22 = vld [vmem:[%s14519_s22 + $0x178] sm:$0xff]  }
  0x60   : > { %2762 = vst [vmem:[#allocation2 + $0x4b8] sm:$0xff] %v14419_v45  ;;  %2763 = vst [vmem:[#allocation2 + $0x4c0] sm:$0xff] %v14419_v45 }
  0x61   : > { %2764 = vst [vmem:[#allocation2 + $0x4c8] sm:$0xff] %v14419_v45  ;;  %2765 = vst [vmem:[#allocation2 + $0x4d0] sm:$0x3] %v14419_v45 }
  0x62   : > { %2766 = vst [vmem:[#allocation2 + $0x4d8] sm:$0xff] %v14419_v45  ;;  %2767 = vst [vmem:[#allocation2 + $0x4e0] sm:$0xff] %v14419_v45 }
  0x63   : > { %2768 = vst [vmem:[#allocation2 + $0x4e8] sm:$0xff] %v14419_v45  ;;  %2769 = vst [vmem:[#allocation2 + $0x4f0] sm:$0xff] %v14419_v45 }
  0x64   : > { %2770 = vst [vmem:[#allocation2 + $0x4f8] sm:$0x3] %v14419_v45  ;;  %2771 = vst [vmem:[#allocation2 + $0x500] sm:$0xff] %v14419_v45 }
  0x65   : > { %2772 = vst [vmem:[#allocation2 + $0x508] sm:$0xff] %v14419_v45  ;;  %2773 = vst [vmem:[#allocation2 + $0x510] sm:$0xff] %v14419_v45 }
  0x66   : > { %12928 = vmatmul.mubr.msk.bf16.gmra.mrb[40].mxu0 %vm977_vm0, %v13164_v23  ;;  %2774 = vst [vmem:[#allocation2 + $0x518] sm:$0xff] %v14419_v45  ;;  %2775 = vst [vmem:[#allocation2 + $0x520] sm:$0x3] %v14419_v45  ;;  %v13191_v23 = vld [vmem:[%s14519_s22 + $0x180] sm:$0xff]  }
  0x67   : > { %12931 = vmatprep.mubr.msk.bf16.mxu0 %vm977_vm0, %v13165_v24  ;;  %5539 = vst [vmem:[#allocation3] sm:$0xff] %v14419_v45  ;;  %5540 = vst [vmem:[#allocation3 + $0x8] sm:$0xff] %v14419_v45  ;;  %v13192_v24 = vld [vmem:[%s14519_s22 + $0x188] sm:$0xff]  }
  0x68   : > { %5541 = vst [vmem:[#allocation3 + $0x10] sm:$0x3] %v14419_v45  ;;  %5542 = vst [vmem:[#allocation3 + $0x18] sm:$0xff] %v14419_v45 }
  0x69   : > { %5543 = vst [vmem:[#allocation3 + $0x20] sm:$0xff] %v14419_v45  ;;  %5544 = vst [vmem:[#allocation3 + $0x28] sm:$0x3] %v14419_v45 }
  0x6a   : > { %5545 = vst [vmem:[#allocation3 + $0x30] sm:$0xff] %v14419_v45  ;;  %5546 = vst [vmem:[#allocation3 + $0x38] sm:$0xff] %v14419_v45 }
  0x6b   : > { %5547 = vst [vmem:[#allocation3 + $0x40] sm:$0x3] %v14419_v45  ;;  %5548 = vst [vmem:[#allocation3 + $0x48] sm:$0xff] %v14419_v45 }
  0x6c   : > { %5549 = vst [vmem:[#allocation3 + $0x50] sm:$0xff] %v14419_v45  ;;  %5550 = vst [vmem:[#allocation3 + $0x58] sm:$0x3] %v14419_v45 }
  0x6d   : > { %5551 = vst [vmem:[#allocation3 + $0x60] sm:$0xff] %v14419_v45  ;;  %5552 = vst [vmem:[#allocation3 + $0x68] sm:$0xff] %v14419_v45 }
  0x6e   : > { %12932 = vmatmul.mubr.msk.bf16.gmra.mrb[44].mxu0 %vm977_vm0, %v13166_v25  ;;  %5553 = vst [vmem:[#allocation3 + $0x70] sm:$0x3] %v14419_v45  ;;  %5554 = vst [vmem:[#allocation3 + $0x78] sm:$0xff] %v14419_v45  ;;  %v13193_v25 = vld [vmem:[%s14519_s22 + $0x190] sm:$0xff]  }
  0x6f   : > { %12935 = vmatprep.mubr.msk.bf16.mxu0 %vm977_vm0, %v13167_v26  ;;  %5555 = vst [vmem:[#allocation3 + $0x80] sm:$0xff] %v14419_v45  ;;  %5556 = vst [vmem:[#allocation3 + $0x88] sm:$0x3] %v14419_v45  ;;  %v13194_v26 = vld [vmem:[%s14519_s22 + $0x198] sm:$0xff]  }
  0x70   : > { %5557 = vst [vmem:[#allocation3 + $0x90] sm:$0xff] %v14419_v45  ;;  %5558 = vst [vmem:[#allocation3 + $0x98] sm:$0xff] %v14419_v45 }
  0x71   : > { %5559 = vst [vmem:[#allocation3 + $0xa0] sm:$0x3] %v14419_v45  ;;  %5560 = vst [vmem:[#allocation3 + $0xa8] sm:$0xff] %v14419_v45 }
  0x72   : > { %5561 = vst [vmem:[#allocation3 + $0xb0] sm:$0xff] %v14419_v45  ;;  %5562 = vst [vmem:[#allocation3 + $0xb8] sm:$0x3] %v14419_v45 }
  0x73   : > { %5563 = vst [vmem:[#allocation3 + $0xc0] sm:$0xff] %v14419_v45  ;;  %5564 = vst [vmem:[#allocation3 + $0xc8] sm:$0xff] %v14419_v45 }
  0x74   : > { %5565 = vst [vmem:[#allocation3 + $0xd0] sm:$0x3] %v14419_v45  ;;  %5566 = vst [vmem:[#allocation3 + $0xd8] sm:$0xff] %v14419_v45 }
  0x75   : > { %5567 = vst [vmem:[#allocation3 + $0xe0] sm:$0xff] %v14419_v45  ;;  %5568 = vst [vmem:[#allocation3 + $0xe8] sm:$0x3] %v14419_v45 }
  0x76   : > { %12936 = vmatmul.mubr.msk.bf16.gmra.mrb[48].mxu0 %vm977_vm0, %v13168_v27  ;;  %5569 = vst [vmem:[#allocation3 + $0xf0] sm:$0xff] %v14419_v45  ;;  %5570 = vst [vmem:[#allocation3 + $0xf8] sm:$0xff] %v14419_v45  ;;  %v13195_v27 = vld [vmem:[%s14519_s22 + $0x1a0] sm:$0xff]  }
  0x77   : > { %12939 = vmatprep.mubr.msk.bf16.mxu0 %vm977_vm0, %v13169_v28  ;;  %5571 = vst [vmem:[#allocation3 + $0x100] sm:$0x3] %v14419_v45  ;;  %5572 = vst [vmem:[#allocation3 + $0x108] sm:$0xff] %v14419_v45  ;;  %v13196_v28 = vld [vmem:[%s14519_s22 + $0x1a8] sm:$0xff]  }
  0x78   : > { %5573 = vst [vmem:[#allocation3 + $0x110] sm:$0xff] %v14419_v45  ;;  %5574 = vst [vmem:[#allocation3 + $0x118] sm:$0x3] %v14419_v45 }
  0x79   : > { %5575 = vst [vmem:[#allocation3 + $0x120] sm:$0xff] %v14419_v45  ;;  %5576 = vst [vmem:[#allocation3 + $0x128] sm:$0xff] %v14419_v45 }
  0x7a   : > { %5577 = vst [vmem:[#allocation3 + $0x130] sm:$0x3] %v14419_v45  ;;  %5578 = vst [vmem:[#allocation3 + $0x138] sm:$0xff] %v14419_v45 }
  0x7b   : > { %5579 = vst [vmem:[#allocation3 + $0x140] sm:$0xff] %v14419_v45  ;;  %5580 = vst [vmem:[#allocation3 + $0x148] sm:$0x3] %v14419_v45 }
  0x7c   : > { %5581 = vst [vmem:[#allocation3 + $0x150] sm:$0xff] %v14419_v45  ;;  %5582 = vst [vmem:[#allocation3 + $0x158] sm:$0xff] %v14419_v45 }
  0x7d   : > { %5583 = vst [vmem:[#allocation3 + $0x160] sm:$0x3] %v14419_v45  ;;  %5584 = vst [vmem:[#allocation3 + $0x168] sm:$0xff] %v14419_v45 }
  0x7e   : > { %12940 = vmatmul.mubr.msk.bf16.gmra.mrb[52].mxu0 %vm977_vm0, %v13170_v29  ;;  %5585 = vst [vmem:[#allocation3 + $0x170] sm:$0xff] %v14419_v45  ;;  %5586 = vst [vmem:[#allocation3 + $0x178] sm:$0x3] %v14419_v45  ;;  %v13197_v29 = vld [vmem:[%s14519_s22 + $0x1b0] sm:$0xff]  }
  0x7f   : > { %12943 = vmatprep.mubr.msk.bf16.mxu0 %vm977_vm0, %v13171_v30  ;;  %5587 = vst [vmem:[#allocation3 + $0x180] sm:$0xff] %v14419_v45  ;;  %5588 = vst [vmem:[#allocation3 + $0x188] sm:$0xff] %v14419_v45  ;;  %v14979_v30 = vld [vmem:[%s18432_s2] ss:$0 sm:$0xff] }
  0x80   : > { %5589 = vst [vmem:[#allocation3 + $0x190] sm:$0x3] %v14419_v45  ;;  %7247 = vst [vmem:[#allocation4] sm:$0xff] %v14419_v45 }
  0x81   : > { %7248 = vst [vmem:[#allocation4 + $0x8] sm:$0x3] %v14419_v45  ;;  %7249 = vst [vmem:[#allocation4 + $0x10] sm:$0xff] %v14419_v45 }
  0x82   : > { %7250 = vst [vmem:[#allocation4 + $0x18] sm:$0x3] %v14419_v45  ;;  %7251 = vst [vmem:[#allocation4 + $0x20] sm:$0xff] %v14419_v45 }
  0x83   : > { %7252 = vst [vmem:[#allocation4 + $0x28] sm:$0x3] %v14419_v45  ;;  %7253 = vst [vmem:[#allocation4 + $0x30] sm:$0xff] %v14419_v45 }
  0x84   : > { %7254 = vst [vmem:[#allocation4 + $0x38] sm:$0x3] %v14419_v45  ;;  %7255 = vst [vmem:[#allocation4 + $0x40] sm:$0xff] %v14419_v45 }
  0x85   : > { %7256 = vst [vmem:[#allocation4 + $0x48] sm:$0x3] %v14419_v45  ;;  %7257 = vst [vmem:[#allocation4 + $0x50] sm:$0xff] %v14419_v45 }
  0x86   : > { %12944 = vmatmul.mubr.msk.bf16.gmra.mrb[56].mxu0 %vm977_vm0, %v13172_v35  ;;  %7258 = vst [vmem:[#allocation4 + $0x58] sm:$0x3] %v14419_v45  ;;  %7259 = vst [vmem:[#allocation4 + $0x60] sm:$0xff] %v14419_v45 }
  0x87   : > { %12947 = vmatprep.mubr.msk.bf16.mxu0 %vm977_vm0, %v13173_v37  ;;  %7260 = vst [vmem:[#allocation4 + $0x68] sm:$0x3] %v14419_v45  ;;  %7261 = vst [vmem:[#allocation4 + $0x70] sm:$0xff] %v14419_v45 }
  0x88   : > { %7262 = vst [vmem:[#allocation4 + $0x78] sm:$0x3] %v14419_v45  ;;  %7263 = vst [vmem:[#allocation4 + $0x80] sm:$0xff] %v14419_v45 }
  0x89   : > { %7264 = vst [vmem:[#allocation4 + $0x88] sm:$0x3] %v14419_v45  ;;  %8525 = vst [vmem:[#allocation5] sm:$0x3f] %v14419_v45 }
  0x8a   : > { %8526 = vst [vmem:[#allocation5 + $0x8] sm:$0x3f] %v14419_v45  ;;  %8527 = vst [vmem:[#allocation5 + $0x10] sm:$0x3f] %v14419_v45 }
  0x8b   : > { %8528 = vst [vmem:[#allocation5 + $0x18] sm:$0x3f] %v14419_v45  ;;  %8529 = vst [vmem:[#allocation5 + $0x20] sm:$0x3f] %v14419_v45 }
  0x8c   : > { %v2914_v45 = vld [vmem:[#allocation2 + $0x20] ss:$2 sm:$0x1]  ;;  %vm16759_vm4 = vmor %vm5834_vm2, %vm5835_vm3  ;;  %vm8621_vm2 = vsmask.f32 3340 }
  0x8d   : > { %v3012_v58 = vpack.c.bf16 %v2914_v45, %v2914_v45  ;;  %vm7366_vm9 = vmor %vm7364_vm5, %vm7365_vm6  ;;  %vm8625_vm6 = vsmask.f32 5396 }
  0x8e   : > { %12948 = vmatmul.mubr.msk.bf16.gmra.mrb[60].mxu0 %vm977_vm0, %v13174_v46  ;;  %v13200_v46 = vld [vmem:[%s14519_s22 + $0x1c8] sm:$0xff]   ;;  %vm17450_vm10 = vmor %vm7366_vm9, %vm7367_vm7  ;;  %vm8629_vm9 = vsmask.f32 7452 }
  0x8f   : > { %12951 = vmatprep.mubr.msk.bf16.mxu0 %vm977_vm0, %v13175_v47  ;;  %v3339_v47 = vshrl.u32 %v14937_v10, 16  ;;  %v15027_v1 = vshll.u32 %v3012_v58, 16  ;;  %vm17468_vm11 = vmor %vm17450_vm10, %vm7369_vm8  ;;  %vm8627_vm8 = vsmask.f32 6424 }
  0x90   : > { %vm8618_vm15 = vmor %vm8616_vm13, %vm8617_vm14 }
  0x96   : > { %12952 = vmatmul.mubr.msk.bf16.gmra.mrb[64].mxu0 %vm977_vm0, %v13176_v56 }
  0x97   : > { %12955 = vmatprep.mubr.msk.bf16.mxu0 %vm977_vm0, %v13177_v57 }
  0x9e   : > { %12956 = vmatmul.mubr.msk.bf16.gmra.mrb[68].mxu0 %vm977_vm0, %v13178_v2 }
  0x9f   : > { %12959 = vmatprep.mubr.msk.bf16.mxu0 %vm977_vm0, %v13179_v6 }
  0xa6   : > { %12960 = vmatmul.mubr.msk.bf16.gmra.mrb[72].mxu0 %vm977_vm0, %v13180_v11 }
  0xa7   : > { %12963 = vmatprep.mubr.msk.bf16.mxu0 %vm977_vm0, %v13181_v13 }
  0xae   : > { %12964 = vmatmul.mubr.msk.bf16.gmra.mrb[76].mxu0 %vm977_vm0, %v13182_v14 }
  0xaf   : > { %12967 = vmatprep.mubr.msk.bf16.mxu0 %vm977_vm0, %v13183_v15 }
  0xb6   : > { %12968 = vmatmul.mubr.msk.bf16.gmra.mrb[80].mxu0 %vm977_vm0, %v13184_v16 }
  0xb7   : > { %12971 = vmatprep.mubr.msk.bf16.mxu0 %vm977_vm0, %v13185_v17 }
  0xbe   : > { %12972 = vmatmul.mubr.msk.bf16.gmra.mrb[84].mxu0 %vm977_vm0, %v13186_v18 }
  0xbf   : > { %12975 = vmatprep.mubr.msk.bf16.mxu0 %vm977_vm0, %v13187_v19 }
  0xc6   : > { %12976 = vmatmul.mubr.msk.bf16.gmra.mrb[88].mxu0 %vm977_vm0, %v13188_v20 }
  0xc7   : > { %12979 = vmatprep.mubr.msk.bf16.mxu0 %vm977_vm0, %v13189_v21 }
  0xce   : > { %12980 = vmatmul.mubr.msk.bf16.gmra.mrb[92].mxu0 %vm977_vm0, %v13190_v22 }
  0xcf   : > { %12983 = vmatprep.mubr.msk.bf16.mxu0 %vm977_vm0, %v13191_v23 }
  0xd6   : > { %12984 = vmatmul.mubr.msk.bf16.gmra.mrb[96].mxu0 %vm977_vm0, %v13192_v24  ;;  %v13213_v24 = vld [vmem:[%s14519_s22 + $0x1e8] sm:$0xff]  }
  0xd7   : > { %12987 = vmatprep.mubr.msk.bf16.mxu0 %vm977_vm0, %v13193_v25 }
  0xde   : > { %12988 = vmatmul.mubr.msk.bf16.gmra.mrb[100].mxu0 %vm977_vm0, %v13194_v26 }
  0xdf   : > { %12991 = vmatprep.mubr.msk.bf16.mxu0 %vm977_vm0, %v13195_v27 }
  0xe6   : > { %12992 = vmatmul.mubr.msk.bf16.gmra.mrb[104].mxu0 %vm977_vm0, %v13196_v28  ;;  %v13229_v28 = vld [vmem:[%s14519_s22 + $0x1f0] sm:$0xff]  }
  0xe7   : > { %12995 = vmatprep.mubr.msk.bf16.mxu0 %vm977_vm0, %v13197_v29 }
  0xe9   : > { %v12889_v32 = vpop.f32.mrb[0].mxu0 }
  0xea   : > { %v14986_v34 = vadd.f32 %v12889_v32, %v14979_v30  ;;  %v1204_v35 = vpop.f32.mrb[1].mxu0 }
  0xeb   : > { %v14989_v36 = vadd.f32 %v14979_v30, %v1204_v35  ;;  %v12890_v37 = vpop.f32.mrb[2].mxu0 }
  0xec   : > { %v11216_v38 = vmul.f32 -1.442695, %v14986_v34  ;;  %v14993_v39 = vadd.f32 %v12890_v37, %v14979_v30  ;;  %v1207_v40 = vpop.f32.mrb[3].mxu0 }
  0xed   : > { %v11214_v41 = vmul.f32 -1.442695, %v14989_v36  ;;  %v14997_v42 = vadd.f32 %v14979_v30, %v1207_v40 }
  0xee   : > { %13711 = vpow2.f32 %v11216_v38  ;;  %v11217_v43 = vmul.f32 -1.442695, %v14993_v39  ;;  %12996 = vmatmul.mubr.msk.bf16.gmra.mrb[108].mxu0 %vm977_vm0, %v13198_v31 }
  0xef   : > { %13713 = vpow2.f32 %v11214_v41  ;;  %v11215_v44 = vmul.f32 -1.442695, %v14997_v42  ;;  %12999 = vmatprep.mubr.msk.bf16.mxu0 %vm977_vm0, %v13199_v33 }
  0xf0   : > { %13715 = vpow2.f32 %v11217_v43 }
  0xf1   : > { %13717 = vpow2.f32 %v11215_v44  ;;  %v12893_v49 = vpop.f32.mrb[4].mxu0 }
  0xf2   : > { %v15009_v51 = vadd.f32 %v12893_v49, %v14979_v30  ;;  %v1220_v52 = vpop.f32.mrb[5].mxu0 }
  0xf3   : > { %v15012_v53 = vadd.f32 %v14979_v30, %v1220_v52  ;;  %v12894_v54 = vpop.f32.mrb[6].mxu0 }
  0xf4   : > { %v11220_v55 = vmul.f32 -1.442695, %v15009_v51  ;;  %v15016_v56 = vadd.f32 %v12894_v54, %v14979_v30  ;;  %v1223_v57 = vpop.f32.mrb[7].mxu0 }
  0xf5   : > { %v11218_v59 = vmul.f32 -1.442695, %v15012_v53  ;;  %v15020_v60 = vadd.f32 %v14979_v30, %v1223_v57 }
  0xf6   : > { %13719 = vpow2.f32 %v11220_v55  ;;  %v11221_v61 = vmul.f32 -1.442695, %v15016_v56  ;;  %13000 = vmatmul.mubr.msk.bf16.gmra.mrb[112].mxu0 %vm977_vm0, %v13200_v46 }
  0xf7   : > { %13721 = vpow2.f32 %v11218_v59  ;;  %v11219_v62 = vmul.f32 -1.442695, %v15020_v60  ;;  %13003 = vmatprep.mubr.msk.bf16.mxu0 %vm977_vm0, %v13201_v50 }
  0xf8   : > { %v13712_v63 = vpop.eup %13711  ;;  %13723 = vpow2.f32 %v11221_v61 }
  0xf9   : > { %v13714_v2 = vpop.eup %13713  ;;  %v2101_v3 = vadd.f32 1.0, %v13712_v63  ;;  %13725 = vpow2.f32 %v11219_v62  ;;  %v12897_v4 = vpop.f32.mrb[8].mxu0  ;;  %v13230_v63 = vld [vmem:[%s14519_s22 + $0x1f8] sm:$0xff]  }
  0xfa   : > { %v13716_v6 = vpop.eup %13715  ;;  %v2099_v7 = vadd.f32 1.0, %v13714_v2  ;;  %v15031_v8 = vadd.f32 %v12897_v4, %v14979_v30  ;;  %v1236_v9 = vpop.f32.mrb[9].mxu0 }
  0xfb   : > { %v13718_v11 = vpop.eup %13717  ;;  %13727 = vrcp.f32 %v2101_v3  ;;  %v2102_v12 = vadd.f32 1.0, %v13716_v6  ;;  %v15034_v13 = vadd.f32 %v14979_v30, %v1236_v9  ;;  %v12898_v14 = vpop.f32.mrb[10].mxu0 }
  0xfc   : > { %13729 = vrcp.f32 %v2099_v7  ;;  %v2100_v15 = vadd.f32 1.0, %v13718_v11  ;;  %v11224_v16 = vmul.f32 -1.442695, %v15031_v8  ;;  %v15038_v17 = vadd.f32 %v12898_v14, %v14979_v30  ;;  %v1239_v18 = vpop.f32.mrb[11].mxu0 }
  0xfd   : > { %13731 = vrcp.f32 %v2102_v12  ;;  %v11222_v19 = vmul.f32 -1.442695, %v15034_v13  ;;  %v15042_v20 = vadd.f32 %v14979_v30, %v1239_v18 }
  0xfe   : > { %13733 = vrcp.f32 %v2100_v15  ;;  %v11225_v21 = vmul.f32 -1.442695, %v15038_v17  ;;  %13004 = vmatmul.mubr.msk.bf16.gmra.mrb[116].mxu0 %vm977_vm0, %v13203_v0 }
  0xff   : > { %13735 = vpow2.f32 %v11224_v16  ;;  %v11223_v22 = vmul.f32 -1.442695, %v15042_v20  ;;  %13007 = vmatprep.mubr.msk.bf16.mxu0 %vm977_vm0, %v13211_v5 }
 0x100   : > { %v13720_v23 = vpop.eup %13719  ;;  %13737 = vpow2.f32 %v11222_v19 }
 0x101   : > { %v13722_v25 = vpop.eup %13721  ;;  %v2105_v26 = vadd.f32 1.0, %v13720_v23  ;;  %13739 = vpow2.f32 %v11225_v21  ;;  %v12901_v27 = vpop.f32.mrb[12].mxu0 }
 0x102   : > { %v13724_v29 = vpop.eup %13723  ;;  %v2103_v31 = vadd.f32 1.0, %v13722_v25  ;;  %13741 = vpow2.f32 %v11223_v22  ;;  %v15051_v32 = vadd.f32 %v12901_v27, %v14979_v30  ;;  %v1252_v33 = vpop.f32.mrb[13].mxu0 }
 0x103   : > { %v13726_v35 = vpop.eup %13725  ;;  %13743 = vrcp.f32 %v2105_v26  ;;  %v2106_v37 = vadd.f32 1.0, %v13724_v29  ;;  %v15054_v38 = vadd.f32 %v14979_v30, %v1252_v33  ;;  %v12902_v40 = vpop.f32.mrb[14].mxu0 }
 0x104   : > { %13745 = vrcp.f32 %v2103_v31  ;;  %v2104_v41 = vadd.f32 1.0, %v13726_v35  ;;  %v11228_v43 = vmul.f32 -1.442695, %v15051_v32  ;;  %v15058_v44 = vadd.f32 %v12902_v40, %v14979_v30  ;;  %v1255_v45 = vpop.f32.mrb[15].mxu0 }
 0x105   : > { %v13728_v46 = vpop.eup %13727  ;;  %13747 = vrcp.f32 %v2106_v37  ;;  %v11226_v49 = vmul.f32 -1.442695, %v15054_v38  ;;  %v15062_v50 = vadd.f32 %v14979_v30, %v1255_v45 }
 0x106   : > { %v13730_v52 = vpop.eup %13729  ;;  %v2485_v54 = vmul.f32 %v13728_v46, %v14986_v34  ;;  %13749 = vrcp.f32 %v2104_v41  ;;  %v11229_v55 = vmul.f32 -1.442695, %v15058_v44  ;;  %13008 = vmatmul.mubr.msk.bf16.gmra.mrb[120].mxu0 %vm977_vm0, %v13213_v24 }
 0x107   : > { %v13732_v57 = vpop.eup %13731  ;;  %v2483_v58 = vmul.f32 %v13730_v52, %v14989_v36  ;;  %13751 = vpow2.f32 %v11228_v43  ;;  %v11227_v59 = vmul.f32 -1.442695, %v15062_v50  ;;  %13011 = vmatprep.mubr.msk.bf16.mxu0 %vm977_vm0, %v13229_v28  ;;  %v3348_v36 = vrot.slane %v15027_v1, 1 }
 0x108   : > { %v13734_v61 = vpop.eup %13733  ;;  %2784 = vst [vmem:[#allocation2 + $0x39] sm:$0xff] %v2485_v54  ;;  %v2486_v62 = vmul.f32 %v13732_v57, %v14993_v39  ;;  %13753 = vpow2.f32 %v11226_v49 }
 0x109   : > { %v13736_v34 = vpop.eup %13735  ;;  %2782 = vst [vmem:[#allocation2 + $0x29] sm:$0xff] %v2483_v58  ;;  %v2484_v0 = vmul.f32 %v13734_v61, %v14997_v42  ;;  %13755 = vpow2.f32 %v11229_v55  ;;  %v12905_v2 = vpop.f32.mrb[16].mxu0  ;;  %v3344_v42 = vor.u32 %v15005_v48, %v3339_v47 }
 0x10a   : > { %v13738_v3 = vpop.eup %13737  ;;  %2785 = vst [vmem:[#allocation2 + $0x41] sm:$0xff] %v2486_v62  ;;  %v2109_v4 = vadd.f32 1.0, %v13736_v34  ;;  %13757 = vpow2.f32 %v11227_v59  ;;  %v15075_v5 = vadd.f32 %v12905_v2, %v14979_v30  ;;  %v1268_v6 = vpop.f32.mrb[17].mxu0 }
 0x10b   : > { %v13740_v39 = vpop.eup %13739  ;;  %2783 = vst [vmem:[#allocation2 + $0x31] sm:$0xff] %v2484_v0  ;;  %v2107_v7 = vadd.f32 1.0, %v13738_v3  ;;  %v15078_v9 = vadd.f32 %v14979_v30, %v1268_v6  ;;  %v12906_v11 = vpop.f32.mrb[18].mxu0  ;;  %v3349_v35 = vsel %vm3337_vm1, %v3344_v42, %v3348_v36 }
 0x10c   : > { %v13742_v1 = vpop.eup %13741  ;;  %13759 = vrcp.f32 %v2109_v4  ;;  %v2110_v12 = vadd.f32 1.0, %v13740_v39  ;;  %v11232_v14 = vmul.f32 -1.442695, %v15075_v5  ;;  %v15085_v15 = vadd.f32 %v12906_v11, %v14979_v30  ;;  %v1271_v16 = vpop.f32.mrb[19].mxu0 }
 0x10d   : > { %v13744_v18 = vpop.eup %13743  ;;  %13761 = vrcp.f32 %v2107_v7  ;;  %v2108_v19 = vadd.f32 1.0, %v13742_v1  ;;  %v11230_v21 = vmul.f32 -1.442695, %v15078_v9  ;;  %v15089_v22 = vadd.f32 %v14979_v30, %v1271_v16 }
 0x10e   : > { %v13746_v23 = vpop.eup %13745  ;;  %v2489_v47 = vmul.f32 %v13744_v18, %v15009_v51  ;;  %13763 = vrcp.f32 %v2110_v12  ;;  %v11233_v48 = vmul.f32 -1.442695, %v15085_v15  ;;  %13012 = vmatmul.mubr.msk.bf16.gmra.mrb[124].mxu0 %vm977_vm0, %v13230_v63  ;;  %vm8619_vm0 = vsmask.f32 2312 }
 0x10f   : > { %v13748_v24 = vpop.eup %13747  ;;  %v2487_v25 = vmul.f32 %v13746_v23, %v15012_v53  ;;  %13765 = vrcp.f32 %v2108_v19  ;;  %v11231_v26 = vmul.f32 -1.442695, %v15089_v22 }
 0x110   : > { %v13750_v27 = vpop.eup %13749  ;;  %2788 = vst [vmem:[#allocation2 + $0x61] sm:$0xff] %v2489_v47  ;;  %v2490_v28 = vmul.f32 %v13748_v24, %v15016_v56  ;;  %13767 = vpow2.f32 %v11232_v14 }
 0x111   : > { %v13752_v29 = vpop.eup %13751  ;;  %2786 = vst [vmem:[#allocation2 + $0x51] sm:$0xff] %v2487_v25  ;;  %v2488_v51 = vmul.f32 %v13750_v27, %v15020_v60  ;;  %13769 = vpow2.f32 %v11230_v21  ;;  %v12909_v31 = vpop.f32.mrb[20].mxu0  ;;  %v3134_v33 = vld [vmem:[#allocation2 + $0x48] ss:$2 sm:$0x1] }
 0x112   : > { %v13754_v37 = vpop.eup %13753  ;;  %2789 = vst [vmem:[#allocation2 + $0x69] sm:$0xff] %v2490_v28  ;;  %v2113_v53 = vadd.f32 1.0, %v13752_v29  ;;  %13771 = vpow2.f32 %v11233_v48  ;;  %v15100_v40 = vadd.f32 %v12909_v31, %v14979_v30  ;;  %v1284_v41 = vpop.f32.mrb[21].mxu0  ;;  %v3130_v43 = vld [vmem:[#allocation2 + $0x28] ss:$2 sm:$0xff]  ;;  %v3226_v45 = vpack.c.bf16 %v3134_v33, %v3134_v33 }
 0x113   : > { %v3132_v56 = vld [vmem:[#allocation2 + $0x38] ss:$2 sm:$0xff]  ;;  %v13756_v46 = vpop.eup %13755  ;;  %2787 = vst [vmem:[#allocation2 + $0x59] sm:$0xff] %v2488_v51  ;;  %v2111_v49 = vadd.f32 1.0, %v13754_v37  ;;  %13773 = vpow2.f32 %v11231_v26  ;;  %v15103_v60 = vadd.f32 %v14979_v30, %v1284_v41  ;;  %v12910_v52 = vpop.f32.mrb[22].mxu0 }
 0x114   : > { %v3225_v54 = vpack.c.bf16 %v3132_v56, %v3130_v43  ;;  %v13758_v55 = vpop.eup %13757  ;;  %13775 = vrcp.f32 %v2113_v53  ;;  %v2114_v57 = vadd.f32 1.0, %v13756_v46  ;;  %v11236_v58 = vmul.f32 -1.442695, %v15100_v40  ;;  %v1287_v61 = vpop.f32.mrb[23].mxu0  ;;  %v15109_v62 = vld [vmem:[#allocation2 + $0x29] ss:$2 sm:$0xff] }
 0x115   : > { %v15107_v59 = vadd.f32 %v12910_v52, %v14979_v30  ;;  %v3260_v63 = vld [vmem:[#allocation2 + $0x39] ss:$2 sm:$0xff]  ;;  %13777 = vrcp.f32 %v2111_v49  ;;  %v2112_v34 = vadd.f32 1.0, %v13758_v55  ;;  %v11234_v0 = vmul.f32 -1.442695, %v15103_v60 }
 0x116   : > { %v15113_v2 = vadd.f32 %v14979_v30, %v1287_v61  ;;  %3959 = vmatprep.mubr.bf16.mxu1 %v3225_v54  ;;  %v13760_v36 = vpop.eup %13759  ;;  %13779 = vrcp.f32 %v2114_v57  ;;  %v3549_v4 = vshll.u32 %v3225_v54, 16  ;;  %v3547_v6 = vshrl.u32 %v3225_v54, 16 }
 0x117   : > { %v11237_v3 = vmul.f32 -1.442695, %v15107_v59  ;;  %3960 = vmatmul.mubr.bf16.vlgmr.msra.gmra.mrb[0].mxu1 %v3349_v35  ;;  %v13762_v39 = vpop.eup %13761  ;;  %v2493_v7 = vmul.f32 %v13760_v36, %v15031_v8  ;;  %13781 = vrcp.f32 %v2112_v34  ;;  %v3554_v42 = vshll.u32 %v3226_v45, 16 }
 0x118   : > { %v11235_v11 = vmul.f32 -1.442695, %v15113_v2  ;;  %v13764_v1 = vpop.eup %13763  ;;  %v2491_v12 = vmul.f32 %v13762_v39, %v15034_v13  ;;  %13783 = vpow2.f32 %v11236_v58  ;;  %v3551_v14 = vrot.slane %v3549_v4, 1 }
 0x119   : > { %v13766_v16 = vpop.eup %13765  ;;  %2792 = vst [vmem:[#allocation2 + $0x89] sm:$0xff] %v2493_v7  ;;  %v2494_v18 = vmul.f32 %v13764_v1, %v15038_v17  ;;  %13785 = vpow2.f32 %v11234_v0  ;;  %v12913_v19 = vpop.f32.mrb[24].mxu0  ;;  %v3556_v21 = vrot.slane %v3554_v42, 1  ;;  %v3321_v23 = vpack.c.bf16 %v3260_v63, %v15109_v62  ;;  %v2920_v51 = vld [vmem:[#allocation2 + $0x70] ss:$2 sm:$0x1] }
 0x11a   : > { %v13768_v47 = vpop.eup %13767  ;;  %2790 = vst [vmem:[#allocation2 + $0x79] sm:$0xff] %v2491_v12  ;;  %v2492_v8 = vmul.f32 %v13766_v16, %v15042_v20  ;;  %13787 = vpow2.f32 %v11237_v3  ;;  %v15123_v48 = vadd.f32 %v12913_v19, %v14979_v30  ;;  %v1300_v13 = vpop.f32.mrb[25].mxu0  ;;  %v3552_v24 = vor.u32 %v3551_v14, %v3547_v6  ;;  %v2916_v25 = vld [vmem:[#allocation2 + $0x50] ss:$2 sm:$0xff]  ;;  %v2918_v26 = vld [vmem:[#allocation2 + $0x60] ss:$2 sm:$0xff] }
 0x11b   : > { %v13770_v27 = vpop.eup %13769  ;;  %2793 = vst [vmem:[#allocation2 + $0x91] sm:$0xff] %v2494_v18  ;;  %v2117_v17 = vadd.f32 1.0, %v13768_v47  ;;  %13789 = vpow2.f32 %v11235_v11  ;;  %v15126_v28 = vadd.f32 %v14979_v30, %v1300_v13  ;;  %v12914_v29 = vpop.f32.mrb[26].mxu0  ;;  %v15128_v31 = vpack.c.bf16 %v2918_v26, %v2916_v25 }
 0x11c   : > { %v13772_v20 = vpop.eup %13771  ;;  %2791 = vst [vmem:[#allocation2 + $0x81] sm:$0xff] %v2492_v8  ;;  %v2115_v33 = vadd.f32 1.0, %v13770_v27  ;;  %v11240_v35 = vmul.f32 -1.442695, %v15123_v48  ;;  %v15132_v37 = vadd.f32 %v12914_v29, %v14979_v30  ;;  %v1303_v53 = vpop.f32.mrb[27].mxu0  ;;  %v3557_v41 = vsel %vm3337_vm1, %v3552_v24, %v3556_v21 }
 0x11d   : > { %v13774_v43 = vpop.eup %13773  ;;  %13791 = vrcp.f32 %v2117_v17  ;;  %v2118_v56 = vadd.f32 1.0, %v13772_v20  ;;  %v11238_v45 = vmul.f32 -1.442695, %v15126_v28  ;;  %v15137_v46 = vadd.f32 %v14979_v30, %v1303_v53  ;;  %4505 = vmatprep.mubr.bf16.mxu0 %v3557_v41 }
 0x11e   : > { %v13776_v49 = vpop.eup %13775  ;;  %13793 = vrcp.f32 %v2115_v33  ;;  %v2116_v52 = vadd.f32 1.0, %v13774_v43  ;;  %v11241_v54 = vmul.f32 -1.442695, %v15132_v37  ;;  %4506 = vmatmul.mubr.bf16.vlgmr.msra.gmra.mrb[128].mxu0 %v3321_v23  ;;  %v3014_v55 = vpack.c.bf16 %v2920_v51, %v2920_v51 }
 0x11f   : > { %v13778_v57 = vpop.eup %13777  ;;  %v2497_v58 = vmul.f32 %v13776_v49, %v15051_v32  ;;  %13795 = vrcp.f32 %v2118_v56  ;;  %v11239_v61 = vmul.f32 -1.442695, %v15137_v46  ;;  %v3353_v34 = vshll.u32 %v15128_v31, 16 }
 0x120   : > { %v13780_v62 = vpop.eup %13779  ;;  %v2495_v63 = vmul.f32 %v13778_v57, %v15054_v38  ;;  %13797 = vrcp.f32 %v2116_v52  ;;  %v3351_v4 = vshrl.u32 %v15128_v31, 16  ;;  %v3358_v6 = vshll.u32 %v3014_v55, 16 }
 0x121   : > { %v13782_v0 = vpop.eup %13781  ;;  %2796 = vst [vmem:[#allocation2 + $0xb1] sm:$0xff] %v2497_v58  ;;  %v2498_v36 = vmul.f32 %v13780_v62, %v15058_v44  ;;  %13799 = vpow2.f32 %v11240_v35  ;;  %v12917_v3 = vpop.f32.mrb[28].mxu0  ;;  %v3355_v11 = vrot.slane %v3353_v34, 1 }
 0x122   : > { %v13784_v39 = vpop.eup %13783  ;;  %2794 = vst [vmem:[#allocation2 + $0xa1] sm:$0xff] %v2495_v63  ;;  %v2496_v32 = vmul.f32 %v13782_v0, %v15062_v50  ;;  %13801 = vpow2.f32 %v11238_v45  ;;  %v15148_v7 = vadd.f32 %v12917_v3, %v14979_v30  ;;  %v1316_v38 = vpop.f32.mrb[29].mxu0  ;;  %v3140_v42 = vld [vmem:[#allocation2 + $0x98] ss:$2 sm:$0x1]  ;;  %v3360_v35 = vrot.slane %v3358_v6, 1 }
 0x123   : > { %v13786_v1 = vpop.eup %13785  ;;  %2797 = vst [vmem:[#allocation2 + $0xb9] sm:$0xff] %v2498_v36  ;;  %v2121_v12 = vadd.f32 1.0, %v13784_v39  ;;  %13803 = vpow2.f32 %v11241_v54  ;;  %v15151_v44 = vadd.f32 %v14979_v30, %v1316_v38  ;;  %v12918_v14 = vpop.f32.mrb[30].mxu0  ;;  %v3136_v16 = vld [vmem:[#allocation2 + $0x78] ss:$2 sm:$0xff]  ;;  %v3228_v19 = vpack.c.bf16 %v3140_v42, %v3140_v42 }
 0x124   : > { %v3138_v18 = vld [vmem:[#allocation2 + $0x88] ss:$2 sm:$0xff]  ;;  %v13788_v21 = vpop.eup %13787  ;;  %2795 = vst [vmem:[#allocation2 + $0xa9] sm:$0xff] %v2496_v32  ;;  %v2119_v50 = vadd.f32 1.0, %v13786_v1  ;;  %13805 = vpow2.f32 %v11239_v61  ;;  %v11244_v23 = vmul.f32 -1.442695, %v15148_v7  ;;  %v15155_v47 = vadd.f32 %v12918_v14, %v14979_v30 }
 0x125   : > { %v1319_v8 = vpop.f32.mrb[31].mxu0  ;;  %v13790_v13 = vpop.eup %13789  ;;  %13807 = vrcp.f32 %v2121_v12  ;;  %v2122_v24 = vadd.f32 1.0, %v13788_v21  ;;  %v11242_v25 = vmul.f32 -1.442695, %v15151_v44  ;;  %v3227_v29 = vpack.c.bf16 %v3138_v18, %v3136_v16  ;;  %v3262_v3 = vld [vmem:[#allocation2 + $0x79] ss:$2 sm:$0xff] }
 0x126   : > { %v15159_v26 = vadd.f32 %v14979_v30, %v1319_v8  ;;  %13809 = vrcp.f32 %v2119_v50  ;;  %v2120_v27 = vadd.f32 1.0, %v13790_v13  ;;  %v11245_v17 = vmul.f32 -1.442695, %v15155_v47 }
 0x127   : > { %v13792_v51 = vpop.eup %13791  ;;  %13811 = vrcp.f32 %v2122_v24  ;;  %v3356_v33 = vor.u32 %v3355_v11, %v3351_v4  ;;  %v3561_v43 = vshll.u32 %v3227_v29, 16  ;;  %3967 = vmatprep.mubr.bf16.mxu1 %v3227_v29  ;;  %v3559_v56 = vshrl.u32 %v3227_v29, 16 }
 0x128   : > { %v11243_v20 = vmul.f32 -1.442695, %v15159_v26  ;;  %v13794_v53 = vpop.eup %13793  ;;  %v2501_v41 = vmul.f32 %v13792_v51, %v15075_v5  ;;  %13813 = vrcp.f32 %v2120_v27  ;;  %v3566_v55 = vshll.u32 %v3228_v19, 16 }
 0x129   : > { %v13796_v45 = vpop.eup %13795  ;;  %v2499_v49 = vmul.f32 %v13794_v53, %v15078_v9  ;;  %13815 = vpow2.f32 %v11244_v23  ;;  %v15166_v52 = vsel %vm3337_vm1, %v3356_v33, %v3360_v35  ;;  %v12921_v54 = vpop.f32.mrb[32].mxu0  ;;  %v3563_v62 = vrot.slane %v3561_v43, 1 }
 0x12a   : > { %v13798_v57 = vpop.eup %13797  ;;  %2800 = vst [vmem:[#allocation2 + $0xd9] sm:$0xff] %v2501_v41  ;;  %v2502_v58 = vmul.f32 %v13796_v45, %v15085_v15  ;;  %13817 = vpow2.f32 %v11242_v25  ;;  %3968 = vmatmul.mubr.bf16.gmra.mrb[4].mxu1 %v15166_v52  ;;  %v15171_v5 = vadd.f32 %v12921_v54, %v14979_v30  ;;  %v1332_v61 = vpop.f32.mrb[33].mxu0  ;;  %v3568_v36 = vrot.slane %v3566_v55, 1  ;;  %v3264_v15 = vld [vmem:[#allocation2 + $0x89] ss:$2 sm:$0xff] }
 0x12b   : > { %v13800_v63 = vpop.eup %13799  ;;  %2798 = vst [vmem:[#allocation2 + $0xc9] sm:$0xff] %v2499_v49  ;;  %v2500_v9 = vmul.f32 %v13798_v57, %v15089_v22  ;;  %13819 = vpow2.f32 %v11245_v17  ;;  %v15175_v34 = vadd.f32 %v14979_v30, %v1332_v61  ;;  %v12922_v0 = vpop.f32.mrb[34].mxu0  ;;  %v2922_v11 = vld [vmem:[#allocation2 + $0xa0] ss:$2 sm:$0xff]  ;;  %v3564_v16 = vor.u32 %v3563_v62, %v3559_v56  ;;  %v2924_v18 = vld [vmem:[#allocation2 + $0xb0] ss:$2 sm:$0xff] }
 0x12c   : > { %v13802_v4 = vpop.eup %13801  ;;  %2801 = vst [vmem:[#allocation2 + $0xe1] sm:$0xff] %v2502_v58  ;;  %v2125_v6 = vadd.f32 1.0, %v13800_v63  ;;  %13821 = vpow2.f32 %v11243_v20  ;;  %v11248_v39 = vmul.f32 -1.442695, %v15171_v5  ;;  %v15179_v32 = vadd.f32 %v12922_v0, %v14979_v30  ;;  %v1335_v38 = vpop.f32.mrb[35].mxu0  ;;  %v13239_v57 = vld [vmem:[%s18433_s3 + $0x40] sm:$0xff]  }
 0x12d   : > { %v15181_v22 = vld [vmem:[#allocation2 + $0xc0] ss:$2 sm:$0x1]  ;;  %v13804_v42 = vpop.eup %13803  ;;  %2799 = vst [vmem:[#allocation2 + $0xd1] sm:$0xff] %v2500_v9  ;;  %v2123_v1 = vadd.f32 1.0, %v13802_v4  ;;  %v15185_v14 = vadd.f32 %v14979_v30, %v1335_v38  ;;  %v3569_v13 = vsel %vm3337_vm1, %v3564_v16, %v3568_v36  ;;  %v3322_v24 = vpack.c.bf16 %v3264_v15, %v3262_v3  ;;  %12157 = vmatprep.subr.bf16.mxu1 %v13239_v57 }
 0x12e   : > { %v11246_v12 = vmul.f32 -1.442695, %v15175_v34  ;;  %v13806_v19 = vpop.eup %13805  ;;  %13823 = vrcp.f32 %v2125_v6  ;;  %v2126_v21 = vadd.f32 1.0, %v13804_v42  ;;  %v11249_v50 = vmul.f32 -1.442695, %v15179_v32  ;;  %4513 = vmatprep.mubr.bf16.mxu0 %v3569_v13  ;;  %v13240_v6 = vld [vmem:[%s18433_s3] sm:$0xff]  }
 0x12f   : > { %v13808_v23 = vpop.eup %13807  ;;  %13825 = vrcp.f32 %v2123_v1  ;;  %v2124_v8 = vadd.f32 1.0, %v13806_v19  ;;  %v11247_v30 = vmul.f32 -1.442695, %v15185_v14  ;;  %v15191_v17 = vpack.c.bf16 %v2924_v18, %v2922_v11  ;;  %4514 = vmatmul.mubr.bf16.gmra.mrb[132].mxu0 %v3322_v24  ;;  %12158 = vmatpush3.bf16.msra.mxu1 %v13240_v6 }
 0x130   : > { %v13810_v25 = vpop.eup %13809  ;;  %v2505_v27 = vmul.f32 %v13808_v23, %v15100_v40  ;;  %13827 = vrcp.f32 %v2126_v21  ;;  %v3016_v33 = vpack.c.bf16 %v15181_v22, %v15181_v22  ;;  %v15200_v40 = vld [vmem:[%s18432_s2] ss:$0 sm:$0xff] }
 0x131   : > { %v13812_v29 = vpop.eup %13811  ;;  %v2503_v51 = vmul.f32 %v13810_v25, %v15103_v60  ;;  %13829 = vrcp.f32 %v2124_v8  ;;  %v12925_v20 = vpop.f32.mrb[36].mxu0  ;;  %v3363_v43 = vshrl.u32 %v15191_v17, 16  ;;  %v3365_v54 = vshll.u32 %v15191_v17, 16 }
 0x132   : > { %v13814_v35 = vpop.eup %13813  ;;  %2804 = vst [vmem:[#allocation2 + $0x101] sm:$0xff] %v2505_v27  ;;  %v2506_v53 = vmul.f32 %v13812_v29, %v15107_v59  ;;  %13831 = vpow2.f32 %v11248_v39  ;;  %v15203_v41 = vadd.f32 %v15200_v40, %v12925_v20  ;;  %v1348_v60 = vpop.f32.mrb[37].mxu0  ;;  %v3370_v19 = vshll.u32 %v3016_v33, 16 }
 0x133   : > { %v13816_v56 = vpop.eup %13815  ;;  %2802 = vst [vmem:[#allocation2 + $0xf1] sm:$0xff] %v2503_v51  ;;  %v2504_v45 = vmul.f32 %v13814_v35, %v15113_v2  ;;  %13833 = vpow2.f32 %v11246_v12  ;;  %v15208_v49 = vadd.f32 %v15200_v40, %v1348_v60  ;;  %v12926_v59 = vpop.f32.mrb[38].mxu0  ;;  %v15211_v55 = vld [vmem:[#allocation2 + $0xe8] ss:$2 sm:$0x1]  ;;  %v3367_v12 = vrot.slane %v3365_v54, 1 }
 0x134   : > { %v13818_v58 = vpop.eup %13817  ;;  %2805 = vst [vmem:[#allocation2 + $0x109] sm:$0xff] %v2506_v53  ;;  %v2129_v61 = vadd.f32 1.0, %v13816_v56  ;;  %13835 = vpow2.f32 %v11249_v50  ;;  %v11252_v62 = vmul.f32 -1.442695, %v15203_v41  ;;  %v15218_v2 = vadd.f32 %v15200_v40, %v12926_v59  ;;  %v1351_v63 = vpop.f32.mrb[39].mxu0 }
 0x135   : > { %v3142_v9 = vld [vmem:[#allocation2 + $0xc8] ss:$2 sm:$0xff]  ;;  %v13820_v0 = vpop.eup %13819  ;;  %2803 = vst [vmem:[#allocation2 + $0xf9] sm:$0xff] %v2504_v45  ;;  %v2127_v36 = vadd.f32 1.0, %v13818_v58  ;;  %13837 = vpow2.f32 %v11247_v30  ;;  %v11250_v3 = vmul.f32 -1.442695, %v15208_v49  ;;  %v15222_v15 = vadd.f32 %v15200_v40, %v1351_v63 }
 0x136   : > { %v3144_v4 = vld [vmem:[#allocation2 + $0xd8] ss:$2 sm:$0xff]  ;;  %v13822_v39 = vpop.eup %13821  ;;  %13839 = vrcp.f32 %v2129_v61  ;;  %v2130_v38 = vadd.f32 1.0, %v13820_v0  ;;  %v11253_v11 = vmul.f32 -1.442695, %v15218_v2  ;;  %v3230_v21 = vpack.c.bf16 %v15211_v55, %v15211_v55 }
 0x137   : > { %v3229_v22 = vpack.c.bf16 %v3144_v4, %v3142_v9  ;;  %13841 = vrcp.f32 %v2127_v36  ;;  %v2128_v42 = vadd.f32 1.0, %v13822_v39  ;;  %v11251_v1 = vmul.f32 -1.442695, %v15222_v15  ;;  %v3266_v59 = vld [vmem:[#allocation2 + $0xc9] ss:$2 sm:$0xff] }
 0x138   : > { %v13824_v16 = vpop.eup %13823  ;;  %13843 = vrcp.f32 %v2130_v38  ;;  %v3368_v8 = vor.u32 %v3367_v12, %v3363_v43  ;;  %v3372_v30 = vrot.slane %v3370_v19, 1  ;;  %v3578_v39 = vshll.u32 %v3230_v21, 16 }
 0x139   : > { %v3573_v18 = vshll.u32 %v3229_v22, 16  ;;  %3975 = vmatprep.mubr.bf16.mxu1 %v3229_v22  ;;  %v13826_v50 = vpop.eup %13825  ;;  %v2509_v23 = vmul.f32 %v13824_v16, %v15123_v48  ;;  %13845 = vrcp.f32 %v2128_v42  ;;  %v12929_v13 = vpop.f32.mrb[40].mxu0  ;;  %v3571_v24 = vshrl.u32 %v3229_v22, 16 }
 0x13a   : > { %v13828_v25 = vpop.eup %13827  ;;  %v2507_v27 = vmul.f32 %v13826_v50, %v15126_v28  ;;  %13847 = vpow2.f32 %v11252_v62  ;;  %v15234_v29 = vadd.f32 %v15200_v40, %v12929_v13  ;;  %v1364_v51 = vpop.f32.mrb[41].mxu0  ;;  %v15242_v43 = vsel %vm3337_vm1, %v3368_v8, %v3372_v30 }
 0x13b   : > { %v13830_v20 = vpop.eup %13829  ;;  %2808 = vst [vmem:[#allocation2 + $0x129] sm:$0xff] %v2509_v23  ;;  %v2510_v33 = vmul.f32 %v13828_v25, %v15132_v37  ;;  %13849 = vpow2.f32 %v11250_v3  ;;  %v15238_v48 = vadd.f32 %v15200_v40, %v1364_v51  ;;  %v12930_v35 = vpop.f32.mrb[42].mxu0  ;;  %v3575_v53 = vrot.slane %v3573_v18, 1  ;;  %3976 = vmatmul.mubr.bf16.gmra.mrb[8].mxu1 %v15242_v43  ;;  %v15250_v58 = vld [vmem:[#allocation2 + $0x110] ss:$2 sm:$0x1] }
 0x13c   : > { %v13832_v60 = vpop.eup %13831  ;;  %2806 = vst [vmem:[#allocation2 + $0x119] sm:$0xff] %v2507_v27  ;;  %v2508_v28 = vmul.f32 %v13830_v20, %v15137_v46  ;;  %13851 = vpow2.f32 %v11253_v11  ;;  %v11256_v56 = vmul.f32 -1.442695, %v15234_v29  ;;  %v1367_v45 = vpop.f32.mrb[43].mxu0  ;;  %v15248_v57 = vadd.f32 %v15200_v40, %v12930_v35  ;;  %v3268_v46 = vld [vmem:[#allocation2 + $0xd9] ss:$2 sm:$0xff] }
 0x13d   : > { %v13834_v54 = vpop.eup %13833  ;;  %2809 = vst [vmem:[#allocation2 + $0x131] sm:$0xff] %v2510_v33  ;;  %v2133_v37 = vadd.f32 1.0, %v13832_v60  ;;  %13853 = vpow2.f32 %v11251_v1  ;;  %v11254_v55 = vmul.f32 -1.442695, %v15238_v48  ;;  %v15253_v63 = vadd.f32 %v15200_v40, %v1367_v45  ;;  %v2928_v0 = vld [vmem:[#allocation2 + $0xf0] ss:$2 sm:$0xff] }
 0x13e   : > { %v13836_v61 = vpop.eup %13835  ;;  %2807 = vst [vmem:[#allocation2 + $0x121] sm:$0xff] %v2508_v28  ;;  %v2131_v62 = vadd.f32 1.0, %v13834_v54  ;;  %13855 = vpow2.f32 %v11256_v56  ;;  %v3576_v9 = vor.u32 %v3575_v53, %v3571_v24  ;;  %v2930_v36 = vld [vmem:[#allocation2 + $0x100] ss:$2 sm:$0xff]  ;;  %v11257_v6 = vmul.f32 -1.442695, %v15248_v57 }
 0x13f   : > { %v13838_v3 = vpop.eup %13837  ;;  %13857 = vrcp.f32 %v2133_v37  ;;  %v2134_v4 = vadd.f32 1.0, %v13836_v61  ;;  %v11255_v22 = vmul.f32 -1.442695, %v15253_v63  ;;  %v3323_v42 = vpack.c.bf16 %v3268_v46, %v3266_v59  ;;  %v13241_v45 = vld [vmem:[%s18433_s3 + $0x48] sm:$0xff]  }
 0x140   : > { %v13840_v38 = vpop.eup %13839  ;;  %13859 = vrcp.f32 %v2131_v62  ;;  %v2132_v11 = vadd.f32 1.0, %v13838_v3  ;;  %v3580_v16 = vrot.slane %v3578_v39, 1  ;;  %v15258_v19 = vpack.c.bf16 %v2930_v36, %v2928_v0  ;;  %12159 = vmatprep.subr.bf16.mxu1 %v13241_v45  ;;  %v13242_v0 = vld [vmem:[%s18433_s3 + $0x8] sm:$0xff]  }
 0x141   : > { %v13842_v1 = vpop.eup %13841  ;;  %v2513_v12 = vmul.f32 %v13840_v38, %v15148_v7  ;;  %13861 = vrcp.f32 %v2134_v4  ;;  %v12933_v18 = vpop.f32.mrb[44].mxu0  ;;  %v3018_v13 = vpack.c.bf16 %v15250_v58, %v15250_v58  ;;  %12160 = vmatpush3.bf16.msra.mxu1 %v13242_v0 }
 0x142   : > { %v13844_v50 = vpop.eup %13843  ;;  %v2511_v23 = vmul.f32 %v13842_v1, %v15151_v44  ;;  %13863 = vrcp.f32 %v2132_v11  ;;  %v15262_v21 = vadd.f32 %v15200_v40, %v12933_v18  ;;  %v1380_v8 = vpop.f32.mrb[45].mxu0  ;;  %v3581_v25 = vsel %vm3337_vm1, %v3576_v9, %v3580_v16 }
 0x143   : > { %v13846_v24 = vpop.eup %13845  ;;  %2812 = vst [vmem:[#allocation2 + $0x151] sm:$0xff] %v2513_v12  ;;  %v2514_v7 = vmul.f32 %v13844_v50, %v15155_v47  ;;  %13865 = vpow2.f32 %v11254_v55  ;;  %v15269_v27 = vadd.f32 %v15200_v40, %v1380_v8  ;;  %v12934_v30 = vpop.f32.mrb[46].mxu0  ;;  %4521 = vmatprep.mubr.bf16.mxu0 %v3581_v25  ;;  %v3375_v46 = vshrl.u32 %v15258_v19, 16 }
 0x144   : > { %v13848_v44 = vpop.eup %13847  ;;  %2810 = vst [vmem:[#allocation2 + $0x141] sm:$0xff] %v2511_v23  ;;  %v2512_v51 = vmul.f32 %v13846_v24, %v15159_v26  ;;  %13867 = vpow2.f32 %v11257_v6  ;;  %v11260_v20 = vmul.f32 -1.442695, %v15262_v21  ;;  %v15274_v33 = vadd.f32 %v15200_v40, %v12934_v30  ;;  %v1383_v35 = vpop.f32.mrb[47].mxu0  ;;  %4522 = vmatmul.mubr.bf16.gmra.mrb[136].mxu0 %v3323_v42  ;;  %v3272_v45 = vld [vmem:[#allocation2 + $0x129] ss:$2 sm:$0xff] }
 0x145   : > { %v15276_v47 = vld [vmem:[#allocation2 + $0x138] ss:$2 sm:$0x1]  ;;  %v13850_v53 = vpop.eup %13849  ;;  %2813 = vst [vmem:[#allocation2 + $0x159] sm:$0xff] %v2514_v7  ;;  %v2137_v60 = vadd.f32 1.0, %v13848_v44  ;;  %13869 = vpow2.f32 %v11255_v22  ;;  %v15280_v56 = vadd.f32 %v15200_v40, %v1383_v35  ;;  %v3377_v4 = vshll.u32 %v15258_v19, 16 }
 0x146   : > { %v11258_v28 = vmul.f32 -1.442695, %v15269_v27  ;;  %v3148_v26 = vld [vmem:[#allocation2 + $0x118] ss:$2 sm:$0xff]  ;;  %v13852_v59 = vpop.eup %13851  ;;  %2811 = vst [vmem:[#allocation2 + $0x149] sm:$0xff] %v2512_v51  ;;  %v2135_v54 = vadd.f32 1.0, %v13850_v53  ;;  %13871 = vpow2.f32 %v11260_v20  ;;  %v3232_v42 = vpack.c.bf16 %v15276_v47, %v15276_v47 }
 0x147   : > { %v11261_v37 = vmul.f32 -1.442695, %v15274_v33  ;;  %v3150_v55 = vld [vmem:[#allocation2 + $0x128] ss:$2 sm:$0xff]  ;;  %v13854_v58 = vpop.eup %13853  ;;  %13873 = vrcp.f32 %v2137_v60  ;;  %v2138_v61 = vadd.f32 1.0, %v13852_v59  ;;  %v3382_v6 = vshll.u32 %v3018_v13, 16 }
 0x148   : > { %v11259_v62 = vmul.f32 -1.442695, %v15280_v56  ;;  %v15288_v9 = vpack.c.bf16 %v3150_v55, %v3148_v26  ;;  %v13856_v36 = vpop.eup %13855  ;;  %13875 = vrcp.f32 %v2135_v54  ;;  %v2136_v3 = vadd.f32 1.0, %v13854_v58  ;;  %v3270_v53 = vld [vmem:[#allocation2 + $0x119] ss:$2 sm:$0xff] }
 0x149   : > { %v13858_v39 = vpop.eup %13857  ;;  %13877 = vrcp.f32 %v2138_v61  ;;  %v2141_v38 = vadd.f32 1.0, %v13856_v36  ;;  %v12937_v22 = vpop.f32.mrb[48].mxu0  ;;  %v3379_v16 = vrot.slane %v3377_v4, 1  ;;  %v3384_v18 = vrot.slane %v3382_v6, 1 }
 0x14a   : > { %v3585_v11 = vshll.u32 %v15288_v9, 16  ;;  %3983 = vmatprep.mubr.bf16.mxu1 %v15288_v9  ;;  %v13860_v1 = vpop.eup %13859  ;;  %v2517_v12 = vmul.f32 %v13858_v39, %v15171_v5  ;;  %13879 = vrcp.f32 %v2136_v3  ;;  %v1396_v50 = vpop.f32.mrb[49].mxu0  ;;  %v15301_v13 = vadd.f32 %v15200_v40, %v12937_v22 }
 0x14b   : > { %v13862_v23 = vpop.eup %13861  ;;  %v2515_v8 = vmul.f32 %v13860_v1, %v15175_v34  ;;  %13881 = vrcp.f32 %v2141_v38  ;;  %v15304_v24 = vadd.f32 %v15200_v40, %v1396_v50  ;;  %v12938_v7 = vpop.f32.mrb[50].mxu0  ;;  %v3380_v5 = vor.u32 %v3379_v16, %v3375_v46 }
 0x14c   : > { %v13864_v25 = vpop.eup %13863  ;;  %2816 = vst [vmem:[#allocation2 + $0x179] sm:$0xff] %v2517_v12  ;;  %v2518_v30 = vmul.f32 %v13862_v23, %v15179_v32  ;;  %13883 = vpow2.f32 %v11258_v28  ;;  %v15308_v44 = vadd.f32 %v15200_v40, %v12938_v7  ;;  %v1399_v51 = vpop.f32.mrb[51].mxu0  ;;  %v11264_v35 = vmul.f32 -1.442695, %v15301_v13 }
 0x14d   : > { %v13866_v20 = vpop.eup %13865  ;;  %2814 = vst [vmem:[#allocation2 + $0x169] sm:$0xff] %v2515_v8  ;;  %v2516_v34 = vmul.f32 %v13864_v25, %v15185_v14  ;;  %13885 = vpow2.f32 %v11261_v37  ;;  %v11262_v47 = vmul.f32 -1.442695, %v15304_v24  ;;  %v15314_v32 = vsel %vm3337_vm1, %v3380_v5, %v3384_v18  ;;  %v2936_v12 = vld [vmem:[#allocation2 + $0x150] ss:$2 sm:$0xff] }
 0x14e   : > { %v13868_v60 = vpop.eup %13867  ;;  %2817 = vst [vmem:[#allocation2 + $0x181] sm:$0xff] %v2518_v30  ;;  %v2139_v26 = vadd.f32 1.0, %v13866_v20  ;;  %13887 = vpow2.f32 %v11259_v62  ;;  %v11265_v28 = vmul.f32 -1.442695, %v15308_v44  ;;  %3984 = vmatmul.mubr.bf16.gmra.mrb[12].mxu1 %v15314_v32  ;;  %v15319_v14 = vadd.f32 %v15200_v40, %v1399_v51 }
 0x14f   : > { %v13870_v59 = vpop.eup %13869  ;;  %2815 = vst [vmem:[#allocation2 + $0x171] sm:$0xff] %v2516_v34  ;;  %v2142_v54 = vadd.f32 1.0, %v13868_v60  ;;  %13889 = vpow2.f32 %v11264_v35  ;;  %v3583_v37 = vshrl.u32 %v15288_v9, 16  ;;  %v3587_v58 = vrot.slane %v3585_v11, 1  ;;  %v2934_v9 = vld [vmem:[#allocation2 + $0x140] ss:$2 sm:$0xff] }
 0x150   : > { %v13872_v55 = vpop.eup %13871  ;;  %13891 = vrcp.f32 %v2139_v26  ;;  %v2140_v46 = vadd.f32 1.0, %v13870_v59  ;;  %v3590_v61 = vshll.u32 %v3232_v42, 16  ;;  %v11263_v36 = vmul.f32 -1.442695, %v15319_v14 }
 0x151   : > { %v13874_v62 = vpop.eup %13873  ;;  %13893 = vrcp.f32 %v2142_v54  ;;  %v2145_v0 = vadd.f32 1.0, %v13872_v55  ;;  %v3324_v3 = vpack.c.bf16 %v3272_v45, %v3270_v53  ;;  %v12941_v4 = vpop.f32.mrb[52].mxu0  ;;  %v3588_v38 = vor.u32 %v3587_v58, %v3583_v37  ;;  %v2938_v23 = vld [vmem:[#allocation2 + $0x160] ss:$2 sm:$0x1]  ;;  %v13243_v55 = vld [vmem:[%s18433_s3 + $0x50] sm:$0xff]  }
 0x152   : > { %v13876_v6 = vpop.eup %13875  ;;  %v2521_v39 = vmul.f32 %v13874_v62, %v15203_v41  ;;  %13895 = vrcp.f32 %v2140_v46  ;;  %v3592_v22 = vrot.slane %v3590_v61, 1  ;;  %v1412_v1 = vpop.f32.mrb[53].mxu0  ;;  %v15326_v42 = vadd.f32 %v15200_v40, %v12941_v4  ;;  %v13244_v46 = vld [vmem:[%s18433_s3 + $0x10] sm:$0xff]   ;;  %12161 = vmatprep.subr.bf16.mxu1 %v13243_v55 }
 0x153   : > { %v13878_v16 = vpop.eup %13877  ;;  %v2519_v11 = vmul.f32 %v13876_v6, %v15208_v49  ;;  %13897 = vrcp.f32 %v2145_v0  ;;  %v15329_v18 = vadd.f32 %v15200_v40, %v1412_v1  ;;  %v12942_v50 = vpop.f32.mrb[54].mxu0  ;;  %v15346_v45 = vpack.c.bf16 %v2936_v12, %v2934_v9  ;;  %12162 = vmatpush3.bf16.msra.mxu1 %v13244_v46 }
 0x154   : > { %v13880_v8 = vpop.eup %13879  ;;  %2820 = vst [vmem:[#allocation2 + $0x1a1] sm:$0xff] %v2521_v39  ;;  %v2522_v41 = vmul.f32 %v13878_v16, %v15218_v2  ;;  %13899 = vpow2.f32 %v11262_v47  ;;  %v3593_v7 = vsel %vm3337_vm1, %v3588_v38, %v3592_v22  ;;  %v15334_v25 = vadd.f32 %v15200_v40, %v12942_v50  ;;  %v1415_v49 = vpop.f32.mrb[55].mxu0 }
 0x155   : > { %v13882_v30 = vpop.eup %13881  ;;  %2818 = vst [vmem:[#allocation2 + $0x191] sm:$0xff] %v2519_v11  ;;  %v2520_v5 = vmul.f32 %v13880_v8, %v15222_v15  ;;  %13901 = vpow2.f32 %v11265_v28  ;;  %4529 = vmatprep.mubr.bf16.mxu0 %v3593_v7  ;;  %v11268_v51 = vmul.f32 -1.442695, %v15326_v42  ;;  %v11266_v20 = vmul.f32 -1.442695, %v15329_v18 }
 0x156   : > { %v13884_v34 = vpop.eup %13883  ;;  %2821 = vst [vmem:[#allocation2 + $0x1a9] sm:$0xff] %v2522_v41  ;;  %v2525_v2 = vmul.f32 %v13882_v30, %v15234_v29  ;;  %13903 = vpow2.f32 %v11263_v36  ;;  %4530 = vmatmul.mubr.bf16.gmra.mrb[140].mxu0 %v3324_v3  ;;  %v11269_v35 = vmul.f32 -1.442695, %v15334_v25  ;;  %v15342_v47 = vadd.f32 %v15200_v40, %v1415_v49  ;;  %v3154_v53 = vld [vmem:[#allocation2 + $0x168] ss:$2 sm:$0xff] }
 0x157   : > { %v3156_v60 = vld [vmem:[#allocation2 + $0x178] ss:$2 sm:$0xff]  ;;  %v13886_v15 = vpop.eup %13885  ;;  %2819 = vst [vmem:[#allocation2 + $0x199] sm:$0xff] %v2520_v5  ;;  %v2143_v26 = vadd.f32 1.0, %v13884_v34  ;;  %13905 = vpow2.f32 %v11268_v51  ;;  %v3020_v37 = vpack.c.bf16 %v2938_v23, %v2938_v23  ;;  %v3387_v0 = vshrl.u32 %v15346_v45, 16 }
 0x158   : > { %v15344_v28 = vpack.c.bf16 %v3156_v60, %v3154_v53  ;;  %v13888_v59 = vpop.eup %13887  ;;  %2824 = vst [vmem:[#allocation2 + $0x1c9] sm:$0xff] %v2525_v2  ;;  %v2146_v29 = vadd.f32 1.0, %v13886_v15  ;;  %13907 = vpow2.f32 %v11266_v20  ;;  %v11267_v54 = vmul.f32 -1.442695, %v15342_v47  ;;  %v15374_v2 = vld [vmem:[#allocation2 + $0x179] ss:$2 sm:$0xff] }
 0x159   : > { %v13890_v58 = vpop.eup %13889  ;;  %13909 = vrcp.f32 %v2143_v26  ;;  %v2144_v61 = vadd.f32 1.0, %v13888_v59  ;;  %v12945_v36 = vpop.f32.mrb[56].mxu0  ;;  %v3389_v6 = vshll.u32 %v15346_v45, 16  ;;  %v3394_v39 = vshll.u32 %v3020_v37, 16  ;;  %v3274_v15 = vld [vmem:[#allocation2 + $0x169] ss:$2 sm:$0xff] }
 0x15a   : > { %v3597_v62 = vshll.u32 %v15344_v28, 16  ;;  %3991 = vmatprep.mubr.bf16.mxu1 %v15344_v28  ;;  %v13892_v3 = vpop.eup %13891  ;;  %13911 = vrcp.f32 %v2146_v29  ;;  %v2149_v4 = vadd.f32 1.0, %v13890_v58  ;;  %v1428_v38 = vpop.f32.mrb[57].mxu0  ;;  %v3158_v22 = vld [vmem:[#allocation2 + $0x188] ss:$2 sm:$0x1]  ;;  %v15361_v12 = vadd.f32 %v15200_v40, %v12945_v36 }
 0x15b   : > { %v13894_v1 = vpop.eup %13893  ;;  %v2523_v9 = vmul.f32 %v13892_v3, %v15238_v48  ;;  %13913 = vrcp.f32 %v2144_v61  ;;  %v15364_v16 = vadd.f32 %v15200_v40, %v1428_v38  ;;  %v12946_v11 = vpop.f32.mrb[58].mxu0  ;;  %v3391_v8 = vrot.slane %v3389_v6, 1  ;;  %v13245_v6 = vld [vmem:[%s18433_s3 + $0x58] sm:$0xff]  }
 0x15c   : > { %v13896_v50 = vpop.eup %13895  ;;  %v2526_v23 = vmul.f32 %v13894_v1, %v15248_v57  ;;  %13915 = vrcp.f32 %v2149_v4  ;;  %v3396_v41 = vrot.slane %v3394_v39, 1  ;;  %v1431_v7 = vpop.f32.mrb[59].mxu0  ;;  %v11272_v30 = vmul.f32 -1.442695, %v15361_v12  ;;  %v13246_v39 = vld [vmem:[%s18433_s3 + $0x18] sm:$0xff]   ;;  %12163 = vmatprep.subr.bf16.mxu1 %v13245_v6 }
 0x15d   : > { %v13898_v49 = vpop.eup %13897  ;;  %2822 = vst [vmem:[#allocation2 + $0x1b9] sm:$0xff] %v2523_v9  ;;  %v2524_v48 = vmul.f32 %v13896_v50, %v15253_v63  ;;  %13917 = vpow2.f32 %v11269_v35  ;;  %v11270_v5 = vmul.f32 -1.442695, %v15364_v16  ;;  %v3392_v34 = vor.u32 %v3391_v8, %v3387_v0  ;;  %12164 = vmatpush3.bf16.msra.mxu1 %v13246_v39 }
 0x15e   : > { %v13900_v51 = vpop.eup %13899  ;;  %2825 = vst [vmem:[#allocation2 + $0x1d1] sm:$0xff] %v2526_v23  ;;  %v2529_v20 = vmul.f32 %v13898_v49, %v15262_v21  ;;  %13919 = vpow2.f32 %v11267_v54  ;;  %v15372_v57 = vadd.f32 %v15200_v40, %v12946_v11  ;;  %v15377_v63 = vadd.f32 %v15200_v40, %v1431_v7 }
 0x15f   : > { %v13902_v53 = vpop.eup %13901  ;;  %2823 = vst [vmem:[#allocation2 + $0x1c1] sm:$0xff] %v2524_v48  ;;  %v2147_v60 = vadd.f32 1.0, %v13900_v51  ;;  %13921 = vpow2.f32 %v11272_v30  ;;  %v3234_v35 = vpack.c.bf16 %v3158_v22, %v3158_v22  ;;  %v15380_v21 = vsel %vm3337_vm1, %v3392_v34, %v3396_v41  ;;  %v2940_v41 = vld [vmem:[#allocation2 + $0x190] ss:$2 sm:$0xff] }
 0x160   : > { %v13904_v26 = vpop.eup %13903  ;;  %2828 = vst [vmem:[#allocation2 + $0x1f1] sm:$0xff] %v2529_v20  ;;  %v2150_v59 = vadd.f32 1.0, %v13902_v53  ;;  %13923 = vpow2.f32 %v11270_v5  ;;  %v11273_v29 = vmul.f32 -1.442695, %v15372_v57  ;;  %3992 = vmatmul.mubr.bf16.gmra.mrb[16].mxu1 %v15380_v21  ;;  %v11271_v55 = vmul.f32 -1.442695, %v15377_v63 }
 0x161   : > { %v13906_v54 = vpop.eup %13905  ;;  %13925 = vrcp.f32 %v2147_v60  ;;  %v2148_v37 = vadd.f32 1.0, %v13904_v26  ;;  %v3595_v46 = vshrl.u32 %v15344_v28, 16  ;;  %v12949_v58 = vpop.f32.mrb[60].mxu0  ;;  %v3599_v36 = vrot.slane %v3597_v62, 1  ;;  %v2942_v53 = vld [vmem:[#allocation2 + $0x1a0] ss:$2 sm:$0xff] }
 0x162   : > { %v13908_v61 = vpop.eup %13907  ;;  %13927 = vrcp.f32 %v2150_v59  ;;  %v2153_v0 = vadd.f32 1.0, %v13906_v54  ;;  %v3602_v3 = vshll.u32 %v3234_v35, 16  ;;  %v1444_v4 = vpop.f32.mrb[61].mxu0  ;;  %v3325_v28 = vpack.c.bf16 %v15374_v2, %v3274_v15  ;;  %v2944_v5 = vld [vmem:[#allocation2 + $0x1b0] ss:$2 sm:$0x1] }
 0x163   : > { %v13910_v38 = vpop.eup %13909  ;;  %13929 = vrcp.f32 %v2148_v37  ;;  %v2151_v22 = vadd.f32 1.0, %v13908_v61  ;;  %v15394_v1 = vadd.f32 %v15200_v40, %v12949_v58  ;;  %v12950_v9 = vpop.f32.mrb[62].mxu0  ;;  %v3600_v50 = vor.u32 %v3599_v36, %v3595_v46 }
 0x164   : > { %v13912_v62 = vpop.eup %13911  ;;  %v2527_v11 = vmul.f32 %v13910_v38, %v15269_v27  ;;  %13931 = vrcp.f32 %v2153_v0  ;;  %v3604_v23 = vrot.slane %v3602_v3, 1  ;;  %v1447_v8 = vpop.f32.mrb[63].mxu0  ;;  %v15400_v30 = vadd.f32 %v15200_v40, %v1444_v4 }
 0x165   : > { %v13914_v7 = vpop.eup %13913  ;;  %v2530_v49 = vmul.f32 %v13912_v62, %v15274_v33  ;;  %13933 = vrcp.f32 %v2151_v22  ;;  %v11276_v48 = vmul.f32 -1.442695, %v15394_v1  ;;  %v15405_v34 = vadd.f32 %v15200_v40, %v12950_v9 }
 0x166   : > { %v13916_v51 = vpop.eup %13915  ;;  %2826 = vst [vmem:[#allocation2 + $0x1e1] sm:$0xff] %v2527_v11  ;;  %v2528_v27 = vmul.f32 %v13914_v7, %v15280_v56  ;;  %13935 = vpow2.f32 %v11273_v29  ;;  %v3605_v20 = vsel %vm3337_vm1, %v3600_v50, %v3604_v23  ;;  %v3160_v2 = vld [vmem:[#allocation2 + $0x1b8] ss:$2 sm:$0xff]  ;;  %v3162_v33 = vld [vmem:[#allocation2 + $0x1c8] ss:$2 sm:$0xff]  ;;  %v15410_v26 = vadd.f32 %v15200_v40, %v1447_v8 }
 0x167   : > { %v13918_v60 = vpop.eup %13917  ;;  %2829 = vst [vmem:[#allocation2 + $0x1f9] sm:$0xff] %v2530_v49  ;;  %v2533_v35 = vmul.f32 %v13916_v51, %v15301_v13  ;;  %13937 = vpow2.f32 %v11271_v55  ;;  %4537 = vmatprep.mubr.bf16.mxu0 %v3605_v20  ;;  %v11274_v15 = vmul.f32 -1.442695, %v15400_v30  ;;  %v11277_v29 = vmul.f32 -1.442695, %v15405_v34 }
 0x168   : > { %v13920_v56 = vpop.eup %13919  ;;  %2827 = vst [vmem:[#allocation2 + $0x1e9] sm:$0xff] %v2528_v27  ;;  %v2154_v59 = vadd.f32 1.0, %v13918_v60  ;;  %4538 = vmatmul.mubr.bf16.gmra.mrb[144].mxu0 %v3325_v28  ;;  %13939 = vpow2.f32 %v11276_v48  ;;  %v15413_v54 = vpack.c.bf16 %v3162_v33, %v3160_v2  ;;  %v11275_v13 = vmul.f32 -1.442695, %v15410_v26  ;;  %v15436_v60 = vld [vmem:[#allocation2 + $0x1c9] ss:$2 sm:$0xff] }
 0x169   : > { %v13922_v37 = vpop.eup %13921  ;;  %2832 = vst [vmem:[#allocation2 + $0x219] sm:$0xff] %v2533_v35  ;;  %v2152_v46 = vadd.f32 1.0, %v13920_v56  ;;  %13941 = vpow2.f32 %v11274_v15  ;;  %v15416_v55 = vpack.c.bf16 %v2942_v53, %v2940_v41  ;;  %v12953_v58 = vpop.f32.mrb[64].mxu0  ;;  %v3022_v3 = vpack.c.bf16 %v2944_v5, %v2944_v5  ;;  %v3164_v27 = vld [vmem:[#allocation2 + $0x1d8] ss:$2 sm:$0x1] }
 0x16a   : > { %v13924_v61 = vpop.eup %13923  ;;  %13943 = vrcp.f32 %v2154_v59  ;;  %v2157_v0 = vadd.f32 1.0, %v13922_v37  ;;  %v3609_v36 = vshll.u32 %v15413_v54, 16  ;;  %3999 = vmatprep.mubr.bf16.mxu1 %v15413_v54  ;;  %v1460_v4 = vpop.f32.mrb[65].mxu0  ;;  %v15424_v50 = vadd.f32 %v15200_v40, %v12953_v58  ;;  %v15434_v53 = vld [vmem:[#allocation2 + $0x1b9] ss:$2 sm:$0xff] }
 0x16b   : > { %v13926_v6 = vpop.eup %13925  ;;  %13945 = vrcp.f32 %v2152_v46  ;;  %v2155_v39 = vadd.f32 1.0, %v13924_v61  ;;  %v3399_v38 = vshrl.u32 %v15416_v55, 16  ;;  %v3401_v22 = vshll.u32 %v15416_v55, 16  ;;  %v12954_v28 = vpop.f32.mrb[66].mxu0 }
 0x16c   : > { %v13928_v9 = vpop.eup %13927  ;;  %v2531_v62 = vmul.f32 %v13926_v6, %v15304_v24  ;;  %13947 = vrcp.f32 %v2157_v0  ;;  %v3406_v11 = vshll.u32 %v3022_v3, 16  ;;  %v1463_v23 = vpop.f32.mrb[67].mxu0  ;;  %v15428_v49 = vadd.f32 %v15200_v40, %v1460_v4 }
 0x16d   : > { %v13930_v8 = vpop.eup %13929  ;;  %v2534_v41 = vmul.f32 %v13928_v9, %v15308_v44  ;;  %13949 = vrcp.f32 %v2155_v39  ;;  %v3403_v7 = vrot.slane %v3401_v22, 1  ;;  %v11280_v51 = vmul.f32 -1.442695, %v15424_v50  ;;  %v15457_v9 = vld [vmem:[%s18432_s2] ss:$0 sm:$0xff] }
 0x16e   : > { %v13932_v48 = vpop.eup %13931  ;;  %2830 = vst [vmem:[#allocation2 + $0x209] sm:$0xff] %v2531_v62  ;;  %v2532_v5 = vmul.f32 %v13930_v8, %v15319_v14  ;;  %13951 = vpow2.f32 %v11277_v29  ;;  %v3408_v24 = vrot.slane %v3406_v11, 1  ;;  %v11278_v33 = vmul.f32 -1.442695, %v15428_v49 }
 0x16f   : > { %v13934_v20 = vpop.eup %13933  ;;  %2833 = vst [vmem:[#allocation2 + $0x221] sm:$0xff] %v2534_v41  ;;  %v2537_v2 = vmul.f32 %v13932_v48, %v15326_v42  ;;  %13953 = vpow2.f32 %v11275_v13  ;;  %v3404_v44 = vor.u32 %v3403_v7, %v3399_v38  ;;  %v15440_v15 = vadd.f32 %v15200_v40, %v12954_v28 }
 0x170   : > { %v13936_v35 = vpop.eup %13935  ;;  %2831 = vst [vmem:[#allocation2 + $0x211] sm:$0xff] %v2532_v5  ;;  %v2535_v14 = vmul.f32 %v13934_v20, %v15329_v18  ;;  %13955 = vpow2.f32 %v11280_v51  ;;  %v15443_v56 = vadd.f32 %v15200_v40, %v1463_v23  ;;  %v3236_v37 = vpack.c.bf16 %v3164_v27, %v3164_v27  ;;  %v2946_v51 = vld [vmem:[#allocation2 + $0x1e0] ss:$2 sm:$0xff] }
 0x171   : > { %v13938_v42 = vpop.eup %13937  ;;  %2836 = vst [vmem:[#allocation2 + $0x241] sm:$0xff] %v2537_v2  ;;  %v2158_v59 = vadd.f32 1.0, %v13936_v35  ;;  %v15446_v29 = vsel %vm3337_vm1, %v3404_v44, %v3408_v24  ;;  %13957 = vpow2.f32 %v11278_v33  ;;  %v12957_v46 = vpop.f32.mrb[68].mxu0  ;;  %v11281_v18 = vmul.f32 -1.442695, %v15440_v15  ;;  %v13247_v20 = vld [vmem:[%s18433_s3 + $0x60] sm:$0xff]  }
 0x172   : > { %v13940_v13 = vpop.eup %13939  ;;  %2834 = vst [vmem:[#allocation2 + $0x231] sm:$0xff] %v2535_v14  ;;  %v2156_v58 = vadd.f32 1.0, %v13938_v42  ;;  %4000 = vmatmul.mubr.bf16.gmra.mrb[20].mxu1 %v15446_v29  ;;  %v11279_v61 = vmul.f32 -1.442695, %v15443_v56  ;;  %v3607_v40 = vshrl.u32 %v15413_v54, 16  ;;  %v3611_v4 = vrot.slane %v3609_v36, 1  ;;  %12165 = vmatprep.subr.bf16.mxu1 %v13247_v20 }
 0x173   : > { %v13942_v0 = vpop.eup %13941  ;;  %13959 = vrcp.f32 %v2158_v59  ;;  %v2161_v3 = vadd.f32 1.0, %v13940_v13  ;;  %v3614_v6 = vshll.u32 %v3236_v37, 16  ;;  %v1476_v39 = vpop.f32.mrb[69].mxu0  ;;  %v3326_v28 = vpack.c.bf16 %v15436_v60, %v15434_v53  ;;  %v2950_v27 = vld [vmem:[#allocation2 + $0x200] ss:$2 sm:$0x1] }
 0x174   : > { %v13944_v38 = vpop.eup %13943  ;;  %13961 = vrcp.f32 %v2156_v58  ;;  %v2159_v22 = vadd.f32 1.0, %v13942_v0  ;;  %v15460_v62 = vadd.f32 %v15457_v9, %v12957_v46  ;;  %v12958_v54 = vpop.f32.mrb[70].mxu0  ;;  %v3612_v23 = vor.u32 %v3611_v4, %v3607_v40  ;;  %v2948_v60 = vld [vmem:[#allocation2 + $0x1f0] ss:$2 sm:$0xff] }
 0x175   : > { %v13946_v11 = vpop.eup %13945  ;;  %v2538_v36 = vmul.f32 %v13944_v38, %v15334_v25  ;;  %13963 = vrcp.f32 %v2161_v3  ;;  %v3616_v8 = vrot.slane %v3614_v6, 1  ;;  %v1479_v41 = vpop.f32.mrb[71].mxu0  ;;  %v15466_v24 = vadd.f32 %v15457_v9, %v1476_v39 }
 0x176   : > { %v13948_v7 = vpop.eup %13947  ;;  %v2536_v48 = vmul.f32 %v13946_v11, %v15342_v47  ;;  %13965 = vrcp.f32 %v2159_v22  ;;  %v11284_v5 = vmul.f32 -1.442695, %v15460_v62  ;;  %v15474_v47 = vadd.f32 %v15457_v9, %v12958_v54  ;;  %v3170_v20 = vld [vmem:[#allocation2 + $0x228] ss:$2 sm:$0x1] }
 0x177   : > { %v13950_v25 = vpop.eup %13949  ;;  %2837 = vst [vmem:[#allocation2 + $0x249] sm:$0xff] %v2538_v36  ;;  %v2541_v2 = vmul.f32 %v13948_v7, %v15361_v12  ;;  %13967 = vpow2.f32 %v11281_v18  ;;  %v3617_v44 = vsel %vm3337_vm1, %v3612_v23, %v3616_v8  ;;  %v3166_v33 = vld [vmem:[#allocation2 + $0x208] ss:$2 sm:$0xff]  ;;  %v3168_v53 = vld [vmem:[#allocation2 + $0x218] ss:$2 sm:$0xff]  ;;  %v15479_v59 = vadd.f32 %v15457_v9, %v1479_v41 }
 0x178   : > { %v13952_v35 = vpop.eup %13951  ;;  %2835 = vst [vmem:[#allocation2 + $0x239] sm:$0xff] %v2536_v48  ;;  %v2539_v14 = vmul.f32 %v13950_v25, %v15364_v16  ;;  %13969 = vpow2.f32 %v11279_v61  ;;  %4545 = vmatprep.mubr.bf16.mxu0 %v3617_v44  ;;  %v11282_v42 = vmul.f32 -1.442695, %v15466_v24  ;;  %v13248_v12 = vld [vmem:[%s18433_s3 + $0x20] sm:$0xff]   ;;  %v11285_v13 = vmul.f32 -1.442695, %v15474_v47 }
 0x179   : > { %v13954_v37 = vpop.eup %13953  ;;  %2840 = vst [vmem:[#allocation2 + $0x269] sm:$0xff] %v2541_v2  ;;  %v2162_v46 = vadd.f32 1.0, %v13952_v35  ;;  %4546 = vmatmul.mubr.bf16.gmra.mrb[148].mxu0 %v3326_v28  ;;  %13971 = vpow2.f32 %v11284_v5  ;;  %v15485_v16 = vpack.c.bf16 %v3168_v53, %v3166_v33  ;;  %v12961_v58 = vpop.f32.mrb[72].mxu0  ;;  %v11283_v40 = vmul.f32 -1.442695, %v15479_v59  ;;  %12166 = vmatpush3.bf16.msra.mxu1 %v13248_v12 }
 0x17a   : > { %v13956_v18 = vpop.eup %13955  ;;  %2838 = vst [vmem:[#allocation2 + $0x259] sm:$0xff] %v2539_v14  ;;  %v2160_v61 = vadd.f32 1.0, %v13954_v37  ;;  %13973 = vpow2.f32 %v11282_v42  ;;  %v15488_v0 = vpack.c.bf16 %v2948_v60, %v2946_v51  ;;  %v1492_v3 = vpop.f32.mrb[73].mxu0  ;;  %v3024_v38 = vpack.c.bf16 %v2950_v27, %v2950_v27  ;;  %v15508_v14 = vld [vmem:[#allocation2 + $0x209] ss:$2 sm:$0xff] }
 0x17b   : > { %v13958_v4 = vpop.eup %13957  ;;  %13975 = vrcp.f32 %v2162_v46  ;;  %v2165_v6 = vadd.f32 1.0, %v13956_v18  ;;  %v3621_v39 = vshll.u32 %v15485_v16, 16  ;;  %4007 = vmatprep.mubr.bf16.mxu1 %v15485_v16  ;;  %v12962_v22 = vpop.f32.mrb[74].mxu0  ;;  %v15495_v41 = vadd.f32 %v15457_v9, %v12961_v58  ;;  %v15510_v42 = vld [vmem:[#allocation2 + $0x219] ss:$2 sm:$0xff] }
 0x17c   : > { %18460 = vst [vmem:[#allocation6_spill] sm:$0xff] %v15488_v0  ;;  %13977 = vrcp.f32 %v2160_v61  ;;  %v2163_v28 = vadd.f32 1.0, %v13958_v4  ;;  %v3411_v54 = vshrl.u32 %v15488_v0, 16  ;;  %v3413_v11 = vshll.u32 %v15488_v0, 16  ;;  %v1495_v36 = vpop.f32.mrb[75].mxu0 }
 0x17d   : > { %v13960_v23 = vpop.eup %13959  ;;  %13979 = vrcp.f32 %v2165_v6  ;;  %v3418_v8 = vshll.u32 %v3024_v38, 16  ;;  %v15498_v7 = vadd.f32 %v15457_v9, %v1492_v3  ;;  %v15502_v27 = vadd.f32 %v15457_v9, %v12962_v22 }
 0x17e   : > { %v13962_v48 = vpop.eup %13961  ;;  %v2542_v5 = vmul.f32 %v13960_v23, %v15372_v57  ;;  %13981 = vrcp.f32 %v2163_v28  ;;  %v3415_v51 = vrot.slane %v3413_v11, 1  ;;  %v11288_v33 = vmul.f32 -1.442695, %v15495_v41 }
 0x17f   : > { %v13964_v25 = vpop.eup %13963  ;;  %v2540_v2 = vmul.f32 %v13962_v48, %v15377_v63  ;;  %13983 = vpow2.f32 %v11285_v13  ;;  %v3420_v44 = vrot.slane %v3418_v8, 1  ;;  %v11286_v57 = vmul.f32 -1.442695, %v15498_v7 }
 0x180   : > { %v13966_v53 = vpop.eup %13965  ;;  %2841 = vst [vmem:[#allocation2 + $0x271] sm:$0xff] %v2542_v5  ;;  %v2545_v60 = vmul.f32 %v13964_v25, %v15394_v1  ;;  %13985 = vpow2.f32 %v11283_v40  ;;  %v3416_v35 = vor.u32 %v3415_v51, %v3411_v54  ;;  %v11289_v37 = vmul.f32 -1.442695, %v15502_v27  ;;  %v2952_v51 = vld [vmem:[#allocation2 + $0x230] ss:$2 sm:$0xff] }
 0x181   : > { %v13968_v12 = vpop.eup %13967  ;;  %2839 = vst [vmem:[#allocation2 + $0x261] sm:$0xff] %v2540_v2  ;;  %v2543_v63 = vmul.f32 %v13966_v53, %v15400_v30  ;;  %13987 = vpow2.f32 %v11288_v33  ;;  %v15515_v46 = vadd.f32 %v15457_v9, %v1495_v36  ;;  %v12965_v13 = vpop.f32.mrb[76].mxu0  ;;  %v3238_v61 = vpack.c.bf16 %v3170_v20, %v3170_v20 }
 0x182   : > { %v13970_v1 = vpop.eup %13969  ;;  %2844 = vst [vmem:[#allocation2 + $0x291] sm:$0xff] %v2545_v60  ;;  %v2166_v58 = vadd.f32 1.0, %v13968_v12  ;;  %v15518_v18 = vsel %vm3337_vm1, %v3416_v35, %v3420_v44  ;;  %13989 = vpow2.f32 %v11286_v57  ;;  %v1508_v40 = vpop.f32.mrb[77].mxu0  ;;  %v3619_v6 = vshrl.u32 %v15485_v16, 16  ;;  %v2954_v35 = vld [vmem:[#allocation2 + $0x240] ss:$2 sm:$0xff] }
 0x183   : > { %v13972_v3 = vpop.eup %13971  ;;  %2842 = vst [vmem:[#allocation2 + $0x281] sm:$0xff] %v2543_v63  ;;  %v2164_v4 = vadd.f32 1.0, %v13970_v1  ;;  %4008 = vmatmul.mubr.bf16.gmra.mrb[24].mxu1 %v15518_v18  ;;  %13991 = vpow2.f32 %v11289_v37  ;;  %v11287_v30 = vmul.f32 -1.442695, %v15515_v46  ;;  %v12966_v38 = vpop.f32.mrb[78].mxu0  ;;  %v3623_v54 = vrot.slane %v3621_v39, 1 }
 0x184   : > { %v13974_v22 = vpop.eup %13973  ;;  %13993 = vrcp.f32 %v2166_v58  ;;  %v2169_v28 = vadd.f32 1.0, %v13972_v3  ;;  %v3626_v11 = vshll.u32 %v3238_v61, 16  ;;  %v1511_v36 = vpop.f32.mrb[79].mxu0  ;;  %v3327_v48 = vpack.c.bf16 %v15510_v42, %v15508_v14  ;;  %v2956_v44 = vld [vmem:[#allocation2 + $0x250] ss:$2 sm:$0x1] }
 0x185   : > { %v13976_v23 = vpop.eup %13975  ;;  %13995 = vrcp.f32 %v2164_v4  ;;  %v2167_v8 = vadd.f32 1.0, %v13974_v22  ;;  %v15526_v5 = vadd.f32 %v15457_v9, %v12965_v13  ;;  %v3624_v25 = vor.u32 %v3623_v54, %v3619_v6  ;;  %v13249_v58 = vld [vmem:[%s18433_s3 + $0x68] sm:$0xff]  }
 0x186   : > { %v13978_v20 = vpop.eup %13977  ;;  %v2546_v16 = vmul.f32 %v13976_v23, %v15405_v34  ;;  %13997 = vrcp.f32 %v2169_v28  ;;  %v3628_v2 = vrot.slane %v3626_v11, 1  ;;  %v15532_v60 = vadd.f32 %v15457_v9, %v1508_v40  ;;  %v13250_v6 = vld [vmem:[%s18433_s3 + $0x28] sm:$0xff]   ;;  %12167 = vmatprep.subr.bf16.mxu1 %v13249_v58 }
 0x187   : > { %v13980_v39 = vpop.eup %13979  ;;  %v2544_v33 = vmul.f32 %v13978_v20, %v15410_v26  ;;  %13999 = vrcp.f32 %v2167_v8  ;;  %v11292_v53 = vmul.f32 -1.442695, %v15526_v5  ;;  %v15537_v42 = vadd.f32 %v15457_v9, %v12966_v38  ;;  %v13253_v38 = vld [vmem:[%s18433_s3 + $0x200] sm:$0xff]   ;;  %12168 = vmatpush3.bf16.msra.mxu1 %v13250_v6 }
 0x188   : > { %v13982_v57 = vpop.eup %13981  ;;  %2845 = vst [vmem:[#allocation2 + $0x299] sm:$0xff] %v2546_v16  ;;  %v2549_v14 = vmul.f32 %v13980_v39, %v15424_v50  ;;  %14001 = vpow2.f32 %v11287_v30  ;;  %v3629_v34 = vsel %vm3337_vm1, %v3624_v25, %v3628_v2  ;;  %v3172_v12 = vld [vmem:[#allocation2 + $0x258] ss:$2 sm:$0xff]  ;;  %v3174_v63 = vld [vmem:[#allocation2 + $0x268] ss:$2 sm:$0xff]  ;;  %v15542_v1 = vadd.f32 %v15457_v9, %v1511_v36  ;;  %13015 = vmatprep.subr.bf16.mxu0 %v13253_v38 }
 0x189   : > { %v13984_v26 = vpop.eup %13983  ;;  %2843 = vst [vmem:[#allocation2 + $0x289] sm:$0xff] %v2544_v33  ;;  %v2547_v37 = vmul.f32 %v13982_v57, %v15428_v49  ;;  %4553 = vmatprep.mubr.bf16.mxu0 %v3629_v34  ;;  %14003 = vpow2.f32 %v11292_v53  ;;  %v11290_v13 = vmul.f32 -1.442695, %v15532_v60  ;;  %v12969_v50 = vpop.f32.mrb[80].mxu0  ;;  %v11293_v3 = vmul.f32 -1.442695, %v15537_v42  ;;  %13016 = vmatpush3.bf16.msra.mxu0 %v13253_v38 }
 0x18a   : > { %v13986_v61 = vpop.eup %13985  ;;  %2848 = vst [vmem:[#allocation2 + $0x2b9] sm:$0xff] %v2549_v14  ;;  %v2170_v40 = vadd.f32 1.0, %v13984_v26  ;;  %4554 = vmatmul.mubr.bf16.gmra.mrb[152].mxu0 %v3327_v48  ;;  %v15548_v4 = vpack.c.bf16 %v3174_v63, %v3172_v12  ;;  %v15550_v49 = vpack.c.bf16 %v2954_v35, %v2952_v51  ;;  %v1524_v30 = vpop.f32.mrb[81].mxu0  ;;  %v11291_v54 = vmul.f32 -1.442695, %v15542_v1 }
 0x18b   : > { %v13988_v22 = vpop.eup %13987  ;;  %2846 = vst [vmem:[#allocation2 + $0x2a9] sm:$0xff] %v2547_v37  ;;  %v2168_v28 = vadd.f32 1.0, %v13986_v61  ;;  %14005 = vpow2.f32 %v11290_v13  ;;  %v3026_v11 = vpack.c.bf16 %v2956_v44, %v2956_v44  ;;  %v12970_v36 = vpop.f32.mrb[82].mxu0  ;;  %v13254_v44 = vld [vmem:[%s18433_s3 + $0x208] sm:$0xff]   ;;  %v15567_v35 = vadd.f32 %v15457_v9, %v12969_v50  ;;  %v15576_v61 = vld [vmem:[#allocation2 + $0x259] ss:$2 sm:$0xff] }
 0x18c   : > { %18461 = vst [vmem:[#allocation7_spill] sm:$0xff] %v15550_v49  ;;  %v13990_v23 = vpop.eup %13989  ;;  %14007 = vrcp.f32 %v2170_v40  ;;  %v2173_v8 = vadd.f32 1.0, %v13988_v22  ;;  %v3633_v48 = vshll.u32 %v15548_v4, 16  ;;  %4015 = vmatprep.mubr.bf16.mxu1 %v15548_v4  ;;  %v3423_v51 = vshrl.u32 %v15550_v49, 16  ;;  %v1527_v20 = vpop.f32.mrb[83].mxu0  ;;  %13017 = vmatprep.subr.bf16.mxu0 %v13254_v44 }
 0x18d   : > { %v13992_v16 = vpop.eup %13991  ;;  %14009 = vrcp.f32 %v2168_v28  ;;  %v2171_v25 = vadd.f32 1.0, %v13990_v23  ;;  %v3425_v2 = vshll.u32 %v15550_v49, 16  ;;  %v3430_v39 = vshll.u32 %v3026_v11, 16  ;;  %v3176_v26 = vld [vmem:[#allocation2 + $0x278] ss:$2 sm:$0x1]  ;;  %13018 = vmatpush3.bf16.msra.mxu0 %v13254_v44 }
 0x18e   : > { %v13994_v33 = vpop.eup %13993  ;;  %14011 = vrcp.f32 %v2173_v8  ;;  %v2174_v53 = vadd.f32 1.0, %v13992_v16  ;;  %v15570_v57 = vadd.f32 %v15457_v9, %v1524_v30  ;;  %v11296_v58 = vmul.f32 -1.442695, %v15567_v35  ;;  %v15582_v38 = vld [vmem:[#allocation2 + $0x269] ss:$2 sm:$0xff] }
 0x18f   : > { %v13996_v14 = vpop.eup %13995  ;;  %v2550_v34 = vmul.f32 %v13994_v33, %v15440_v15  ;;  %14013 = vrcp.f32 %v2171_v25  ;;  %v3427_v12 = vrot.slane %v3425_v2, 1  ;;  %v3432_v63 = vrot.slane %v3430_v39, 1  ;;  %v13256_v28 = vld [vmem:[%s18433_s3 + $0x210] sm:$0xff]   ;;  %v13255_v33 = vld [vmem:[%s18433_s3 + $0x78] sm:$0xff]  }
 0x190   : > { %v13998_v37 = vpop.eup %13997  ;;  %v2548_v13 = vmul.f32 %v13996_v14, %v15443_v56  ;;  %14015 = vrcp.f32 %v2174_v53  ;;  %v11294_v50 = vmul.f32 -1.442695, %v15570_v57  ;;  %v15580_v6 = vadd.f32 %v15457_v9, %v12970_v36  ;;  %v13251_v56 = vld [vmem:[%s18433_s3 + $0x70] sm:$0xff]   ;;  %13019 = vmatprep.subr.bf16.mxu0 %v13256_v28 }
 0x191   : > { %v14000_v40 = vpop.eup %13999  ;;  %2849 = vst [vmem:[#allocation2 + $0x2c1] sm:$0xff] %v2550_v34  ;;  %v2553_v30 = vmul.f32 %v13998_v37, %v15460_v62  ;;  %14017 = vpow2.f32 %v11293_v3  ;;  %v3428_v15 = vor.u32 %v3427_v12, %v3423_v51  ;;  %v12973_v22 = vpop.f32.mrb[84].mxu0  ;;  %v15592_v3 = vadd.f32 %v15457_v9, %v1527_v20  ;;  %12169 = vmatprep.subr.bf16.mxu1 %v13251_v56 }
 0x192   : > { %v14002_v11 = vpop.eup %14001  ;;  %2847 = vst [vmem:[#allocation2 + $0x2b1] sm:$0xff] %v2548_v13  ;;  %v2551_v62 = vmul.f32 %v14000_v40, %v15466_v24  ;;  %14019 = vpow2.f32 %v11291_v54  ;;  %v3240_v36 = vpack.c.bf16 %v3176_v26, %v3176_v26  ;;  %v1540_v23 = vpop.f32.mrb[85].mxu0  ;;  %v11297_v25 = vmul.f32 -1.442695, %v15580_v6  ;;  %v13252_v24 = vld [vmem:[%s18433_s3 + $0x30] sm:$0xff]   ;;  %v13258_v26 = vld [vmem:[%s18433_s3 + $0x218] sm:$0xff]   ;;  %13020 = vmatpush3.bf16.msra.mxu0 %v13256_v28 }
 0x193   : > { %v14004_v8 = vpop.eup %14003  ;;  %2852 = vst [vmem:[#allocation2 + $0x2e1] sm:$0xff] %v2553_v30  ;;  %v2172_v51 = vadd.f32 1.0, %v14002_v11  ;;  %v15595_v16 = vsel %vm3337_vm1, %v3428_v15, %v3432_v63  ;;  %14021 = vpow2.f32 %v11296_v58  ;;  %v12974_v2 = vpop.f32.mrb[86].mxu0  ;;  %v11295_v20 = vmul.f32 -1.442695, %v15592_v3  ;;  %12170 = vmatpush3.bf16.msra.mxu1 %v13252_v24  ;;  %v13257_v63 = vld [vmem:[%s18433_s3 + $0x38] sm:$0xff]   ;;  %13021 = vmatprep.subr.bf16.mxu0 %v13258_v26 }
 0x194   : > { %2850 = vst [vmem:[#allocation2 + $0x2d1] sm:$0xff] %v2551_v62  ;;  %v2177_v54 = vadd.f32 1.0, %v14004_v8  ;;  %4016 = vmatmul.mubr.bf16.gmra.mrb[28].mxu1 %v15595_v16  ;;  %14023 = vpow2.f32 %v11294_v50  ;;  %v3631_v39 = vshrl.u32 %v15548_v4, 16  ;;  %v1543_v44 = vpop.f32.mrb[87].mxu0  ;;  %v3635_v14 = vrot.slane %v3633_v48, 1  ;;  %12171 = vmatprep.subr.bf16.mxu1 %v13255_v33 }
 0x195   : > { %v14006_v53 = vpop.eup %14005  ;;  %14025 = vrcp.f32 %v2172_v51  ;;  %v3638_v34 = vshll.u32 %v3240_v36, 16  ;;  %v3328_v12 = vpack.c.bf16 %v15582_v38, %v15576_v61  ;;  %v15618_v58 = vadd.f32 %v15457_v9, %v12973_v22  ;;  %v2958_v48 = vld [vmem:[#allocation2 + $0x280] ss:$2 sm:$0xff]  ;;  %v2960_v62 = vld [vmem:[#allocation2 + $0x290] ss:$2 sm:$0xff] }
 0x196   : > { %v14008_v37 = vpop.eup %14007  ;;  %14027 = vrcp.f32 %v2177_v54  ;;  %v2175_v13 = vadd.f32 1.0, %v14006_v53  ;;  %v15621_v4 = vadd.f32 %v15457_v9, %v1540_v23  ;;  %v3636_v40 = vor.u32 %v3635_v14, %v3631_v39  ;;  %v2962_v15 = vld [vmem:[#allocation2 + $0x2a0] ss:$2 sm:$0x1]  ;;  %13022 = vmatpush3.bf16.msra.mxu0 %v13258_v26 }
 0x197   : > { %v14010_v50 = vpop.eup %14009  ;;  %v2554_v61 = vmul.f32 %v14008_v37, %v15474_v47  ;;  %14029 = vpow2.f32 %v11297_v25  ;;  %v3640_v30 = vrot.slane %v3638_v34, 1  ;;  %v13259_v38 = vld [vmem:[%s18433_s3 + $0x220] sm:$0xff]   ;;  %v11300_v11 = vmul.f32 -1.442695, %v15618_v58  ;;  %12172 = vmatpush3.bf16.msra.mxu1 %v13257_v63 }
 0x198   : > { %v14012_v22 = vpop.eup %14011  ;;  %v2552_v56 = vmul.f32 %v14010_v50, %v15479_v59  ;;  %14031 = vrcp.f32 %v2175_v13  ;;  %v11298_v28 = vmul.f32 -1.442695, %v15621_v4  ;;  %v15633_v8 = vadd.f32 %v15457_v9, %v12974_v2  ;;  %13023 = vmatprep.subr.bf16.mxu0 %v13259_v38  ;;  %v13261_v34 = vld [vmem:[%s18433_s3 + $0x1c0] sm:$0xff]  }
 0x199   : > { %v14014_v36 = vpop.eup %14013  ;;  %2853 = vst [vmem:[#allocation2 + $0x2e9] sm:$0xff] %v2554_v61  ;;  %v2557_v47 = vmul.f32 %v14012_v22, %v15495_v41  ;;  %14033 = vpow2.f32 %v11295_v20  ;;  %v3641_v23 = vsel %vm3337_vm1, %v3636_v40, %v3640_v30  ;;  %v3178_v51 = vld [vmem:[#allocation2 + $0x2a8] ss:$2 sm:$0xff]  ;;  %v3180_v25 = vld [vmem:[#allocation2 + $0x2b8] ss:$2 sm:$0xff]  ;;  %v12977_v24 = vpop.f32.mrb[88].mxu0  ;;  %v15637_v39 = vadd.f32 %v15457_v9, %v1543_v44  ;;  %12381 = vmatprep.subr.bf16.mxu1 %v13261_v34 }
 0x19a   : > { %v14016_v59 = vpop.eup %14015  ;;  %2851 = vst [vmem:[#allocation2 + $0x2d9] sm:$0xff] %v2552_v56  ;;  %v2555_v54 = vmul.f32 %v14014_v36, %v15498_v7  ;;  %4561 = vmatprep.mubr.bf16.mxu0 %v3641_v23  ;;  %14035 = vpow2.f32 %v11300_v11  ;;  %v15639_v41 = vpack.c.bf16 %v3180_v25, %v3178_v51  ;;  %v1556_v20 = vpop.f32.mrb[89].mxu0  ;;  %v11301_v53 = vmul.f32 -1.442695, %v15633_v8  ;;  %v13260_v44 = vld [vmem:[%s18433_s3 + $0x228] sm:$0xff]   ;;  %13024 = vmatpush3.bf16.msra.mxu0 %v13259_v38 }
 0x19b   : > { %v14018_v33 = vpop.eup %14017  ;;  %2856 = vst [vmem:[#allocation2 + $0x309] sm:$0xff] %v2557_v47  ;;  %v2558_v2 = vmul.f32 %v14016_v59, %v15502_v27  ;;  %4562 = vmatmul.mubr.bf16.gmra.mrb[156].mxu0 %v3328_v12  ;;  %14037 = vpow2.f32 %v11298_v28  ;;  %v15643_v14 = vpack.c.bf16 %v2960_v62, %v2958_v48  ;;  %v12978_v7 = vpop.f32.mrb[90].mxu0  ;;  %v11299_v27 = vmul.f32 -1.442695, %v15637_v39  ;;  %13025 = vmatprep.subr.bf16.mxu0 %v13260_v44  ;;  %v13262_v47 = vld [vmem:[%s18433_s3 + $0x230] sm:$0xff]  }
 0x19c   : > { %v14020_v63 = vpop.eup %14019  ;;  %2854 = vst [vmem:[#allocation2 + $0x2f9] sm:$0xff] %v2555_v54  ;;  %v2178_v26 = vadd.f32 1.0, %v14018_v33  ;;  %v3645_v12 = vshll.u32 %v15639_v41, 16  ;;  %4023 = vmatprep.mubr.bf16.mxu1 %v15639_v41  ;;  %v3028_v37 = vpack.c.bf16 %v2962_v15, %v2962_v15  ;;  %v1559_v13 = vpop.f32.mrb[91].mxu0  ;;  %14039 = vpow2.f32 %v11301_v53 }
 0x19d   : > { %18462 = vst [vmem:[#allocation8_spill] sm:$0xff] %v15643_v14  ;;  %v14022_v48 = vpop.eup %14021  ;;  %2857 = vst [vmem:[#allocation2 + $0x311] sm:$0xff] %v2558_v2  ;;  %v2176_v50 = vadd.f32 1.0, %v14020_v63  ;;  %v3435_v61 = vshrl.u32 %v15643_v14, 16  ;;  %v3437_v40 = vshll.u32 %v15643_v14, 16  ;;  %v15657_v11 = vadd.f32 %v15457_v9, %v12977_v24 }
 0x19e   : > { %v14024_v30 = vpop.eup %14023  ;;  %14041 = vrcp.f32 %v2178_v26  ;;  %v2181_v22 = vadd.f32 1.0, %v14022_v48  ;;  %v3442_v56 = vshll.u32 %v3028_v37, 16  ;;  %v15660_v36 = vadd.f32 %v15457_v9, %v1556_v20  ;;  %v3182_v38 = vld [vmem:[#allocation2 + $0x2c8] ss:$2 sm:$0x1]  ;;  %13026 = vmatpush3.bf16.msra.mxu0 %v13260_v44 }
 0x19f   : > { %v14026_v28 = vpop.eup %14025  ;;  %14043 = vrcp.f32 %v2176_v50  ;;  %v2179_v15 = vadd.f32 1.0, %v14024_v30  ;;  %v3439_v62 = vrot.slane %v3437_v40, 1  ;;  %v11304_v24 = vmul.f32 -1.442695, %v15657_v11  ;;  %v15669_v2 = vld [vmem:[#allocation2 + $0x2b9] ss:$2 sm:$0xff]  ;;  %13027 = vmatprep.subr.bf16.mxu0 %v13262_v47 }
 0x1a0   : > { %v14028_v23 = vpop.eup %14027  ;;  %v2556_v51 = vmul.f32 %v14026_v28, %v15515_v46  ;;  %14045 = vrcp.f32 %v2181_v22  ;;  %v3444_v25 = vrot.slane %v3442_v56, 1  ;;  %v11302_v20 = vmul.f32 -1.442695, %v15660_v36  ;;  %v15677_v37 = vld [vmem:[#allocation2 + $0x2a9] ss:$2 sm:$0xff] }
 0x1a1   : > { %v14030_v59 = vpop.eup %14029  ;;  %v2561_v54 = vmul.f32 %v14028_v23, %v15526_v5  ;;  %14047 = vrcp.f32 %v2179_v15  ;;  %v3440_v33 = vor.u32 %v3439_v62, %v3435_v61  ;;  %v12981_v53 = vpop.f32.mrb[92].mxu0  ;;  %v15672_v46 = vadd.f32 %v15457_v9, %v12978_v7  ;;  %v13264_v7 = vld [vmem:[%s18433_s3 + $0x238] sm:$0xff]  }
 0x1a2   : > { %v14032_v34 = vpop.eup %14031  ;;  %2855 = vst [vmem:[#allocation2 + $0x301] sm:$0xff] %v2556_v51  ;;  %v2182_v63 = vadd.f32 1.0, %v14030_v59  ;;  %14049 = vpow2.f32 %v11299_v27  ;;  %v15675_v26 = vadd.f32 %v15457_v9, %v1559_v13  ;;  %v1572_v5 = vpop.f32.mrb[93].mxu0  ;;  %v3242_v40 = vpack.c.bf16 %v3182_v38, %v3182_v38  ;;  %13028 = vmatpush3.bf16.msra.mxu0 %v13262_v47  ;;  %v2966_v47 = vld [vmem:[#allocation2 + $0x2e0] ss:$2 sm:$0xff] }
 0x1a3   : > { %v14034_v48 = vpop.eup %14033  ;;  %2860 = vst [vmem:[#allocation2 + $0x331] sm:$0xff] %v2561_v54  ;;  %v2559_v50 = vmul.f32 %v14032_v34, %v15532_v60  ;;  %v15681_v61 = vsel %vm3337_vm1, %v3440_v33, %v3444_v25  ;;  %14051 = vpow2.f32 %v11304_v24  ;;  %v12982_v27 = vpop.f32.mrb[94].mxu0  ;;  %v11305_v44 = vmul.f32 -1.442695, %v15672_v46  ;;  %v2964_v33 = vld [vmem:[#allocation2 + $0x2d0] ss:$2 sm:$0xff]  ;;  %13029 = vmatprep.subr.bf16.mxu0 %v13264_v7 }
 0x1a4   : > { %v14036_v13 = vpop.eup %14035  ;;  %14053 = vrcp.f32 %v2182_v63  ;;  %v2180_v30 = vadd.f32 1.0, %v14034_v48  ;;  %4024 = vmatmul.mubr.bf16.gmra.mrb[32].mxu1 %v15681_v61  ;;  %v11303_v60 = vmul.f32 -1.442695, %v15675_v26  ;;  %v1575_v22 = vpop.f32.mrb[95].mxu0  ;;  %v3643_v15 = vshrl.u32 %v15639_v41, 16 }
 0x1a5   : > { %v14038_v56 = vpop.eup %14037  ;;  %2858 = vst [vmem:[#allocation2 + $0x321] sm:$0xff] %v2559_v50  ;;  %v2185_v28 = vadd.f32 1.0, %v14036_v13  ;;  %14055 = vpow2.f32 %v11302_v20  ;;  %v3647_v62 = vrot.slane %v3645_v12, 1  ;;  %v3650_v51 = vshll.u32 %v3242_v40, 16 }
 0x1a6   : > { %14057 = vrcp.f32 %v2180_v30  ;;  %v2183_v23 = vadd.f32 1.0, %v14038_v56  ;;  %v3329_v25 = vpack.c.bf16 %v15669_v2, %v15677_v37  ;;  %v14040_v24 = vpop.eup %14039  ;;  %v15695_v59 = vadd.f32 %v15457_v9, %v12981_v53  ;;  %v2968_v20 = vld [vmem:[#allocation2 + $0x2f0] ss:$2 sm:$0x1]  ;;  %13030 = vmatpush3.bf16.msra.mxu0 %v13264_v7 }
 0x1a7   : > { %14059 = vrcp.f32 %v2185_v28  ;;  %v3648_v38 = vor.u32 %v3647_v62, %v3643_v15  ;;  %v15698_v54 = vadd.f32 %v15457_v9, %v1572_v5  ;;  %v2186_v12 = vadd.f32 1.0, %v14040_v24 }
 0x1a8   : > { %v14042_v41 = vpop.eup %14041  ;;  %14061 = vrcp.f32 %v2183_v23  ;;  %v3652_v34 = vrot.slane %v3650_v51, 1  ;;  %v15701_v63 = vadd.f32 %v15457_v9, %v12982_v27  ;;  %v11308_v53 = vmul.f32 -1.442695, %v15695_v59 }
 0x1a9   : > { %v14044_v2 = vpop.eup %14043  ;;  %v2562_v37 = vmul.f32 %v14042_v41, %v15537_v42  ;;  %14063 = vpow2.f32 %v11305_v44  ;;  %v11306_v5 = vmul.f32 -1.442695, %v15698_v54  ;;  %v3184_v48 = vld [vmem:[#allocation2 + $0x2f8] ss:$2 sm:$0xff]  ;;  %v3186_v27 = vld [vmem:[#allocation2 + $0x308] ss:$2 sm:$0xff]  ;;  %v15711_v44 = vadd.f32 %v15457_v9, %v1575_v22 }
 0x1aa   : > { %v14046_v50 = vpop.eup %14045  ;;  %v2560_v40 = vmul.f32 %v14044_v2, %v15542_v1  ;;  %14065 = vrcp.f32 %v2186_v12  ;;  %v3653_v13 = vsel %vm3337_vm1, %v3648_v38, %v3652_v34  ;;  %v11309_v30 = vmul.f32 -1.442695, %v15701_v63  ;;  %v12985_v56 = vpop.f32.mrb[96].mxu0 }
 0x1ab   : > { %v14048_v28 = vpop.eup %14047  ;;  %2861 = vst [vmem:[#allocation2 + $0x339] sm:$0xff] %v2562_v37  ;;  %v2565_v42 = vmul.f32 %v14046_v50, %v15567_v35  ;;  %14067 = vpow2.f32 %v11303_v60  ;;  %4569 = vmatprep.mubr.bf16.mxu0 %v3653_v13  ;;  %v15713_v15 = vpack.c.bf16 %v3186_v27, %v3184_v48  ;;  %v1588_v1 = vpop.f32.mrb[97].mxu0  ;;  %v15716_v51 = vpack.c.bf16 %v2966_v47, %v2964_v33  ;;  %v3188_v50 = vld [vmem:[#allocation2 + $0x318] ss:$2 sm:$0x1] }
 0x1ac   : > { %v14050_v62 = vpop.eup %14049  ;;  %2859 = vst [vmem:[#allocation2 + $0x329] sm:$0xff] %v2560_v40  ;;  %v2563_v23 = vmul.f32 %v14048_v28, %v15570_v57  ;;  %4570 = vmatmul.mubr.bf16.gmra.mrb[160].mxu0 %v3329_v25  ;;  %14069 = vpow2.f32 %v11308_v53  ;;  %v3030_v7 = vpack.c.bf16 %v2968_v20, %v2968_v20  ;;  %v12986_v24 = vpop.f32.mrb[98].mxu0  ;;  %v11307_v60 = vmul.f32 -1.442695, %v15711_v44 }
 0x1ad   : > { %18463 = vst [vmem:[#allocation9_spill] sm:$0xff] %v15716_v51  ;;  %v14052_v38 = vpop.eup %14051  ;;  %2864 = vst [vmem:[#allocation2 + $0x359] sm:$0xff] %v2565_v42  ;;  %v2184_v35 = vadd.f32 1.0, %v14050_v62  ;;  %14071 = vpow2.f32 %v11306_v5  ;;  %v3657_v22 = vshll.u32 %v15713_v15, 16  ;;  %4031 = vmatprep.mubr.bf16.mxu1 %v15713_v15  ;;  %v1591_v41 = vpop.f32.mrb[99].mxu0  ;;  %v3447_v25 = vshrl.u32 %v15716_v51, 16 }
 0x1ae   : > { %v14054_v12 = vpop.eup %14053  ;;  %2862 = vst [vmem:[#allocation2 + $0x349] sm:$0xff] %v2563_v23  ;;  %v2189_v57 = vadd.f32 1.0, %v14052_v38  ;;  %14073 = vpow2.f32 %v11309_v30  ;;  %v3449_v33 = vshll.u32 %v15716_v51, 16  ;;  %v3454_v47 = vshll.u32 %v3030_v7, 16 }
 0x1af   : > { %v14056_v20 = vpop.eup %14055  ;;  %v2566_v34 = vmul.f32 %v14054_v12, %v15580_v6  ;;  %14075 = vrcp.f32 %v2184_v35  ;;  %v15725_v2 = vadd.f32 %v15457_v9, %v12985_v56  ;;  %v15728_v48 = vadd.f32 %v15457_v9, %v1588_v1 }
 0x1b0   : > { %v14058_v37 = vpop.eup %14057  ;;  %14077 = vrcp.f32 %v2189_v57  ;;  %v2187_v53 = vadd.f32 1.0, %v14056_v20  ;;  %v3451_v5 = vrot.slane %v3449_v33, 1  ;;  %v3456_v30 = vrot.slane %v3454_v47, 1  ;;  %v3294_v57 = vld [vmem:[#allocation2 + $0x2f9] ss:$2 sm:$0xff] }
 0x1b1   : > { %v14060_v40 = vpop.eup %14059  ;;  %2865 = vst [vmem:[#allocation2 + $0x361] sm:$0xff] %v2566_v34  ;;  %v2564_v13 = vmul.f32 %v14058_v37, %v15592_v3  ;;  %14079 = vpow2.f32 %v11307_v60  ;;  %v11312_v6 = vmul.f32 -1.442695, %v15725_v2  ;;  %v12989_v27 = vpop.f32.mrb[100].mxu0  ;;  %v11310_v62 = vmul.f32 -1.442695, %v15728_v48 }
 0x1b2   : > { %v14062_v28 = vpop.eup %14061  ;;  %v2569_v56 = vmul.f32 %v14060_v40, %v15618_v58  ;;  %14081 = vrcp.f32 %v2187_v53  ;;  %v3452_v42 = vor.u32 %v3451_v5, %v3447_v25  ;;  %v1604_v23 = vpop.f32.mrb[101].mxu0  ;;  %v15738_v3 = vld [vmem:[%s18432_s2] ss:$0 sm:$0xff]  ;;  %v3296_v25 = vld [vmem:[#allocation2 + $0x309] ss:$2 sm:$0xff]  ;;  %v3655_v47 = vshrl.u32 %v15713_v15, 16 }
 0x1b3   : > { %v14064_v9 = vpop.eup %14063  ;;  %2863 = vst [vmem:[#allocation2 + $0x351] sm:$0xff] %v2564_v13  ;;  %v2567_v1 = vmul.f32 %v14062_v28, %v15621_v4  ;;  %14083 = vpow2.f32 %v11312_v6  ;;  %v15741_v7 = vadd.f32 %v15738_v3, %v12986_v24  ;;  %v15744_v58 = vadd.f32 %v15738_v3, %v1591_v41  ;;  %v12990_v38 = vpop.f32.mrb[102].mxu0 }
 0x1b4   : > { %v14066_v35 = vpop.eup %14065  ;;  %2868 = vst [vmem:[#allocation2 + $0x381] sm:$0xff] %v2569_v56  ;;  %v2190_v60 = vadd.f32 1.0, %v14064_v9  ;;  %v15747_v12 = vsel %vm3337_vm1, %v3452_v42, %v3456_v30  ;;  %14085 = vpow2.f32 %v11310_v62  ;;  %v3244_v4 = vpack.c.bf16 %v3188_v50, %v3188_v50  ;;  %v1607_v33 = vpop.f32.mrb[103].mxu0  ;;  %v2970_v62 = vld [vmem:[#allocation2 + $0x320] ss:$2 sm:$0xff] }
 0x1b5   : > { %v14068_v20 = vpop.eup %14067  ;;  %2866 = vst [vmem:[#allocation2 + $0x371] sm:$0xff] %v2567_v1  ;;  %v2570_v24 = vmul.f32 %v14066_v35, %v15633_v8  ;;  %4032 = vmatmul.mubr.bf16.gmra.mrb[36].mxu1 %v15747_v12  ;;  %v11313_v41 = vmul.f32 -1.442695, %v15741_v7  ;;  %v11311_v34 = vmul.f32 -1.442695, %v15744_v58  ;;  %v3659_v5 = vrot.slane %v3657_v22, 1 }
 0x1b6   : > { %v14070_v37 = vpop.eup %14069  ;;  %14087 = vrcp.f32 %v2190_v60  ;;  %v2188_v53 = vadd.f32 1.0, %v14068_v20  ;;  %v3662_v50 = vshll.u32 %v3244_v4, 16  ;;  %v3330_v30 = vpack.c.bf16 %v3296_v25, %v3294_v57  ;;  %v2972_v35 = vld [vmem:[#allocation2 + $0x330] ss:$2 sm:$0xff] }
 0x1b7   : > { %v14072_v40 = vpop.eup %14071  ;;  %2869 = vst [vmem:[#allocation2 + $0x389] sm:$0xff] %v2570_v24  ;;  %v2193_v13 = vadd.f32 1.0, %v14070_v37  ;;  %14089 = vpow2.f32 %v11313_v41  ;;  %v15755_v8 = vadd.f32 %v15738_v3, %v12989_v27  ;;  %v3660_v56 = vor.u32 %v3659_v5, %v3655_v47 }
 0x1b8   : > { %v14074_v6 = vpop.eup %14073  ;;  %14091 = vrcp.f32 %v2188_v53  ;;  %v2191_v28 = vadd.f32 1.0, %v14072_v40  ;;  %v3664_v42 = vrot.slane %v3662_v50, 1  ;;  %v15759_v1 = vadd.f32 %v15738_v3, %v1604_v23 }
 0x1b9   : > { %v14076_v15 = vpop.eup %14075  ;;  %14093 = vrcp.f32 %v2193_v13  ;;  %v2194_v9 = vadd.f32 1.0, %v14074_v6  ;;  %v11316_v22 = vmul.f32 -1.442695, %v15755_v8  ;;  %v12993_v60 = vpop.f32.mrb[104].mxu0  ;;  %v15764_v25 = vadd.f32 %v15738_v3, %v12990_v38 }
 0x1ba   : > { %v14078_v4 = vpop.eup %14077  ;;  %v2568_v27 = vmul.f32 %v14076_v15, %v15637_v39  ;;  %14095 = vrcp.f32 %v2191_v28  ;;  %v3665_v57 = vsel %vm3337_vm1, %v3660_v56, %v3664_v42  ;;  %v3190_v20 = vld [vmem:[#allocation2 + $0x348] ss:$2 sm:$0xff]  ;;  %v3192_v24 = vld [vmem:[#allocation2 + $0x358] ss:$2 sm:$0xff]  ;;  %v1620_v41 = vpop.f32.mrb[105].mxu0  ;;  %v15769_v53 = vadd.f32 %v15738_v3, %v1607_v33 }
 0x1bb   : > { %v14080_v47 = vpop.eup %14079  ;;  %v2573_v37 = vmul.f32 %v14078_v4, %v15657_v11  ;;  %14097 = vrcp.f32 %v2194_v9  ;;  %4577 = vmatprep.mubr.bf16.mxu0 %v3665_v57  ;;  %v11314_v23 = vmul.f32 -1.442695, %v15759_v1  ;;  %v2974_v39 = vld [vmem:[#allocation2 + $0x340] ss:$2 sm:$0x1]  ;;  %v12994_v5 = vpop.f32.mrb[106].mxu0  ;;  %v15772_v13 = vpack.c.bf16 %v3192_v24, %v3190_v20 }
 0x1bc   : > { %v14082_v50 = vpop.eup %14081  ;;  %2867 = vst [vmem:[#allocation2 + $0x379] sm:$0xff] %v2568_v27  ;;  %v2192_v40 = vadd.f32 1.0, %v14080_v47  ;;  %14099 = vpow2.f32 %v11311_v34  ;;  %4578 = vmatmul.mubr.bf16.gmra.mrb[164].mxu0 %v3330_v30  ;;  %v11317_v38 = vmul.f32 -1.442695, %v15764_v25  ;;  %v1623_v6 = vpop.f32.mrb[107].mxu0  ;;  %v15776_v56 = vpack.c.bf16 %v2972_v35, %v2970_v62 }
 0x1bd   : > { %v14084_v11 = vpop.eup %14083  ;;  %2872 = vst [vmem:[#allocation2 + $0x3a9] sm:$0xff] %v2573_v37  ;;  %v2571_v28 = vmul.f32 %v14082_v50, %v15660_v36  ;;  %14101 = vpow2.f32 %v11316_v22  ;;  %v11315_v33 = vmul.f32 -1.442695, %v15769_v53  ;;  %v3669_v34 = vshll.u32 %v15772_v13, 16  ;;  %4039 = vmatprep.mubr.bf16.mxu1 %v15772_v13 }
 0x1be   : > { %18464 = vst [vmem:[#allocation10_spill] sm:$0xff] %v15776_v56  ;;  %v14086_v42 = vpop.eup %14085  ;;  %14103 = vrcp.f32 %v2192_v40  ;;  %v2197_v15 = vadd.f32 1.0, %v14084_v11  ;;  %v3032_v30 = vpack.c.bf16 %v2974_v39, %v2974_v39  ;;  %v3459_v4 = vshrl.u32 %v15776_v56, 16  ;;  %v3194_v37 = vld [vmem:[#allocation2 + $0x368] ss:$2 sm:$0x1] }
 0x1bf   : > { %2870 = vst [vmem:[#allocation2 + $0x399] sm:$0xff] %v2571_v28  ;;  %v2195_v9 = vadd.f32 1.0, %v14086_v42  ;;  %14105 = vpow2.f32 %v11314_v23  ;;  %v3461_v36 = vshll.u32 %v15776_v56, 16  ;;  %v15783_v62 = vadd.f32 %v15738_v3, %v12993_v60 }
 0x1c0   : > { %v14088_v22 = vpop.eup %14087  ;;  %14107 = vrcp.f32 %v2197_v15  ;;  %v3466_v27 = vshll.u32 %v3032_v30, 16  ;;  %v15786_v35 = vadd.f32 %v15738_v3, %v1620_v41  ;;  %v15790_v47 = vadd.f32 %v15738_v3, %v12994_v5 }
 0x1c1   : > { %v14090_v57 = vpop.eup %14089  ;;  %v2574_v20 = vmul.f32 %v14088_v22, %v15672_v46  ;;  %14109 = vrcp.f32 %v2195_v9  ;;  %v3463_v24 = vrot.slane %v3461_v36, 1  ;;  %v12997_v23 = vpop.f32.mrb[108].mxu0  ;;  %v11320_v60 = vmul.f32 -1.442695, %v15783_v62 }
 0x1c2   : > { %v14092_v39 = vpop.eup %14091  ;;  %v2198_v50 = vadd.f32 1.0, %v14090_v57  ;;  %14111 = vpow2.f32 %v11317_v38  ;;  %v3468_v40 = vrot.slane %v3466_v27, 1  ;;  %v1636_v11 = vpop.f32.mrb[109].mxu0  ;;  %v11318_v42 = vmul.f32 -1.442695, %v15786_v35 }
 0x1c3   : > { %v14094_v28 = vpop.eup %14093  ;;  %2873 = vst [vmem:[#allocation2 + $0x3b1] sm:$0xff] %v2574_v20  ;;  %v2572_v41 = vmul.f32 %v14092_v39, %v15675_v26  ;;  %14113 = vpow2.f32 %v11315_v33  ;;  %v3464_v46 = vor.u32 %v3463_v24, %v3459_v4  ;;  %v12998_v15 = vpop.f32.mrb[110].mxu0  ;;  %v11321_v9 = vmul.f32 -1.442695, %v15790_v47  ;;  %v3298_v4 = vld [vmem:[#allocation2 + $0x349] ss:$2 sm:$0xff] }
 0x1c4   : > { %v14096_v5 = vpop.eup %14095  ;;  %v2577_v30 = vmul.f32 %v14094_v28, %v15695_v59  ;;  %14115 = vrcp.f32 %v2198_v50  ;;  %v15798_v38 = vadd.f32 %v15738_v3, %v1623_v6  ;;  %v1639_v36 = vpop.f32.mrb[111].mxu0  ;;  %v3246_v33 = vpack.c.bf16 %v3194_v37, %v3194_v37  ;;  %v3300_v57 = vld [vmem:[#allocation2 + $0x359] ss:$2 sm:$0xff] }
 0x1c5   : > { %v14098_v22 = vpop.eup %14097  ;;  %2871 = vst [vmem:[#allocation2 + $0x3a1] sm:$0xff] %v2572_v41  ;;  %v2575_v27 = vmul.f32 %v14096_v5, %v15698_v54  ;;  %v15802_v26 = vsel %vm3337_vm1, %v3464_v46, %v3468_v40  ;;  %14117 = vpow2.f32 %v11320_v60  ;;  %v3667_v24 = vshrl.u32 %v15772_v13, 16  ;;  %v2976_v5 = vld [vmem:[#allocation2 + $0x370] ss:$2 sm:$0xff] }
 0x1c6   : > { %v14100_v20 = vpop.eup %14099  ;;  %2876 = vst [vmem:[#allocation2 + $0x3d1] sm:$0xff] %v2577_v30  ;;  %v2578_v59 = vmul.f32 %v14098_v22, %v15701_v63  ;;  %4040 = vmatmul.mubr.bf16.gmra.mrb[40].mxu1 %v15802_v26  ;;  %14119 = vpow2.f32 %v11318_v42  ;;  %v11319_v6 = vmul.f32 -1.442695, %v15798_v38  ;;  %v3671_v50 = vrot.slane %v3669_v34, 1  ;;  %v2978_v30 = vld [vmem:[#allocation2 + $0x380] ss:$2 sm:$0xff] }
 0x1c7   : > { %v14102_v39 = vpop.eup %14101  ;;  %2874 = vst [vmem:[#allocation2 + $0x3c1] sm:$0xff] %v2575_v27  ;;  %v2196_v54 = vadd.f32 1.0, %v14100_v20  ;;  %14121 = vpow2.f32 %v11321_v9  ;;  %v3674_v40 = vshll.u32 %v3246_v33, 16  ;;  %v3331_v28 = vpack.c.bf16 %v3300_v57, %v3298_v4 }
 0x1c8   : > { %v14104_v37 = vpop.eup %14103  ;;  %2877 = vst [vmem:[#allocation2 + $0x3d9] sm:$0xff] %v2578_v59  ;;  %v2201_v60 = vadd.f32 1.0, %v14102_v39  ;;  %14123 = vpow2.f32 %v11319_v6  ;;  %v15809_v63 = vadd.f32 %v15738_v3, %v12997_v23  ;;  %v3672_v42 = vor.u32 %v3671_v50, %v3667_v24  ;;  %v2980_v6 = vld [vmem:[#allocation2 + $0x390] ss:$2 sm:$0x1] }
 0x1c9   : > { %v14106_v41 = vpop.eup %14105  ;;  %v2576_v46 = vmul.f32 %v14104_v37, %v15711_v44  ;;  %14125 = vrcp.f32 %v2196_v54  ;;  %v3676_v13 = vrot.slane %v3674_v40, 1  ;;  %v13001_v22 = vpop.f32.mrb[112].mxu0  ;;  %v15814_v33 = vadd.f32 %v15738_v3, %v1636_v11 }
 0x1ca   : > { %v14108_v9 = vpop.eup %14107  ;;  %14127 = vrcp.f32 %v2201_v60  ;;  %v2199_v34 = vadd.f32 1.0, %v14106_v41  ;;  %v11324_v27 = vmul.f32 -1.442695, %v15809_v63  ;;  %v1652_v4 = vpop.f32.mrb[113].mxu0  ;;  %v15819_v20 = vadd.f32 %v15738_v3, %v12998_v15 }
 0x1cb   : > { %v14110_v23 = vpop.eup %14109  ;;  %2875 = vst [vmem:[#allocation2 + $0x3c9] sm:$0xff] %v2576_v46  ;;  %v2581_v57 = vmul.f32 %v14108_v9, %v15725_v2  ;;  %v3677_v44 = vsel %vm3337_vm1, %v3672_v42, %v3676_v13  ;;  %v15822_v59 = vadd.f32 %v15738_v3, %v1639_v36  ;;  %v13002_v24 = vpop.f32.mrb[114].mxu0  ;;  %v11322_v11 = vmul.f32 -1.442695, %v15814_v33 }
 0x1cc   : > { %v14112_v39 = vpop.eup %14111  ;;  %v2579_v54 = vmul.f32 %v14110_v23, %v15728_v48  ;;  %14129 = vrcp.f32 %v2199_v34  ;;  %4585 = vmatprep.mubr.bf16.mxu0 %v3677_v44  ;;  %v3196_v50 = vld [vmem:[#allocation2 + $0x398] ss:$2 sm:$0xff]  ;;  %v3198_v40 = vld [vmem:[#allocation2 + $0x3a8] ss:$2 sm:$0xff]  ;;  %v15826_v2 = vpack.c.bf16 %v2978_v30, %v2976_v5  ;;  %v11325_v36 = vmul.f32 -1.442695, %v15819_v20 }
 0x1cd   : > { %v14114_v37 = vpop.eup %14113  ;;  %2880 = vst [vmem:[#allocation2 + $0x3f9] sm:$0xff] %v2581_v57  ;;  %v2202_v15 = vadd.f32 1.0, %v14112_v39  ;;  %4586 = vmatmul.mubr.bf16.gmra.mrb[168].mxu0 %v3331_v28  ;;  %14131 = vpow2.f32 %v11324_v27  ;;  %v11323_v60 = vmul.f32 -1.442695, %v15822_v59  ;;  %v1655_v41 = vpop.f32.mrb[115].mxu0  ;;  %v15830_v42 = vpack.c.bf16 %v3198_v40, %v3196_v50 }
 0x1ce   : > { %18465 = vst [vmem:[#allocation11_spill] sm:$0xff] %v15826_v2  ;;  %v14116_v46 = vpop.eup %14115  ;;  %2878 = vst [vmem:[#allocation2 + $0x3e9] sm:$0xff] %v2579_v54  ;;  %v2200_v48 = vadd.f32 1.0, %v14114_v37  ;;  %14133 = vpow2.f32 %v11322_v11  ;;  %v3034_v13 = vpack.c.bf16 %v2980_v6, %v2980_v6  ;;  %v3471_v30 = vshrl.u32 %v15826_v2, 16 }
 0x1cf   : > { %v14118_v9 = vpop.eup %14117  ;;  %v2582_v5 = vmul.f32 %v14116_v46, %v15741_v7  ;;  %14135 = vrcp.f32 %v2202_v15  ;;  %v3473_v28 = vshll.u32 %v15826_v2, 16  ;;  %v3681_v23 = vshll.u32 %v15830_v42, 16  ;;  %4047 = vmatprep.mubr.bf16.mxu1 %v15830_v42  ;;  %v3200_v15 = vld [vmem:[#allocation2 + $0x3b8] ss:$2 sm:$0x1] }
 0x1d0   : > { %v14120_v34 = vpop.eup %14119  ;;  %14137 = vrcp.f32 %v2200_v48  ;;  %v2205_v27 = vadd.f32 1.0, %v14118_v9  ;;  %v3478_v57 = vshll.u32 %v3034_v13, 16  ;;  %v15838_v7 = vadd.f32 %v15738_v3, %v13001_v22 }
 0x1d1   : > { %v14122_v44 = vpop.eup %14121  ;;  %2881 = vst [vmem:[#allocation2 + $0x401] sm:$0xff] %v2582_v5  ;;  %v2203_v39 = vadd.f32 1.0, %v14120_v34  ;;  %14139 = vpow2.f32 %v11325_v36  ;;  %v3475_v6 = vrot.slane %v3473_v28, 1  ;;  %v13005_v54 = vpop.f32.mrb[116].mxu0  ;;  %v15841_v37 = vadd.f32 %v15738_v3, %v1652_v4 }
 0x1d2   : > { %v14124_v11 = vpop.eup %14123  ;;  %14141 = vrcp.f32 %v2205_v27  ;;  %v2206_v50 = vadd.f32 1.0, %v14122_v44  ;;  %v3480_v40 = vrot.slane %v3478_v57, 1  ;;  %v1668_v46 = vpop.f32.mrb[117].mxu0  ;;  %v11328_v36 = vmul.f32 -1.442695, %v15838_v7 }
 0x1d3   : > { %v14126_v48 = vpop.eup %14125  ;;  %14143 = vrcp.f32 %v2203_v39  ;;  %v2204_v13 = vadd.f32 1.0, %v14124_v11  ;;  %v3476_v9 = vor.u32 %v3475_v6, %v3471_v30  ;;  %v13006_v5 = vpop.f32.mrb[118].mxu0  ;;  %v11326_v34 = vmul.f32 -1.442695, %v15841_v37  ;;  %v3302_v39 = vld [vmem:[#allocation2 + $0x399] ss:$2 sm:$0xff] }
 0x1d4   : > { %v14128_v28 = vpop.eup %14127  ;;  %v2580_v22 = vmul.f32 %v14126_v48, %v15744_v58  ;;  %14145 = vrcp.f32 %v2206_v50  ;;  %v15847_v27 = vadd.f32 %v15738_v3, %v13002_v24  ;;  %v1671_v4 = vpop.f32.mrb[119].mxu0  ;;  %v15854_v30 = vadd.f32 %v15738_v3, %v1655_v41  ;;  %v3304_v6 = vld [vmem:[#allocation2 + $0x3a9] ss:$2 sm:$0xff] }
 0x1d5   : > { %v2585_v57 = vmul.f32 %v14128_v28, %v15755_v8  ;;  %14147 = vrcp.f32 %v2204_v13  ;;  %v15851_v44 = vsel %vm3337_vm1, %v3476_v9, %v3480_v40  ;;  %v3248_v24 = vpack.c.bf16 %v3200_v15, %v3200_v15 }
 0x1d6   : > { %v14130_v11 = vpop.eup %14129  ;;  %2879 = vst [vmem:[#allocation2 + $0x3f1] sm:$0xff] %v2580_v22  ;;  %14149 = vpow2.f32 %v11323_v60  ;;  %4048 = vmatmul.mubr.bf16.gmra.mrb[44].mxu1 %v15851_v44  ;;  %v11329_v58 = vmul.f32 -1.442695, %v15847_v27  ;;  %v3679_v50 = vshrl.u32 %v15830_v42, 16  ;;  %v11327_v41 = vmul.f32 -1.442695, %v15854_v30 }
 0x1d7   : > { %v14132_v8 = vpop.eup %14131  ;;  %2884 = vst [vmem:[#allocation2 + $0x421] sm:$0xff] %v2585_v57  ;;  %v2583_v40 = vmul.f32 %v14130_v11, %v15759_v1  ;;  %14151 = vpow2.f32 %v11328_v36  ;;  %v3683_v48 = vrot.slane %v3681_v23, 1  ;;  %v3686_v28 = vshll.u32 %v3248_v24, 16  ;;  %v2986_v11 = vld [vmem:[#allocation2 + $0x3e0] ss:$2 sm:$0x1] }
 0x1d8   : > { %v14134_v13 = vpop.eup %14133  ;;  %v2209_v9 = vadd.f32 1.0, %v14132_v8  ;;  %14153 = vpow2.f32 %v11326_v34  ;;  %v3332_v60 = vpack.c.bf16 %v3304_v6, %v3302_v39  ;;  %v15862_v42 = vadd.f32 %v15738_v3, %v13005_v54  ;;  %v2982_v34 = vld [vmem:[#allocation2 + $0x3c0] ss:$2 sm:$0xff] }
 0x1d9   : > { %v14136_v22 = vpop.eup %14135  ;;  %2882 = vst [vmem:[#allocation2 + $0x411] sm:$0xff] %v2583_v40  ;;  %v2207_v2 = vadd.f32 1.0, %v14134_v13  ;;  %14155 = vpow2.f32 %v11329_v58  ;;  %v3684_v15 = vor.u32 %v3683_v48, %v3679_v50  ;;  %v13009_v57 = vpop.f32.mrb[120].mxu0  ;;  %v3688_v36 = vrot.slane %v3686_v28, 1  ;;  %v2984_v50 = vld [vmem:[#allocation2 + $0x3d0] ss:$2 sm:$0xff] }
 0x1da   : > { %v14138_v56 = vpop.eup %14137  ;;  %v2586_v1 = vmul.f32 %v14136_v22, %v15764_v25  ;;  %14157 = vrcp.f32 %v2209_v9  ;;  %v15866_v23 = vadd.f32 %v15738_v3, %v1668_v46  ;;  %v1684_v39 = vpop.f32.mrb[121].mxu0  ;;  %v11332_v58 = vmul.f32 -1.442695, %v15862_v42 }
 0x1db   : > { %v14140_v6 = vpop.eup %14139  ;;  %v2584_v24 = vmul.f32 %v14138_v56, %v15769_v53  ;;  %14159 = vrcp.f32 %v2207_v2  ;;  %v15871_v54 = vadd.f32 %v15738_v3, %v13006_v5  ;;  %v13010_v8 = vpop.f32.mrb[122].mxu0  ;;  %v3689_v46 = vsel %vm3337_vm1, %v3684_v15, %v3688_v36 }
 0x1dc   : > { %v14142_v25 = vpop.eup %14141  ;;  %2885 = vst [vmem:[#allocation2 + $0x429] sm:$0xff] %v2586_v1  ;;  %v2210_v40 = vadd.f32 1.0, %v14140_v6  ;;  %14161 = vpow2.f32 %v11327_v41  ;;  %v11330_v48 = vmul.f32 -1.442695, %v15866_v23  ;;  %v15875_v13 = vpop.f32.mrb[123].mxu0  ;;  %4593 = vmatprep.mubr.bf16.mxu0 %v3689_v46  ;;  %v15880_v2 = vadd.f32 %v15738_v3, %v1671_v4 }
 0x1dd   : > { %v14144_v9 = vpop.eup %14143  ;;  %2883 = vst [vmem:[#allocation2 + $0x419] sm:$0xff] %v2584_v24  ;;  %v2589_v53 = vmul.f32 %v14142_v25, %v15783_v62  ;;  %14163 = vpow2.f32 %v11332_v58  ;;  %v11333_v56 = vmul.f32 -1.442695, %v15871_v54  ;;  %v3202_v5 = vld [vmem:[#allocation2 + $0x3e8] ss:$2 sm:$0xff]  ;;  %4594 = vmatmul.mubr.bf16.gmra.mrb[172].mxu0 %v3332_v60  ;;  %v15885_v1 = vpack.c.bf16 %v2984_v50, %v2982_v34 }
 0x1de   : > { %v3204_v28 = vld [vmem:[#allocation2 + $0x3f8] ss:$2 sm:$0xff]  ;;  %v14146_v41 = vpop.eup %14145  ;;  %v2587_v22 = vmul.f32 %v14144_v9, %v15786_v35  ;;  %14165 = vrcp.f32 %v2210_v40  ;;  %v11331_v6 = vmul.f32 -1.442695, %v15880_v2  ;;  %v3036_v4 = vpack.c.bf16 %v2986_v11, %v2986_v11 }
 0x1df   : > { %v15883_v15 = vpack.c.bf16 %v3204_v28, %v3202_v5  ;;  %18466 = vst [vmem:[#allocation12_spill] sm:$0xff] %v15885_v1  ;;  %v14148_v36 = vpop.eup %14147  ;;  %2888 = vst [vmem:[#allocation2 + $0x449] sm:$0xff] %v2589_v53  ;;  %v2590_v62 = vmul.f32 %v14146_v41, %v15790_v47  ;;  %14167 = vpow2.f32 %v11330_v48  ;;  %v3483_v60 = vshrl.u32 %v15885_v1, 16 }
 0x1e0   : > { %v14150_v24 = vpop.eup %14149  ;;  %2886 = vst [vmem:[#allocation2 + $0x439] sm:$0xff] %v2587_v22  ;;  %v2588_v58 = vmul.f32 %v14148_v36, %v15798_v38  ;;  %14169 = vpow2.f32 %v11333_v56  ;;  %v3485_v47 = vshll.u32 %v15885_v1, 16  ;;  %v3490_v25 = vshll.u32 %v3036_v4, 16  ;;  %v3206_v22 = vld [vmem:[#allocation2 + $0x408] ss:$2 sm:$0x1] }
 0x1e1   : > { %v3693_v35 = vshll.u32 %v15883_v15, 16  ;;  %4055 = vmatprep.mubr.bf16.mxu1 %v15883_v15  ;;  %v14152_v34 = vpop.eup %14151  ;;  %2889 = vst [vmem:[#allocation2 + $0x451] sm:$0xff] %v2590_v62  ;;  %v2208_v50 = vadd.f32 1.0, %v14150_v24  ;;  %14171 = vpow2.f32 %v11331_v6  ;;  %v15894_v40 = vpop.f32.mrb[124].mxu0  ;;  %v15897_v38 = vadd.f32 %v15738_v3, %v13009_v57 }
 0x1e2   : > { %v14154_v11 = vpop.eup %14153  ;;  %2887 = vst [vmem:[#allocation2 + $0x441] sm:$0xff] %v2588_v58  ;;  %v2213_v46 = vadd.f32 1.0, %v14152_v34  ;;  %v15900_v48 = vadd.f32 %v15738_v3, %v1684_v39  ;;  %v15903_v9 = vadd.f32 %v15738_v3, %v13010_v8  ;;  %v15905_v53 = vpop.f32.mrb[125].mxu0  ;;  %v3487_v28 = vrot.slane %v3485_v47, 1 }
 0x1e3   : > { %v14156_v56 = vpop.eup %14155  ;;  %14173 = vrcp.f32 %v2208_v50  ;;  %v2211_v5 = vadd.f32 1.0, %v14154_v11  ;;  %v3492_v41 = vrot.slane %v3490_v25, 1  ;;  %v11336_v57 = vmul.f32 -1.442695, %v15897_v38  ;;  %v15909_v39 = vpop.f32.mrb[126].mxu0 }
 0x1e4   : > { %v14158_v36 = vpop.eup %14157  ;;  %14175 = vrcp.f32 %v2213_v46  ;;  %v2214_v62 = vadd.f32 1.0, %v14156_v56  ;;  %v11334_v6 = vmul.f32 -1.442695, %v15900_v48  ;;  %v3488_v24 = vor.u32 %v3487_v28, %v3483_v60  ;;  %v3306_v11 = vld [vmem:[#allocation2 + $0x3e9] ss:$2 sm:$0xff]  ;;  %v15918_v56 = vpop.f32.mrb[127].mxu0 }
 0x1e5   : > { %v14160_v4 = vpop.eup %14159  ;;  %v2593_v8 = vmul.f32 %v14158_v36, %v15809_v63  ;;  %14177 = vrcp.f32 %v2211_v5  ;;  %v11337_v58 = vmul.f32 -1.442695, %v15903_v9  ;;  %v15916_v47 = vadd.f32 %v15738_v3, %v15875_v13  ;;  %v3308_v46 = vld [vmem:[#allocation2 + $0x3f9] ss:$2 sm:$0xff] }
 0x1e6   : > { %v14162_v34 = vpop.eup %14161  ;;  %v2591_v50 = vmul.f32 %v14160_v4, %v15814_v33  ;;  %14179 = vrcp.f32 %v2214_v62  ;;  %v3250_v25 = vpack.c.bf16 %v3206_v22, %v3206_v22  ;;  %v15921_v60 = vsel %vm3337_vm1, %v3488_v24, %v3492_v41  ;;  %v2988_v33 = vld [vmem:[#allocation2 + $0x410] ss:$2 sm:$0xff]  ;;  %v2990_v4 = vld [vmem:[#allocation2 + $0x420] ss:$2 sm:$0xff] }
 0x1e7   : > { %v14164_v1 = vpop.eup %14163  ;;  %2892 = vst [vmem:[#allocation2 + $0x471] sm:$0xff] %v2593_v8  ;;  %v2212_v63 = vadd.f32 1.0, %v14162_v34  ;;  %18467 = vst [vmem:[#allocation13_spill] sm:$0xff] %v15921_v60  ;;  %14181 = vpow2.f32 %v11336_v57  ;;  %v3691_v5 = vshrl.u32 %v15883_v15, 16  ;;  %4056 = vmatmul.mubr.bf16.gmra.mrb[48].mxu1 %v15921_v60  ;;  %v11335_v22 = vmul.f32 -1.442695, %v15916_v47 }
 0x1e8   : > { %v2992_v28 = vld [vmem:[#allocation2 + $0x430] ss:$2 sm:$0x1]  ;;  %v14166_v36 = vpop.eup %14165  ;;  %2890 = vst [vmem:[#allocation2 + $0x461] sm:$0xff] %v2591_v50  ;;  %v2217_v13 = vadd.f32 1.0, %v14164_v1  ;;  %14183 = vpow2.f32 %v11334_v6  ;;  %v3695_v62 = vrot.slane %v3693_v35, 1  ;;  %v3333_v57 = vpack.c.bf16 %v3308_v46, %v3306_v11 }
 0x1e9   : > { %v14168_v8 = vpop.eup %14167  ;;  %v2594_v34 = vmul.f32 %v14166_v36, %v15819_v20  ;;  %14185 = vrcp.f32 %v2212_v63  ;;  %v3698_v41 = vshll.u32 %v3250_v25, 16  ;;  %v3208_v24 = vld [vmem:[#allocation2 + $0x438] ss:$2 sm:$0xff]  ;;  %v3210_v15 = vld [vmem:[#allocation2 + $0x448] ss:$2 sm:$0xff]  ;;  %v15929_v60 = vpack.c.bf16 %v2990_v4, %v2988_v33 }
 0x1ea   : > { %v15927_v51 = vpop.f32.mrb[0].mxu1  ;;  %v14170_v14 = vpop.eup %14169  ;;  %14187 = vrcp.f32 %v2217_v13  ;;  %v2215_v1 = vadd.f32 1.0, %v14168_v8  ;;  %v3696_v50 = vor.u32 %v3695_v62, %v3691_v5  ;;  %v3251_v49 = vpack.c.bf16 %v3210_v15, %v3208_v24  ;;  %v3212_v63 = vld [vmem:[#allocation2 + $0x458] ss:$2 sm:$0x1] }
 0x1eb   : > { %v14172_v6 = vpop.eup %14171  ;;  %2893 = vst [vmem:[#allocation2 + $0x479] sm:$0xff] %v2594_v34  ;;  %v2218_v0 = vadd.f32 1.0, %v14170_v14  ;;  %14189 = vpow2.f32 %v11337_v58  ;;  %v3700_v35 = vrot.slane %v3698_v41, 1  ;;  %v15931_v20 = vpop.f32.mrb[1].mxu1  ;;  %v3038_v46 = vpack.c.bf16 %v2992_v28, %v2992_v28  ;;  %v3310_v15 = vld [vmem:[#allocation2 + $0x439] ss:$2 sm:$0xff] }
 0x1ec   : > { %14191 = vrcp.f32 %v2215_v1  ;;  %v2216_v25 = vadd.f32 1.0, %v14172_v6  ;;  %v3705_v11 = vshll.u32 %v3251_v49, 16  ;;  %4063 = vmatprep.mubr.bf16.mxu1 %v3251_v49  ;;  %v15933_v36 = vpop.f32.mrb[2].mxu1  ;;  %v3495_v14 = vshrl.u32 %v15929_v60, 16  ;;  %v3312_v1 = vld [vmem:[#allocation2 + $0x449] ss:$2 sm:$0xff] }
 0x1ed   : > { %v14174_v13 = vpop.eup %14173  ;;  %14193 = vrcp.f32 %v2218_v0  ;;  %v3701_v5 = vsel %vm3337_vm1, %v3696_v50, %v3700_v35  ;;  %v3497_v58 = vshll.u32 %v15929_v60, 16  ;;  %v15938_v33 = vpop.f32.mrb[3].mxu1  ;;  %v3502_v8 = vshll.u32 %v3038_v46, 16 }
 0x1ee   : > { %v14176_v62 = vpop.eup %14175  ;;  %v2592_v4 = vmul.f32 %v14174_v13, %v15822_v59  ;;  %14195 = vrcp.f32 %v2216_v25  ;;  %4601 = vmatprep.mubr.bf16.mxu0 %v3701_v5  ;;  %v15943_v28 = vadd.f32 %v15738_v3, %v15894_v40  ;;  %v3252_v24 = vpack.c.bf16 %v3212_v63, %v3212_v63 }
 0x1ef   : > { %v14178_v34 = vpop.eup %14177  ;;  %v2597_v0 = vmul.f32 %v14176_v62, %v15838_v7  ;;  %14197 = vpow2.f32 %v11335_v22  ;;  %4602 = vmatmul.mubr.bf16.gmra.mrb[176].mxu0 %v3333_v57  ;;  %v3499_v41 = vrot.slane %v3497_v58, 1  ;;  %v3504_v6 = vrot.slane %v3502_v8, 1 }
 0x1f0   : > { %v14180_v50 = vpop.eup %14179  ;;  %2891 = vst [vmem:[#allocation2 + $0x469] sm:$0xff] %v2592_v4  ;;  %v2595_v59 = vmul.f32 %v14178_v34, %v15841_v37  ;;  %v11340_v35 = vmul.f32 -1.442695, %v15943_v28  ;;  %v3703_v25 = vshrl.u32 %v3251_v49, 16  ;;  %v3707_v7 = vrot.slane %v3705_v11, 1 }
 0x1f1   : > { %v14182_v46 = vpop.eup %14181  ;;  %2896 = vst [vmem:[#allocation2 + $0x499] sm:$0xff] %v2597_v0  ;;  %v2598_v40 = vmul.f32 %v14180_v50, %v15847_v27  ;;  %v3500_v13 = vor.u32 %v3499_v41, %v3495_v14  ;;  %v3710_v22 = vshll.u32 %v3252_v24, 16  ;;  %v12285_v57 = vpop.f32.mrb[128].mxu0  ;;  %v15951_v58 = vadd.f32 %v15738_v3, %v15905_v53 }
 0x1f2   : > { %v14184_v5 = vpop.eup %14183  ;;  %2894 = vst [vmem:[#allocation2 + $0x489] sm:$0xff] %v2595_v59  ;;  %v2221_v63 = vadd.f32 1.0, %v14182_v46  ;;  %14199 = vpow2.f32 %v11340_v35  ;;  %v3334_v37 = vpack.c.bf16 %v3312_v1, %v3310_v15  ;;  %v12286_v62 = vpop.f32.mrb[129].mxu0  ;;  %v3708_v27 = vor.u32 %v3707_v7, %v3703_v25 }
 0x1f3   : > { %v14186_v4 = vpop.eup %14185  ;;  %2897 = vst [vmem:[#allocation2 + $0x4a1] sm:$0xff] %v2598_v40  ;;  %v2219_v49 = vadd.f32 1.0, %v14184_v5  ;;  %v15954_v8 = vsel %vm3337_vm1, %v3500_v13, %v3504_v6  ;;  %v3712_v11 = vrot.slane %v3710_v22, 1  ;;  %v12288_v14 = vpop.f32.mrb[130].mxu0  ;;  %v11338_v53 = vmul.f32 -1.442695, %v15951_v58 }
 0x1f4   : > { %v14188_v34 = vpop.eup %14187  ;;  %v2596_v0 = vmul.f32 %v14186_v4, %v15854_v30  ;;  %14201 = vrcp.f32 %v2221_v63  ;;  %4064 = vmatmul.mubr.bf16.gmra.mrb[52].mxu1 %v15954_v8  ;;  %v15961_v41 = vadd.f32 %v15738_v3, %v15909_v39  ;;  %v12289_v24 = vpop.f32.mrb[131].mxu0  ;;  %v15967_v59 = vadd.f32 %v15738_v3, %v15918_v56  ;;  %v2998_v30 = vld [vmem:[#allocation2 + $0x480] ss:$2 sm:$0x1] }
 0x1f5   : > { %v14190_v15 = vpop.eup %14189  ;;  %v2601_v1 = vmul.f32 %v14188_v34, %v15862_v42  ;;  %14203 = vrcp.f32 %v2219_v49  ;;  %v3713_v50 = vsel %vm3337_vm1, %v3708_v27, %v3712_v11  ;;  %v15970_v25 = vadd.f32 %v12286_v62, %v12285_v57 }
 0x1f6   : > { %v14192_v6 = vpop.eup %14191  ;;  %2895 = vst [vmem:[#allocation2 + $0x491] sm:$0xff] %v2596_v0  ;;  %v2222_v35 = vadd.f32 1.0, %v14190_v15  ;;  %4609 = vmatprep.mubr.bf16.mxu0 %v3713_v50  ;;  %14205 = vpow2.f32 %v11338_v53  ;;  %v11341_v39 = vmul.f32 -1.442695, %v15961_v41  ;;  %v11339_v40 = vmul.f32 -1.442695, %v15967_v59 }
 0x1f7   : > { %v14194_v46 = vpop.eup %14193  ;;  %2900 = vst [vmem:[#allocation2 + $0x4c1] sm:$0xff] %v2601_v1  ;;  %v2599_v42 = vmul.f32 %v14192_v6, %v15866_v23  ;;  %4610 = vmatmul.mubr.bf16.gmra.mrb[180].mxu0 %v3334_v37  ;;  %v15974_v13 = vadd.f32 %v12289_v24, %v12288_v14  ;;  %v15978_v3 = vadd.f32 %v15931_v20, %v15927_v51  ;;  %v2994_v56 = vld [vmem:[#allocation2 + $0x460] ss:$2 sm:$0xff]  ;;  %v2996_v7 = vld [vmem:[#allocation2 + $0x470] ss:$2 sm:$0xff] }
 0x1f8   : > { %v14196_v22 = vpop.eup %14195  ;;  %v2602_v5 = vmul.f32 %v14194_v46, %v15871_v54  ;;  %14207 = vrcp.f32 %v2222_v35  ;;  %v15981_v57 = vpack.c.bf16 %v2996_v7, %v2994_v56  ;;  %v3040_v63 = vpack.c.bf16 %v2998_v30, %v2998_v30 }
 0x1f9   : > { %v14198_v62 = vpop.eup %14197  ;;  %2898 = vst [vmem:[#allocation2 + $0x4b1] sm:$0xff] %v2599_v42  ;;  %v2600_v23 = vmul.f32 %v14196_v22, %v15880_v2  ;;  %14209 = vpow2.f32 %v11341_v39  ;;  %v15986_v37 = vadd.f32 %v15938_v33, %v15933_v36 }
 0x1fa   : > { %2901 = vst [vmem:[#allocation2 + $0x4c9] sm:$0xff] %v2602_v5  ;;  %v2220_v51 = vadd.f32 1.0, %v14198_v62  ;;  %14211 = vpow2.f32 %v11339_v40  ;;  %v3509_v20 = vshll.u32 %v15981_v57, 16  ;;  %v3218_v4 = vld [vmem:[#allocation2 + $0x4a8] ss:$2 sm:$0x1] }
 0x1fb   : > { %2899 = vst [vmem:[#allocation2 + $0x4b9] sm:$0xff] %v2600_v23  ;;  %v3514_v54 = vshll.u32 %v3040_v63, 16  ;;  %v3254_v49 = vpack.c.bf16 %v3218_v4, %v3218_v4  ;;  %v3507_v11 = vshrl.u32 %v15981_v57, 16 }
 0x1fc   : > { %v14200_v27 = vpop.eup %14199  ;;  %14213 = vrcp.f32 %v2220_v51  ;;  %v3511_v14 = vrot.slane %v3509_v20, 1 }
 0x1fd   : > { %v2225_v2 = vadd.f32 1.0, %v14200_v27  ;;  %v3214_v34 = vld [vmem:[#allocation2 + $0x488] ss:$2 sm:$0xff]  ;;  %v3216_v0 = vld [vmem:[#allocation2 + $0x498] ss:$2 sm:$0xff]  ;;  %v3516_v24 = vrot.slane %v3514_v54, 1 }
 0x1fe   : > { %v14202_v53 = vpop.eup %14201  ;;  %v3253_v36 = vpack.c.bf16 %v3216_v0, %v3214_v34  ;;  %v3512_v33 = vor.u32 %v3511_v14, %v3507_v11  ;;  %v12067_v15 = vpop.f32.mrb[4].mxu1  ;;  %v3722_v6 = vshll.u32 %v3254_v49, 16  ;;  %v3314_v4 = vld [vmem:[#allocation2 + $0x489] ss:$2 sm:$0xff]  ;;  %v3316_v54 = vld [vmem:[#allocation2 + $0x499] ss:$2 sm:$0xff] }
 0x1ff   : > { %v14204_v1 = vpop.eup %14203  ;;  %v2605_v50 = vmul.f32 %v14202_v53, %v15897_v38  ;;  %14215 = vrcp.f32 %v2225_v2  ;;  %v12068_v30 = vpop.f32.mrb[5].mxu1 }
 0x200   : > { %v14206_v35 = vpop.eup %14205  ;;  %v2603_v39 = vmul.f32 %v14204_v1, %v15900_v48  ;;  %v3717_v46 = vshll.u32 %v3253_v36, 16  ;;  %4071 = vmatprep.mubr.bf16.mxu1 %v3253_v36  ;;  %v15993_v42 = vsel %vm3337_vm1, %v3512_v33, %v3516_v24  ;;  %v15995_v40 = vadd.f32 %v12068_v30, %v12067_v15  ;;  %v12070_v56 = vpop.f32.mrb[6].mxu1 }
 0x201   : > { %2904 = vst [vmem:[#allocation2 + $0x4e9] sm:$0xff] %v2605_v50  ;;  %v2223_v7 = vadd.f32 1.0, %v14206_v35  ;;  %4072 = vmatmul.mubr.bf16.gmra.mrb[56].mxu1 %v15993_v42  ;;  %v12071_v22 = vpop.f32.mrb[7].mxu1  ;;  %v3715_v63 = vshrl.u32 %v3253_v36, 16  ;;  %v3724_v2 = vrot.slane %v3722_v6, 1  ;;  %v3335_v24 = vpack.c.bf16 %v3316_v54, %v3314_v4 }
 0x202   : > { %v14208_v38 = vpop.eup %14207  ;;  %2902 = vst [vmem:[#allocation2 + $0x4d9] sm:$0xff] %v2603_v39  ;;  %v15998_v5 = vadd.f32 %v12071_v22, %v12070_v56  ;;  %v3719_v62 = vrot.slane %v3717_v46, 1  ;;  %v3000_v48 = vld [vmem:[#allocation2 + $0x4b0] ss:$2 sm:$0xff]  ;;  %v3002_v23 = vld [vmem:[#allocation2 + $0x4c0] ss:$2 sm:$0xff] }
 0x203   : > { %v14210_v51 = vpop.eup %14209  ;;  %v2606_v20 = vmul.f32 %v14208_v38, %v15903_v9  ;;  %14217 = vrcp.f32 %v2223_v7  ;;  %v16001_v49 = vpack.c.bf16 %v3002_v23, %v3000_v48  ;;  %v12291_v34 = vpop.f32.mrb[132].mxu0  ;;  %v3004_v1 = vld [vmem:[#allocation2 + $0x4d0] ss:$2 sm:$0x1]  ;;  %v3046_v48 = vld [vmem:[#allocation2 + $0x1] ss:$2 sm:$0xff] }
 0x204   : > { %v14212_v27 = vpop.eup %14211  ;;  %v2226_v11 = vadd.f32 1.0, %v14210_v51  ;;  %v3720_v14 = vor.u32 %v3719_v62, %v3715_v63  ;;  %v12292_v53 = vpop.f32.mrb[133].mxu0  ;;  %v3042_v46 = vpack.c.bf16 %v3004_v1, %v3004_v1  ;;  %v3048_v23 = vld [vmem:[#allocation2 + $0x11] ss:$2 sm:$0xff] }
 0x205   : > { %2905 = vst [vmem:[#allocation2 + $0x4f1] sm:$0xff] %v2606_v20  ;;  %v2224_v0 = vadd.f32 1.0, %v14212_v27  ;;  %v16004_v15 = vadd.f32 %v12292_v53, %v12291_v34  ;;  %v12294_v9 = vpop.f32.mrb[134].mxu0  ;;  %v3521_v6 = vshll.u32 %v16001_v49, 16  ;;  %v3519_v63 = vshrl.u32 %v16001_v49, 16 }
 0x206   : > { %v14214_v36 = vpop.eup %14213  ;;  %14219 = vrcp.f32 %v2226_v11  ;;  %v3725_v33 = vsel %vm3337_vm1, %v3720_v14, %v3724_v2  ;;  %v12295_v30 = vpop.f32.mrb[135].mxu0  ;;  %v3113_v53 = vpack.c.bf16 %v3048_v23, %v3046_v48 }
 0x207   : > { %v2604_v50 = vmul.f32 %v14214_v36, %v15916_v47  ;;  %14221 = vrcp.f32 %v2224_v0  ;;  %4617 = vmatprep.mubr.bf16.mxu0 %v3725_v33  ;;  %v16008_v35 = vadd.f32 %v12295_v30, %v12294_v9  ;;  %v3523_v7 = vrot.slane %v3521_v6, 1 }
 0x208   : > { %4618 = vmatmul.mubr.bf16.gmra.mrb[184].mxu0 %v3335_v24  ;;  %v3526_v47 = vshll.u32 %v3042_v46, 16 }
 0x209   : > { %v14216_v39 = vpop.eup %14215  ;;  %2903 = vst [vmem:[#allocation2 + $0x4e1] sm:$0xff] %v2604_v50  ;;  %v3524_v51 = vor.u32 %v3523_v7, %v3519_v63  ;;  %v3050_v7 = vld [vmem:[#allocation2 + $0x51] ss:$2 sm:$0xff] }
 0x20a   : > { %v2609_v56 = vmul.f32 %v14216_v39, %v15943_v28  ;;  %v3528_v34 = vrot.slane %v3526_v47, 1 }
 0x20c   : > { %2908 = vst [vmem:[#allocation2 + $0x511] sm:$0xff] %v2609_v56  ;;  %v3224_v22 = vld [vmem:[#allocation2 + $0x4f8] ss:$2 sm:$0x1]  ;;  %v16018_v9 = vsel %vm3337_vm1, %v3524_v51, %v3528_v34  ;;  %v3320_v39 = vld [vmem:[#allocation2 + $0x4e9] ss:$2 sm:$0xff] }
 0x20d   : > { %v14218_v38 = vpop.eup %14217  ;;  %v3256_v20 = vpack.c.bf16 %v3224_v22, %v3224_v22  ;;  %v3052_v22 = vld [vmem:[#allocation2 + $0x61] ss:$2 sm:$0xff]  ;;  %v13269_v34 = vld [vmem:[%s18433_s3 + $0x1d8] sm:$0xff]  }
 0x20e   : > { %v2607_v62 = vmul.f32 %v14218_v38, %v15951_v58  ;;  %v12073_v11 = vpop.f32.mrb[8].mxu1 }
 0x20f   : > { %v12074_v0 = vpop.f32.mrb[9].mxu1  ;;  %v3734_v50 = vshll.u32 %v3256_v20, 16  ;;  %v13265_v20 = vld [vmem:[%s18433_s3 + $0x1c8] sm:$0xff]  }
 0x210   : > { %v14220_v4 = vpop.eup %14219  ;;  %2906 = vst [vmem:[#allocation2 + $0x501] sm:$0xff] %v2607_v62  ;;  %v3220_v54 = vld [vmem:[#allocation2 + $0x4d8] ss:$2 sm:$0xff]  ;;  %v3222_v27 = vld [vmem:[#allocation2 + $0x4e8] ss:$2 sm:$0xff]  ;;  %v16015_v33 = vadd.f32 %v12074_v0, %v12073_v11  ;;  %v12076_v58 = vpop.f32.mrb[10].mxu1 }
 0x211   : > { %v14222_v14 = vpop.eup %14221  ;;  %v2610_v28 = vmul.f32 %v14220_v4, %v15961_v41  ;;  %v3255_v2 = vpack.c.bf16 %v3222_v27, %v3220_v54  ;;  %v12077_v1 = vpop.f32.mrb[11].mxu1  ;;  %v3736_v56 = vrot.slane %v3734_v50, 1  ;;  %v13263_v62 = vld [vmem:[%s18433_s3 + $0x180] sm:$0xff]   ;;  %v16032_v4 = vpack.c.bf16 %v3052_v22, %v3050_v7  ;;  %v13266_v11 = vld [vmem:[%s18433_s3 + $0x188] sm:$0xff]  }
 0x212   : > { %v2608_v36 = vmul.f32 %v14222_v14, %v15967_v59  ;;  %v16021_v41 = vadd.f32 %v12077_v1, %v12076_v58  ;;  %v3318_v59 = vld [vmem:[#allocation2 + $0x4d9] ss:$2 sm:$0xff]  ;;  %v13267_v14 = vld [vmem:[%s18433_s3 + $0x1d0] sm:$0xff]  }
 0x213   : > { %2909 = vst [vmem:[#allocation2 + $0x519] sm:$0xff] %v2610_v28  ;;  %v3729_v24 = vshll.u32 %v3255_v2, 16  ;;  %4079 = vmatprep.mubr.bf16.mxu1 %v3255_v2  ;;  %v3727_v30 = vshrl.u32 %v3255_v2, 16  ;;  %v3336_v47 = vpack.c.bf16 %v3320_v39, %v3318_v59  ;;  %v3054_v28 = vld [vmem:[#allocation2 + $0xa1] ss:$2 sm:$0xff]  ;;  %v13270_v1 = vld [vmem:[%s18433_s3 + $0x198] sm:$0xff]  }
 0x214   : > { %2907 = vst [vmem:[#allocation2 + $0x509] sm:$0xff] %v2608_v36  ;;  %4080 = vmatmul.mubr.bf16.gmra.mrb[60].mxu1 %v16018_v9  ;;  %v3056_v2 = vld [vmem:[#allocation2 + $0xb1] ss:$2 sm:$0xff]  ;;  %v13272_v59 = vld [vmem:[%s18433_s3 + $0x1a0] sm:$0xff]  }
 0x215   : > { %v3731_v6 = vrot.slane %v3729_v24, 1  ;;  %4216 = vmatprep.mubr.bf16.mxu1 %v3113_v53  ;;  %v16052_v0 = vpack.c.bf16 %v3056_v2, %v3054_v28 }
 0x217   : > { %v3732_v46 = vor.u32 %v3731_v6, %v3727_v30  ;;  %v12297_v38 = vpop.f32.mrb[136].mxu0  ;;  %v3058_v30 = vld [vmem:[#allocation2 + $0xf1] ss:$2 sm:$0xff] }
 0x218   : > { %v12298_v48 = vpop.f32.mrb[137].mxu0 }
 0x219   : > { %v3737_v63 = vsel %vm3337_vm1, %v3732_v46, %v3736_v56  ;;  %v16027_v23 = vadd.f32 %v12298_v48, %v12297_v38  ;;  %v12300_v51 = vpop.f32.mrb[138].mxu0  ;;  %v13273_v46 = vld [vmem:[%s18433_s3 + $0x1e8] sm:$0xff]   ;;  %v3064_v48 = vld [vmem:[#allocation2 + $0x151] ss:$2 sm:$0xff] }
 0x21a   : > { %4625 = vmatprep.mubr.bf16.mxu0 %v3737_v63  ;;  %v12301_v54 = vpop.f32.mrb[139].mxu0 }
 0x21b   : > { %4626 = vmatmul.mubr.bf16.gmra.mrb[188].mxu0 %v3336_v47  ;;  %v16036_v27 = vadd.f32 %v12301_v54, %v12300_v51  ;;  %v13274_v47 = vld [vmem:[%s18433_s3 + $0x1a8] sm:$0xff]   ;;  %v13277_v51 = vld [vmem:[%s18433_s3 + $0x1f8] sm:$0xff]  }
 0x21c   : > { %4217 = vmatmul.mubr.bf16.vlgmr.msra.gmra.mrb[64].mxu1 %v14937_v10  ;;  %13031 = vmatprep.mubr.bf16.mxu0 %v15166_v52  ;;  %v13268_v10 = vld [vmem:[%s18433_s3 + $0x190] sm:$0xff]  }
 0x21d   : > { %18468 = vst [vmem:[#allocation14_spill] sm:$0xff] %v16036_v27  ;;  %12382 = vmatpush3.bf16.msra.mxu1 %v13263_v62  ;;  %4224 = vmatprep.mubr.bf16.mxu1 %v16032_v4  ;;  %v3062_v62 = vld [vmem:[#allocation2 + $0x141] ss:$2 sm:$0xff] }
 0x21e   : > { %12383 = vmatprep.subr.bf16.mxu1 %v13265_v20  ;;  %v16096_v20 = vpack.c.bf16 %v3064_v48, %v3062_v62  ;;  %v18473_v62 = vld [vmem:[#allocation13_spill] sm:$0xff]  ;;  %v18474_v48 = vld [vmem:[#allocation6_spill] sm:$0xff] }
 0x221   : > { %12384 = vmatpush3.bf16.msra.mxu1 %v13266_v11  ;;  %v12079_v52 = vpop.f32.mrb[12].mxu1 }
 0x222   : > { %12385 = vmatprep.subr.bf16.mxu1 %v13267_v14  ;;  %v12080_v53 = vpop.f32.mrb[13].mxu1  ;;  %v13278_v14 = vld [vmem:[%s18433_s3 + $0x1b8] sm:$0xff]  }
 0x223   : > { %13032 = vmatmul.mubr.bf16.vlgmr.msra.gmra.mrb[192].mxu0 %v15242_v43  ;;  %v16056_v36 = vadd.f32 %v12080_v53, %v12079_v52  ;;  %v12082_v58 = vpop.f32.mrb[14].mxu1  ;;  %v13271_v43 = vld [vmem:[%s18433_s3 + $0x1e0] sm:$0xff]   ;;  %v3066_v52 = vld [vmem:[#allocation2 + $0x191] ss:$2 sm:$0xff] }
 0x224   : > { %4225 = vmatmul.mubr.bf16.gmra.mrb[68].mxu1 %v15128_v31  ;;  %13035 = vmatprep.mubr.bf16.mxu0 %v15314_v32  ;;  %v12083_v24 = vpop.f32.mrb[15].mxu1  ;;  %v3060_v32 = vld [vmem:[#allocation2 + $0x101] ss:$2 sm:$0xff] }
 0x225   : > { %4232 = vmatprep.mubr.bf16.mxu1 %v16052_v0  ;;  %12386 = vmatpush3.bf16.msra.mxu1 %v13268_v10  ;;  %v16062_v50 = vadd.f32 %v12083_v24, %v12082_v58  ;;  %v16074_v56 = vpack.c.bf16 %v3060_v32, %v3058_v30  ;;  %v3070_v32 = vld [vmem:[#allocation2 + $0x1e1] ss:$2 sm:$0xff] }
 0x226   : > { %12387 = vmatprep.subr.bf16.mxu1 %v13269_v34  ;;  %v3068_v34 = vld [vmem:[#allocation2 + $0x1a1] ss:$2 sm:$0xff] }
 0x229   : > { %v12303_v6 = vpop.f32.mrb[140].mxu0  ;;  %12388 = vmatpush3.bf16.msra.mxu1 %v13270_v1 }
 0x22a   : > { %v12304_v39 = vpop.f32.mrb[141].mxu0  ;;  %12389 = vmatprep.subr.bf16.mxu1 %v13271_v43 }
 0x22b   : > { %13036 = vmatmul.mubr.bf16.gmra.mrb[196].mxu0 %v15380_v21  ;;  %v16076_v7 = vadd.f32 %v12304_v39, %v12303_v6  ;;  %v12306_v22 = vpop.f32.mrb[142].mxu0  ;;  %v13275_v21 = vld [vmem:[%s18433_s3 + $0x1f0] sm:$0xff]  }
 0x22c   : > { %4233 = vmatmul.mubr.bf16.gmra.mrb[72].mxu1 %v15191_v17  ;;  %13039 = vmatprep.mubr.bf16.mxu0 %v15446_v29  ;;  %v12307_v38 = vpop.f32.mrb[143].mxu0  ;;  %v13276_v29 = vld [vmem:[%s18433_s3 + $0x1b0] sm:$0xff]  }
 0x22d   : > { %18469 = vst [vmem:[#allocation15_spill] sm:$0xff] %v16076_v7  ;;  %4240 = vmatprep.mubr.bf16.mxu1 %v16074_v56  ;;  %v16081_v63 = vadd.f32 %v12307_v38, %v12306_v22  ;;  %12390 = vmatpush3.bf16.msra.mxu1 %v13272_v59  ;;  %v3072_v6 = vld [vmem:[#allocation2 + $0x1f1] ss:$2 sm:$0xff] }
 0x22e   : > { %12391 = vmatprep.subr.bf16.mxu1 %v13273_v46  ;;  %v3074_v38 = vld [vmem:[#allocation2 + $0x231] ss:$2 sm:$0xff] }
 0x22f   : > { %18470 = vst [vmem:[#allocation16_spill] sm:$0xff] %v16081_v63 }
 0x231   : > { %12392 = vmatpush3.bf16.msra.mxu1 %v13274_v47  ;;  %v3076_v47 = vld [vmem:[#allocation2 + $0x241] ss:$2 sm:$0xff] }
 0x232   : > { %12393 = vmatprep.subr.bf16.mxu1 %v13275_v21 }
 0x233   : > { %13040 = vmatmul.mubr.bf16.gmra.mrb[200].mxu0 %v15518_v18  ;;  %v12085_v54 = vpop.f32.mrb[16].mxu1 }
 0x234   : > { %4241 = vmatmul.mubr.bf16.gmra.mrb[76].mxu1 %v15258_v19  ;;  %13043 = vmatprep.mubr.bf16.mxu0 %v15595_v16  ;;  %v12086_v11 = vpop.f32.mrb[17].mxu1  ;;  %v16109_v16 = vpack.c.bf16 %v3068_v34, %v3066_v52  ;;  %v18477_v34 = vld [vmem:[#allocation7_spill] sm:$0xff] }
 0x235   : > { %4248 = vmatprep.mubr.bf16.mxu1 %v16096_v20  ;;  %12394 = vmatpush3.bf16.msra.mxu1 %v13276_v29  ;;  %v16104_v28 = vadd.f32 %v12086_v11, %v12085_v54  ;;  %v12088_v2 = vpop.f32.mrb[18].mxu1 }
 0x236   : > { %12395 = vmatprep.subr.bf16.mxu1 %v13277_v51  ;;  %v12089_v18 = vpop.f32.mrb[19].mxu1 }
 0x237   : > { %v16106_v10 = vadd.f32 %v12089_v18, %v12088_v2  ;;  %v3078_v2 = vld [vmem:[#allocation2 + $0x281] ss:$2 sm:$0xff]  ;;  %v3080_v18 = vld [vmem:[#allocation2 + $0x291] ss:$2 sm:$0xff] }
 0x238   : > { %v16139_v52 = vpack.c.bf16 %v3080_v18, %v3078_v2 }
 0x239   : > { %12396 = vmatpush3.bf16.msra.mxu1 %v13278_v14 }
 0x23b   : > { %13044 = vmatmul.mubr.bf16.gmra.mrb[204].mxu0 %v15681_v61  ;;  %v12309_v53 = vpop.f32.mrb[144].mxu0  ;;  %v16119_v61 = vpack.c.bf16 %v3072_v6, %v3070_v32  ;;  %v3084_v32 = vld [vmem:[#allocation2 + $0x2e1] ss:$2 sm:$0xff] }
 0x23c   : > { %4249 = vmatmul.mubr.bf16.gmra.mrb[80].mxu1 %v15346_v45  ;;  %13047 = vmatprep.mubr.bf16.mxu0 %v15747_v12  ;;  %v12310_v58 = vpop.f32.mrb[145].mxu0 }
 0x23d   : > { %4256 = vmatprep.mubr.bf16.mxu1 %v16109_v16  ;;  %v16114_v24 = vadd.f32 %v12310_v58, %v12309_v53  ;;  %v12312_v1 = vpop.f32.mrb[146].mxu0 }
 0x23e   : > { %v12313_v43 = vpop.f32.mrb[147].mxu0 }
 0x23f   : > { %18471 = vst [vmem:[#allocation17_spill] sm:$0xff] %v16114_v24  ;;  %v16116_v30 = vadd.f32 %v12313_v43, %v12312_v1  ;;  %v3082_v43 = vld [vmem:[#allocation2 + $0x2d1] ss:$2 sm:$0xff] }
 0x241   : > { %18472 = vst [vmem:[#allocation18_spill] sm:$0xff] %v16116_v30 }
 0x243   : > { %13048 = vmatmul.mubr.bf16.gmra.mrb[208].mxu0 %v15802_v26  ;;  %v16129_v26 = vpack.c.bf16 %v3076_v47, %v3074_v38 }
 0x244   : > { %4257 = vmatmul.mubr.bf16.gmra.mrb[84].mxu1 %v15416_v55  ;;  %13051 = vmatprep.mubr.bf16.mxu0 %v15851_v44 }
 0x245   : > { %4264 = vmatprep.mubr.bf16.mxu1 %v16119_v61  ;;  %v12091_v12 = vpop.f32.mrb[20].mxu1 }
 0x246   : > { %v12092_v59 = vpop.f32.mrb[21].mxu1 }
 0x247   : > { %v16124_v39 = vadd.f32 %v12092_v59, %v12091_v12  ;;  %v12094_v46 = vpop.f32.mrb[22].mxu1  ;;  %v16148_v59 = vpack.c.bf16 %v3084_v32, %v3082_v43 }
 0x248   : > { %v12095_v22 = vpop.f32.mrb[23].mxu1 }
 0x249   : > { %v16126_v21 = vadd.f32 %v12095_v22, %v12094_v46 }
 0x24b   : > { %13052 = vmatmul.mubr.bf16.gmra.mrb[212].mxu0 %v18473_v62  ;;  %v3086_v62 = vld [vmem:[#allocation2 + $0x321] ss:$2 sm:$0xff] }
 0x24c   : > { %4265 = vmatmul.mubr.bf16.gmra.mrb[88].mxu1 %v18474_v48  ;;  %13055 = vmatprep.mubr.bf16.mxu0 %v15954_v8  ;;  %v12315_v44 = vpop.f32.mrb[148].mxu0 }
 0x24d   : > { %4272 = vmatprep.mubr.bf16.mxu1 %v16129_v26  ;;  %v12316_v29 = vpop.f32.mrb[149].mxu0 }
 0x24e   : > { %v16134_v51 = vadd.f32 %v12316_v29, %v12315_v44  ;;  %v12318_v54 = vpop.f32.mrb[150].mxu0  ;;  %v3088_v44 = vld [vmem:[#allocation2 + $0x331] ss:$2 sm:$0xff] }
 0x24f   : > { %v12319_v11 = vpop.f32.mrb[151].mxu0 }
 0x250   : > { %18475 = vst [vmem:[#allocation13_spill] sm:$0xff] %v16134_v51  ;;  %v16136_v14 = vadd.f32 %v12319_v11, %v12318_v54  ;;  %v16156_v54 = vpack.c.bf16 %v3088_v44, %v3086_v62  ;;  %v18482_v11 = vld [vmem:[#allocation9_spill] sm:$0xff] }
 0x252   : > { %18476 = vst [vmem:[#allocation6_spill] sm:$0xff] %v16136_v14 }
 0x253   : > { %13056 = vmatmul.mubr.bf16.gmra.mrb[216].mxu0 %v15993_v42  ;;  %v18479_v42 = vld [vmem:[#allocation8_spill] sm:$0xff] }
 0x254   : > { %4273 = vmatmul.mubr.bf16.gmra.mrb[92].mxu1 %v18477_v34  ;;  %13059 = vmatprep.mubr.bf16.mxu0 %v16018_v9 }
 0x255   : > { %4280 = vmatprep.mubr.bf16.mxu1 %v16139_v52 }
 0x256   : > { %v12097_v8 = vpop.f32.mrb[24].mxu1 }
 0x257   : > { %v12098_v53 = vpop.f32.mrb[25].mxu1 }
 0x258   : > { %v16144_v58 = vadd.f32 %v12098_v53, %v12097_v8  ;;  %v12100_v1 = vpop.f32.mrb[26].mxu1  ;;  %v3090_v8 = vld [vmem:[#allocation2 + $0x371] ss:$2 sm:$0xff]  ;;  %v3092_v53 = vld [vmem:[#allocation2 + $0x381] ss:$2 sm:$0xff] }
 0x259   : > { %v12101_v6 = vpop.f32.mrb[27].mxu1 }
 0x25a   : > { %v16146_v12 = vadd.f32 %v12101_v6, %v12100_v1 }
 0x25c   : > { %18478 = vst [vmem:[#allocation7_spill] sm:$0xff] %v16146_v12  ;;  %4281 = vmatmul.mubr.bf16.gmra.mrb[96].mxu1 %v18479_v42 }
 0x25d   : > { %4288 = vmatprep.mubr.bf16.mxu1 %v16148_v59  ;;  %v12321_v46 = vpop.f32.mrb[152].mxu0 }
 0x25e   : > { %v12322_v9 = vpop.f32.mrb[153].mxu0 }
 0x25f   : > { %v16152_v22 = vadd.f32 %v12322_v9, %v12321_v46  ;;  %v12324_v38 = vpop.f32.mrb[154].mxu0  ;;  %v16164_v46 = vpack.c.bf16 %v3092_v53, %v3090_v8  ;;  %v18485_v9 = vld [vmem:[#allocation10_spill] sm:$0xff]  ;;  %v18488_v8 = vld [vmem:[#allocation11_spill] sm:$0xff]  ;;  %v3010_v53 = vld [vmem:[#allocation2 + $0x520] ss:$2 sm:$0x1] }
 0x260   : > { %v12325_v47 = vpop.f32.mrb[155].mxu0  ;;  %v3044_v30 = vpack.c.bf16 %v3010_v53, %v3010_v53  ;;  %v18490_v53 = vld [vmem:[#allocation12_spill] sm:$0xff] }
 0x261   : > { %18480 = vst [vmem:[#allocation8_spill] sm:$0xff] %v16152_v22  ;;  %v16154_v29 = vadd.f32 %v12325_v47, %v12324_v38  ;;  %v3096_v22 = vld [vmem:[#allocation2 + $0x3d1] ss:$2 sm:$0xff] }
 0x262   : > { %v3762_v24 = vshll.u32 %v3044_v30, 16 }
 0x263   : > { %18481 = vst [vmem:[#allocation19_spill] sm:$0xff] %v16154_v29  ;;  %v3094_v29 = vld [vmem:[#allocation2 + $0x3c1] ss:$2 sm:$0xff] }
 0x264   : > { %4289 = vmatmul.mubr.bf16.gmra.mrb[100].mxu1 %v18482_v11 }
 0x265   : > { %4296 = vmatprep.mubr.bf16.mxu1 %v16156_v54 }
 0x267   : > { %v12103_v2 = vpop.f32.mrb[28].mxu1 }
 0x268   : > { %v12104_v18 = vpop.f32.mrb[29].mxu1 }
 0x269   : > { %v16160_v1 = vadd.f32 %v12104_v18, %v12103_v2  ;;  %v12106_v43 = vpop.f32.mrb[30].mxu1  ;;  %v16172_v18 = vpack.c.bf16 %v3096_v22, %v3094_v29  ;;  %v3100_v22 = vld [vmem:[#allocation2 + $0x421] ss:$2 sm:$0xff] }
 0x26a   : > { %v12107_v32 = vpop.f32.mrb[31].mxu1 }
 0x26b   : > { %18483 = vst [vmem:[#allocation9_spill] sm:$0xff] %v16160_v1  ;;  %v16162_v6 = vadd.f32 %v12107_v32, %v12106_v43  ;;  %v3006_v43 = vld [vmem:[#allocation2 + $0x500] ss:$2 sm:$0xff]  ;;  %v3008_v32 = vld [vmem:[#allocation2 + $0x510] ss:$2 sm:$0xff] }
 0x26c   : > { %4297 = vmatmul.mubr.bf16.gmra.mrb[104].mxu1 %v18485_v9  ;;  %v16175_v51 = vpack.c.bf16 %v3008_v32, %v3006_v43 }
 0x26d   : > { %18484 = vst [vmem:[#allocation20_spill] sm:$0xff] %v16162_v6  ;;  %4304 = vmatprep.mubr.bf16.mxu1 %v16164_v46  ;;  %v3764_v6 = vrot.slane %v3762_v24, 1 }
 0x26e   : > { %v12327_v38 = vpop.f32.mrb[156].mxu0 }
 0x26f   : > { %v12328_v47 = vpop.f32.mrb[157].mxu0 }
 0x270   : > { %v16168_v62 = vadd.f32 %v12328_v47, %v12327_v38  ;;  %v12330_v44 = vpop.f32.mrb[158].mxu0  ;;  %v3755_v38 = vshrl.u32 %v16175_v51, 16  ;;  %v3757_v47 = vshll.u32 %v16175_v51, 16 }
 0x271   : > { %v12331_v14 = vpop.f32.mrb[159].mxu0 }
 0x272   : > { %18486 = vst [vmem:[#allocation10_spill] sm:$0xff] %v16168_v62  ;;  %v16170_v2 = vadd.f32 %v12331_v14, %v12330_v44  ;;  %v3098_v44 = vld [vmem:[#allocation2 + $0x411] ss:$2 sm:$0xff]  ;;  %v3759_v29 = vrot.slane %v3757_v47, 1  ;;  %v3102_v47 = vld [vmem:[#allocation2 + $0x461] ss:$2 sm:$0xff] }
 0x273   : > { %v16184_v7 = vpack.c.bf16 %v3100_v22, %v3098_v44  ;;  %v3108_v44 = vld [vmem:[#allocation2 + $0x4c1] ss:$2 sm:$0xff] }
 0x274   : > { %18487 = vst [vmem:[#allocation21_spill] sm:$0xff] %v16170_v2  ;;  %4305 = vmatmul.mubr.bf16.gmra.mrb[108].mxu1 %v18488_v8  ;;  %v3760_v43 = vor.u32 %v3759_v29, %v3755_v38 }
 0x275   : > { %4312 = vmatprep.mubr.bf16.mxu1 %v16172_v18 }
 0x276   : > { %v3765_v27 = vsel %vm3337_vm1, %v3760_v43, %v3764_v6  ;;  %v3106_v6 = vld [vmem:[#allocation2 + $0x4b1] ss:$2 sm:$0xff]  ;;  %vm8620_vm1 = vmor %vm8618_vm15, %vm8619_vm0 }
 0x277   : > { %v12109_v62 = vpop.f32.mrb[32].mxu1  ;;  %13060 = vmatmul.mubr.bf16.gmra.mrb[220].mxu0 %v3765_v27  ;;  %vm8622_vm3 = vmor %vm8620_vm1, %vm8621_vm2 }
 0x278   : > { %v12110_v14 = vpop.f32.mrb[33].mxu1 }
 0x279   : > { %v16180_v2 = vadd.f32 %v12110_v14, %v12109_v62  ;;  %v12112_v63 = vpop.f32.mrb[34].mxu1  ;;  %v3104_v62 = vld [vmem:[#allocation2 + $0x471] ss:$2 sm:$0xff] }
 0x27a   : > { %v12113_v1 = vpop.f32.mrb[35].mxu1 }
 0x27b   : > { %18489 = vst [vmem:[#allocation11_spill] sm:$0xff] %v16180_v2  ;;  %v16182_v32 = vadd.f32 %v12113_v1, %v12112_v63  ;;  %v16193_v63 = vpack.c.bf16 %v3104_v62, %v3102_v47 }
 0x27c   : > { %4313 = vmatmul.mubr.bf16.gmra.mrb[112].mxu1 %v18490_v53 }
 0x27d   : > { %4320 = vmatprep.mubr.bf16.mxu1 %v16184_v7 }
 0x27f   : > { %v12333_v30 = vpop.f32.mrb[160].mxu0 }
 0x280   : > { %v12334_v12 = vpop.f32.mrb[161].mxu0 }
 0x281   : > { %v16189_v14 = vadd.f32 %v12334_v12, %v12333_v30  ;;  %v12336_v24 = vpop.f32.mrb[162].mxu0  ;;  %v16199_v12 = vpack.c.bf16 %v3108_v44, %v3106_v6 }
 0x282   : > { %v12337_v2 = vpop.f32.mrb[163].mxu0 }
 0x283   : > { %18491 = vst [vmem:[#allocation12_spill] sm:$0xff] %v16189_v14  ;;  %v16191_v38 = vadd.f32 %v12337_v2, %v12336_v24 }
 0x284   : > { %4321 = vmatmul.mubr.bf16.gmra.mrb[116].mxu1 %v15929_v60 }
 0x285   : > { %18492 = vst [vmem:[#allocation22_spill] sm:$0xff] %v16191_v38  ;;  %4328 = vmatprep.mubr.bf16.mxu1 %v16193_v63 }
 0x288   : > { %v12115_v1 = vpop.f32.mrb[36].mxu1 }
 0x289   : > { %v12116_v27 = vpop.f32.mrb[37].mxu1 }
 0x28a   : > { %v16197_v22 = vadd.f32 %v12116_v27, %v12115_v1  ;;  %v12118_v29 = vpop.f32.mrb[38].mxu1 }
 0x28b   : > { %v12119_v43 = vpop.f32.mrb[39].mxu1 }
 0x28c   : > { %v16201_v30 = vadd.f32 %v12119_v43, %v12118_v29  ;;  %4329 = vmatmul.mubr.bf16.gmra.mrb[120].mxu1 %v15981_v57 }
 0x28d   : > { %4336 = vmatprep.mubr.bf16.mxu1 %v16199_v12 }
 0x28f   : > { %v12339_v2 = vpop.f32.mrb[164].mxu0 }
 0x290   : > { %v12340_v47 = vpop.f32.mrb[165].mxu0 }
 0x291   : > { %v16205_v62 = vadd.f32 %v12340_v47, %v12339_v2  ;;  %v12342_v24 = vpop.f32.mrb[166].mxu0 }
 0x292   : > { %v12343_v38 = vpop.f32.mrb[167].mxu0 }
 0x293   : > { %18493 = vst [vmem:[#allocation23_spill] sm:$0xff] %v16205_v62  ;;  %v16207_v14 = vadd.f32 %v12343_v38, %v12342_v24 }
 0x294   : > { %4337 = vmatmul.mubr.bf16.gmra.mrb[124].mxu1 %v16001_v49 }
 0x295   : > { %18494 = vst [vmem:[#allocation24_spill] sm:$0xff] %v16207_v14  ;;  %4826 = vmatprep.mubr.bf16.mxu1 %v16032_v4 }
 0x299   : > { %v12121_v1 = vpop.f32.mrb[40].mxu1 }
 0x29a   : > { %v12122_v6 = vpop.f32.mrb[41].mxu1 }
 0x29b   : > { %v16211_v44 = vadd.f32 %v12122_v6, %v12121_v1  ;;  %v12124_v27 = vpop.f32.mrb[42].mxu1 }
 0x29c   : > { %v12125_v29 = vpop.f32.mrb[43].mxu1  ;;  %4827 = vmatmul.mubr.bf16.vlgmr.msra.gmra.mrb[128].mxu1 %v15128_v31 }
 0x29d   : > { %v16214_v43 = vadd.f32 %v12125_v29, %v12124_v27  ;;  %4834 = vmatprep.mubr.bf16.mxu1 %v16052_v0 }
 0x2a0   : > { %v12345_v2 = vpop.f32.mrb[168].mxu0 }
 0x2a1   : > { %v12346_v47 = vpop.f32.mrb[169].mxu0 }
 0x2a2   : > { %v16217_v38 = vadd.f32 %v12346_v47, %v12345_v2  ;;  %v12348_v24 = vpop.f32.mrb[170].mxu0 }
 0x2a3   : > { %v12349_v14 = vpop.f32.mrb[171].mxu0 }
 0x2a4   : > { %v16219_v62 = vadd.f32 %v12349_v14, %v12348_v24  ;;  %4835 = vmatmul.mubr.bf16.gmra.mrb[132].mxu1 %v15191_v17 }
 0x2a5   : > { %4842 = vmatprep.mubr.bf16.mxu1 %v16074_v56 }
 0x2a9   : > { %v12127_v4 = vpop.f32.mrb[44].mxu1 }
 0x2aa   : > { %v12128_v1 = vpop.f32.mrb[45].mxu1 }
 0x2ab   : > { %v16223_v6 = vadd.f32 %v12128_v1, %v12127_v4  ;;  %v12130_v31 = vpop.f32.mrb[46].mxu1 }
 0x2ac   : > { %v12131_v27 = vpop.f32.mrb[47].mxu1  ;;  %4843 = vmatmul.mubr.bf16.gmra.mrb[136].mxu1 %v15258_v19 }
 0x2ad   : > { %v16226_v0 = vadd.f32 %v12131_v27, %v12130_v31  ;;  %4850 = vmatprep.mubr.bf16.mxu1 %v16096_v20 }
 0x2b0   : > { %v12351_v29 = vpop.f32.mrb[172].mxu0 }
 0x2b1   : > { %v12352_v2 = vpop.f32.mrb[173].mxu0 }
 0x2b2   : > { %v16229_v14 = vadd.f32 %v12352_v2, %v12351_v29  ;;  %v12354_v47 = vpop.f32.mrb[174].mxu0 }
 0x2b3   : > { %v12355_v17 = vpop.f32.mrb[175].mxu0 }
 0x2b4   : > { %4851 = vmatmul.mubr.bf16.gmra.mrb[140].mxu1 %v15346_v45  ;;  %v16232_v56 = vadd.f32 %v12355_v17, %v12354_v47 }
 0x2b5   : > { %4858 = vmatprep.mubr.bf16.mxu1 %v16109_v16 }
 0x2b6   : > { %18495 = vst [vmem:[#allocation25_spill] sm:$0xff] %v16232_v56 }
 0x2ba   : > { %v12133_v24 = vpop.f32.mrb[48].mxu1 }
 0x2bb   : > { %v12134_v4 = vpop.f32.mrb[49].mxu1 }
 0x2bc   : > { %4859 = vmatmul.mubr.bf16.gmra.mrb[144].mxu1 %v15416_v55  ;;  %v16236_v19 = vadd.f32 %v12134_v4, %v12133_v24  ;;  %v12136_v1 = vpop.f32.mrb[50].mxu1 }
 0x2bd   : > { %4866 = vmatprep.mubr.bf16.mxu1 %v16119_v61  ;;  %v12137_v20 = vpop.f32.mrb[51].mxu1 }
 0x2be   : > { %v16239_v31 = vadd.f32 %v12137_v20, %v12136_v1 }
 0x2c2   : > { %v12357_v27 = vpop.f32.mrb[176].mxu0 }
 0x2c3   : > { %v12358_v29 = vpop.f32.mrb[177].mxu0 }
 0x2c4   : > { %v16241_v2 = vadd.f32 %v12358_v29, %v12357_v27  ;;  %v12360_v45 = vpop.f32.mrb[178].mxu0  ;;  %4867 = vmatmul.mubr.bf16.gmra.mrb[148].mxu1 %v18474_v48 }
 0x2c5   : > { %v12361_v16 = vpop.f32.mrb[179].mxu0  ;;  %4874 = vmatprep.mubr.bf16.mxu1 %v16129_v26 }
 0x2c6   : > { %v16245_v47 = vadd.f32 %v12361_v16, %v12360_v45 }
 0x2c7   : > { %v12139_v55 = vpop.f32.mrb[52].mxu1 }
 0x2c8   : > { %v12140_v17 = vpop.f32.mrb[53].mxu1 }
 0x2c9   : > { %v16247_v24 = vadd.f32 %v12140_v17, %v12139_v55  ;;  %v12142_v61 = vpop.f32.mrb[54].mxu1 }
 0x2ca   : > { %v12143_v4 = vpop.f32.mrb[55].mxu1  ;;  %v12363_v1 = vpop.f32.mrb[180].mxu0 }
 0x2cb   : > { %v16249_v20 = vadd.f32 %v12143_v4, %v12142_v61  ;;  %v12364_v56 = vpop.f32.mrb[181].mxu0 }
 0x2cc   : > { %4875 = vmatmul.mubr.bf16.gmra.mrb[152].mxu1 %v18477_v34  ;;  %v16252_v27 = vadd.f32 %v12364_v56, %v12363_v1  ;;  %v12366_v48 = vpop.f32.mrb[182].mxu0 }
 0x2cd   : > { %4882 = vmatprep.mubr.bf16.mxu1 %v16139_v52  ;;  %v12367_v26 = vpop.f32.mrb[183].mxu0 }
 0x2ce   : > { %v16255_v29 = vadd.f32 %v12367_v26, %v12366_v48 }
 0x2d4   : > { %4883 = vmatmul.mubr.bf16.gmra.mrb[156].mxu1 %v18479_v42  ;;  %v12145_v45 = vpop.f32.mrb[56].mxu1 }
 0x2d5   : > { %4890 = vmatprep.mubr.bf16.mxu1 %v16148_v59  ;;  %v12146_v16 = vpop.f32.mrb[57].mxu1 }
 0x2d6   : > { %v16259_v55 = vadd.f32 %v12146_v16, %v12145_v45  ;;  %v12148_v17 = vpop.f32.mrb[58].mxu1 }
 0x2d7   : > { %v12149_v61 = vpop.f32.mrb[59].mxu1 }
 0x2d8   : > { %v16261_v4 = vadd.f32 %v12149_v61, %v12148_v17 }
 0x2db   : > { %v12369_v34 = vpop.f32.mrb[184].mxu0 }
 0x2dc   : > { %4891 = vmatmul.mubr.bf16.gmra.mrb[160].mxu1 %v18482_v11  ;;  %v12370_v56 = vpop.f32.mrb[185].mxu0 }
 0x2dd   : > { %4898 = vmatprep.mubr.bf16.mxu1 %v16156_v54  ;;  %v16265_v52 = vadd.f32 %v12370_v56, %v12369_v34  ;;  %v12372_v1 = vpop.f32.mrb[186].mxu0 }
 0x2de   : > { %v12373_v42 = vpop.f32.mrb[187].mxu0 }
 0x2df   : > { %v16267_v48 = vadd.f32 %v12373_v42, %v12372_v1 }
 0x2e1   : > { %18496 = vst [vmem:[#allocation26_spill] sm:$0xff] %v16267_v48 }
 0x2e4   : > { %4899 = vmatmul.mubr.bf16.gmra.mrb[164].mxu1 %v18485_v9 }
 0x2e5   : > { %4906 = vmatprep.mubr.bf16.mxu1 %v16164_v46 }
 0x2e7   : > { %v12151_v59 = vpop.f32.mrb[60].mxu1 }
 0x2e8   : > { %v12152_v26 = vpop.f32.mrb[61].mxu1 }
 0x2e9   : > { %v16271_v45 = vadd.f32 %v12152_v26, %v12151_v59  ;;  %v12154_v16 = vpop.f32.mrb[62].mxu1 }
 0x2ea   : > { %v12155_v17 = vpop.f32.mrb[63].mxu1 }
 0x2eb   : > { %v16273_v11 = vadd.f32 %v12155_v17, %v12154_v16 }
 0x2ec   : > { %4907 = vmatmul.mubr.bf16.gmra.mrb[168].mxu1 %v18488_v8 }
 0x2ed   : > { %4914 = vmatprep.mubr.bf16.mxu1 %v16172_v18 }
 0x2ee   : > { %v12375_v54 = vpop.f32.mrb[188].mxu0 }
 0x2ef   : > { %v12173_v61 = vpop.f32.mrb[64].mxu1  ;;  %v12376_v34 = vpop.f32.mrb[189].mxu0 }
 0x2f0   : > { %v16277_v56 = vadd.f32 %v12376_v34, %v12375_v54  ;;  %v12174_v9 = vpop.f32.mrb[65].mxu1  ;;  %v12378_v1 = vpop.f32.mrb[190].mxu0 }
 0x2f1   : > { %v12175_v46 = vadd.f32 %v12174_v9, %v12173_v61  ;;  %v12176_v42 = vpop.f32.mrb[66].mxu1  ;;  %v12379_v48 = vpop.f32.mrb[191].mxu0 }
 0x2f2   : > { %18497 = vst [vmem:[#allocation27_spill] sm:$0xff] %v16277_v56  ;;  %v16279_v59 = vadd.f32 %v12379_v48, %v12378_v1  ;;  %v12177_v26 = vpop.f32.mrb[67].mxu1 }
 0x2f3   : > { %v4219_v16 = vadd.f32 %v12175_v46, %v15978_v3  ;;  %v12178_v17 = vadd.f32 %v12177_v26, %v12176_v42 }
 0x2f4   : > { %18498 = vst [vmem:[#allocation28_spill] sm:$0xff] %v16279_v59  ;;  %4915 = vmatmul.mubr.bf16.gmra.mrb[172].mxu1 %v18490_v53 }
 0x2f5   : > { %v4222_v18 = vadd.f32 %v12178_v17, %v15986_v37  ;;  %4922 = vmatprep.mubr.bf16.mxu1 %v16184_v7  ;;  %v16286_v8 = vadd.f32 %v15970_v25, %v4219_v16 }
 0x2f6   : > { %v16288_v54 = vpop.f32.mrb[192].mxu0 }
 0x2f7   : > { %v12179_v61 = vpop.f32.mrb[68].mxu1  ;;  %v16290_v34 = vpop.f32.mrb[193].mxu0 }
 0x2f8   : > { %v12180_v48 = vpop.f32.mrb[69].mxu1  ;;  %v16292_v9 = vpop.f32.mrb[194].mxu0 }
 0x2f9   : > { %v12181_v1 = vadd.f32 %v12180_v48, %v12179_v61  ;;  %v12182_v3 = vpop.f32.mrb[70].mxu1  ;;  %v16294_v46 = vpop.f32.mrb[195].mxu0 }
 0x2fa   : > { %v12183_v53 = vpop.f32.mrb[71].mxu1 }
 0x2fb   : > { %v4227_v37 = vadd.f32 %v12181_v1, %v15995_v40  ;;  %v12184_v42 = vadd.f32 %v12183_v53, %v12182_v3 }
 0x2fc   : > { %4923 = vmatmul.mubr.bf16.gmra.mrb[176].mxu1 %v15929_v60 }
 0x2fd   : > { %v4230_v25 = vadd.f32 %v12184_v42, %v15998_v5  ;;  %4930 = vmatprep.mubr.bf16.mxu1 %v16193_v63 }
 0x2fe   : > { %v16300_v7 = vpop.f32.mrb[196].mxu0 }
 0x2ff   : > { %18499 = vst [vmem:[#allocation29_spill] sm:$0xff] %v16300_v7  ;;  %v12185_v26 = vpop.f32.mrb[72].mxu1  ;;  %v16302_v16 = vpop.f32.mrb[197].mxu0 }
 0x300   : > { %v12186_v17 = vpop.f32.mrb[73].mxu1  ;;  %v16304_v61 = vpop.f32.mrb[198].mxu0 }
 0x301   : > { %18500 = vst [vmem:[#allocation30_spill] sm:$0xff] %v16304_v61  ;;  %v12187_v48 = vadd.f32 %v12186_v17, %v12185_v26  ;;  %v12188_v59 = vpop.f32.mrb[74].mxu1  ;;  %v16306_v56 = vpop.f32.mrb[199].mxu0  ;;  %v3110_v17 = vld [vmem:[#allocation2 + $0x501] ss:$2 sm:$0xff] }
 0x302   : > { %18501 = vst [vmem:[#allocation31_spill] sm:$0xff] %v16306_v56  ;;  %v12189_v40 = vpop.f32.mrb[75].mxu1  ;;  %v3112_v61 = vld [vmem:[#allocation2 + $0x511] ss:$2 sm:$0xff] }
 0x303   : > { %v4235_v1 = vadd.f32 %v12187_v48, %v16015_v33  ;;  %v12190_v60 = vadd.f32 %v12189_v40, %v12188_v59  ;;  %v3129_v40 = vpack.c.bf16 %v3112_v61, %v3110_v17 }
 0x304   : > { %4931 = vmatmul.mubr.bf16.gmra.mrb[180].mxu1 %v15981_v57 }
 0x305   : > { %v16311_v5 = vadd.f32 %v12190_v60, %v16021_v41  ;;  %4938 = vmatprep.mubr.bf16.mxu1 %v16199_v12 }
 0x306   : > { %v16314_v63 = vpop.f32.mrb[200].mxu0 }
 0x307   : > { %18502 = vst [vmem:[#allocation32_spill] sm:$0xff] %v16314_v63  ;;  %v12191_v3 = vpop.f32.mrb[76].mxu1  ;;  %v16316_v53 = vpop.f32.mrb[201].mxu0 }
 0x308   : > { %18503 = vst [vmem:[#allocation33_spill] sm:$0xff] %v16316_v53  ;;  %v12192_v42 = vpop.f32.mrb[77].mxu1  ;;  %v16318_v26 = vpop.f32.mrb[202].mxu0 }
 0x309   : > { %18504 = vst [vmem:[#allocation34_spill] sm:$0xff] %v16318_v26  ;;  %v12193_v7 = vadd.f32 %v12192_v42, %v12191_v3  ;;  %v12194_v33 = vpop.f32.mrb[78].mxu1  ;;  %v16320_v59 = vpop.f32.mrb[203].mxu0 }
 0x30a   : > { %18505 = vst [vmem:[#allocation35_spill] sm:$0xff] %v16320_v59  ;;  %v12195_v57 = vpop.f32.mrb[79].mxu1 }
 0x30b   : > { %v4243_v41 = vadd.f32 %v12193_v7, %v16056_v36  ;;  %v12196_v48 = vadd.f32 %v12195_v57, %v12194_v33 }
 0x30c   : > { %4939 = vmatmul.mubr.bf16.gmra.mrb[184].mxu1 %v16001_v49 }
 0x30d   : > { %v4246_v12 = vadd.f32 %v12196_v48, %v16062_v50  ;;  %4946 = vmatprep.mubr.bf16.mxu1 %v3129_v40  ;;  %v16337_v50 = vadd.f32 %v15974_v13, %v4222_v18 }
 0x30e   : > { %v16325_v60 = vpop.f32.mrb[204].mxu0 }
 0x30f   : > { %v12197_v63 = vpop.f32.mrb[80].mxu1  ;;  %v16327_v26 = vpop.f32.mrb[205].mxu0 }
 0x310   : > { %v12198_v53 = vpop.f32.mrb[81].mxu1  ;;  %v16329_v3 = vpop.f32.mrb[206].mxu0 }
 0x311   : > { %18506 = vst [vmem:[#allocation36_spill] sm:$0xff] %v16329_v3  ;;  %v12199_v42 = vadd.f32 %v12198_v53, %v12197_v63  ;;  %v12200_v59 = vpop.f32.mrb[82].mxu1  ;;  %v16331_v56 = vpop.f32.mrb[207].mxu0  ;;  %v16344_v63 = vadd.f32 %v16004_v15, %v4227_v37 }
 0x312   : > { %v12201_v36 = vpop.f32.mrb[83].mxu1 }
 0x313   : > { %v4251_v7 = vadd.f32 %v12199_v42, %v16104_v28  ;;  %v12202_v61 = vadd.f32 %v12201_v36, %v12200_v59  ;;  %v16353_v42 = vadd.f32 %v16008_v35, %v4230_v25 }
 0x314   : > { %4947 = vmatmul.mubr.bf16.gmra.mrb[188].mxu1 %v16175_v51 }
 0x315   : > { %v4254_v49 = vadd.f32 %v12202_v61, %v16106_v10  ;;  %v13279_v61 = vld [vmem:[%s18435_s5 + $0xc0] sm:$0xff]  }
 0x316   : > { %v16339_v17 = vpop.f32.mrb[208].mxu0  ;;  %12517 = vmatprep.subr.bf16.mxu1 %v13279_v61 }
 0x317   : > { %18507 = vst [vmem:[#allocation37_spill] sm:$0xff] %v16339_v17  ;;  %v12203_v33 = vpop.f32.mrb[84].mxu1  ;;  %v16341_v57 = vpop.f32.mrb[209].mxu0 }
 0x318   : > { %18508 = vst [vmem:[#allocation38_spill] sm:$0xff] %v16341_v57  ;;  %v12204_v53 = vpop.f32.mrb[85].mxu1  ;;  %v16346_v48 = vpop.f32.mrb[210].mxu0 }
 0x319   : > { %18509 = vst [vmem:[#allocation39_spill] sm:$0xff] %v16346_v48  ;;  %v12205_v28 = vadd.f32 %v12204_v53, %v12203_v33  ;;  %v12206_v59 = vpop.f32.mrb[86].mxu1  ;;  %v16348_v40 = vpop.f32.mrb[211].mxu0  ;;  %v13280_v33 = vld [vmem:[%s18435_s5 + $0x80] sm:$0xff]   ;;  %v18516_v48 = vld [vmem:[#allocation14_spill] sm:$0xff] }
 0x31a   : > { %18510 = vst [vmem:[#allocation40_spill] sm:$0xff] %v16348_v40  ;;  %v12207_v51 = vpop.f32.mrb[87].mxu1  ;;  %12518 = vmatpush3.bf16.msra.mxu1 %v13280_v33  ;;  %v16376_v17 = vadd.f32 %v18516_v48, %v16311_v5  ;;  %v18523_v48 = vld [vmem:[#allocation20_spill] sm:$0xff] }
 0x31b   : > { %v4259_v10 = vadd.f32 %v12205_v28, %v16124_v39  ;;  %v12208_v13 = vadd.f32 %v12207_v51, %v12206_v59  ;;  %v16366_v39 = vadd.f32 %v16027_v23, %v4235_v1 }
 0x31d   : > { %v4262_v18 = vadd.f32 %v12208_v13, %v16126_v21 }
 0x31e   : > { %v16355_v36 = vpop.f32.mrb[212].mxu0 }
 0x31f   : > { %18511 = vst [vmem:[#allocation41_spill] sm:$0xff] %v16355_v36  ;;  %v12209_v15 = vpop.f32.mrb[88].mxu1  ;;  %v16357_v37 = vpop.f32.mrb[213].mxu0  ;;  %v18515_v36 = vld [vmem:[#allocation7_spill] sm:$0xff] }
 0x320   : > { %18512 = vst [vmem:[#allocation42_spill] sm:$0xff] %v16357_v37  ;;  %v12210_v21 = vpop.f32.mrb[89].mxu1  ;;  %v16368_v53 = vpop.f32.mrb[214].mxu0 }
 0x321   : > { %18513 = vst [vmem:[#allocation43_spill] sm:$0xff] %v16368_v53  ;;  %v12211_v35 = vadd.f32 %v12210_v21, %v12209_v15  ;;  %v12212_v25 = vpop.f32.mrb[90].mxu1  ;;  %v16370_v28 = vpop.f32.mrb[215].mxu0  ;;  %v18519_v15 = vld [vmem:[#allocation15_spill] sm:$0xff] }
 0x322   : > { %18514 = vst [vmem:[#allocation44_spill] sm:$0xff] %v16370_v28  ;;  %v12213_v59 = vpop.f32.mrb[91].mxu1  ;;  %v16383_v21 = vadd.f32 %v18519_v15, %v4243_v41  ;;  %v13281_v41 = vld [vmem:[%s18435_s5 + $0xc8] sm:$0xff]  }
 0x323   : > { %v4267_v51 = vadd.f32 %v12211_v35, %v16144_v58  ;;  %v12214_v13 = vadd.f32 %v12213_v59, %v12212_v25  ;;  %v18522_v25 = vld [vmem:[#allocation9_spill] sm:$0xff]  ;;  %12519 = vmatprep.subr.bf16.mxu1 %v13281_v41 }
 0x324   : > { %v18525_v15 = vld [vmem:[#allocation17_spill] sm:$0xff] }
 0x325   : > { %v4270_v37 = vadd.f32 %v12214_v13, %v18515_v36 }
 0x326   : > { %v16378_v23 = vpop.f32.mrb[216].mxu0 }
 0x327   : > { %18517 = vst [vmem:[#allocation7_spill] sm:$0xff] %v16378_v23  ;;  %v12215_v1 = vpop.f32.mrb[92].mxu1  ;;  %v16380_v53 = vpop.f32.mrb[217].mxu0  ;;  %v18524_v23 = vld [vmem:[#allocation16_spill] sm:$0xff] }
 0x328   : > { %18518 = vst [vmem:[#allocation14_spill] sm:$0xff] %v16380_v53  ;;  %v12216_v61 = vpop.f32.mrb[93].mxu1  ;;  %v16385_v28 = vpop.f32.mrb[218].mxu0  ;;  %v16394_v40 = vadd.f32 %v18524_v23, %v4246_v12  ;;  %v18526_v12 = vld [vmem:[#allocation11_spill] sm:$0xff] }
 0x329   : > { %18520 = vst [vmem:[#allocation15_spill] sm:$0xff] %v16385_v28  ;;  %v12217_v33 = vadd.f32 %v12216_v61, %v12215_v1  ;;  %v12218_v58 = vpop.f32.mrb[94].mxu1  ;;  %v16387_v35 = vpop.f32.mrb[219].mxu0  ;;  %v13282_v1 = vld [vmem:[%s18435_s5 + $0x88] sm:$0xff]   ;;  %v16403_v61 = vadd.f32 %v18525_v15, %v4251_v7  ;;  %v18527_v28 = vld [vmem:[#allocation18_spill] sm:$0xff] }
 0x32a   : > { %18521 = vst [vmem:[#allocation45_spill] sm:$0xff] %v16387_v35  ;;  %v12219_v36 = vpop.f32.mrb[95].mxu1  ;;  %12520 = vmatpush3.bf16.msra.mxu1 %v13282_v1  ;;  %v16412_v35 = vadd.f32 %v18527_v28, %v4254_v49  ;;  %v18528_v7 = vld [vmem:[#allocation13_spill] sm:$0xff]  ;;  %v13283_v28 = vld [vmem:[%s18435_s5 + $0xd0] sm:$0xff]  }
 0x32b   : > { %v4275_v59 = vadd.f32 %v12217_v33, %v18522_v25  ;;  %v12220_v5 = vadd.f32 %v12219_v36, %v12218_v58  ;;  %v16415_v15 = vadd.f32 %v18528_v7, %v4259_v10  ;;  %12521 = vmatprep.subr.bf16.mxu1 %v13283_v28 }
 0x32d   : > { %v16391_v13 = vadd.f32 %v12220_v5, %v18523_v48 }
 0x32f   : > { %v12221_v53 = vpop.f32.mrb[96].mxu1 }
 0x330   : > { %v12222_v33 = vpop.f32.mrb[97].mxu1 }
 0x331   : > { %v12223_v58 = vadd.f32 %v12222_v33, %v12221_v53  ;;  %v12224_v36 = vpop.f32.mrb[98].mxu1 }
 0x332   : > { %v12225_v25 = vpop.f32.mrb[99].mxu1 }
 0x333   : > { %v16406_v23 = vadd.f32 %v12223_v58, %v18526_v12  ;;  %v12226_v5 = vadd.f32 %v12225_v25, %v12224_v36 }
 0x335   : > { %v16409_v48 = vadd.f32 %v12226_v5, %v16182_v32  ;;  %v18529_v32 = vld [vmem:[#allocation6_spill] sm:$0xff] }
 0x336   : > { %v16424_v25 = vadd.f32 %v18529_v32, %v4262_v18  ;;  %v13286_v18 = vld [vmem:[%s18435_s5 + $0x100] sm:$0xff]   ;;  %v13289_v32 = vld [vmem:[%s18435_s5 + $0x148] sm:$0xff]  }
 0x337   : > { %v12227_v57 = vpop.f32.mrb[100].mxu1 }
 0x338   : > { %v12228_v3 = vpop.f32.mrb[101].mxu1 }
 0x339   : > { %v12229_v53 = vadd.f32 %v12228_v3, %v12227_v57  ;;  %v12230_v33 = vpop.f32.mrb[102].mxu1  ;;  %v13284_v3 = vld [vmem:[%s18435_s5 + $0x90] sm:$0xff]   ;;  %v18530_v57 = vld [vmem:[#allocation8_spill] sm:$0xff] }
 0x33a   : > { %v12231_v41 = vpop.f32.mrb[103].mxu1  ;;  %v16436_v10 = vadd.f32 %v18530_v57, %v4267_v51  ;;  %12522 = vmatpush3.bf16.msra.mxu1 %v13284_v3  ;;  %v13287_v51 = vld [vmem:[%s18435_s5 + $0xd8] sm:$0xff]   ;;  %v18532_v57 = vld [vmem:[#allocation10_spill] sm:$0xff] }
 0x33b   : > { %v16418_v1 = vadd.f32 %v12229_v53, %v16197_v22  ;;  %v12232_v58 = vadd.f32 %v12231_v41, %v12230_v33  ;;  %v13285_v22 = vld [vmem:[%s18435_s5 + $0x140] sm:$0xff]   ;;  %12523 = vmatprep.subr.bf16.mxu1 %v13287_v51 }
 0x33c   : > { %12597 = vmatprep.subr.bf16.mxu0 %v13285_v22  ;;  %v13291_v22 = vld [vmem:[%s18435_s5 + $0xe0] sm:$0xff]  }
 0x33d   : > { %v16421_v36 = vadd.f32 %v12232_v58, %v16201_v30  ;;  %12598 = vmatpush3.bf16.msra.mxu0 %v13286_v18  ;;  %v13288_v58 = vld [vmem:[%s18435_s5 + $0x98] sm:$0xff]  }
 0x33e   : > { %12599 = vmatprep.subr.bf16.mxu0 %v13289_v32  ;;  %12524 = vmatpush3.bf16.msra.mxu1 %v13288_v58  ;;  %v13295_v32 = vld [vmem:[%s18435_s5 + $0xe8] sm:$0xff]  }
 0x33f   : > { %v12233_v49 = vpop.f32.mrb[104].mxu1  ;;  %12525 = vmatprep.subr.bf16.mxu1 %v13291_v22  ;;  %v13299_v22 = vld [vmem:[%s18435_s5 + $0xf0] sm:$0xff]  }
 0x340   : > { %v12234_v30 = vpop.f32.mrb[105].mxu1 }
 0x341   : > { %v12235_v12 = vadd.f32 %v12234_v30, %v12233_v49  ;;  %v12236_v5 = vpop.f32.mrb[106].mxu1  ;;  %v18531_v49 = vld [vmem:[#allocation19_spill] sm:$0xff]  ;;  %v16466_v30 = vadd.f32 %v18532_v57, %v4275_v59  ;;  %v18534_v57 = vld [vmem:[#allocation12_spill] sm:$0xff] }
 0x342   : > { %v12237_v7 = vpop.f32.mrb[107].mxu1  ;;  %v16457_v28 = vadd.f32 %v18531_v49, %v4270_v37  ;;  %v13292_v37 = vld [vmem:[%s18435_s5 + $0xa0] sm:$0xff]   ;;  %v13296_v49 = vld [vmem:[%s18435_s5 + $0xa8] sm:$0xff]  }
 0x343   : > { %v16442_v53 = vadd.f32 %v12235_v12, %v16211_v44  ;;  %v12238_v33 = vadd.f32 %v12237_v7, %v12236_v5  ;;  %v13293_v5 = vld [vmem:[%s18435_s5 + $0x150] sm:$0xff]   ;;  %12526 = vmatpush3.bf16.msra.mxu1 %v13292_v37 }
 0x344   : > { %12527 = vmatprep.subr.bf16.mxu1 %v13295_v32 }
 0x345   : > { %v16445_v41 = vadd.f32 %v12238_v33, %v16214_v43  ;;  %v13290_v43 = vld [vmem:[%s18435_s5 + $0x108] sm:$0xff]   ;;  %v13294_v33 = vld [vmem:[%s18435_s5 + $0x110] sm:$0xff]  }
 0x346   : > { %12600 = vmatpush3.bf16.msra.mxu0 %v13290_v43  ;;  %v13298_v43 = vld [vmem:[%s18435_s5 + $0x118] sm:$0xff]  }
 0x347   : > { %v12239_v44 = vpop.f32.mrb[108].mxu1  ;;  %12601 = vmatprep.subr.bf16.mxu0 %v13293_v5  ;;  %12528 = vmatpush3.bf16.msra.mxu1 %v13296_v49  ;;  %v13303_v49 = vld [vmem:[%s18435_s5 + $0xf8] sm:$0xff]  }
 0x348   : > { %v12240_v3 = vpop.f32.mrb[109].mxu1  ;;  %12529 = vmatprep.subr.bf16.mxu1 %v13299_v22 }
 0x349   : > { %v12241_v18 = vadd.f32 %v12240_v3, %v12239_v44  ;;  %v12242_v12 = vpop.f32.mrb[110].mxu1  ;;  %v13297_v44 = vld [vmem:[%s18435_s5 + $0x158] sm:$0xff]  }
 0x34a   : > { %v12243_v7 = vpop.f32.mrb[111].mxu1  ;;  %12602 = vmatpush3.bf16.msra.mxu0 %v13294_v33 }
 0x34b   : > { %v16478_v59 = vadd.f32 %v12241_v18, %v16223_v6  ;;  %v12244_v51 = vadd.f32 %v12243_v7, %v12242_v12  ;;  %v18533_v6 = vld [vmem:[#allocation21_spill] sm:$0xff]  ;;  %12603 = vmatprep.subr.bf16.mxu0 %v13297_v44  ;;  %v16504_v18 = vadd.f32 %v18534_v57, %v16406_v23  ;;  %v13300_v7 = vld [vmem:[%s18435_s5 + $0xb0] sm:$0xff]   ;;  %v13302_v23 = vld [vmem:[%s18435_s5 + $0x120] sm:$0xff]  }
 0x34c   : > { %v16494_v3 = vadd.f32 %v18533_v6, %v16391_v13  ;;  %v13301_v13 = vld [vmem:[%s18435_s5 + $0x160] sm:$0xff]   ;;  %12530 = vmatpush3.bf16.msra.mxu1 %v13300_v7  ;;  %v13304_v6 = vld [vmem:[%s18435_s5 + $0xb8] sm:$0xff]   ;;  %v13306_v57 = vld [vmem:[%s18435_s5 + $0x128] sm:$0xff]  }
 0x34d   : > { %v16481_v58 = vadd.f32 %v12244_v51, %v16226_v0  ;;  %12531 = vmatprep.subr.bf16.mxu1 %v13303_v49  ;;  %v13309_v49 = vld [vmem:[%s18435_s5 + $0x178] sm:$0xff]  }
 0x34e   : > { %12604 = vmatpush3.bf16.msra.mxu0 %v13298_v43 }
 0x34f   : > { %v12245_v0 = vpop.f32.mrb[112].mxu1  ;;  %12605 = vmatprep.subr.bf16.mxu0 %v13301_v13 }
 0x350   : > { %v12246_v12 = vpop.f32.mrb[113].mxu1  ;;  %12532 = vmatpush3.bf16.msra.mxu1 %v13304_v6  ;;  %v18537_v6 = vld [vmem:[#allocation24_spill] sm:$0xff] }
 0x351   : > { %v12247_v37 = vadd.f32 %v12246_v12, %v12245_v0  ;;  %v12248_v5 = vpop.f32.mrb[114].mxu1  ;;  %v13305_v0 = vld [vmem:[%s18435_s5 + $0x168] sm:$0xff]   ;;  %v18536_v12 = vld [vmem:[#allocation23_spill] sm:$0xff] }
 0x352   : > { %v12249_v33 = vpop.f32.mrb[115].mxu1  ;;  %12606 = vmatpush3.bf16.msra.mxu0 %v13302_v23  ;;  %v16537_v13 = vadd.f32 %v18536_v12, %v16418_v1 }
 0x353   : > { %v4315_v51 = vadd.f32 %v12247_v37, %v16236_v19  ;;  %v12250_v32 = vadd.f32 %v12249_v33, %v12248_v5  ;;  %v18535_v19 = vld [vmem:[#allocation22_spill] sm:$0xff]  ;;  %12607 = vmatprep.subr.bf16.mxu0 %v13305_v0  ;;  %v16552_v0 = vadd.f32 %v18537_v6, %v16421_v36 }
 0x354   : > { %v16530_v43 = vadd.f32 %v18535_v19, %v16409_v48  ;;  %v13307_v48 = vld [vmem:[%s18435_s5 + $0x170] sm:$0xff]  }
 0x355   : > { %v16517_v44 = vadd.f32 %v12250_v32, %v16239_v31  ;;  %v13308_v33 = vld [vmem:[%s18435_s5 + $0x130] sm:$0xff]  }
 0x356   : > { %12608 = vmatpush3.bf16.msra.mxu0 %v13306_v57 }
 0x357   : > { %v12251_v31 = vpop.f32.mrb[116].mxu1  ;;  %12609 = vmatprep.subr.bf16.mxu0 %v13307_v48 }
 0x358   : > { %v12252_v22 = vpop.f32.mrb[117].mxu1 }
 0x359   : > { %v12253_v37 = vadd.f32 %v12252_v22, %v12251_v31  ;;  %v12254_v5 = vpop.f32.mrb[118].mxu1  ;;  %v13310_v31 = vld [vmem:[%s18435_s5 + $0x138] sm:$0xff]  }
 0x35a   : > { %v12255_v7 = vpop.f32.mrb[119].mxu1  ;;  %12610 = vmatpush3.bf16.msra.mxu0 %v13308_v33  ;;  %v16569_v33 = vpop.f32.mrb[220].mxu0 }
 0x35b   : > { %v4323_v23 = vadd.f32 %v12253_v37, %v16247_v24  ;;  %v12256_v32 = vadd.f32 %v12255_v7, %v12254_v5  ;;  %12611 = vmatprep.subr.bf16.mxu0 %v13309_v49  ;;  %v16559_v24 = vadd.f32 %v16217_v38, %v16442_v53  ;;  %v16567_v7 = vadd.f32 %v16219_v62, %v16445_v41 }
 0x35c   : > { %v16573_v38 = vadd.f32 %v16229_v14, %v16478_v59 }
 0x35d   : > { %v4326_v1 = vadd.f32 %v12256_v32, %v16249_v20  ;;  %v16575_v32 = vpop.f32.mrb[221].mxu0 }
 0x35e   : > { %12612 = vmatpush3.bf16.msra.mxu0 %v13310_v31  ;;  %v16577_v6 = vpop.f32.mrb[222].mxu0 }
 0x35f   : > { %v12257_v19 = vpop.f32.mrb[120].mxu1  ;;  %18538 = vst [vmem:[#allocation9_spill] sm:$0xff] %v16577_v6 }
 0x360   : > { %v12258_v20 = vpop.f32.mrb[121].mxu1 }
 0x361   : > { %v12259_v22 = vadd.f32 %v12258_v20, %v12257_v19  ;;  %v12260_v57 = vpop.f32.mrb[122].mxu1  ;;  %v16579_v19 = vpop.f32.mrb[223].mxu0  ;;  %v18539_v20 = vld [vmem:[#allocation25_spill] sm:$0xff] }
 0x362   : > { %v12261_v12 = vpop.f32.mrb[123].mxu1  ;;  %v16587_v14 = vadd.f32 %v18539_v20, %v16481_v58 }
 0x363   : > { %v4331_v37 = vadd.f32 %v12259_v22, %v16259_v55  ;;  %v12262_v36 = vadd.f32 %v12261_v12, %v12260_v57  ;;  %v16590_v22 = vadd.f32 %v16241_v2, %v4315_v51  ;;  %v16602_v2 = vadd.f32 %v16245_v47, %v16517_v44 }
 0x365   : > { %v16563_v5 = vadd.f32 %v12262_v36, %v16261_v4 }
 0x367   : > { %v12263_v48 = vpop.f32.mrb[124].mxu1 }
 0x368   : > { %v12264_v53 = vpop.f32.mrb[125].mxu1 }
 0x369   : > { %v12265_v49 = vadd.f32 %v12264_v53, %v12263_v48  ;;  %v12266_v55 = vpop.f32.mrb[126].mxu1 }
 0x36a   : > { %v12267_v4 = vpop.f32.mrb[127].mxu1 }
 0x36b   : > { %v4339_v62 = vadd.f32 %v12265_v49, %v16271_v45  ;;  %v12268_v41 = vadd.f32 %v12267_v4, %v12266_v55  ;;  %v16596_v45 = vld [vmem:[%s18434_s4] ss:$0 sm:$0xff]  ;;  %v16609_v55 = vadd.f32 %v16252_v27, %v4323_v23  ;;  %v16620_v23 = vadd.f32 %v16255_v29, %v4326_v1 }
 0x36d   : > { %v16583_v31 = vadd.f32 %v12268_v41, %v16273_v11 }
 0x36f   : > { %v12397_v59 = vpop.f32.mrb[128].mxu1 }
 0x370   : > { %v12398_v57 = vpop.f32.mrb[129].mxu1 }
 0x371   : > { %v12399_v12 = vadd.f32 %v12398_v57, %v12397_v59  ;;  %v12400_v36 = vpop.f32.mrb[130].mxu1 }
 0x372   : > { %v12401_v48 = vpop.f32.mrb[131].mxu1 }
 0x373   : > { %v4955_v53 = vadd.f32 %v12399_v12, %v16286_v8  ;;  %v12402_v6 = vadd.f32 %v12401_v48, %v12400_v36 }
 0x375   : > { %v5212_v11 = vadd.f32 %v16290_v34, %v4955_v53  ;;  %v4956_v58 = vadd.f32 %v12402_v6, %v16337_v50  ;;  %v16627_v53 = vadd.f32 %v16265_v52, %v4331_v37  ;;  %v18540_v37 = vld [vmem:[#allocation26_spill] sm:$0xff] }
 0x377   : > { %v16605_v51 = vadd.f32 %v16596_v45, %v5212_v11  ;;  %v5213_v49 = vadd.f32 %v16294_v46, %v4956_v58  ;;  %v12403_v8 = vpop.f32.mrb[132].mxu1 }
 0x378   : > { %v12404_v4 = vpop.f32.mrb[133].mxu1 }
 0x379   : > { %v11415_v41 = vmul.f32 -1.442695, %v16605_v51  ;;  %v16613_v34 = vadd.f32 %v16596_v45, %v5213_v49  ;;  %v12405_v50 = vadd.f32 %v12404_v4, %v12403_v8  ;;  %v12406_v6 = vpop.f32.mrb[134].mxu1  ;;  %v16639_v4 = vadd.f32 %v18540_v37, %v16563_v5  ;;  %v18545_v37 = vld [vmem:[#allocation30_spill] sm:$0xff] }
 0x37a   : > { %v12407_v20 = vpop.f32.mrb[135].mxu1 }
 0x37b   : > { %14223 = vpow2.f32 %v11415_v41  ;;  %v11416_v47 = vmul.f32 -1.442695, %v16613_v34  ;;  %v4957_v44 = vadd.f32 %v12405_v50, %v16344_v63  ;;  %v12408_v59 = vadd.f32 %v12407_v20, %v12406_v6  ;;  %v18541_v20 = vld [vmem:[#allocation31_spill] sm:$0xff] }
 0x37d   : > { %14225 = vpow2.f32 %v11416_v47  ;;  %v5214_v46 = vadd.f32 %v16288_v54, %v4957_v44  ;;  %v4958_v27 = vadd.f32 %v12408_v59, %v16353_v42 }
 0x37f   : > { %v16623_v57 = vadd.f32 %v16596_v45, %v5214_v46  ;;  %v5215_v12 = vadd.f32 %v16292_v9, %v4958_v27  ;;  %v12409_v36 = vpop.f32.mrb[136].mxu1 }
 0x380   : > { %v12410_v48 = vpop.f32.mrb[137].mxu1 }
 0x381   : > { %v11417_v63 = vmul.f32 -1.442695, %v16623_v57  ;;  %v16631_v11 = vadd.f32 %v16596_v45, %v5215_v12  ;;  %v12411_v54 = vadd.f32 %v12410_v48, %v12409_v36  ;;  %v12412_v42 = vpop.f32.mrb[138].mxu1 }
 0x382   : > { %v12413_v58 = vpop.f32.mrb[139].mxu1 }
 0x383   : > { %14227 = vpow2.f32 %v11417_v63  ;;  %v11418_v29 = vmul.f32 -1.442695, %v16631_v11  ;;  %v4959_v1 = vadd.f32 %v12411_v54, %v16366_v39  ;;  %v12414_v49 = vadd.f32 %v12413_v58, %v12412_v42  ;;  %v18542_v39 = vld [vmem:[#allocation27_spill] sm:$0xff]  ;;  %v18543_v42 = vld [vmem:[#allocation29_spill] sm:$0xff] }
 0x384   : > { %v16646_v59 = vadd.f32 %v18542_v39, %v4339_v62 }
 0x385   : > { %v14224_v9 = vpop.eup %14223  ;;  %14229 = vpow2.f32 %v11418_v29  ;;  %v5216_v8 = vadd.f32 %v16302_v16, %v4959_v1  ;;  %v4960_v52 = vadd.f32 %v12414_v49, %v16376_v17  ;;  %v18544_v49 = vld [vmem:[#allocation28_spill] sm:$0xff] }
 0x386   : > { %v5379_v41 = vadd.f32 1.0, %v14224_v9  ;;  %v16658_v9 = vadd.f32 %v18544_v49, %v16583_v31 }
 0x387   : > { %v14226_v50 = vpop.eup %14225  ;;  %v16642_v6 = vadd.f32 %v16596_v45, %v5216_v8  ;;  %v5217_v47 = vadd.f32 %v18541_v20, %v4960_v52  ;;  %v12415_v44 = vpop.f32.mrb[140].mxu1 }
 0x388   : > { %14231 = vrcp.f32 %v5379_v41  ;;  %v5380_v46 = vadd.f32 1.0, %v14226_v50  ;;  %v12416_v16 = vpop.f32.mrb[141].mxu1  ;;  %v13311_v50 = vld [vmem:[%s18435_s5 + $0x40] sm:$0xff]  }
 0x389   : > { %v11419_v17 = vmul.f32 -1.442695, %v16642_v6  ;;  %v16650_v27 = vadd.f32 %v16596_v45, %v5217_v47  ;;  %v12417_v5 = vadd.f32 %v12416_v16, %v12415_v44  ;;  %v12418_v12 = vpop.f32.mrb[142].mxu1  ;;  %12557 = vmatprep.subr.bf16.mxu1 %v13311_v50  ;;  %v16675_v16 = vld [vmem:[%s18435_s5 + $0x200] sm:$0xff]  }
 0x38a   : > { %14233 = vrcp.f32 %v5380_v46  ;;  %v12419_v36 = vpop.f32.mrb[143].mxu1  ;;  %v5626_v46 = vld [vmem:[#allocation3] ss:$2 sm:$0xff]  ;;  %13063 = vmatprep.subr.bf16.mxu0 %v16675_v16 }
 0x38b   : > { %14235 = vpow2.f32 %v11419_v17  ;;  %v11420_v48 = vmul.f32 -1.442695, %v16650_v27  ;;  %v4961_v63 = vadd.f32 %v12417_v5, %v16383_v21  ;;  %v12420_v62 = vadd.f32 %v12419_v36, %v12418_v12 }
 0x38d   : > { %v14228_v54 = vpop.eup %14227  ;;  %14237 = vpow2.f32 %v11420_v48  ;;  %v5218_v58 = vadd.f32 %v18543_v42, %v4961_v63  ;;  %v4962_v29 = vadd.f32 %v12420_v62, %v16394_v40 }
 0x38e   : > { %v5381_v1 = vadd.f32 1.0, %v14228_v54  ;;  %v11921_v54 = vpack.c.bf16 %v5626_v46, %v5626_v46 }
 0x38f   : > { %v14230_v8 = vpop.eup %14229  ;;  %v16662_v52 = vadd.f32 %v16596_v45, %v5218_v58  ;;  %v5219_v41 = vadd.f32 %v18545_v37, %v4962_v29  ;;  %v12421_v21 = vpop.f32.mrb[144].mxu1  ;;  %v18546_v29 = vld [vmem:[#allocation33_spill] sm:$0xff] }
 0x390   : > { %14239 = vrcp.f32 %v5381_v1  ;;  %v5382_v20 = vadd.f32 1.0, %v14230_v8  ;;  %v12422_v40 = vpop.f32.mrb[145].mxu1 }
 0x391   : > { %v11421_v47 = vmul.f32 -1.442695, %v16662_v52  ;;  %v16670_v31 = vadd.f32 %v16596_v45, %v5219_v41  ;;  %v12423_v44 = vadd.f32 %v12422_v40, %v12421_v21  ;;  %v12424_v39 = vpop.f32.mrb[146].mxu1  ;;  %v18547_v21 = vld [vmem:[#allocation35_spill] sm:$0xff]  ;;  %v5838_v40 = vshrl.u32 %v11921_v54, 16 }
 0x392   : > { %v14232_v17 = vpop.eup %14231  ;;  %14241 = vrcp.f32 %v5382_v20  ;;  %v12425_v5 = vpop.f32.mrb[147].mxu1 }
 0x393   : > { %v5475_v12 = vmul.f32 %v14232_v17, %v16605_v51  ;;  %14243 = vpow2.f32 %v11421_v47  ;;  %v11422_v36 = vmul.f32 -1.442695, %v16670_v31  ;;  %v4963_v48 = vadd.f32 %v12423_v44, %v16403_v61 }
 0x394   : > { %v14234_v63 = vpop.eup %14233  ;;  %v12426_v62 = vadd.f32 %v12425_v5, %v12424_v39  ;;  %v5841_v39 = vshll.u32 %v11921_v54, 16 }
 0x395   : > { %v14236_v42 = vpop.eup %14235  ;;  %5507 = vst [vmem:[%s16680_s28] sm:$0xff] %v5475_v12  ;;  %5594 = vst [vmem:[#allocation3 + $0x19] sm:$0xff] %v5475_v12  ;;  %v5476_v58 = vmul.f32 %v14234_v63, %v16613_v34  ;;  %14245 = vpow2.f32 %v11422_v36  ;;  %v5220_v1 = vadd.f32 %v18546_v29, %v4963_v48  ;;  %v5628_v48 = vld [vmem:[#allocation3 + $0x10] ss:$2 sm:$0x1] }
 0x396   : > { %v5383_v51 = vadd.f32 1.0, %v14236_v42  ;;  %v4964_v49 = vadd.f32 %v12426_v62, %v16412_v35  ;;  %v16702_v42 = vrot.slane %v5838_v40, 4  ;;  %v18548_v29 = vld [vmem:[#allocation32_spill] sm:$0xff] }
 0x397   : > { %v14238_v8 = vpop.eup %14237  ;;  %5508 = vst [vmem:[%s16680_s28 + $0x8] sm:$0xff] %v5476_v58  ;;  %5595 = vst [vmem:[#allocation3 + $0x21] sm:$0xff] %v5476_v58  ;;  %v16692_v61 = vadd.f32 %v16596_v45, %v5220_v1  ;;  %v12427_v37 = vpop.f32.mrb[148].mxu1 }
 0x398   : > { %14247 = vrcp.f32 %v5383_v51  ;;  %v5384_v41 = vadd.f32 1.0, %v14238_v8  ;;  %v5221_v50 = vadd.f32 %v18547_v21, %v4964_v49  ;;  %v12428_v20 = vpop.f32.mrb[149].mxu1  ;;  %v5843_v51 = vrot.slane %v5841_v39, 5 }
 0x399   : > { %v11423_v34 = vmul.f32 -1.442695, %v16692_v61  ;;  %v12429_v47 = vadd.f32 %v12428_v20, %v12427_v37  ;;  %v12430_v44 = vpop.f32.mrb[150].mxu1  ;;  %v11922_v8 = vpack.c.bf16 %v5628_v48, %v5628_v48 }
 0x39a   : > { %v14240_v35 = vpop.eup %14239  ;;  %14249 = vrcp.f32 %v5384_v41  ;;  %v16697_v46 = vadd.f32 %v16596_v45, %v5221_v50  ;;  %v12431_v17 = vpop.f32.mrb[151].mxu1  ;;  %v18549_v50 = vld [vmem:[#allocation34_spill] sm:$0xff] }
 0x39b   : > { %v5477_v5 = vmul.f32 %v14240_v35, %v16623_v57  ;;  %14251 = vpow2.f32 %v11423_v34  ;;  %v4965_v12 = vadd.f32 %v12429_v47, %v16415_v15  ;;  %v12432_v36 = vadd.f32 %v12431_v17, %v12430_v44 }
 0x39c   : > { %v14242_v63 = vpop.eup %14241  ;;  %v11424_v62 = vmul.f32 -1.442695, %v16697_v46 }
 0x39d   : > { %v14244_v54 = vpop.eup %14243  ;;  %5509 = vst [vmem:[%s16680_s28 + $0x10] sm:$0xff] %v5477_v5  ;;  %5596 = vst [vmem:[#allocation3 + $0x31] sm:$0xff] %v5477_v5  ;;  %v5478_v58 = vmul.f32 %v14242_v63, %v16631_v11  ;;  %v5222_v1 = vadd.f32 %v18548_v29, %v4965_v12  ;;  %v4966_v57 = vadd.f32 %v12432_v36, %v16424_v25 }
 0x39e   : > { %v5385_v49 = vadd.f32 1.0, %v14244_v54  ;;  %14253 = vpow2.f32 %v11424_v62  ;;  %v16708_v15 = vld [vmem:[#allocation3 + $0x18] ss:$2 sm:$0xff]  ;;  %v5717_v37 = vld [vmem:[#allocation3 + $0x28] ss:$2 sm:$0x1]  ;;  %v5844_v63 = vor.u32 %v5843_v51, %v16702_v42 }
 0x39f   : > { %v14246_v41 = vpop.eup %14245  ;;  %5510 = vst [vmem:[%s16680_s28 + $0x18] sm:$0xff] %v5478_v58  ;;  %5597 = vst [vmem:[#allocation3 + $0x39] sm:$0xff] %v5478_v58  ;;  %v16712_v21 = vadd.f32 %v16596_v45, %v5222_v1  ;;  %v5223_v20 = vadd.f32 %v18549_v50, %v4966_v57  ;;  %v12433_v11 = vpop.f32.mrb[152].mxu1  ;;  %v11937_v40 = vpack.c.bf16 %v16708_v15, %v16708_v15  ;;  %v16722_v62 = vshll.u32 %v11922_v8, 16 }
 0x3a0   : > { %14255 = vrcp.f32 %v5385_v49  ;;  %v5386_v25 = vadd.f32 1.0, %v14246_v41  ;;  %v12434_v34 = vpop.f32.mrb[153].mxu1  ;;  %v11938_v47 = vpack.c.bf16 %v5717_v37, %v5717_v37 }
 0x3a1   : > { %v11425_v44 = vmul.f32 -1.442695, %v16712_v21  ;;  %v16719_v39 = vadd.f32 %v16596_v45, %v5223_v20  ;;  %v12435_v35 = vadd.f32 %v12434_v34, %v12433_v11  ;;  %v12436_v17 = vpop.f32.mrb[154].mxu1  ;;  %v5990_v5 = vshrl.u32 %v11937_v40, 16 }
 0x3a2   : > { %v14248_v12 = vpop.eup %14247  ;;  %14257 = vrcp.f32 %v5386_v25  ;;  %v12437_v36 = vpop.f32.mrb[155].mxu1  ;;  %v5993_v48 = vshll.u32 %v11937_v40, 16  ;;  %v16727_v41 = vshll.u32 %v11938_v47, 16 }
 0x3a3   : > { %v5479_v54 = vmul.f32 %v14248_v12, %v16642_v6  ;;  %14259 = vpow2.f32 %v11425_v44  ;;  %v11426_v58 = vmul.f32 -1.442695, %v16719_v39  ;;  %v4967_v29 = vadd.f32 %v12435_v35, %v16436_v10 }
 0x3a4   : > { %v14250_v1 = vpop.eup %14249  ;;  %v12438_v57 = vadd.f32 %v12437_v36, %v12436_v17  ;;  %v5992_v49 = vrot.slane %v5990_v5, 4  ;;  %v5995_v37 = vrot.slane %v5993_v48, 5  ;;  %v5845_v35 = vrot.slane %v5844_v63, 4 }
 0x3a5   : > { %v14252_v50 = vpop.eup %14251  ;;  %5511 = vst [vmem:[%s16680_s28 + $0x20] sm:$0xff] %v5479_v54  ;;  %5598 = vst [vmem:[#allocation3 + $0x49] sm:$0xff] %v5479_v54  ;;  %v5480_v42 = vmul.f32 %v14250_v1, %v16650_v27  ;;  %14261 = vpow2.f32 %v11426_v58  ;;  %v5224_v6 = vadd.f32 %v16327_v26, %v4967_v29  ;;  %v5849_v26 = vrot.slane %v16722_v62, 5 }
 0x3a6   : > { %v5387_v51 = vadd.f32 1.0, %v14252_v50  ;;  %v4968_v8 = vadd.f32 %v12438_v57, %v16457_v28  ;;  %v16733_v10 = vld [vmem:[#allocation3 + $0x30] ss:$2 sm:$0xff]  ;;  %v5632_v20 = vld [vmem:[#allocation3 + $0x40] ss:$2 sm:$0x1]  ;;  %v5996_v11 = vor.u32 %v5995_v37, %v5992_v49 }
 0x3a7   : > { %5512 = vst [vmem:[%s16680_s28 + $0x28] sm:$0xff] %v5480_v42  ;;  %5599 = vst [vmem:[#allocation3 + $0x51] sm:$0xff] %v5480_v42  ;;  %v16737_v40 = vadd.f32 %v16596_v45, %v5224_v6  ;;  %v12439_v25 = vpop.f32.mrb[156].mxu1  ;;  %v11923_v27 = vpack.c.bf16 %v16733_v10, %v16733_v10  ;;  %v11924_v34 = vpack.c.bf16 %v5632_v20, %v5632_v20  ;;  %v6001_v17 = vrot.slane %v16727_v41, 5  ;;  %v13314_v41 = vld [vmem:[%s18435_s5 + $0x8] sm:$0xff]  }
 0x3a8   : > { %v14254_v47 = vpop.eup %14253  ;;  %14263 = vrcp.f32 %v5387_v51  ;;  %v5225_v28 = vadd.f32 %v16331_v56, %v4968_v8  ;;  %v12440_v44 = vpop.f32.mrb[157].mxu1  ;;  %v16748_v49 = vrot.slane %v5996_v11, 4 }
 0x3a9   : > { %v5388_v5 = vadd.f32 1.0, %v14254_v47  ;;  %v11427_v12 = vmul.f32 -1.442695, %v16737_v40  ;;  %v12441_v36 = vadd.f32 %v12440_v44, %v12439_v25  ;;  %v12442_v48 = vpop.f32.mrb[158].mxu1  ;;  %v5852_v54 = vshrl.u32 %v11923_v27, 16 }
 0x3aa   : > { %v14256_v58 = vpop.eup %14255  ;;  %v16746_v29 = vadd.f32 %v16596_v45, %v5225_v28  ;;  %v12443_v62 = vpop.f32.mrb[159].mxu1  ;;  %v5855_v1 = vshll.u32 %v11923_v27, 16  ;;  %v5861_v57 = vshll.u32 %v11924_v34, 16  ;;  %v5850_v47 = vsel %vm16759_vm4, %v5845_v35, %v5849_v26 }
 0x3ab   : > { %v5481_v56 = vmul.f32 %v14256_v58, %v16662_v52  ;;  %14265 = vrcp.f32 %v5388_v5  ;;  %v4969_v63 = vadd.f32 %v12441_v36, %v16466_v30  ;;  %v12444_v37 = vadd.f32 %v12443_v62, %v12442_v48  ;;  %v13346_v30 = vld [vmem:[%s18435_s5 + $0x1a8] sm:$0xff]  }
 0x3ac   : > { %v14258_v50 = vpop.eup %14257  ;;  %14267 = vpow2.f32 %v11427_v12  ;;  %v11428_v42 = vmul.f32 -1.442695, %v16746_v29  ;;  %v5854_v6 = vrot.slane %v5852_v54, 4  ;;  %v5857_v51 = vrot.slane %v5855_v1, 5 }
 0x3ad   : > { %v14260_v8 = vpop.eup %14259  ;;  %5513 = vst [vmem:[%s16680_s28 + $0x30] sm:$0xff] %v5481_v56  ;;  %5600 = vst [vmem:[#allocation3 + $0x61] sm:$0xff] %v5481_v56  ;;  %v5482_v20 = vmul.f32 %v14258_v50, %v16670_v31  ;;  %v5226_v11 = vadd.f32 %v16325_v60, %v4969_v63  ;;  %v4970_v52 = vadd.f32 %v12444_v37, %v16494_v3  ;;  %v5863_v25 = vrot.slane %v5861_v57, 5  ;;  %v18552_v3 = vld [vmem:[#allocation36_spill] sm:$0xff] }
 0x3ae   : > { %v5389_v27 = vadd.f32 1.0, %v14260_v8  ;;  %14269 = vpow2.f32 %v11428_v42  ;;  %v5719_v34 = vld [vmem:[#allocation3 + $0x48] ss:$2 sm:$0xff]  ;;  %v5858_v28 = vor.u32 %v5857_v51, %v5854_v6  ;;  %v5721_v44 = vld [vmem:[#allocation3 + $0x58] ss:$2 sm:$0x1] }
 0x3af   : > { %v14262_v31 = vpop.eup %14261  ;;  %5514 = vst [vmem:[%s16680_s28 + $0x38] sm:$0xff] %v5482_v20  ;;  %5601 = vst [vmem:[#allocation3 + $0x69] sm:$0xff] %v5482_v20  ;;  %v16767_v60 = vadd.f32 %v16596_v45, %v5226_v11  ;;  %v5227_v5 = vadd.f32 %v18552_v3, %v4970_v52  ;;  %v12445_v12 = vpop.f32.mrb[160].mxu1  ;;  %v11939_v36 = vpack.c.bf16 %v5719_v34, %v5719_v34  ;;  %v13312_v11 = vld [vmem:[%s18435_s5] sm:$0xff]  }
 0x3b0   : > { %v11963_v48 = vpack.c.bf16 %v5719_v34, %v16708_v15  ;;  %14271 = vrcp.f32 %v5389_v27  ;;  %v5390_v54 = vadd.f32 1.0, %v14262_v31  ;;  %v12446_v58 = vpop.f32.mrb[161].mxu1  ;;  %v5859_v62 = vrot.slane %v5858_v28, 4 }
 0x3b1   : > { %v11940_v1 = vpack.c.bf16 %v5721_v44, %v5721_v44  ;;  %v11429_v26 = vmul.f32 -1.442695, %v16767_v60  ;;  %v16773_v35 = vadd.f32 %v16596_v45, %v5227_v5  ;;  %v12447_v57 = vadd.f32 %v12446_v58, %v12445_v12  ;;  %v12448_v56 = vpop.f32.mrb[162].mxu1 }
 0x3b2   : > { %v6004_v63 = vshrl.u32 %v11939_v36, 16  ;;  %6368 = vmatprep.mubr.bf16.mxu1 %v11963_v48  ;;  %v14264_v37 = vpop.eup %14263  ;;  %14273 = vrcp.f32 %v5390_v54  ;;  %v6007_v50 = vshll.u32 %v11939_v36, 16  ;;  %v12449_v42 = vpop.f32.mrb[163].mxu1  ;;  %v16777_v15 = vsel %vm16759_vm4, %v5859_v62, %v5863_v25  ;;  %v13313_v25 = vld [vmem:[%s18435_s5 + $0x48] sm:$0xff]  }
 0x3b3   : > { %v6013_v6 = vshll.u32 %v11940_v1, 16  ;;  %v5483_v51 = vmul.f32 %v14264_v37, %v16692_v61  ;;  %14275 = vpow2.f32 %v11429_v26  ;;  %v11430_v8 = vmul.f32 -1.442695, %v16773_v35  ;;  %v18553_v61 = vld [vmem:[#allocation38_spill] sm:$0xff] }
 0x3b4   : > { %v4971_v20 = vadd.f32 %v12447_v57, %v16504_v18  ;;  %v6006_v52 = vrot.slane %v6004_v63, 4  ;;  %v6009_v27 = vrot.slane %v6007_v50, 5  ;;  %v12450_v34 = vadd.f32 %v12449_v42, %v12448_v56  ;;  %v16791_v18 = vld [vmem:[#allocation3 + $0x49] ss:$2 sm:$0xff]  ;;  %v5755_v26 = vld [vmem:[#allocation3 + $0x19] ss:$2 sm:$0xff] }
 0x3b5   : > { %v11489_v28 = vcombine.low %v5850_v47, %v16777_v15  ;;  %v14266_v44 = vpop.eup %14265  ;;  %5515 = vst [vmem:[%s16680_s28 + $0x40] sm:$0xff] %v5483_v51  ;;  %5602 = vst [vmem:[#allocation3 + $0x79] sm:$0xff] %v5483_v51  ;;  %14277 = vpow2.f32 %v11430_v8  ;;  %v6002_v47 = vsel %vm16759_vm4, %v16748_v49, %v6001_v17  ;;  %v18554_v49 = vld [vmem:[#allocation40_spill] sm:$0xff]  ;;  %v11967_v37 = vpack.c.bf16 %v16791_v18, %v5755_v26  ;;  %v13315_v42 = vld [vmem:[%s18435_s5 + $0x50] sm:$0xff]  }
 0x3b6   : > { %v5228_v31 = vadd.f32 %v18553_v61, %v4971_v20  ;;  %v14268_v3 = vpop.eup %14267  ;;  %v5484_v5 = vmul.f32 %v14266_v44, %v16697_v46  ;;  %v4972_v12 = vadd.f32 %v12450_v34, %v16530_v43  ;;  %v6010_v36 = vor.u32 %v6009_v27, %v6006_v52  ;;  %v16800_v48 = vld [vmem:[#allocation3 + $0x60] ss:$2 sm:$0xff]  ;;  %v5636_v54 = vld [vmem:[#allocation3 + $0x70] ss:$2 sm:$0x1] }
 0x3b7   : > { %6369 = vmatmul.mubr.bf16.vlgmr.msra.gmra.mrb[192].mxu1 %v11489_v28  ;;  %v5391_v58 = vadd.f32 1.0, %v14268_v3  ;;  %v12451_v1 = vpop.f32.mrb[164].mxu1  ;;  %v6015_v46 = vrot.slane %v6013_v6, 5  ;;  %v11925_v43 = vpack.c.bf16 %v16800_v48, %v16800_v48  ;;  %v11926_v50 = vpack.c.bf16 %v5636_v54, %v5636_v54  ;;  %v13316_v18 = vld [vmem:[%s18435_s5 + $0x10] sm:$0xff]  }
 0x3b8   : > { %v16803_v62 = vadd.f32 %v16596_v45, %v5228_v31  ;;  %12558 = vmatpush3.bf16.msra.mxu1 %v13312_v11  ;;  %v14270_v17 = vpop.eup %14269  ;;  %5516 = vst [vmem:[%s16680_s28 + $0x48] sm:$0xff] %v5484_v5  ;;  %5603 = vst [vmem:[#allocation3 + $0x81] sm:$0xff] %v5484_v5  ;;  %v5229_v57 = vadd.f32 %v18554_v49, %v4972_v12  ;;  %v12452_v56 = vpop.f32.mrb[165].mxu1  ;;  %v6011_v63 = vrot.slane %v6010_v36, 4 }
 0x3b9   : > { %12559 = vmatprep.subr.bf16.mxu1 %v13313_v25  ;;  %14279 = vrcp.f32 %v5391_v58  ;;  %v5392_v6 = vadd.f32 1.0, %v14270_v17  ;;  %v12453_v8 = vadd.f32 %v12452_v56, %v12451_v1  ;;  %v12454_v20 = vpop.f32.mrb[166].mxu1  ;;  %v5866_v28 = vshrl.u32 %v11925_v43, 16  ;;  %v18555_v58 = vld [vmem:[#allocation37_spill] sm:$0xff]  ;;  %v13319_v17 = vld [vmem:[%s18435_s5 + $0x18] sm:$0xff]  }
 0x3ba   : > { %v11431_v51 = vmul.f32 -1.442695, %v16803_v62  ;;  %v14272_v11 = vpop.eup %14271  ;;  %v16818_v52 = vadd.f32 %v16596_v45, %v5229_v57  ;;  %v12455_v27 = vpop.f32.mrb[167].mxu1  ;;  %v6016_v34 = vsel %vm16759_vm4, %v6011_v63, %v6015_v46  ;;  %v5869_v25 = vshll.u32 %v11925_v43, 16  ;;  %v18556_v57 = vld [vmem:[#allocation39_spill] sm:$0xff] }
 0x3bb   : > { %v5485_v44 = vmul.f32 %v14272_v11, %v16712_v21  ;;  %14281 = vrcp.f32 %v5392_v6  ;;  %v4973_v61 = vadd.f32 %v12453_v8, %v16537_v13  ;;  %v12456_v31 = vadd.f32 %v12455_v27, %v12454_v20  ;;  %v13318_v21 = vld [vmem:[%s18435_s5 + $0x58] sm:$0xff]  }
 0x3bc   : > { %12560 = vmatpush3.bf16.msra.mxu1 %v13314_v41  ;;  %v14274_v3 = vpop.eup %14273  ;;  %14283 = vpow2.f32 %v11431_v51  ;;  %v11432_v5 = vmul.f32 -1.442695, %v16818_v52  ;;  %v11533_v12 = vcombine.low %v6002_v47, %v6016_v34  ;;  %v5868_v36 = vrot.slane %v5866_v28, 4  ;;  %v13320_v47 = vld [vmem:[%s18435_s5 + $0x208] sm:$0xff]  }
 0x3bd   : > { %12561 = vmatprep.subr.bf16.mxu1 %v13315_v42  ;;  %v14276_v54 = vpop.eup %14275  ;;  %5517 = vst [vmem:[%s16680_s28 + $0x50] sm:$0xff] %v5485_v44  ;;  %5604 = vst [vmem:[#allocation3 + $0x91] sm:$0xff] %v5485_v44  ;;  %v5486_v13 = vmul.f32 %v14274_v3, %v16719_v39  ;;  %v5230_v1 = vadd.f32 %v18555_v58, %v4973_v61  ;;  %v4974_v46 = vadd.f32 %v12456_v31, %v16552_v0  ;;  %v13323_v61 = vld [vmem:[%s18435_s5 + $0x210] sm:$0xff]  }
 0x3be   : > { %v5871_v26 = vrot.slane %v5869_v25, 5  ;;  %v5393_v43 = vadd.f32 1.0, %v14276_v54  ;;  %14285 = vpow2.f32 %v11432_v5  ;;  %6762 = vmatprep.mubr.bf16.mxu0 %v11533_v12  ;;  %v5875_v41 = vshll.u32 %v11926_v50, 16  ;;  %v13322_v54 = vld [vmem:[%s18435_s5 + $0x20] sm:$0xff]  }
 0x3bf   : > { %v11971_v39 = vpack.c.bf16 %v16800_v48, %v16733_v10  ;;  %v14278_v49 = vpop.eup %14277  ;;  %5518 = vst [vmem:[%s16680_s28 + $0x58] sm:$0xff] %v5486_v13  ;;  %5605 = vst [vmem:[#allocation3 + $0x99] sm:$0xff] %v5486_v13  ;;  %v16845_v0 = vadd.f32 %v16596_v45, %v5230_v1  ;;  %v5231_v56 = vadd.f32 %v18556_v57, %v4974_v46  ;;  %6763 = vmatmul.mubr.bf16.vlgmr.msra.gmra.mrb[224].mxu0 %v11967_v37  ;;  %v12457_v63 = vpop.f32.mrb[168].mxu1  ;;  %v16848_v42 = vld [vmem:[#allocation3 + $0x78] ss:$2 sm:$0xff]  ;;  %v13321_v37 = vld [vmem:[%s18435_s5 + $0x60] sm:$0xff]  }
 0x3c0   : > { %v5872_v50 = vor.u32 %v5871_v26, %v5868_v36  ;;  %v5725_v6 = vld [vmem:[#allocation3 + $0x88] ss:$2 sm:$0x1]  ;;  %12562 = vmatpush3.bf16.msra.mxu1 %v13316_v18  ;;  %14287 = vrcp.f32 %v5393_v43  ;;  %v5394_v51 = vadd.f32 1.0, %v14278_v49  ;;  %v12458_v8 = vpop.f32.mrb[169].mxu1  ;;  %v11941_v20 = vpack.c.bf16 %v16848_v42, %v16848_v42  ;;  %13064 = vmatpush3.bf16.msra.mxu0 %v16675_v16  ;;  %v18557_v43 = vld [vmem:[#allocation42_spill] sm:$0xff] }
 0x3c1   : > { %v5877_v11 = vrot.slane %v5875_v41, 5  ;;  %12563 = vmatprep.subr.bf16.mxu1 %v13318_v21  ;;  %v11433_v27 = vmul.f32 -1.442695, %v16845_v0  ;;  %v16858_v34 = vadd.f32 %v16596_v45, %v5231_v56  ;;  %v12459_v28 = vadd.f32 %v12458_v8, %v12457_v63  ;;  %v12460_v25 = vpop.f32.mrb[170].mxu1  ;;  %13065 = vmatprep.subr.bf16.mxu0 %v13320_v47 }
 0x3c2   : > { %v5873_v44 = vrot.slane %v5872_v50, 4  ;;  %14289 = vrcp.f32 %v5394_v51  ;;  %v12461_v16 = vpop.f32.mrb[171].mxu1  ;;  %v6018_v31 = vshrl.u32 %v11941_v20, 16  ;;  %v6021_v18 = vshll.u32 %v11941_v20, 16 }
 0x3c3   : > { %v11942_v3 = vpack.c.bf16 %v5725_v6, %v5725_v6  ;;  %v14280_v5 = vpop.eup %14279  ;;  %14291 = vpow2.f32 %v11433_v27  ;;  %v11434_v12 = vmul.f32 -1.442695, %v16858_v34  ;;  %v4975_v36 = vadd.f32 %v12459_v28, %v16559_v24  ;;  %v13324_v24 = vld [vmem:[%s18435_s5 + $0x68] sm:$0xff]   ;;  %v18558_v6 = vld [vmem:[#allocation44_spill] sm:$0xff] }
 0x3c4   : > { %v12462_v21 = vadd.f32 %v12461_v16, %v12460_v25  ;;  %12564 = vmatpush3.bf16.msra.mxu1 %v13319_v17  ;;  %v5487_v13 = vmul.f32 %v14280_v5, %v16737_v40  ;;  %v16869_v58 = vrot.slane %v6018_v31, 4  ;;  %v16871_v1 = vrot.slane %v6021_v18, 5  ;;  %13066 = vmatpush3.bf16.msra.mxu0 %v13320_v47  ;;  %v13326_v17 = vld [vmem:[%s18435_s5 + $0x218] sm:$0xff]  }
 0x3c5   : > { %v16875_v46 = vsel %vm16759_vm4, %v5873_v44, %v5877_v11  ;;  %12565 = vmatprep.subr.bf16.mxu1 %v13321_v37  ;;  %v14282_v26 = vpop.eup %14281  ;;  %14293 = vpow2.f32 %v11434_v12  ;;  %v5232_v41 = vadd.f32 %v18557_v43, %v4975_v36  ;;  %13067 = vmatprep.subr.bf16.mxu0 %v13323_v61  ;;  %v16903_v25 = vshll.u32 %v11942_v3, 16  ;;  %v13327_v44 = vld [vmem:[%s18435_s5 + $0x70] sm:$0xff]   ;;  %v13329_v3 = vld [vmem:[%s18435_s5 + $0x220] sm:$0xff]  }
 0x3c6   : > { %v4976_v40 = vadd.f32 %v12462_v21, %v16567_v7  ;;  %v14284_v49 = vpop.eup %14283  ;;  %5519 = vst [vmem:[%s16680_s28 + $0x60] sm:$0xff] %v5487_v13  ;;  %5606 = vst [vmem:[#allocation3 + $0xa9] sm:$0xff] %v5487_v13  ;;  %v5488_v47 = vmul.f32 %v14282_v26, %v16746_v29  ;;  %v16887_v57 = vld [vmem:[#allocation3 + $0x90] ss:$2 sm:$0xff]  ;;  %v11577_v63 = vcombine.low %v16777_v15, %v16875_v46  ;;  %v13328_v26 = vld [vmem:[%s18435_s5 + $0x30] sm:$0xff]  }
 0x3c7   : > { %v5640_v56 = vld [vmem:[#allocation3 + $0xa0] ss:$2 sm:$0x1]  ;;  %v5395_v50 = vadd.f32 1.0, %v14284_v49  ;;  %v16892_v7 = vadd.f32 %v16596_v45, %v5232_v41  ;;  %v12463_v8 = vpop.f32.mrb[172].mxu1  ;;  %v11927_v20 = vpack.c.bf16 %v16887_v57, %v16887_v57  ;;  %v13325_v29 = vld [vmem:[%s18435_s5 + $0x28] sm:$0xff]   ;;  %v6024_v28 = vor.u32 %v16871_v1, %v16869_v58 }
 0x3c8   : > { %v5233_v51 = vadd.f32 %v18558_v6, %v4976_v40  ;;  %12566 = vmatpush3.bf16.msra.mxu1 %v13322_v54  ;;  %v14286_v11 = vpop.eup %14285  ;;  %5520 = vst [vmem:[%s16680_s28 + $0x68] sm:$0xff] %v5488_v47  ;;  %5607 = vst [vmem:[#allocation3 + $0xb1] sm:$0xff] %v5488_v47  ;;  %v12464_v37 = vpop.f32.mrb[173].mxu1  ;;  %v11928_v27 = vpack.c.bf16 %v5640_v56, %v5640_v56  ;;  %13068 = vmatpush3.bf16.msra.mxu0 %v13323_v61  ;;  %v18559_v6 = vld [vmem:[#allocation41_spill] sm:$0xff]  ;;  %v13341_v15 = vld [vmem:[%s18435_s5 + $0x1d8] sm:$0xff]  }
 0x3c9   : > { %12567 = vmatprep.subr.bf16.mxu1 %v13324_v24  ;;  %14295 = vrcp.f32 %v5395_v50  ;;  %v5396_v16 = vadd.f32 1.0, %v14286_v11  ;;  %v11435_v31 = vmul.f32 -1.442695, %v16892_v7  ;;  %v12466_v5 = vpop.f32.mrb[174].mxu1  ;;  %13069 = vmatprep.subr.bf16.mxu0 %v13326_v17  ;;  %v12465_v61 = vadd.f32 %v12464_v37, %v12463_v8  ;;  %v18560_v11 = vld [vmem:[#allocation43_spill] sm:$0xff] }
 0x3ca   : > { %v16910_v18 = vadd.f32 %v16596_v45, %v5233_v51  ;;  %v14288_v12 = vpop.eup %14287  ;;  %v12467_v36 = vpop.f32.mrb[175].mxu1  ;;  %v5880_v21 = vshrl.u32 %v11927_v20, 16  ;;  %v5883_v54 = vshll.u32 %v11927_v20, 16  ;;  %v16915_v13 = vshll.u32 %v11928_v27, 16 }
 0x3cb   : > { %v5489_v58 = vmul.f32 %v14288_v12, %v16767_v60  ;;  %14297 = vrcp.f32 %v5396_v16  ;;  %v12468_v24 = vadd.f32 %v12467_v36, %v12466_v5  ;;  %v4977_v41 = vadd.f32 %v12465_v61, %v16573_v38  ;;  %v13330_v60 = vld [vmem:[%s18435_s5 + $0x78] sm:$0xff]   ;;  %v13332_v38 = vld [vmem:[%s18435_s5 + $0x228] sm:$0xff]  }
 0x3cc   : > { %v11436_v1 = vmul.f32 -1.442695, %v16910_v18  ;;  %12568 = vmatpush3.bf16.msra.mxu1 %v13325_v29  ;;  %v14290_v43 = vpop.eup %14289  ;;  %14299 = vpow2.f32 %v11435_v31  ;;  %v5882_v40 = vrot.slane %v5880_v21, 4  ;;  %v5885_v49 = vrot.slane %v5883_v54, 5  ;;  %13070 = vmatpush3.bf16.msra.mxu0 %v13326_v17  ;;  %v13331_v16 = vld [vmem:[%s18435_s5 + $0x38] sm:$0xff]  }
 0x3cd   : > { %12569 = vmatprep.subr.bf16.mxu1 %v13327_v44  ;;  %v14292_v47 = vpop.eup %14291  ;;  %5521 = vst [vmem:[%s16680_s28 + $0x70] sm:$0xff] %v5489_v58  ;;  %5608 = vst [vmem:[#allocation3 + $0xc1] sm:$0xff] %v5489_v58  ;;  %v5490_v56 = vmul.f32 %v14290_v43, %v16773_v35  ;;  %v4978_v50 = vadd.f32 %v12468_v24, %v16587_v14  ;;  %13071 = vmatprep.subr.bf16.mxu0 %v13329_v3  ;;  %v6025_v20 = vrot.slane %v6024_v28, 4 }
 0x3ce   : > { %14301 = vpow2.f32 %v11436_v1  ;;  %v5397_v17 = vadd.f32 1.0, %v14292_v47  ;;  %v5234_v51 = vadd.f32 %v18559_v6, %v4977_v41  ;;  %v5886_v8 = vor.u32 %v5885_v49, %v5882_v40  ;;  %v13335_v1 = vld [vmem:[%s18435_s5 + $0x230] sm:$0xff]  }
 0x3cf   : > { %v14294_v29 = vpop.eup %14293  ;;  %5522 = vst [vmem:[%s16680_s28 + $0x78] sm:$0xff] %v5490_v56  ;;  %5609 = vst [vmem:[#allocation3 + $0xc9] sm:$0xff] %v5490_v56  ;;  %v5235_v37 = vadd.f32 %v18560_v11, %v4978_v50  ;;  %v12469_v27 = vpop.f32.mrb[176].mxu1  ;;  %v5727_v35 = vld [vmem:[#allocation3 + $0xa8] ss:$2 sm:$0xff]  ;;  %v5891_v44 = vrot.slane %v16915_v13, 5  ;;  %v11956_v31 = vpack.c.bf16 %v16887_v57, %v16800_v48 }
 0x3d0   : > { %v6029_v14 = vrot.slane %v16903_v25, 5  ;;  %12570 = vmatpush3.bf16.msra.mxu1 %v13328_v26  ;;  %14303 = vrcp.f32 %v5397_v17  ;;  %v5398_v28 = vadd.f32 1.0, %v14294_v29  ;;  %v16943_v5 = vadd.f32 %v16596_v45, %v5234_v51  ;;  %v12470_v12 = vpop.f32.mrb[177].mxu1  ;;  %13072 = vmatpush3.bf16.msra.mxu0 %v13329_v3  ;;  %v13333_v25 = vld [vmem:[%s18435_s5 + $0x1c0] sm:$0xff]   ;;  %v18561_v6 = vld [vmem:[#allocation14_spill] sm:$0xff]  ;;  %v13338_v29 = vld [vmem:[%s18435_s5 + $0x238] sm:$0xff]  }
 0x3d1   : > { %v11943_v61 = vpack.c.bf16 %v5727_v35, %v5727_v35  ;;  %12571 = vmatprep.subr.bf16.mxu1 %v13330_v60  ;;  %v16949_v36 = vadd.f32 %v16596_v45, %v5235_v37  ;;  %v12471_v21 = vadd.f32 %v12470_v12, %v12469_v27  ;;  %v12472_v54 = vpop.f32.mrb[178].mxu1  ;;  %v11964_v13 = vpack.c.bf16 %v5727_v35, %v16848_v42  ;;  %v5729_v60 = vld [vmem:[#allocation3 + $0xb8] ss:$2 sm:$0x1] }
 0x3d2   : > { %v5887_v58 = vrot.slane %v5886_v8, 4  ;;  %13073 = vmatprep.subr.bf16.mxu0 %v13332_v38  ;;  %14305 = vrcp.f32 %v5398_v28  ;;  %v11437_v3 = vmul.f32 -1.442695, %v16943_v5  ;;  %v12473_v43 = vpop.f32.mrb[179].mxu1  ;;  %v11944_v11 = vpack.c.bf16 %v5729_v60, %v5729_v60  ;;  %v16981_v28 = vld [vmem:[%s18434_s4] ss:$0 sm:$0xff] }
 0x3d3   : > { %v6032_v24 = vshrl.u32 %v11943_v61, 16  ;;  %v6035_v26 = vshll.u32 %v11943_v61, 16  ;;  %v14296_v41 = vpop.eup %14295  ;;  %v11438_v45 = vmul.f32 -1.442695, %v16949_v36  ;;  %v4979_v40 = vadd.f32 %v12471_v21, %v16590_v22  ;;  %6376 = vmatprep.mubr.bf16.mxu1 %v11964_v13 }
 0x3d4   : > { %v12474_v49 = vadd.f32 %v12473_v43, %v12472_v54  ;;  %v16960_v42 = vsel %vm16759_vm4, %v5887_v58, %v5891_v44  ;;  %12572 = vmatpush3.bf16.msra.mxu1 %v13331_v16  ;;  %v5491_v47 = vmul.f32 %v14296_v41, %v16803_v62  ;;  %14307 = vpow2.f32 %v11437_v3  ;;  %13074 = vmatpush3.bf16.msra.mxu0 %v13332_v38 }
 0x3d5   : > { %v6034_v56 = vrot.slane %v6032_v24, 4  ;;  %v6037_v50 = vrot.slane %v6035_v26, 5  ;;  %12637 = vmatprep.subr.bf16.mxu1 %v13333_v25  ;;  %v14298_v17 = vpop.eup %14297  ;;  %14309 = vpow2.f32 %v11438_v45  ;;  %v5236_v22 = vadd.f32 %v18561_v6, %v4979_v40  ;;  %13075 = vmatprep.subr.bf16.mxu0 %v13335_v1 }
 0x3d6   : > { %v4980_v51 = vadd.f32 %v12474_v49, %v16602_v2  ;;  %v11490_v8 = vcombine.low %v16875_v46, %v16960_v42  ;;  %v14300_v62 = vpop.eup %14299  ;;  %5523 = vst [vmem:[%s16680_s28 + $0x80] sm:$0xff] %v5491_v47  ;;  %5610 = vst [vmem:[#allocation3 + $0xd9] sm:$0xff] %v5491_v47  ;;  %v5492_v38 = vmul.f32 %v14298_v17, %v16818_v52  ;;  %v16974_v2 = vld [vmem:[#allocation3 + $0xc0] ss:$2 sm:$0xff]  ;;  %v18562_v52 = vld [vmem:[#allocation45_spill] sm:$0xff]  ;;  %v6041_v13 = vshll.u32 %v11944_v11, 16 }
 0x3d7   : > { %v6030_v37 = vsel %vm16759_vm4, %v6025_v20, %v6029_v14  ;;  %v6038_v27 = vor.u32 %v6037_v50, %v6034_v56  ;;  %v16976_v35 = vld [vmem:[#allocation3 + $0xd0] ss:$2 sm:$0x1]  ;;  %v5399_v16 = vadd.f32 1.0, %v14300_v62  ;;  %v16984_v12 = vadd.f32 %v16981_v28, %v5236_v22  ;;  %v12475_v25 = vpop.f32.mrb[180].mxu1 }
 0x3d8   : > { %v14302_v44 = vpop.eup %14301  ;;  %v5237_v61 = vadd.f32 %v18562_v52, %v4980_v51  ;;  %6377 = vmatmul.mubr.bf16.gmra.mrb[196].mxu1 %v11490_v8  ;;  %v11929_v20 = vpack.c.bf16 %v16974_v2, %v16974_v2  ;;  %5524 = vst [vmem:[%s16680_s28 + $0x88] sm:$0xff] %v5492_v38  ;;  %5611 = vst [vmem:[#allocation3 + $0xe1] sm:$0xff] %v5492_v38  ;;  %v12476_v21 = vpop.f32.mrb[181].mxu1  ;;  %v11930_v58 = vpack.c.bf16 %v16976_v35, %v16976_v35  ;;  %v5767_v50 = vld [vmem:[#allocation3 + $0xa9] ss:$2 sm:$0xff] }
 0x3d9   : > { %v5400_v14 = vadd.f32 1.0, %v14302_v44  ;;  %v6039_v54 = vrot.slane %v6038_v27, 4  ;;  %13076 = vmatpush3.bf16.msra.mxu0 %v13335_v1  ;;  %14311 = vrcp.f32 %v5399_v16  ;;  %v11439_v3 = vmul.f32 -1.442695, %v16984_v12  ;;  %v12478_v43 = vpop.f32.mrb[182].mxu1 }
 0x3da   : > { %v16994_v24 = vadd.f32 %v16981_v28, %v5237_v61  ;;  %v12477_v26 = vadd.f32 %v12476_v21, %v12475_v25  ;;  %13077 = vmatprep.subr.bf16.mxu0 %v13338_v29  ;;  %v14304_v41 = vpop.eup %14303  ;;  %v12479_v45 = vpop.f32.mrb[183].mxu1  ;;  %v6043_v40 = vrot.slane %v6041_v13, 5  ;;  %v5894_v49 = vshrl.u32 %v11929_v20, 16  ;;  %v5763_v27 = vld [vmem:[#allocation3 + $0x79] ss:$2 sm:$0xff] }
 0x3db   : > { %14313 = vrcp.f32 %v5400_v14  ;;  %v5897_v60 = vshll.u32 %v11929_v20, 16  ;;  %v5493_v47 = vmul.f32 %v14304_v41, %v16845_v0  ;;  %v12480_v6 = vadd.f32 %v12479_v45, %v12478_v43  ;;  %v18563_v0 = vld [vmem:[#allocation7_spill] sm:$0xff] }
 0x3dc   : > { %14315 = vpow2.f32 %v11439_v3  ;;  %v11440_v1 = vmul.f32 -1.442695, %v16994_v24  ;;  %v4981_v56 = vadd.f32 %v12477_v26, %v16609_v55  ;;  %v14306_v17 = vpop.eup %14305  ;;  %v6044_v22 = vsel %vm16759_vm4, %v6039_v54, %v6043_v40  ;;  %v18564_v14 = vld [vmem:[#allocation15_spill] sm:$0xff] }
 0x3dd   : > { %v5896_v51 = vrot.slane %v5894_v49, 4  ;;  %v5899_v8 = vrot.slane %v5897_v60, 5  ;;  %13078 = vmatpush3.bf16.msra.mxu0 %v13338_v29  ;;  %5525 = vst [vmem:[%s16680_s28 + $0x90] sm:$0xff] %v5493_v47  ;;  %5612 = vst [vmem:[#allocation3 + $0xf1] sm:$0xff] %v5493_v47  ;;  %v5494_v62 = vmul.f32 %v14306_v17, %v16858_v34  ;;  %v11534_v11 = vcombine.low %v6030_v37, %v6044_v22 }
 0x3de   : > { %14317 = vpow2.f32 %v11440_v1  ;;  %v5238_v38 = vadd.f32 %v18563_v0, %v4981_v56  ;;  %v14308_v55 = vpop.eup %14307  ;;  %v4982_v35 = vadd.f32 %v12480_v6, %v16620_v23  ;;  %v11968_v44 = vpack.c.bf16 %v5767_v50, %v5763_v27 }
 0x3df   : > { %v14310_v16 = vpop.eup %14309  ;;  %5526 = vst [vmem:[%s16680_s28 + $0x98] sm:$0xff] %v5494_v62  ;;  %5613 = vst [vmem:[#allocation3 + $0xf9] sm:$0xff] %v5494_v62  ;;  %v5401_v52 = vadd.f32 1.0, %v14308_v55  ;;  %6770 = vmatprep.mubr.bf16.mxu0 %v11534_v11  ;;  %v12481_v29 = vpop.f32.mrb[184].mxu1  ;;  %v17009_v25 = vld [vmem:[#allocation3 + $0xd8] ss:$2 sm:$0xff]  ;;  %v5900_v34 = vor.u32 %v5899_v8, %v5896_v51  ;;  %v11972_v37 = vpack.c.bf16 %v16974_v2, %v16887_v57 }
 0x3e0   : > { %v17007_v61 = vadd.f32 %v16981_v28, %v5238_v38  ;;  %v5402_v20 = vadd.f32 1.0, %v14310_v16  ;;  %v5239_v21 = vadd.f32 %v18564_v14, %v4982_v35  ;;  %6771 = vmatmul.mubr.bf16.gmra.mrb[228].mxu0 %v11968_v44  ;;  %v12482_v23 = vpop.f32.mrb[185].mxu1  ;;  %v11945_v54 = vpack.c.bf16 %v17009_v25, %v17009_v25 }
 0x3e1   : > { %v5903_v13 = vshll.u32 %v11930_v58, 16  ;;  %14319 = vrcp.f32 %v5401_v52  ;;  %v12483_v26 = vadd.f32 %v12482_v23, %v12481_v29  ;;  %v12484_v43 = vpop.f32.mrb[186].mxu1  ;;  %v5901_v47 = vrot.slane %v5900_v34, 4 }
 0x3e2   : > { %v11441_v3 = vmul.f32 -1.442695, %v17007_v61  ;;  %14321 = vrcp.f32 %v5402_v20  ;;  %v17018_v41 = vadd.f32 %v16981_v28, %v5239_v21  ;;  %v12485_v45 = vpop.f32.mrb[187].mxu1  ;;  %v6046_v50 = vshrl.u32 %v11945_v54, 16 }
 0x3e3   : > { %v14312_v40 = vpop.eup %14311  ;;  %v4983_v49 = vadd.f32 %v12483_v26, %v16627_v53  ;;  %v12486_v60 = vadd.f32 %v12485_v45, %v12484_v43  ;;  %v5905_v17 = vrot.slane %v5903_v13, 5  ;;  %v6049_v62 = vshll.u32 %v11945_v54, 16  ;;  %v5733_v43 = vld [vmem:[#allocation3 + $0xe8] ss:$2 sm:$0x1] }
 0x3e4   : > { %14323 = vpow2.f32 %v11441_v3  ;;  %v5495_v58 = vmul.f32 %v14312_v40, %v16892_v7  ;;  %v11442_v56 = vmul.f32 -1.442695, %v17018_v41  ;;  %v17044_v14 = vrot.slane %v6046_v50, 4 }
 0x3e5   : > { %v14314_v1 = vpop.eup %14313  ;;  %v5240_v51 = vadd.f32 %v16575_v32, %v4983_v49  ;;  %v4984_v8 = vadd.f32 %v12486_v60, %v16639_v4  ;;  %v17038_v44 = vsel %vm16759_vm4, %v5901_v47, %v5905_v17  ;;  %v17046_v21 = vrot.slane %v6049_v62, 5 }
 0x3e6   : > { %v14316_v6 = vpop.eup %14315  ;;  %v5496_v22 = vmul.f32 %v14314_v1, %v16910_v18  ;;  %5527 = vst [vmem:[%s16680_s28 + $0xa0] sm:$0xff] %v5495_v58  ;;  %5614 = vst [vmem:[#allocation3 + $0x109] sm:$0xff] %v5495_v58  ;;  %14325 = vpow2.f32 %v11442_v56  ;;  %v17027_v0 = vld [vmem:[#allocation3 + $0xf0] ss:$2 sm:$0xff] }
 0x3e7   : > { %v5403_v53 = vadd.f32 1.0, %v14316_v6  ;;  %v5648_v7 = vld [vmem:[#allocation3 + $0x100] ss:$2 sm:$0x1]  ;;  %v17031_v11 = vadd.f32 %v16981_v28, %v5240_v51  ;;  %v5241_v18 = vadd.f32 %v16579_v19, %v4984_v8  ;;  %v12487_v27 = vpop.f32.mrb[188].mxu1  ;;  %v11931_v32 = vpack.c.bf16 %v17027_v0, %v17027_v0 }
 0x3e8   : > { %v14318_v38 = vpop.eup %14317  ;;  %5528 = vst [vmem:[%s16680_s28 + $0xa8] sm:$0xff] %v5496_v22  ;;  %5615 = vst [vmem:[#allocation3 + $0x111] sm:$0xff] %v5496_v22  ;;  %v12488_v55 = vpop.f32.mrb[189].mxu1  ;;  %v11932_v35 = vpack.c.bf16 %v5648_v7, %v5648_v7  ;;  %v11946_v51 = vpack.c.bf16 %v5733_v43, %v5733_v43 }
 0x3e9   : > { %14327 = vrcp.f32 %v5403_v53  ;;  %v5404_v4 = vadd.f32 1.0, %v14318_v38  ;;  %v11443_v16 = vmul.f32 -1.442695, %v17031_v11  ;;  %v17042_v52 = vadd.f32 %v16981_v28, %v5241_v18  ;;  %v12490_v34 = vpop.f32.mrb[190].mxu1 }
 0x3ea   : > { %v12489_v29 = vadd.f32 %v12488_v55, %v12487_v27  ;;  %v5908_v19 = vshrl.u32 %v11931_v32, 16  ;;  %v12491_v20 = vpop.f32.mrb[191].mxu1  ;;  %v5911_v23 = vshll.u32 %v11931_v32, 16  ;;  %v5917_v47 = vshll.u32 %v11932_v35, 16 }
 0x3eb   : > { %14329 = vrcp.f32 %v5404_v4  ;;  %v14320_v54 = vpop.eup %14319  ;;  %v11444_v13 = vmul.f32 -1.442695, %v17042_v52  ;;  %v12492_v26 = vadd.f32 %v12491_v20, %v12490_v34  ;;  %v11957_v34 = vpack.c.bf16 %v17027_v0, %v16974_v2 }
 0x3ec   : > { %14331 = vpow2.f32 %v11443_v16  ;;  %v4985_v3 = vadd.f32 %v12489_v29, %v16646_v59  ;;  %v14322_v45 = vpop.eup %14321  ;;  %v5497_v40 = vmul.f32 %v14320_v54, %v16943_v5  ;;  %v5910_v49 = vrot.slane %v5908_v19, 4 }
 0x3ed   : > { %v5913_v60 = vrot.slane %v5911_v23, 5  ;;  %v5498_v58 = vmul.f32 %v14322_v45, %v16949_v36  ;;  %14333 = vpow2.f32 %v11444_v13  ;;  %v4986_v50 = vadd.f32 %v12492_v26, %v16658_v9  ;;  %v18565_v36 = vld [vmem:[#allocation9_spill] sm:$0xff] }
 0x3ee   : > { %v14324_v1 = vpop.eup %14323  ;;  %v5242_v56 = vadd.f32 %v16569_v33, %v4985_v3  ;;  %5529 = vst [vmem:[%s16680_s28 + $0xb0] sm:$0xff] %v5497_v40  ;;  %5616 = vst [vmem:[#allocation3 + $0x121] sm:$0xff] %v5497_v40  ;;  %v6052_v5 = vor.u32 %v17046_v21, %v17044_v14  ;;  %v5919_v38 = vrot.slane %v5917_v47, 5 }
 0x3ef   : > { %v5405_v59 = vadd.f32 1.0, %v14324_v1  ;;  %v5735_v17 = vld [vmem:[#allocation3 + $0x108] ss:$2 sm:$0xff]  ;;  %v5914_v6 = vor.u32 %v5913_v60, %v5910_v49  ;;  %v5737_v22 = vld [vmem:[#allocation3 + $0x118] ss:$2 sm:$0x1]  ;;  %v5243_v62 = vadd.f32 %v18565_v36, %v4986_v50 }
 0x3f0   : > { %5530 = vst [vmem:[%s16680_s28 + $0xb8] sm:$0xff] %v5498_v58  ;;  %5617 = vst [vmem:[#allocation3 + $0x129] sm:$0xff] %v5498_v58  ;;  %v17059_v8 = vadd.f32 %v16981_v28, %v5242_v56  ;;  %v11947_v33 = vpack.c.bf16 %v5735_v17, %v5735_v17  ;;  %v11965_v9 = vpack.c.bf16 %v5735_v17, %v17009_v25  ;;  %v14326_v53 = vpop.eup %14325  ;;  %v6055_v25 = vshll.u32 %v11946_v51, 16 }
 0x3f1   : > { %14335 = vrcp.f32 %v5405_v59  ;;  %v5915_v7 = vrot.slane %v5914_v6, 4  ;;  %v11948_v18 = vpack.c.bf16 %v5737_v22, %v5737_v22  ;;  %v5406_v27 = vadd.f32 1.0, %v14326_v53  ;;  %v5771_v22 = vld [vmem:[#allocation3 + $0xd9] ss:$2 sm:$0xff] }
 0x3f2   : > { %v11445_v32 = vmul.f32 -1.442695, %v17059_v8  ;;  %v17065_v4 = vadd.f32 %v16981_v28, %v5243_v62  ;;  %v6060_v55 = vshrl.u32 %v11947_v33, 16  ;;  %6384 = vmatprep.mubr.bf16.mxu1 %v11965_v9  ;;  %v6063_v16 = vshll.u32 %v11947_v33, 16 }
 0x3f3   : > { %v14328_v35 = vpop.eup %14327  ;;  %v17069_v29 = vsel %vm16759_vm4, %v5915_v7, %v5919_v38  ;;  %14337 = vrcp.f32 %v5406_v27  ;;  %v6069_v54 = vshll.u32 %v11948_v18, 16  ;;  %v6057_v49 = vrot.slane %v6055_v25, 5 }
 0x3f4   : > { %v5499_v19 = vmul.f32 %v14328_v35, %v16984_v12  ;;  %v11446_v20 = vmul.f32 -1.442695, %v17065_v4  ;;  %v6062_v28 = vrot.slane %v6060_v55, 4  ;;  %14339 = vpow2.f32 %v11445_v32 }
 0x3f5   : > { %v14330_v14 = vpop.eup %14329  ;;  %v6065_v21 = vrot.slane %v6063_v16, 5  ;;  %v11491_v23 = vcombine.low %v17038_v44, %v17069_v29  ;;  %v6053_v12 = vrot.slane %v6052_v5, 4  ;;  %v6071_v58 = vrot.slane %v6069_v54, 5 }
 0x3f6   : > { %v14332_v13 = vpop.eup %14331  ;;  %5531 = vst [vmem:[%s16680_s28 + $0xc0] sm:$0xff] %v5499_v19  ;;  %5618 = vst [vmem:[#allocation3 + $0x139] sm:$0xff] %v5499_v19  ;;  %v5500_v3 = vmul.f32 %v14330_v14, %v16994_v24  ;;  %14341 = vpow2.f32 %v11446_v20  ;;  %v5775_v24 = vld [vmem:[#allocation3 + $0x109] ss:$2 sm:$0xff] }
 0x3f7   : > { %v5407_v26 = vadd.f32 1.0, %v14332_v13  ;;  %6385 = vmatmul.mubr.bf16.gmra.mrb[200].mxu1 %v11491_v23  ;;  %v6066_v43 = vor.u32 %v6065_v21, %v6062_v28  ;;  %v17079_v45 = vld [vmem:[#allocation3 + $0x120] ss:$2 sm:$0xff]  ;;  %v14334_v40 = vpop.eup %14333  ;;  %v6058_v50 = vsel %vm16759_vm4, %v6053_v12, %v6057_v49  ;;  %v11969_v51 = vpack.c.bf16 %v5775_v24, %v5771_v22  ;;  %v5652_v55 = vld [vmem:[#allocation3 + $0x130] ss:$2 sm:$0x1] }
 0x3f8   : > { %5532 = vst [vmem:[%s16680_s28 + $0xc8] sm:$0xff] %v5500_v3  ;;  %5619 = vst [vmem:[#allocation3 + $0x141] sm:$0xff] %v5500_v3  ;;  %v11973_v60 = vpack.c.bf16 %v17079_v45, %v17027_v0  ;;  %v5408_v47 = vadd.f32 1.0, %v14334_v40  ;;  %v11933_v33 = vpack.c.bf16 %v17079_v45, %v17079_v45  ;;  %v11934_v14 = vpack.c.bf16 %v5652_v55, %v5652_v55 }
 0x3f9   : > { %14343 = vrcp.f32 %v5407_v26  ;;  %v6067_v1 = vrot.slane %v6066_v43, 4 }
 0x3fa   : > { %14345 = vrcp.f32 %v5408_v47  ;;  %v5922_v18 = vshrl.u32 %v11933_v33, 16  ;;  %v5925_v27 = vshll.u32 %v11933_v33, 16  ;;  %v5931_v12 = vshll.u32 %v11934_v14, 16 }
 0x3fb   : > { %v14336_v56 = vpop.eup %14335  ;;  %v6072_v59 = vsel %vm16759_vm4, %v6067_v1, %v6071_v58 }
 0x3fc   : > { %v5501_v17 = vmul.f32 %v14336_v56, %v17007_v61  ;;  %v11535_v6 = vcombine.low %v6058_v50, %v6072_v59  ;;  %v5924_v25 = vrot.slane %v5922_v18, 4  ;;  %v5927_v19 = vrot.slane %v5925_v27, 5 }
 0x3fd   : > { %v14338_v5 = vpop.eup %14337 }
 0x3fe   : > { %5533 = vst [vmem:[%s16680_s28 + $0xd0] sm:$0xff] %v5501_v17  ;;  %5620 = vst [vmem:[#allocation3 + $0x151] sm:$0xff] %v5501_v17  ;;  %6778 = vmatprep.mubr.bf16.mxu0 %v11535_v6  ;;  %v14340_v36 = vpop.eup %14339  ;;  %v5502_v62 = vmul.f32 %v14338_v5, %v17018_v41  ;;  %v5928_v13 = vor.u32 %v5927_v19, %v5924_v25 }
 0x3ff   : > { %6779 = vmatmul.mubr.bf16.gmra.mrb[232].mxu0 %v11969_v51  ;;  %v5409_v53 = vadd.f32 1.0, %v14340_v36  ;;  %v5739_v38 = vld [vmem:[#allocation3 + $0x138] ss:$2 sm:$0xff]  ;;  %v5741_v43 = vld [vmem:[#allocation3 + $0x148] ss:$2 sm:$0x1] }
 0x400   : > { %v14342_v9 = vpop.eup %14341  ;;  %5534 = vst [vmem:[%s16680_s28 + $0xd8] sm:$0xff] %v5502_v62  ;;  %5621 = vst [vmem:[#allocation3 + $0x159] sm:$0xff] %v5502_v62  ;;  %v11949_v16 = vpack.c.bf16 %v5739_v38, %v5739_v38  ;;  %v5929_v17 = vrot.slane %v5928_v13, 4  ;;  %v11950_v51 = vpack.c.bf16 %v5741_v43, %v5741_v43 }
 0x401   : > { %v5410_v61 = vadd.f32 1.0, %v14342_v9  ;;  %14347 = vrcp.f32 %v5409_v53 }
 0x402   : > { %v6077_v54 = vshll.u32 %v11949_v16, 16 }
 0x403   : > { %v14344_v7 = vpop.eup %14343  ;;  %14349 = vrcp.f32 %v5410_v61 }
 0x404   : > { %v5503_v32 = vmul.f32 %v14344_v7, %v17031_v11  ;;  %v14346_v41 = vpop.eup %14345  ;;  %v6074_v11 = vshrl.u32 %v11949_v16, 16  ;;  %v6079_v50 = vrot.slane %v6077_v54, 5  ;;  %v17106_v7 = vld [vmem:[#allocation3 + $0x31] ss:$2 sm:$0xff] }
 0x405   : > { %v5504_v35 = vmul.f32 %v14346_v41, %v17042_v52 }
 0x406   : > { %5535 = vst [vmem:[%s16680_s28 + $0xe0] sm:$0xff] %v5503_v32  ;;  %5622 = vst [vmem:[#allocation3 + $0x169] sm:$0xff] %v5503_v32  ;;  %v6076_v56 = vrot.slane %v6074_v11, 4 }
 0x407   : > { %5536 = vst [vmem:[%s16680_s28 + $0xe8] sm:$0xff] %v5504_v35  ;;  %5623 = vst [vmem:[#allocation3 + $0x171] sm:$0xff] %v5504_v35  ;;  %v17098_v20 = vld [vmem:[#allocation3 + $0x150] ss:$2 sm:$0xff] }
 0x408   : > { %v5656_v28 = vld [vmem:[#allocation3 + $0x160] ss:$2 sm:$0x1]  ;;  %v11935_v21 = vpack.c.bf16 %v17098_v20, %v17098_v20  ;;  %v6080_v18 = vor.u32 %v6079_v50, %v6076_v56  ;;  %v5679_v56 = vld [vmem:[#allocation3 + $0x61] ss:$2 sm:$0xff] }
 0x409   : > { %v11936_v23 = vpack.c.bf16 %v5656_v28, %v5656_v28 }
 0x40a   : > { %v5936_v3 = vshrl.u32 %v11935_v21, 16  ;;  %v5939_v26 = vshll.u32 %v11935_v21, 16  ;;  %v6081_v19 = vrot.slane %v6080_v18, 4 }
 0x40b   : > { %v14348_v52 = vpop.eup %14347  ;;  %v5945_v58 = vshll.u32 %v11936_v23, 16 }
 0x40c   : > { %v5505_v49 = vmul.f32 %v14348_v52, %v17059_v8  ;;  %v5938_v47 = vrot.slane %v5936_v3, 4  ;;  %v5941_v1 = vrot.slane %v5939_v26, 5  ;;  %v5933_v8 = vrot.slane %v5931_v12, 5  ;;  %v17127_v52 = vld [vmem:[#allocation3 + $0x91] ss:$2 sm:$0xff] }
 0x40d   : > { %v14350_v40 = vpop.eup %14349  ;;  %v5947_v9 = vrot.slane %v5945_v58, 5  ;;  %v14408_v58 = vld [vmem:[#allocation3 + $0x30] ss:$2 sm:$0xff] }
 0x40e   : > { %v5506_v24 = vmul.f32 %v14350_v40, %v17065_v4  ;;  %5537 = vst [vmem:[%s16680_s28 + $0xf0] sm:$0xff] %v5505_v49  ;;  %5624 = vst [vmem:[#allocation3 + $0x181] sm:$0xff] %v5505_v49  ;;  %v5743_v59 = vld [vmem:[#allocation3 + $0x168] ss:$2 sm:$0xff]  ;;  %v5942_v6 = vor.u32 %v5941_v1, %v5938_v47  ;;  %v5671_v4 = vld [vmem:[#allocation3 + $0x1] ss:$2 sm:$0xff]  ;;  %v17110_v27 = vsel %vm16759_vm4, %v5929_v17, %v5933_v8 }
 0x40f   : > { %v5745_v22 = vld [vmem:[#allocation3 + $0x178] ss:$2 sm:$0x1]  ;;  %v11951_v5 = vpack.c.bf16 %v5743_v59, %v5743_v59  ;;  %v11966_v36 = vpack.c.bf16 %v5743_v59, %v5739_v38  ;;  %v6083_v38 = vshll.u32 %v11950_v51, 16  ;;  %v11959_v25 = vpack.c.bf16 %v17106_v7, %v5671_v4  ;;  %v5783_v13 = vld [vmem:[#allocation3 + $0x169] ss:$2 sm:$0xff] }
 0x410   : > { %5538 = vst [vmem:[%s16680_s28 + $0xf8] sm:$0xff] %v5506_v24  ;;  %5625 = vst [vmem:[#allocation3 + $0x189] sm:$0xff] %v5506_v24  ;;  %v11952_v62 = vpack.c.bf16 %v5745_v22, %v5745_v22  ;;  %v5943_v33 = vrot.slane %v5942_v6, 4  ;;  %v13334_v49 = vld [vmem:[%s18435_s5 + $0x180] sm:$0xff]   ;;  %v5779_v47 = vld [vmem:[#allocation3 + $0x139] ss:$2 sm:$0xff]  ;;  %v11960_v6 = vpack.c.bf16 %v17127_v52, %v5679_v56  ;;  %v11579_v18 = vcombine.low %v17069_v29, %v17110_v27 }
 0x411   : > { %v6088_v53 = vshrl.u32 %v11951_v5, 16  ;;  %v6091_v61 = vshll.u32 %v11951_v5, 16  ;;  %6392 = vmatprep.mubr.bf16.mxu1 %v11966_v36  ;;  %v6085_v21 = vrot.slane %v6083_v38, 5  ;;  %v14407_v1 = vld [vmem:[#allocation3] ss:$2 sm:$0xff]  ;;  %v11970_v50 = vpack.c.bf16 %v5783_v13, %v5779_v47  ;;  %v13336_v59 = vld [vmem:[%s18435_s5 + $0x1c8] sm:$0xff]  }
 0x412   : > { %v17114_v32 = vsel %vm16759_vm4, %v5943_v33, %v5947_v9  ;;  %v6097_v16 = vshll.u32 %v11952_v62, 16  ;;  %v11955_v24 = vpack.c.bf16 %v14408_v58, %v14407_v1  ;;  %v13337_v5 = vld [vmem:[%s18435_s5 + $0x188] sm:$0xff]   ;;  %v13339_v62 = vld [vmem:[%s18435_s5 + $0x1d0] sm:$0xff]   ;;  %v13343_v38 = vld [vmem:[%s18435_s5 + $0x1e0] sm:$0xff]  }
 0x413   : > { %v6090_v41 = vrot.slane %v6088_v53, 4  ;;  %v6093_v55 = vrot.slane %v6091_v61, 5  ;;  %v11492_v35 = vcombine.low %v17110_v27, %v17114_v32  ;;  %v6086_v3 = vsel %vm16759_vm4, %v6081_v19, %v6085_v21  ;;  %v5691_v33 = vld [vmem:[#allocation3 + $0xf1] ss:$2 sm:$0xff]  ;;  %v13340_v9 = vld [vmem:[%s18435_s5 + $0x190] sm:$0xff]   ;;  %v13349_v19 = vld [vmem:[%s18435_s5 + $0x1f8] sm:$0xff]  }
 0x414   : > { %v6099_v11 = vrot.slane %v6097_v16, 5  ;;  %v11578_v61 = vcombine.low %v16960_v42, %v17038_v44  ;;  %v5687_v4 = vld [vmem:[#allocation3 + $0xc1] ss:$2 sm:$0xff]  ;;  %v13344_v29 = vld [vmem:[%s18435_s5 + $0x1a0] sm:$0xff]  }
 0x415   : > { %6393 = vmatmul.mubr.bf16.gmra.mrb[204].mxu1 %v11492_v35  ;;  %v6094_v28 = vor.u32 %v6093_v55, %v6090_v41  ;;  %v11961_v46 = vpack.c.bf16 %v5691_v33, %v5687_v4  ;;  %v13342_v42 = vld [vmem:[%s18435_s5 + $0x198] sm:$0xff]   ;;  %v5699_v41 = vld [vmem:[#allocation3 + $0x151] ss:$2 sm:$0xff] }
 0x416   : > { %6529 = vmatprep.mubr.bf16.mxu1 %v11959_v25  ;;  %v5695_v27 = vld [vmem:[#allocation3 + $0x121] ss:$2 sm:$0xff]  ;;  %v13345_v35 = vld [vmem:[%s18435_s5 + $0x1e8] sm:$0xff]  }
 0x417   : > { %v17119_v14 = vld [vmem:[#allocation3 + $0x180] ss:$2 sm:$0xff]  ;;  %v6095_v23 = vrot.slane %v6094_v28, 4  ;;  %v5660_v17 = vld [vmem:[#allocation3 + $0x190] ss:$2 sm:$0x1]  ;;  %v11962_v16 = vpack.c.bf16 %v5699_v41, %v5695_v27  ;;  %v11975_v28 = vpack.c.bf16 %v5679_v56, %v17106_v7 }
 0x418   : > { %v11953_v54 = vpack.c.bf16 %v17119_v14, %v17119_v14  ;;  %v11954_v36 = vpack.c.bf16 %v5660_v17, %v5660_v17  ;;  %v13348_v25 = vld [vmem:[%s18435_s5 + $0x1b0] sm:$0xff]   ;;  %v13350_v21 = vld [vmem:[%s18435_s5 + $0x1b8] sm:$0xff]   ;;  %v11974_v13 = vpack.c.bf16 %v17119_v14, %v17098_v20 }
 0x419   : > { %v6100_v26 = vsel %vm16759_vm4, %v6095_v23, %v6099_v11  ;;  %v11976_v23 = vpack.c.bf16 %v5687_v4, %v17127_v52  ;;  %v11977_v11 = vpack.c.bf16 %v5695_v27, %v5691_v33  ;;  %v5703_v7 = vld [vmem:[#allocation3 + $0x181] ss:$2 sm:$0xff] }
 0x41a   : > { %v6107_v12 = vshrl.u32 %v11953_v54, 16  ;;  %v6110_v43 = vshll.u32 %v11953_v54, 16  ;;  %v11536_v40 = vcombine.low %v6086_v3, %v6100_v26  ;;  %v6116_v53 = vshll.u32 %v11954_v36, 16  ;;  %v13351_v36 = vld [vmem:[%s18437_s7 + $0x40] sm:$0xff]   ;;  %v13367_v27 = vld [vmem:[%s18437_s7 + $0x90] sm:$0xff]  }
 0x41b   : > { %v11978_v54 = vpack.c.bf16 %v5703_v7, %v5699_v41  ;;  %12711 = vmatprep.subr.bf16.mxu0 %v13351_v36  ;;  %v13356_v41 = vld [vmem:[%s18437_s7 + $0x10] sm:$0xff]  }
 0x41c   : > { %6786 = vmatprep.mubr.bf16.mxu0 %v11536_v40  ;;  %v6109_v22 = vrot.slane %v6107_v12, 4  ;;  %v6112_v51 = vrot.slane %v6110_v43, 5  ;;  %v6118_v44 = vrot.slane %v6116_v53, 5  ;;  %v13357_v53 = vld [vmem:[%s18437_s7 + $0xc0] sm:$0xff]   ;;  %v13381_v7 = vld [vmem:[%s18437_s7 + $0xf0] sm:$0xff]  }
 0x41d   : > { %6530 = vmatmul.mubr.bf16.vlgmr.msra.gmra.mrb[208].mxu1 %v11955_v24  ;;  %6787 = vmatmul.mubr.bf16.gmra.mrb[236].mxu0 %v11970_v50 }
 0x41e   : > { %12638 = vmatpush3.bf16.msra.mxu1 %v13334_v49  ;;  %6537 = vmatprep.mubr.bf16.mxu1 %v11960_v6  ;;  %v6113_v8 = vor.u32 %v6112_v51, %v6109_v22 }
 0x41f   : > { %13079 = vmatprep.mubr.bf16.mxu0 %v11577_v63  ;;  %12639 = vmatprep.subr.bf16.mxu1 %v13336_v59 }
 0x420   : > { %v6114_v63 = vrot.slane %v6113_v8, 4  ;;  %v13353_v8 = vld [vmem:[%s18437_s7 + $0x48] sm:$0xff]  }
 0x422   : > { %12640 = vmatpush3.bf16.msra.mxu1 %v13337_v5 }
 0x423   : > { %12641 = vmatprep.subr.bf16.mxu1 %v13339_v62  ;;  %v13352_v62 = vld [vmem:[%s18437_s7] sm:$0xff]  }
 0x425   : > { %6538 = vmatmul.mubr.bf16.gmra.mrb[212].mxu1 %v11956_v31  ;;  %13080 = vmatmul.mubr.bf16.vlgmr.msra.gmra.mrb[240].mxu0 %v11578_v61  ;;  %v6119_v31 = vsel %vm16759_vm4, %v6114_v63, %v6118_v44  ;;  %v13359_v61 = vld [vmem:[%s18437_s7 + $0x80] sm:$0xff]   ;;  %v13361_v63 = vld [vmem:[%s18437_s7 + $0xc8] sm:$0xff]   ;;  %vm8623_vm4 = vsmask.f32 4368 }
 0x426   : > { %12642 = vmatpush3.bf16.msra.mxu1 %v13340_v9  ;;  %6545 = vmatprep.mubr.bf16.mxu1 %v11961_v46  ;;  %v11580_v55 = vcombine.low %v17114_v32, %v6119_v31  ;;  %v13347_v32 = vld [vmem:[%s18435_s5 + $0x1f0] sm:$0xff]   ;;  %v13354_v46 = vld [vmem:[%s18437_s7 + $0x8] sm:$0xff]   ;;  %vm8624_vm5 = vmor %vm8622_vm3, %vm8623_vm4 }
 0x427   : > { %13083 = vmatprep.mubr.bf16.mxu0 %v11579_v18  ;;  %12643 = vmatprep.subr.bf16.mxu1 %v13341_v15  ;;  %v13365_v31 = vld [vmem:[%s18437_s7 + $0xd0] sm:$0xff]   ;;  %vm8626_vm7 = vmor %vm8624_vm5, %vm8625_vm6 }
 0x428   : > { %12712 = vmatpush3.bf16.msra.mxu0 %v13352_v62  ;;  %vm8628_vm10 = vmor %vm8626_vm7, %vm8627_vm8 }
 0x429   : > { %12713 = vmatprep.subr.bf16.mxu0 %v13353_v8 }
 0x42a   : > { %12644 = vmatpush3.bf16.msra.mxu1 %v13342_v42  ;;  %v13355_v42 = vld [vmem:[%s18437_s7 + $0x50] sm:$0xff]  }
 0x42b   : > { %12645 = vmatprep.subr.bf16.mxu1 %v13343_v38  ;;  %v13363_v38 = vld [vmem:[%s18437_s7 + $0x88] sm:$0xff]  }
 0x42c   : > { %12714 = vmatpush3.bf16.msra.mxu0 %v13354_v46 }
 0x42d   : > { %6546 = vmatmul.mubr.bf16.gmra.mrb[216].mxu1 %v11957_v34  ;;  %13084 = vmatmul.mubr.bf16.gmra.mrb[244].mxu0 %v11580_v55  ;;  %v11958_v34 = vpack.c.bf16 %v17098_v20, %v17079_v45  ;;  %v13369_v55 = vld [vmem:[%s18437_s7 + $0xd8] sm:$0xff]  }
 0x42e   : > { %12646 = vmatpush3.bf16.msra.mxu1 %v13344_v29  ;;  %6553 = vmatprep.mubr.bf16.mxu1 %v11962_v16  ;;  %v13358_v29 = vld [vmem:[%s18437_s7 + $0x58] sm:$0xff]   ;;  %v13362_v16 = vld [vmem:[%s18437_s7 + $0x60] sm:$0xff]  }
 0x42f   : > { %12647 = vmatprep.subr.bf16.mxu1 %v13345_v35  ;;  %12715 = vmatprep.subr.bf16.mxu0 %v13355_v42  ;;  %v13360_v35 = vld [vmem:[%s18437_s7 + $0x18] sm:$0xff]  }
 0x430   : > { %12716 = vmatpush3.bf16.msra.mxu0 %v13356_v41 }
 0x431   : > { %12717 = vmatprep.subr.bf16.mxu0 %v13358_v29 }
 0x432   : > { %12648 = vmatpush3.bf16.msra.mxu1 %v13346_v30  ;;  %v13371_v30 = vld [vmem:[%s18437_s7 + $0x98] sm:$0xff]  }
 0x433   : > { %12649 = vmatprep.subr.bf16.mxu1 %v13347_v32  ;;  %v13373_v32 = vld [vmem:[%s18437_s7 + $0xe0] sm:$0xff]  }
 0x434   : > { %12718 = vmatpush3.bf16.msra.mxu0 %v13360_v35 }
 0x435   : > { %6554 = vmatmul.mubr.bf16.gmra.mrb[220].mxu1 %v11958_v34  ;;  %12719 = vmatprep.subr.bf16.mxu0 %v13362_v16  ;;  %v13366_v34 = vld [vmem:[%s18437_s7 + $0x68] sm:$0xff]  }
 0x436   : > { %12650 = vmatpush3.bf16.msra.mxu1 %v13348_v25  ;;  %6981 = vmatprep.mubr.bf16.mxu1 %v11975_v28  ;;  %v13364_v25 = vld [vmem:[%s18437_s7 + $0x20] sm:$0xff]   ;;  %v13377_v28 = vld [vmem:[%s18437_s7 + $0xe8] sm:$0xff]  }
 0x437   : > { %12651 = vmatprep.subr.bf16.mxu1 %v13349_v19  ;;  %v13375_v19 = vld [vmem:[%s18437_s7 + $0xa0] sm:$0xff]  }
 0x438   : > { %12720 = vmatpush3.bf16.msra.mxu0 %v13364_v25 }
 0x439   : > { %12721 = vmatprep.subr.bf16.mxu0 %v13366_v34 }
 0x43a   : > { %12652 = vmatpush3.bf16.msra.mxu1 %v13350_v21  ;;  %v13368_v21 = vld [vmem:[%s18437_s7 + $0x28] sm:$0xff]  }
 0x43b   : > { %12689 = vmatprep.subr.bf16.mxu1 %v13357_v53 }
 0x43c   : > { %12722 = vmatpush3.bf16.msra.mxu0 %v13368_v21 }
 0x43d   : > { %6982 = vmatmul.mubr.bf16.vlgmr.msra.gmra.mrb[224].mxu1 %v11971_v39 }
 0x43e   : > { %6989 = vmatprep.mubr.bf16.mxu1 %v11976_v23  ;;  %12690 = vmatpush3.bf16.msra.mxu1 %v13359_v61  ;;  %v13370_v23 = vld [vmem:[%s18437_s7 + $0x70] sm:$0xff]  }
 0x43f   : > { %12691 = vmatprep.subr.bf16.mxu1 %v13361_v63  ;;  %12723 = vmatprep.subr.bf16.mxu0 %v13370_v23 }
 0x442   : > { %12692 = vmatpush3.bf16.msra.mxu1 %v13363_v38 }
 0x443   : > { %12693 = vmatprep.subr.bf16.mxu1 %v13365_v31 }
 0x445   : > { %6990 = vmatmul.mubr.bf16.gmra.mrb[228].mxu1 %v11972_v37 }
 0x446   : > { %6997 = vmatprep.mubr.bf16.mxu1 %v11977_v11  ;;  %12694 = vmatpush3.bf16.msra.mxu1 %v13367_v27  ;;  %v13379_v11 = vld [vmem:[%s18437_s7 + $0xa8] sm:$0xff]  }
 0x447   : > { %12695 = vmatprep.subr.bf16.mxu1 %v13369_v55 }
 0x44a   : > { %12696 = vmatpush3.bf16.msra.mxu1 %v13371_v30 }
 0x44b   : > { %12697 = vmatprep.subr.bf16.mxu1 %v13373_v32 }
 0x44d   : > { %6998 = vmatmul.mubr.bf16.gmra.mrb[232].mxu1 %v11973_v60 }
 0x44e   : > { %7005 = vmatprep.mubr.bf16.mxu1 %v11978_v54  ;;  %12698 = vmatpush3.bf16.msra.mxu1 %v13375_v19  ;;  %v13372_v54 = vld [vmem:[%s18437_s7 + $0x30] sm:$0xff]  }
 0x44f   : > { %12699 = vmatprep.subr.bf16.mxu1 %v13377_v28  ;;  %12724 = vmatpush3.bf16.msra.mxu0 %v13372_v54 }
 0x452   : > { %12700 = vmatpush3.bf16.msra.mxu1 %v13379_v11 }
 0x453   : > { %12701 = vmatprep.subr.bf16.mxu1 %v13381_v7 }
 0x455   : > { %7006 = vmatmul.mubr.bf16.gmra.mrb[236].mxu1 %v11974_v13 }
 0x48a   : > { %v12533_v10 = vpop.f32.mrb[192].mxu1 }
 0x48b   : > { %v12534_v48 = vpop.f32.mrb[193].mxu1 }
 0x48c   : > { %v17206_v39 = vadd.f32 %v12534_v48, %v12533_v10  ;;  %v12536_v3 = vpop.f32.mrb[194].mxu1  ;;  %v13374_v10 = vld [vmem:[%s18437_s7 + $0x78] sm:$0xff]  }
 0x48d   : > { %v12537_v26 = vpop.f32.mrb[195].mxu1  ;;  %12725 = vmatprep.subr.bf16.mxu0 %v13374_v10 }
 0x48e   : > { %v17208_v57 = vadd.f32 %v12537_v26, %v12536_v3  ;;  %v13383_v3 = vld [vmem:[%s18437_s7 + $0xb0] sm:$0xff]  }
 0x48f   : > { %12702 = vmatpush3.bf16.msra.mxu1 %v13383_v3 }
 0x492   : > { %v12613_v2 = vpop.f32.mrb[224].mxu0 }
 0x493   : > { %v12614_v37 = vpop.f32.mrb[225].mxu0 }
 0x494   : > { %v17210_v52 = vadd.f32 %v12614_v37, %v12613_v2  ;;  %v12616_v12 = vpop.f32.mrb[226].mxu0  ;;  %v13385_v37 = vld [vmem:[%s18437_s7 + $0xf8] sm:$0xff]  }
 0x495   : > { %v12617_v0 = vpop.f32.mrb[227].mxu0  ;;  %12703 = vmatprep.subr.bf16.mxu1 %v13385_v37 }
 0x496   : > { %v17212_v45 = vadd.f32 %v12617_v0, %v12616_v12  ;;  %v13376_v0 = vld [vmem:[%s18437_s7 + $0x38] sm:$0xff]  }
 0x497   : > { %12726 = vmatpush3.bf16.msra.mxu0 %v13376_v0 }
 0x4ab   : > { %v12539_v60 = vpop.f32.mrb[196].mxu1 }
 0x4ac   : > { %v12540_v43 = vpop.f32.mrb[197].mxu1 }
 0x4ad   : > { %v17214_v20 = vadd.f32 %v12540_v43, %v12539_v60  ;;  %v12542_v14 = vpop.f32.mrb[198].mxu1  ;;  %v13378_v43 = vld [vmem:[%s18437_s7 + $0x1c0] sm:$0xff]  }
 0x4ae   : > { %v12543_v40 = vpop.f32.mrb[199].mxu1  ;;  %12755 = vmatprep.subr.bf16.mxu0 %v13378_v43 }
 0x4af   : > { %v17216_v49 = vadd.f32 %v12543_v40, %v12542_v14  ;;  %v13387_v14 = vld [vmem:[%s18437_s7 + $0xb8] sm:$0xff]   ;;  %v13389_v40 = vld [vmem:[%s18437_s7 + $0x140] sm:$0xff]  }
 0x4b0   : > { %12704 = vmatpush3.bf16.msra.mxu1 %v13387_v14 }
 0x4b1   : > { %12733 = vmatprep.subr.bf16.mxu1 %v13389_v40 }
 0x4b3   : > { %v12619_v47 = vpop.f32.mrb[228].mxu0 }
 0x4b4   : > { %v12620_v1 = vpop.f32.mrb[229].mxu0 }
 0x4b5   : > { %v17218_v58 = vadd.f32 %v12620_v1, %v12619_v47  ;;  %v12622_v24 = vpop.f32.mrb[230].mxu0 }
 0x4b6   : > { %v12623_v56 = vpop.f32.mrb[231].mxu0 }
 0x4b7   : > { %v17220_v50 = vadd.f32 %v12623_v56, %v12622_v24 }
 0x4ca   : > { %v12545_v59 = vpop.f32.mrb[200].mxu1 }
 0x4cb   : > { %v12546_v17 = vpop.f32.mrb[201].mxu1 }
 0x4cc   : > { %v17222_v6 = vadd.f32 %v12546_v17, %v12545_v59  ;;  %v12548_v22 = vpop.f32.mrb[202].mxu1 }
 0x4cd   : > { %v12549_v51 = vpop.f32.mrb[203].mxu1 }
 0x4ce   : > { %v17224_v5 = vadd.f32 %v12549_v51, %v12548_v22 }
 0x4d2   : > { %v12625_v33 = vpop.f32.mrb[232].mxu0 }
 0x4d3   : > { %v12626_v9 = vpop.f32.mrb[233].mxu0 }
 0x4d4   : > { %v17241_v4 = vadd.f32 %v12626_v9, %v12625_v33  ;;  %v12628_v15 = vpop.f32.mrb[234].mxu0 }
 0x4d5   : > { %v12629_v18 = vpop.f32.mrb[235].mxu0 }
 0x4d6   : > { %v17252_v44 = vadd.f32 %v12629_v18, %v12628_v15 }
 0x4e8   : > { %v12551_v13 = vpop.f32.mrb[204].mxu1 }
 0x4e9   : > { %v12552_v48 = vpop.f32.mrb[205].mxu1 }
 0x4ea   : > { %v17317_v26 = vadd.f32 %v12552_v48, %v12551_v13  ;;  %v12554_v2 = vpop.f32.mrb[206].mxu1 }
 0x4eb   : > { %v12555_v12 = vpop.f32.mrb[207].mxu1 }
 0x4ec   : > { %v12556_v60 = vadd.f32 %v12555_v12, %v12554_v2 }
 0x4f0   : > { %v12573_v47 = vpop.f32.mrb[208].mxu1  ;;  %v12631_v1 = vpop.f32.mrb[236].mxu0 }
 0x4f1   : > { %v12574_v24 = vpop.f32.mrb[209].mxu1  ;;  %v12632_v56 = vpop.f32.mrb[237].mxu0 }
 0x4f2   : > { %v12575_v59 = vadd.f32 %v12574_v24, %v12573_v47  ;;  %v12576_v17 = vpop.f32.mrb[210].mxu1  ;;  %v12633_v22 = vadd.f32 %v12632_v56, %v12631_v1  ;;  %v12634_v51 = vpop.f32.mrb[238].mxu0 }
 0x4f3   : > { %v12577_v36 = vpop.f32.mrb[211].mxu1  ;;  %v12635_v62 = vpop.f32.mrb[239].mxu0 }
 0x4f4   : > { %v6532_v8 = vadd.f32 %v12575_v59, %v17206_v39  ;;  %v12578_v33 = vadd.f32 %v12577_v36, %v12576_v17  ;;  %v12636_v9 = vadd.f32 %v12635_v62, %v12634_v51 }
 0x4f6   : > { %v6535_v53 = vadd.f32 %v12578_v33, %v17208_v57  ;;  %v6795_v61 = vadd.f32 %v17210_v52, %v6532_v8 }
 0x4f8   : > { %v12579_v15 = vpop.f32.mrb[212].mxu1  ;;  %v13081_v46 = vpop.f32.mrb[240].mxu0  ;;  %v6796_v63 = vadd.f32 %v17212_v45, %v6535_v53 }
 0x4f9   : > { %v12580_v18 = vpop.f32.mrb[213].mxu1  ;;  %v7129_v42 = vpop.f32.mrb[241].mxu0 }
 0x4fa   : > { %v12581_v38 = vadd.f32 %v12580_v18, %v12579_v15  ;;  %v12582_v31 = vpop.f32.mrb[214].mxu1  ;;  %v13082_v41 = vpop.f32.mrb[242].mxu0 }
 0x4fb   : > { %v12583_v29 = vpop.f32.mrb[215].mxu1  ;;  %v7132_v27 = vpop.f32.mrb[243].mxu0 }
 0x4fc   : > { %v6540_v55 = vadd.f32 %v12581_v38, %v17214_v20  ;;  %v12584_v39 = vadd.f32 %v12583_v29, %v12582_v31 }
 0x4fe   : > { %v6543_v35 = vadd.f32 %v12584_v39, %v17216_v49  ;;  %v6797_v57 = vadd.f32 %v17218_v58, %v6540_v55 }
 0x500   : > { %v12585_v16 = vpop.f32.mrb[216].mxu1  ;;  %v17341_v52 = vpop.f32.mrb[244].mxu0  ;;  %v6798_v30 = vadd.f32 %v17220_v50, %v6543_v35 }
 0x501   : > { %v12586_v45 = vpop.f32.mrb[217].mxu1  ;;  %v7145_v32 = vpop.f32.mrb[245].mxu0 }
 0x502   : > { %v12587_v25 = vadd.f32 %v12586_v45, %v12585_v16  ;;  %v12588_v34 = vpop.f32.mrb[218].mxu1  ;;  %v17344_v19 = vpop.f32.mrb[246].mxu0 }
 0x503   : > { %v12589_v28 = vpop.f32.mrb[219].mxu1  ;;  %v7148_v21 = vpop.f32.mrb[247].mxu0 }
 0x504   : > { %v6548_v20 = vadd.f32 %v12587_v25, %v17222_v6  ;;  %v12590_v23 = vadd.f32 %v12589_v28, %v12588_v34 }
 0x506   : > { %v6551_v49 = vadd.f32 %v12590_v23, %v17224_v5  ;;  %v6799_v58 = vadd.f32 %v17241_v4, %v6548_v20 }
 0x508   : > { %v12591_v11 = vpop.f32.mrb[220].mxu1  ;;  %v6800_v7 = vadd.f32 %v17252_v44, %v6551_v49  ;;  %v17356_v44 = vld [vmem:[%s18436_s6] ss:$0 sm:$0xff] }
 0x509   : > { %v12592_v54 = vpop.f32.mrb[221].mxu1 }
 0x50a   : > { %v12593_v50 = vadd.f32 %v12592_v54, %v12591_v11  ;;  %v12594_v13 = vpop.f32.mrb[222].mxu1 }
 0x50b   : > { %v12595_v10 = vpop.f32.mrb[223].mxu1 }
 0x50c   : > { %v6556_v48 = vadd.f32 %v12593_v50, %v17317_v26  ;;  %v12596_v3 = vadd.f32 %v12595_v10, %v12594_v13 }
 0x50e   : > { %v6559_v2 = vadd.f32 %v12596_v3, %v12556_v60  ;;  %v6801_v37 = vadd.f32 %v12633_v22, %v6556_v48  ;;  %v14420_v3 = vmov 1983009808  }
 0x510   : > { %v12653_v12 = vpop.f32.mrb[224].mxu1  ;;  %v17351_v0 = vadd.f32 %v12636_v9, %v6559_v2  ;;  %v7333_v2 = vunpack.c.l.s4 %v14420_v3 }
 0x511   : > { %v12654_v6 = vpop.f32.mrb[225].mxu1 }
 0x512   : > { %v12655_v43 = vadd.f32 %v12654_v6, %v12653_v12  ;;  %v12656_v5 = vpop.f32.mrb[226].mxu1 }
 0x513   : > { %v12657_v14 = vpop.f32.mrb[227].mxu1 }
 0x514   : > { %v7014_v4 = vadd.f32 %v12655_v43, %v6795_v61  ;;  %v12658_v40 = vadd.f32 %v12657_v14, %v12656_v5  ;;  %v17389_v14 = vld [vmem:[#allocation4] ss:$2 sm:$0x1f] }
 0x516   : > { %v7160_v47 = vadd.f32 %v7129_v42, %v7014_v4  ;;  %v7015_v1 = vadd.f32 %v12658_v40, %v6796_v63 }
 0x518   : > { %v17359_v26 = vadd.f32 %v17356_v44, %v7160_v47  ;;  %v7161_v60 = vadd.f32 %v7132_v27, %v7015_v1  ;;  %v12659_v24 = vpop.f32.mrb[228].mxu1 }
 0x519   : > { %v12660_v56 = vpop.f32.mrb[229].mxu1 }
 0x51a   : > { %v11590_v59 = vmul.f32 -1.442695, %v17359_v26  ;;  %v17363_v17 = vadd.f32 %v17356_v44, %v7161_v60  ;;  %v12661_v22 = vadd.f32 %v12660_v56, %v12659_v24  ;;  %v12662_v51 = vpop.f32.mrb[230].mxu1 }
 0x51b   : > { %v12663_v36 = vpop.f32.mrb[231].mxu1 }
 0x51c   : > { %14351 = vpow2.f32 %v11590_v59  ;;  %v11591_v62 = vmul.f32 -1.442695, %v17363_v17  ;;  %v7016_v8 = vadd.f32 %v12661_v22, %v6797_v57  ;;  %v12664_v33 = vadd.f32 %v12663_v36, %v12662_v51 }
 0x51e   : > { %14353 = vpow2.f32 %v11591_v62  ;;  %v7162_v9 = vadd.f32 %v13081_v46, %v7016_v8  ;;  %v7017_v53 = vadd.f32 %v12664_v33, %v6798_v30 }
 0x520   : > { %v17367_v61 = vadd.f32 %v17356_v44, %v7162_v9  ;;  %v7163_v15 = vadd.f32 %v13082_v41, %v7017_v53  ;;  %v12665_v63 = vpop.f32.mrb[232].mxu1 }
 0x521   : > { %v12666_v18 = vpop.f32.mrb[233].mxu1 }
 0x522   : > { %v11592_v42 = vmul.f32 -1.442695, %v17367_v61  ;;  %v17371_v38 = vadd.f32 %v17356_v44, %v7163_v15  ;;  %v12667_v31 = vadd.f32 %v12666_v18, %v12665_v63  ;;  %v12668_v29 = vpop.f32.mrb[234].mxu1 }
 0x523   : > { %v12669_v27 = vpop.f32.mrb[235].mxu1 }
 0x524   : > { %14355 = vpow2.f32 %v11592_v42  ;;  %v11593_v55 = vmul.f32 -1.442695, %v17371_v38  ;;  %v7018_v39 = vadd.f32 %v12667_v31, %v6799_v58  ;;  %v12670_v46 = vadd.f32 %v12669_v27, %v12668_v29 }
 0x526   : > { %v14352_v35 = vpop.eup %14351  ;;  %14357 = vpow2.f32 %v11593_v55  ;;  %v7164_v57 = vadd.f32 %v7145_v32, %v7018_v39  ;;  %v7019_v16 = vadd.f32 %v12670_v46, %v6800_v7 }
 0x527   : > { %v7207_v41 = vadd.f32 1.0, %v14352_v35 }
 0x528   : > { %v14354_v30 = vpop.eup %14353  ;;  %v17375_v45 = vadd.f32 %v17356_v44, %v7164_v57  ;;  %v7165_v25 = vadd.f32 %v7148_v21, %v7019_v16  ;;  %v12671_v34 = vpop.f32.mrb[236].mxu1  ;;  %v7335_v21 = vlaneseq }
 0x529   : > { %14359 = vrcp.f32 %v7207_v41  ;;  %v7208_v28 = vadd.f32 1.0, %v14354_v30  ;;  %v12672_v20 = vpop.f32.mrb[237].mxu1 }
 0x52a   : > { %v11594_v23 = vmul.f32 -1.442695, %v17375_v45  ;;  %v17379_v49 = vadd.f32 %v17356_v44, %v7165_v25  ;;  %v12673_v58 = vadd.f32 %v12672_v20, %v12671_v34  ;;  %v12674_v11 = vpop.f32.mrb[238].mxu1  ;;  %v17395_v40 = vshrl.u32 %v7335_v21, 7 }
 0x52b   : > { %14361 = vrcp.f32 %v7208_v28  ;;  %v12675_v32 = vpop.f32.mrb[239].mxu1  ;;  %v7291_v34 = vld [vmem:[#allocation4 + $0x1] ss:$2 sm:$0x1f] }
 0x52c   : > { %14363 = vpow2.f32 %v11594_v23  ;;  %v11595_v7 = vmul.f32 -1.442695, %v17379_v49  ;;  %v7020_v54 = vadd.f32 %v12673_v58, %v6801_v37  ;;  %v12676_v50 = vadd.f32 %v12675_v32, %v12674_v11 }
 0x52e   : > { %v14356_v13 = vpop.eup %14355  ;;  %14365 = vpow2.f32 %v11595_v7  ;;  %v7166_v10 = vadd.f32 %v17341_v52, %v7020_v54  ;;  %v7021_v48 = vadd.f32 %v12676_v50, %v17351_v0  ;;  %v7334_v0 = vunpack.c.0.s8 %v7333_v2 }
 0x52f   : > { %v7209_v12 = vadd.f32 1.0, %v14356_v13 }
 0x530   : > { %v14358_v6 = vpop.eup %14357  ;;  %v17386_v43 = vadd.f32 %v17356_v44, %v7166_v10  ;;  %v7167_v5 = vadd.f32 %v17344_v19, %v7021_v48  ;;  %v17409_v59 = vsub.s32 %v7334_v0, %v17395_v40 }
 0x531   : > { %14367 = vrcp.f32 %v7209_v12  ;;  %v7210_v37 = vadd.f32 1.0, %v14358_v6 }
 0x532   : > { %v11596_v4 = vmul.f32 -1.442695, %v17386_v43  ;;  %v17393_v52 = vadd.f32 %v17356_v44, %v7167_v5  ;;  %v7285_v44 = vpack.c.bf16 %v17389_v14, %v17389_v14 }
 0x533   : > { %v14360_v47 = vpop.eup %14359  ;;  %14369 = vrcp.f32 %v7210_v37 }
 0x534   : > { %v7231_v19 = vmul.f32 %v14360_v47, %v17359_v26  ;;  %14371 = vpow2.f32 %v11596_v4  ;;  %v11597_v1 = vmul.f32 -1.442695, %v17393_v52  ;;  %v7338_v26 = vrot.slane %v7285_v44, %v17409_v59 }
 0x535   : > { %v14362_v60 = vpop.eup %14361 }
 0x536   : > { %v14364_v24 = vpop.eup %14363  ;;  %7239 = vst [vmem:[%s17400_s15] sm:$0xff] %v7231_v19  ;;  %7268 = vst [vmem:[#allocation4 + $0x11] sm:$0xff] %v7231_v19  ;;  %v7232_v56 = vmul.f32 %v14362_v60, %v17363_v17  ;;  %14373 = vpow2.f32 %v11597_v1  ;;  %v7372_v33 = vshrl.u32 %v7338_v26, 16  ;;  %v7375_v17 = vshll.u32 %v7338_v26, 16 }
 0x537   : > { %v7211_v22 = vadd.f32 1.0, %v14364_v24  ;;  %v7339_v42 = vcombine.high %v7338_v26, %v7338_v26 }
 0x538   : > { %v14366_v51 = vpop.eup %14365  ;;  %7240 = vst [vmem:[%s17400_s15 + $0x8] sm:$0xff] %v7232_v56  ;;  %7269 = vst [vmem:[#allocation4 + $0x21] sm:$0xff] %v7232_v56  ;;  %v7374_v55 = vrot.slane %v7372_v33, 6  ;;  %v7377_v39 = vrot.slane %v7375_v17, 7 }
 0x539   : > { %14375 = vrcp.f32 %v7211_v22  ;;  %v7212_v36 = vadd.f32 1.0, %v14366_v51 }
 0x53a   : > { %v7378_v28 = vor.u32 %v7377_v39, %v7374_v55 }
 0x53b   : > { %v14368_v62 = vpop.eup %14367  ;;  %14377 = vrcp.f32 %v7212_v36 }
 0x53c   : > { %v7233_v8 = vmul.f32 %v14368_v62, %v17367_v61 }
 0x53d   : > { %v14370_v9 = vpop.eup %14369  ;;  %v17414_v53 = vld [vmem:[#allocation4 + $0x10] ss:$2 sm:$0x1f] }
 0x53e   : > { %v14372_v15 = vpop.eup %14371  ;;  %7241 = vst [vmem:[%s17400_s15 + $0x10] sm:$0xff] %v7233_v8  ;;  %7270 = vst [vmem:[#allocation4 + $0x31] sm:$0xff] %v7233_v8  ;;  %v7234_v63 = vmul.f32 %v14370_v9, %v17371_v38  ;;  %v7312_v18 = vpack.c.bf16 %v17414_v53, %v17414_v53  ;;  %v17426_v38 = vshll.u32 %v7339_v42, 16 }
 0x53f   : > { %v7213_v31 = vadd.f32 1.0, %v14372_v15  ;;  %v17421_v27 = vld [vmem:[#allocation4 + $0x20] ss:$2 sm:$0x1f] }
 0x540   : > { %v14374_v29 = vpop.eup %14373  ;;  %7242 = vst [vmem:[%s17400_s15 + $0x18] sm:$0xff] %v7234_v63  ;;  %7271 = vst [vmem:[#allocation4 + $0x41] sm:$0xff] %v7234_v63  ;;  %v7437_v61 = vrot.slane %v7312_v18, %v17409_v59  ;;  %v7286_v35 = vpack.c.bf16 %v17421_v27, %v17421_v27  ;;  %v7293_v50 = vld [vmem:[#allocation4 + $0x21] ss:$2 sm:$0x1f]  ;;  %v7383_v13 = vrot.slane %v17426_v38, 7  ;;  %v11598_v37 = vpack.c.bf16 %v17421_v27, %v17389_v14 }
 0x541   : > { %14379 = vrcp.f32 %v7213_v31  ;;  %v7214_v46 = vadd.f32 1.0, %v14374_v29  ;;  %v11600_v5 = vpack.c.bf16 %v7293_v50, %v7291_v34 }
 0x542   : > { %v7464_v57 = vshrl.u32 %v7437_v61, 16  ;;  %v7467_v16 = vshll.u32 %v7437_v61, 16  ;;  %v7346_v30 = vrot.slane %v7286_v35, %v17409_v59  ;;  %v7438_v10 = vcombine.high %v7437_v61, %v7437_v61 }
 0x543   : > { %v14376_v41 = vpop.eup %14375  ;;  %14381 = vrcp.f32 %v7214_v46  ;;  %v7572_v55 = vrot.slane %v11600_v5, %v17409_v59  ;;  %v7550_v46 = vrot.slane %v11598_v37, %v17409_v59 }
 0x544   : > { %v7235_v25 = vmul.f32 %v14376_v41, %v17375_v45  ;;  %v7466_v20 = vrot.slane %v7464_v57, 6  ;;  %v7469_v23 = vrot.slane %v7467_v16, 7  ;;  %v7386_v32 = vshrl.u32 %v7346_v30, 16 }
 0x545   : > { %v14378_v58 = vpop.eup %14377  ;;  %v7307_v11 = vld [vmem:[#allocation4 + $0x30] ss:$2 sm:$0x1f]  ;;  %v7389_v7 = vshll.u32 %v7346_v30, 16  ;;  %v7347_v3 = vcombine.high %v7346_v30, %v7346_v30  ;;  %v17447_v44 = vshll.u32 %v7438_v10, 16  ;;  %v13380_v10 = vld [vmem:[%s18437_s7 + $0x180] sm:$0xff]  }
 0x546   : > { %7243 = vst [vmem:[%s17400_s15 + $0x20] sm:$0xff] %v7235_v25  ;;  %7272 = vst [vmem:[#allocation4 + $0x51] sm:$0xff] %v7235_v25  ;;  %v7236_v54 = vmul.f32 %v14378_v58, %v17379_v49  ;;  %v7313_v21 = vpack.c.bf16 %v7307_v11, %v7307_v11  ;;  %v7379_v49 = vrot.slane %v7378_v28, 2  ;;  %v7470_v6 = vor.u32 %v7469_v23, %v7466_v20 }
 0x547   : > { %v7295_v48 = vld [vmem:[#allocation4 + $0x41] ss:$2 sm:$0x1f]  ;;  %v17433_v45 = vld [vmem:[#allocation4 + $0x40] ss:$2 sm:$0x1f]  ;;  %v11602_v19 = vpack.c.bf16 %v7307_v11, %v17414_v53 }
 0x548   : > { %7244 = vst [vmem:[%s17400_s15 + $0x28] sm:$0xff] %v7236_v54  ;;  %7273 = vst [vmem:[#allocation4 + $0x61] sm:$0xff] %v7236_v54  ;;  %v7287_v2 = vpack.c.bf16 %v17433_v45, %v17433_v45  ;;  %v17439_v12 = vrot.slane %v7313_v21, %v17409_v59  ;;  %v7388_v4 = vrot.slane %v7386_v32, 6  ;;  %v7391_v0 = vrot.slane %v7389_v7, 7 }
 0x549   : > { %v11656_v1 = vpack.c.bf16 %v7295_v48, %v7293_v50  ;;  %v7395_v22 = vshll.u32 %v7347_v3, 16  ;;  %v17457_v8 = vrot.slane %v7470_v6, 2  ;;  %v17477_v35 = vrot.slane %v11602_v19, %v17409_v59 }
 0x54a   : > { %v7354_v47 = vrot.slane %v7287_v2, %v17409_v59  ;;  %v7392_v56 = vor.u32 %v7391_v0, %v7388_v4  ;;  %v7478_v14 = vshrl.u32 %v17439_v12, 16  ;;  %v7481_v51 = vshll.u32 %v17439_v12, 16 }
 0x54b   : > { %v14380_v60 = vpop.eup %14379  ;;  %v7397_v41 = vrot.slane %v7395_v22, 7  ;;  %v17490_v25 = vrot.slane %v11656_v1, %v17409_v59  ;;  %v7446_v7 = vcombine.high %v17439_v12, %v17439_v12  ;;  %v7475_v54 = vrot.slane %v17447_v44, 7  ;;  %v13384_v22 = vld [vmem:[%s18437_s7 + $0x188] sm:$0xff]  }
 0x54c   : > { %v7237_v26 = vmul.f32 %v14380_v60, %v17386_v43  ;;  %v7400_v36 = vshrl.u32 %v7354_v47, 16  ;;  %v7403_v62 = vshll.u32 %v7354_v47, 16  ;;  %v7355_v9 = vcombine.high %v7354_v47, %v7354_v47 }
 0x54d   : > { %v14382_v33 = vpop.eup %14381  ;;  %v7309_v17 = vld [vmem:[#allocation4 + $0x50] ss:$2 sm:$0x1f]  ;;  %v7393_v53 = vrot.slane %v7392_v56, 2  ;;  %v17459_v15 = vrot.slane %v7478_v14, 6  ;;  %v17461_v63 = vrot.slane %v7481_v51, 7 }
 0x54e   : > { %7245 = vst [vmem:[%s17400_s15 + $0x30] sm:$0xff] %v7237_v26  ;;  %7274 = vst [vmem:[#allocation4 + $0x71] sm:$0xff] %v7237_v26  ;;  %v7238_v18 = vmul.f32 %v14382_v33, %v17393_v52  ;;  %v7314_v42 = vpack.c.bf16 %v7309_v17, %v7309_v17  ;;  %v7402_v31 = vrot.slane %v7400_v36, 6  ;;  %v7405_v29 = vrot.slane %v7403_v62, 7  ;;  %v13386_v62 = vld [vmem:[%s18437_s7 + $0x1d0] sm:$0xff]  }
 0x54f   : > { %v7297_v61 = vld [vmem:[#allocation4 + $0x61] ss:$2 sm:$0x1f]  ;;  %v17473_v39 = vld [vmem:[#allocation4 + $0x60] ss:$2 sm:$0x1f]  ;;  %v17481_v52 = vsel %vm17468_vm11, %v7379_v49, %v7383_v13  ;;  %v17497_v11 = vsel %vm17468_vm11, %v7393_v53, %v7397_v41  ;;  %v7484_v50 = vor.u32 %v17461_v63, %v17459_v15 }
 0x550   : > { %7246 = vst [vmem:[%s17400_s15 + $0x38] sm:$0xff] %v7238_v18  ;;  %7275 = vst [vmem:[#allocation4 + $0x81] sm:$0xff] %v7238_v18  ;;  %v11601_v38 = vpack.c.bf16 %v7297_v61, %v7295_v48  ;;  %v7288_v57 = vpack.c.bf16 %v17473_v39, %v17473_v39  ;;  %v11599_v16 = vpack.c.bf16 %v17473_v39, %v17433_v45  ;;  %v7409_v28 = vshll.u32 %v7355_v9, 16  ;;  %v13382_v48 = vld [vmem:[%s18437_s7 + $0x1c8] sm:$0xff]   ;;  %v13390_v41 = vld [vmem:[%s18437_s7 + $0x1d8] sm:$0xff]   ;;  %s499_s15 = scalar_lea.vmem %s18443_s13, %s11920_s25 }
 0x551   : > { %v7453_v30 = vrot.slane %v7314_v42, %v17409_v59  ;;  %v7406_v34 = vor.u32 %v7405_v29, %v7402_v31  ;;  %v7614_v5 = vcombine.low %v17481_v52, %v17497_v11  ;;  %v7487_v36 = vshll.u32 %v7446_v7, 16 }
 0x552   : > { %v7579_v20 = vrot.slane %v11601_v38, %v17409_v59  ;;  %v7362_v23 = vrot.slane %v7288_v57, %v17409_v59  ;;  %v7557_v58 = vrot.slane %v11599_v16, %v17409_v59  ;;  %v7411_v6 = vrot.slane %v7409_v28, 7  ;;  %v13388_v38 = vld [vmem:[%s18437_s7 + $0x190] sm:$0xff]  }
 0x553   : > { %v7407_v32 = vrot.slane %v7406_v34, 2  ;;  %v7492_v37 = vshrl.u32 %v7453_v30, 16  ;;  %v7454_v60 = vcombine.high %v7453_v30, %v7453_v30  ;;  %v7495_v56 = vshll.u32 %v7453_v30, 16 }
 0x554   : > { %v7580_v21 = vcombine.low %v7572_v55, %v7579_v20  ;;  %v7558_v13 = vcombine.low %v7550_v46, %v7557_v58  ;;  %v7363_v3 = vcombine.high %v7362_v23, %v7362_v23  ;;  %v7414_v2 = vshrl.u32 %v7362_v23, 16 }
 0x555   : > { %v7311_v49 = vld [vmem:[#allocation4 + $0x70] ss:$2 sm:$0x1f]  ;;  %v7417_v12 = vshll.u32 %v7362_v23, 16  ;;  %v7494_v24 = vrot.slane %v7492_v37, 6  ;;  %v17522_v33 = vsel %vm17468_vm11, %v7407_v32, %v7411_v6  ;;  %v7485_v9 = vrot.slane %v7484_v50, 2 }
 0x556   : > { %7947 = vmatprep.mubr.bf16.mxu0 %v7580_v21  ;;  %v7315_v4 = vpack.c.bf16 %v7311_v49, %v7311_v49  ;;  %v11603_v0 = vpack.c.bf16 %v7311_v49, %v7309_v17  ;;  %v7416_v47 = vrot.slane %v7414_v2, 6  ;;  %v7423_v19 = vshll.u32 %v7363_v3, 16  ;;  %v13394_v3 = vld [vmem:[%s18437_s7 + $0x1e0] sm:$0xff]   ;;  %v13393_v37 = vld [vmem:[%s18437_s7 + $0x148] sm:$0xff]  }
 0x557   : > { %7948 = vmatmul.mubr.bf16.vlgmr.msra.gmra.mrb[248].mxu0 %v7558_v13  ;;  %v7299_v1 = vld [vmem:[#allocation4 + $0x81] ss:$2 sm:$0x1f]  ;;  %v7419_v44 = vrot.slane %v7417_v12, 7  ;;  %v7497_v53 = vrot.slane %v7495_v56, 7  ;;  %v7489_v57 = vrot.slane %v7487_v36, 7  ;;  %v7476_v23 = vsel %vm17468_vm11, %v17457_v8, %v7475_v54 }
 0x558   : > { %12756 = vmatpush3.bf16.msra.mxu0 %v13380_v10  ;;  %v7461_v14 = vrot.slane %v7315_v4, %v17409_v59  ;;  %v7647_v51 = vrot.slane %v11603_v0, %v17409_v59  ;;  %v11657_v26 = vpack.c.bf16 %v7299_v1, %v7297_v61  ;;  %v17526_v31 = vld [vmem:[#allocation4 + $0x80] ss:$2 sm:$0x1f]  ;;  %v7425_v61 = vrot.slane %v7423_v19, 7  ;;  %v13392_v10 = vld [vmem:[%s18437_s7 + $0x198] sm:$0xff]  }
 0x559   : > { %12757 = vmatprep.subr.bf16.mxu0 %v13382_v48  ;;  %v7420_v17 = vor.u32 %v7419_v44, %v7416_v47  ;;  %v7498_v55 = vor.u32 %v7497_v53, %v7494_v24  ;;  %v7490_v58 = vsel %vm17468_vm11, %v7485_v9, %v7489_v57  ;;  %v7622_v21 = vrot.slane %v7614_v5, %v17409_v59  ;;  %v13391_v54 = vld [vmem:[%s18437_s7 + $0x100] sm:$0xff]   ;;  %v13395_v56 = vld [vmem:[%s18437_s7 + $0x108] sm:$0xff]   ;;  %v13399_v53 = vld [vmem:[%s18437_s7 + $0x110] sm:$0xff]  }
 0x55a   : > { %v7648_v15 = vcombine.low %v17477_v35, %v7647_v51  ;;  %v8201_v63 = vrot.slane %v11657_v26, %v17409_v59  ;;  %v7462_v18 = vcombine.high %v7461_v14, %v7461_v14  ;;  %v7506_v42 = vshrl.u32 %v7461_v14, 16  ;;  %v13396_v1 = vld [vmem:[%s18437_s7 + $0x1a0] sm:$0xff]   ;;  %v13397_v26 = vld [vmem:[%s18437_s7 + $0x150] sm:$0xff]  }
 0x55b   : > { %v7421_v29 = vrot.slane %v7420_v17, 2  ;;  %v7509_v46 = vshll.u32 %v7461_v14, 16  ;;  %v7501_v35 = vshll.u32 %v7454_v60, 16  ;;  %v7499_v32 = vrot.slane %v7498_v55, 2  ;;  %v13406_v55 = vld [vmem:[%s18437_s7 + $0x1f8] sm:$0xff]  }
 0x55c   : > { %12758 = vmatpush3.bf16.msra.mxu0 %v13384_v22  ;;  %7810 = vmatprep.mubr.bf16.mxu1 %v7648_v15  ;;  %v8202_v52 = vcombine.low %v17490_v25, %v8201_v63  ;;  %v7508_v16 = vrot.slane %v7506_v42, 6  ;;  %v7515_v28 = vshll.u32 %v7462_v18, 16  ;;  %v7289_v25 = vpack.c.bf16 %v17526_v31, %v17526_v31  ;;  %v13398_v22 = vld [vmem:[%s18437_s7 + $0x1e8] sm:$0xff]   ;;  %v13402_v15 = vld [vmem:[%s18437_s7 + $0x1f0] sm:$0xff]   ;;  %v13401_v63 = vld [vmem:[%s18437_s7 + $0x158] sm:$0xff]  }
 0x55d   : > { %12759 = vmatprep.subr.bf16.mxu0 %v13386_v62  ;;  %v17537_v30 = vsel %vm17468_vm11, %v7421_v29, %v7425_v61  ;;  %v7511_v34 = vrot.slane %v7509_v46, 7  ;;  %v7503_v48 = vrot.slane %v7501_v35, 7  ;;  %v8391_v8 = vcombine.low %v17497_v11, %v17522_v33  ;;  %v13404_v29 = vld [vmem:[%s18437_s7 + $0x1b0] sm:$0xff]   ;;  %v13403_v61 = vld [vmem:[%s18437_s7 + $0x118] sm:$0xff]  }
 0x55e   : > { %8364 = vmatprep.mubr.bf16.mxu0 %v8202_v52  ;;  %v7615_v20 = vcombine.low %v17522_v33, %v17537_v30  ;;  %v7526_v50 = vrot.slane %v7289_v25, %v17409_v59  ;;  %v7517_v49 = vrot.slane %v7515_v28, 7  ;;  %v7978_v4 = vcombine.low %v7476_v23, %v7490_v58  ;;  %v13400_v33 = vld [vmem:[%s18437_s7 + $0x1a8] sm:$0xff]   ;;  %v7323_v28 = vld [vmem:[#allocation4 + $0x71] ss:$2 sm:$0x1f] }
 0x55f   : > { %v7512_v7 = vor.u32 %v7511_v34, %v7508_v16  ;;  %v7504_v0 = vsel %vm17468_vm11, %v7499_v32, %v7503_v48  ;;  %v11655_v43 = vpack.c.bf16 %v17526_v31, %v17473_v39  ;;  %v17610_v46 = vrot.slane %v8391_v8, %v17409_v59  ;;  %v13408_v39 = vld [vmem:[%s18437_s7 + $0x1b8] sm:$0xff]   ;;  %v13407_v31 = vld [vmem:[%s18437_s7 + $0x120] sm:$0xff]   ;;  %v13411_v34 = vld [vmem:[%s18437_s7 + $0x170] sm:$0xff]  }
 0x560   : > { %12760 = vmatpush3.bf16.msra.mxu0 %v13388_v38  ;;  %v7629_v13 = vrot.slane %v7615_v20, %v17409_v59  ;;  %v7527_v6 = vcombine.high %v7526_v50, %v7526_v50  ;;  %v7529_v12 = vshrl.u32 %v7526_v50, 16  ;;  %v7532_v11 = vshll.u32 %v7526_v50, 16  ;;  %v13405_v38 = vld [vmem:[%s18437_s7 + $0x160] sm:$0xff]   ;;  %v13412_v25 = vld [vmem:[%s18437_s7 + $0x130] sm:$0xff]   ;;  %v13413_v58 = vld [vmem:[%s18437_s7 + $0x178] sm:$0xff]  }
 0x561   : > { %12761 = vmatprep.subr.bf16.mxu0 %v13390_v41  ;;  %v7513_v2 = vrot.slane %v7512_v7, 2  ;;  %v7986_v14 = vrot.slane %v7978_v4, %v17409_v59  ;;  %v11654_v57 = vpack.c.bf16 %v17433_v45, %v17421_v27  ;;  %v8182_v16 = vrot.slane %v11655_v43, %v17409_v59  ;;  %v13409_v27 = vld [vmem:[%s18437_s7 + $0x168] sm:$0xff]   ;;  %v7319_v20 = vld [vmem:[#allocation4 + $0x31] ss:$2 sm:$0x1f]  ;;  %v13415_v48 = vld [vmem:[%s18437_s7 + $0x200] sm:$0xff]  }
 0x562   : > { %v7630_v5 = vcombine.low %v7622_v21, %v7629_v13  ;;  %v7531_v19 = vrot.slane %v7529_v12, 6  ;;  %v7534_v60 = vrot.slane %v7532_v11, 7  ;;  %v7538_v24 = vshll.u32 %v7527_v6, 16  ;;  %v7321_v23 = vld [vmem:[#allocation4 + $0x51] ss:$2 sm:$0x1f] }
 0x563   : > { %v7518_v47 = vsel %vm17468_vm11, %v7513_v2, %v7517_v49  ;;  %v8175_v45 = vrot.slane %v11654_v57, %v17409_v59  ;;  %v11637_v32 = vpack.c.bf16 %v7323_v28, %v7321_v23  ;;  %v7317_v7 = vld [vmem:[#allocation4 + $0x11] ss:$2 sm:$0x1f]  ;;  %v13419_v49 = vld [vmem:[%s18437_s7 + $0x220] sm:$0xff]   ;;  %v13420_v6 = vld [vmem:[%s18437_s7 + $0x228] sm:$0xff]  }
 0x564   : > { %7811 = vmatmul.mubr.bf16.vlgmr.msra.gmra.mrb[240].mxu1 %v7630_v5  ;;  %12762 = vmatpush3.bf16.msra.mxu0 %v13392_v10  ;;  %v7979_v44 = vcombine.low %v7504_v0, %v7518_v47  ;;  %v7535_v36 = vor.u32 %v7534_v60, %v7531_v19  ;;  %v7540_v9 = vrot.slane %v7538_v24, 7  ;;  %v11636_v50 = vpack.c.bf16 %v7319_v20, %v7317_v7  ;;  %v13414_v21 = vld [vmem:[%s18437_s7 + $0x138] sm:$0xff]   ;;  %v13421_v12 = vld [vmem:[%s18437_s7 + $0x230] sm:$0xff]  }
 0x565   : > { %12734 = vmatpush3.bf16.msra.mxu1 %v13391_v54  ;;  %12763 = vmatprep.subr.bf16.mxu0 %v13394_v3  ;;  %v8183_v41 = vcombine.low %v8175_v45, %v8182_v16  ;;  %v7975_v13 = vrot.slane %v11637_v32, %v17409_v59  ;;  %v14409_v54 = vld [vmem:[#allocation2] sm:$0xff]  ;;  %v13416_v3 = vld [vmem:[%s18437_s7 + $0x208] sm:$0xff]   ;;  %v13418_v2 = vld [vmem:[%s18437_s7 + $0x218] sm:$0xff]  }
 0x566   : > { %12735 = vmatprep.subr.bf16.mxu1 %v13393_v37  ;;  %v7993_v51 = vrot.slane %v7979_v44, %v17409_v59  ;;  %v7536_v17 = vrot.slane %v7535_v36, 2  ;;  %v7968_v10 = vrot.slane %v11636_v50, %v17409_v59  ;;  %v13422_v5 = vld [vmem:[%s18437_s7 + $0x238] sm:$0xff]   ;;  %v13423_v37 = vld [vmem:[%s18439_s9 + $0x180] ss:$12 sps:$4 sm:$0xff]   ;;  %v13425_v4 = vld [vmem:[%s18439_s9 + $0x184] ss:$12 sps:$4 sm:$0xff]  }
 0x567   : > { %v13428_v11 = vld [vmem:[%s18439_s9 + $0x19c] ss:$12 sps:$4 sm:$0xff]   ;;  %v13426_v0 = vld [vmem:[%s18439_s9 + $0x198] ss:$12 sps:$4 sm:$0xff]   ;;  %v13431_v19 = vld [vmem:[%s18439_s9 + $0x1b4] ss:$12 sps:$4 sm:$0xff]  }
 0x568   : > { %12764 = vmatpush3.bf16.msra.mxu0 %v13396_v1  ;;  %v7994_v62 = vcombine.low %v7986_v14, %v7993_v51  ;;  %v7541_v18 = vsel %vm17468_vm11, %v7536_v17, %v7540_v9  ;;  %v7976_v8 = vcombine.low %v7968_v10, %v7975_v13  ;;  %v13429_v47 = vld [vmem:[%s18439_s9 + $0x1b0] ss:$12 sps:$4 sm:$0xff]   ;;  %v13434_v1 = vld [vmem:[%s18439_s9 + $0x1cc] ss:$12 sps:$4 sm:$0xff]   ;;  %v13432_v44 = vld [vmem:[%s18439_s9 + $0x1c8] ss:$12 sps:$4 sm:$0xff]  }
 0x569   : > { %12736 = vmatpush3.bf16.msra.mxu1 %v13395_v56  ;;  %12765 = vmatprep.subr.bf16.mxu0 %v13398_v22  ;;  %v8392_v42 = vcombine.low %v17537_v30, %v7541_v18  ;;  %v13410_v30 = vld [vmem:[%s18437_s7 + $0x128] sm:$0xff]   ;;  %v13437_v60 = vld [vmem:[%s18439_s9 + $0x1e4] ss:$12 sps:$4 sm:$0xff]   ;;  %v13459_v7 = vld [vmem:[%s18439_s9 + $0x274] ss:$12 sps:$4 sm:$0xff]  }
 0x56a   : > { %8156 = vmatprep.mubr.bf16.mxu1 %v7994_v62  ;;  %12737 = vmatprep.subr.bf16.mxu1 %v13397_v26  ;;  %v13450_v24 = vld [vmem:[%s18439_s9 + $0x248] ss:$12 sps:$4 sm:$0xff]   ;;  %v13455_v22 = vld [vmem:[%s18439_s9 + $0x260] ss:$12 sps:$4 sm:$0xff]   ;;  %v13460_v62 = vld [vmem:[%s18439_s9 + $0x278] ss:$12 sps:$4 sm:$0xff]  }
 0x56b   : > { %v17613_v52 = vrot.slane %v8392_v42, %v17409_v59  ;;  %v13417_v59 = vld [vmem:[%s18437_s7 + $0x210] sm:$0xff]   ;;  %v13435_v14 = vld [vmem:[%s18439_s9 + $0x1e0] ss:$12 sps:$4 sm:$0xff]   ;;  %v13440_v36 = vld [vmem:[%s18439_s9 + $0x1fc] ss:$12 sps:$4 sm:$0xff]  }
 0x56c   : > { %12766 = vmatpush3.bf16.msra.mxu0 %v13400_v33  ;;  %v13451_v56 = vld [vmem:[%s18439_s9 + $0x188] ss:$12 sps:$4 sm:$0xff]   ;;  %v13456_v51 = vld [vmem:[%s18439_s9 + $0x1a0] ss:$12 sps:$4 sm:$0xff]   ;;  %v13449_v57 = vld [vmem:[%s18439_s9 + $0x244] ss:$12 sps:$4 sm:$0xff]  }
 0x56d   : > { %12738 = vmatpush3.bf16.msra.mxu1 %v13399_v53  ;;  %12767 = vmatprep.subr.bf16.mxu0 %v13402_v15  ;;  %v8407_v35 = vcombine.low %v17610_v46, %v17613_v52  ;;  %v13438_v15 = vld [vmem:[%s18439_s9 + $0x1f8] ss:$12 sps:$4 sm:$0xff]   ;;  %v13443_v42 = vld [vmem:[%s18439_s9 + $0x214] ss:$12 sps:$4 sm:$0xff]   ;;  %v13485_v50 = vld [vmem:[%s18439_s9 + $0x2f0] ss:$12 sps:$4 sm:$0xff]  }
 0x56e   : > { %12739 = vmatprep.subr.bf16.mxu1 %v13401_v63  ;;  %v13461_v63 = vld [vmem:[%s18439_s9 + $0x1b8] ss:$12 sps:$4 sm:$0xff]   ;;  %v13470_v46 = vld [vmem:[%s18439_s9 + $0x2a8] ss:$12 sps:$4 sm:$0xff]   ;;  %v13447_v45 = vld [vmem:[%s18439_s9 + $0x240] ss:$12 sps:$4 sm:$0xff]  }
 0x56f   : > { %v13446_v43 = vld [vmem:[%s18439_s9 + $0x22c] ss:$12 sps:$4 sm:$0xff]   ;;  %v13444_v52 = vld [vmem:[%s18439_s9 + $0x228] ss:$12 sps:$4 sm:$0xff]   ;;  %v13486_v13 = vld [vmem:[%s18439_s9 + $0x230] ss:$12 sps:$4 sm:$0xff]  }
 0x570   : > { %12768 = vmatpush3.bf16.msra.mxu0 %v13404_v29  ;;  %v13465_v29 = vld [vmem:[%s18439_s9 + $0x290] ss:$12 sps:$4 sm:$0xff]   ;;  %v13480_v28 = vld [vmem:[%s18439_s9 + $0x2d8] ss:$12 sps:$4 sm:$0xff]   ;;  %vm17856_vm11 = vmor %vm8628_vm10, %vm8629_vm9 }
 0x571   : > { %12740 = vmatpush3.bf16.msra.mxu1 %v13403_v61  ;;  %12769 = vmatprep.subr.bf16.mxu0 %v13406_v55  ;;  %v13441_v61 = vld [vmem:[%s18439_s9 + $0x210] ss:$12 sps:$4 sm:$0xff]   ;;  %v13481_v32 = vld [vmem:[%s18439_s9 + $0x218] ss:$12 sps:$4 sm:$0xff]  }
 0x572   : > { %12741 = vmatprep.subr.bf16.mxu1 %v13405_v38  ;;  %v13466_v55 = vld [vmem:[%s18439_s9 + $0x1d0] ss:$12 sps:$4 sm:$0xff]   ;;  %v13471_v38 = vld [vmem:[%s18439_s9 + $0x1e8] ss:$12 sps:$4 sm:$0xff]   ;;  %v13464_v10 = vld [vmem:[%s18439_s9 + $0x28c] ss:$12 sps:$4 sm:$0xff]  }
 0x574   : > { %12770 = vmatpush3.bf16.msra.mxu0 %v13408_v39 }
 0x575   : > { %12742 = vmatpush3.bf16.msra.mxu1 %v13407_v31  ;;  %9195 = vmatprep.subr.bf16.mxu0 %v13425_v4 }
 0x576   : > { %12743 = vmatprep.subr.bf16.mxu1 %v13409_v27 }
 0x577   : > { %8365 = vmatmul.mubr.bf16.vlgmr.msra.gmra.mrb[252].mxu0 %v8183_v41  ;;  %v13476_v41 = vld [vmem:[%s18439_s9 + $0x200] ss:$12 sps:$4 sm:$0xff]  }
 0x578   : > { %9196 = vmatpush1.bf16.msra.mxu0 %v13423_v37  ;;  %v13472_v37 = vld [vmem:[%s18439_s9 + $0x2b8] ss:$12 sps:$4 sm:$0xff]  }
 0x579   : > { %12744 = vmatpush3.bf16.msra.mxu1 %v13410_v30  ;;  %9197 = vmatprep.subr.bf16.mxu0 %v13428_v11  ;;  %v13479_v11 = vld [vmem:[%s18439_s9 + $0x2d4] ss:$12 sps:$4 sm:$0xff]  }
 0x57a   : > { %12745 = vmatprep.subr.bf16.mxu1 %v13411_v34  ;;  %v13454_v34 = vld [vmem:[%s18439_s9 + $0x25c] ss:$12 sps:$4 sm:$0xff]  }
 0x57c   : > { %9198 = vmatpush1.bf16.msra.mxu0 %v13426_v0  ;;  %v13477_v0 = vld [vmem:[%s18439_s9 + $0x2d0] ss:$12 sps:$4 sm:$0xff]  }
 0x57d   : > { %12746 = vmatpush3.bf16.msra.mxu1 %v13412_v25  ;;  %9199 = vmatprep.subr.bf16.mxu0 %v13431_v19  ;;  %v13482_v19 = vld [vmem:[%s18439_s9 + $0x2e8] ss:$12 sps:$4 sm:$0xff]  }
 0x57e   : > { %12747 = vmatprep.subr.bf16.mxu1 %v13413_v58  ;;  %v13452_v58 = vld [vmem:[%s18439_s9 + $0x258] ss:$12 sps:$4 sm:$0xff]  }
 0x580   : > { %9200 = vmatpush1.bf16.msra.mxu0 %v13429_v47  ;;  %v13484_v47 = vld [vmem:[%s18439_s9 + $0x2ec] ss:$12 sps:$4 sm:$0xff]  }
 0x581   : > { %12748 = vmatpush3.bf16.msra.mxu1 %v13414_v21  ;;  %9201 = vmatprep.subr.bf16.mxu0 %v13434_v1  ;;  %v13457_v21 = vld [vmem:[%s18439_s9 + $0x270] ss:$12 sps:$4 sm:$0xff]   ;;  %v13490_v1 = vld [vmem:[%s18439_s9 + $0xc8] ss:$12 sps:$4 sm:$0xff]  }
 0x582   : > { %13087 = vmatprep.subr.bf16.mxu1 %v14409_v54 }
 0x584   : > { %8157 = vmatmul.mubr.bf16.vlgmr.msra.gmra.mrb[244].mxu1 %v7976_v8  ;;  %9202 = vmatpush1.bf16.msra.mxu0 %v13432_v44  ;;  %v13462_v8 = vld [vmem:[%s18439_s9 + $0x288] ss:$12 sps:$4 sm:$0xff]  }
 0x585   : > { %13088 = vmatpush3.bf16.msra.mxu1 %v13415_v48  ;;  %13103 = vmatprep.mubr.msk.bf16.mxu1 %vm14421_vm12, %v14409_v54  ;;  %v13489_v48 = vld [vmem:[%s18439_s9 + $0x4] ss:$12 sps:$4 sm:$0xff]  }
 0x586   : > { %13089 = vmatprep.subr.bf16.mxu1 %v14409_v54  ;;  %9203 = vmatprep.subr.bf16.mxu0 %v13437_v60 }
 0x588   : > { %9204 = vmatpush1.bf16.msra.mxu0 %v13435_v14 }
 0x589   : > { %13090 = vmatpush3.bf16.msra.mxu1 %v13416_v3  ;;  %9205 = vmatprep.subr.bf16.mxu0 %v13440_v36  ;;  %v13467_v3 = vld [vmem:[%s18439_s9 + $0x2a0] ss:$12 sps:$4 sm:$0xff]  }
 0x58a   : > { %13091 = vmatprep.subr.bf16.mxu1 %v14409_v54 }
 0x58c   : > { %9206 = vmatpush1.bf16.msra.mxu0 %v13438_v15 }
 0x58d   : > { %13092 = vmatpush3.bf16.msra.mxu1 %v13417_v59  ;;  %9207 = vmatprep.subr.bf16.mxu0 %v13443_v42 }
 0x58e   : > { %13093 = vmatprep.subr.bf16.mxu1 %v14409_v54 }
 0x590   : > { %9208 = vmatpush1.bf16.msra.mxu0 %v13441_v61 }
 0x591   : > { %13094 = vmatpush3.bf16.msra.mxu1 %v13418_v2  ;;  %9209 = vmatprep.subr.bf16.mxu0 %v13446_v43  ;;  %v13474_v2 = vld [vmem:[%s18439_s9 + $0x2bc] ss:$12 sps:$4 sm:$0xff]  }
 0x592   : > { %13095 = vmatprep.subr.bf16.mxu1 %v14409_v54 }
 0x594   : > { %9210 = vmatpush1.bf16.msra.mxu0 %v13444_v52 }
 0x595   : > { %13096 = vmatpush3.bf16.msra.mxu1 %v13419_v49  ;;  %9211 = vmatprep.subr.bf16.mxu0 %v13449_v57  ;;  %v14422_v57 = vmov 1966171168  }
 0x596   : > { %13097 = vmatprep.subr.bf16.mxu1 %v14409_v54 }
 0x598   : > { %9212 = vmatpush1.bf16.msra.mxu0 %v13447_v45 }
 0x599   : > { %13098 = vmatpush3.bf16.msra.mxu1 %v13420_v6  ;;  %9213 = vmatprep.subr.bf16.mxu0 %v13454_v34 }
 0x59a   : > { %13099 = vmatprep.subr.bf16.mxu1 %v14409_v54 }
 0x59c   : > { %9214 = vmatpush1.bf16.msra.mxu0 %v13452_v58 }
 0x59d   : > { %13100 = vmatpush3.bf16.msra.mxu1 %v13421_v12  ;;  %9215 = vmatprep.subr.bf16.mxu0 %v13459_v7 }
 0x59e   : > { %13101 = vmatprep.subr.bf16.mxu1 %v14409_v54  ;;  %v13469_v54 = vld [vmem:[%s18439_s9 + $0x2a4] ss:$12 sps:$4 sm:$0xff]  }
 0x5a0   : > { %9216 = vmatpush1.bf16.msra.mxu0 %v13457_v21 }
 0x5a1   : > { %13102 = vmatpush3.bf16.msra.mxu1 %v13422_v5  ;;  %9217 = vmatprep.subr.bf16.mxu0 %v13464_v10 }
 0x5a2   : > { %12786 = vmatprep.subr.bf16.mxu1 %v13450_v24 }
 0x5a4   : > { %13104 = vmatmul.mubr.bf16.vlgmr.msra.gmra.mrb[248].mxu1 %v8407_v35  ;;  %v13475_v35 = vld [vmem:[%s18439_s9 + $0x2c0] ss:$12 sps:$4 sm:$0xff]   ;;  %9218 = vmatpush1.bf16.msra.mxu0 %v13462_v8 }
 0x5a5   : > { %12787 = vmatpush3.bf16.msra.mxu1 %v13451_v56  ;;  %9219 = vmatprep.subr.bf16.mxu0 %v13469_v54 }
 0x5a6   : > { %12788 = vmatprep.subr.bf16.mxu1 %v13455_v22 }
 0x5a8   : > { %9220 = vmatpush1.bf16.msra.mxu0 %v13467_v3 }
 0x5a9   : > { %12789 = vmatpush3.bf16.msra.mxu1 %v13456_v51  ;;  %9221 = vmatprep.subr.bf16.mxu0 %v13474_v2 }
 0x5aa   : > { %12790 = vmatprep.subr.bf16.mxu1 %v13460_v62 }
 0x5ac   : > { %9222 = vmatpush1.bf16.msra.mxu0 %v13472_v37  ;;  %v13702_v37 = vld [vmem:[%s18439_s9 + $0x6ac] ss:$12 sps:$4 sm:$0xff]  }
 0x5ad   : > { %12791 = vmatpush3.bf16.msra.mxu1 %v13461_v63  ;;  %9223 = vmatprep.subr.bf16.mxu0 %v13479_v11 }
 0x5ae   : > { %12792 = vmatprep.subr.bf16.mxu1 %v13465_v29 }
 0x5b0   : > { %9224 = vmatpush1.bf16.msra.mxu0 %v13477_v0 }
 0x5b1   : > { %12793 = vmatpush3.bf16.msra.mxu1 %v13466_v55  ;;  %9225 = vmatprep.subr.bf16.mxu0 %v13484_v47 }
 0x5b2   : > { %12794 = vmatprep.subr.bf16.mxu1 %v13470_v46 }
 0x5b4   : > { %9226 = vmatpush1.bf16.msra.mxu0 %v13482_v19 }
 0x5b5   : > { %12795 = vmatpush3.bf16.msra.mxu1 %v13471_v38  ;;  %12808 = vmatprep.subr.bf16.mxu0 %v13490_v1 }
 0x5b6   : > { %12796 = vmatprep.subr.bf16.mxu1 %v13475_v35  ;;  %v8573_v35 = vunpack.c.l.s4 %v14422_v57 }
 0x5b9   : > { %12797 = vmatpush3.bf16.msra.mxu1 %v13476_v41 }
 0x5ba   : > { %12798 = vmatprep.subr.bf16.mxu1 %v13480_v28 }
 0x5bd   : > { %12799 = vmatpush3.bf16.msra.mxu1 %v13481_v32 }
 0x5be   : > { %12800 = vmatprep.subr.bf16.mxu1 %v13485_v50 }
 0x5c1   : > { %12801 = vmatpush3.bf16.msra.mxu1 %v13486_v13 }
 0x5c2   : > { %9532 = vmatprep.subr.bf16.mxu1 %v13489_v48 }
 0x62a   : > { %v12727_v26 = vpop.f32.mrb[248].mxu0 }
 0x62b   : > { %v12728_v33 = vpop.f32.mrb[249].mxu0 }
 0x62c   : > { %v12729_v17 = vadd.f32 %v12728_v33, %v12727_v26  ;;  %v12730_v9 = vpop.f32.mrb[250].mxu0 }
 0x62d   : > { %v12731_v53 = vpop.f32.mrb[251].mxu0 }
 0x62e   : > { %v12732_v18 = vadd.f32 %v12731_v53, %v12730_v9 }
 0x637   : > { %v12705_v39 = vpop.f32.mrb[240].mxu1 }
 0x638   : > { %v12706_v31 = vpop.f32.mrb[241].mxu1 }
 0x639   : > { %v12707_v16 = vadd.f32 %v12706_v31, %v12705_v39  ;;  %v12708_v27 = vpop.f32.mrb[242].mxu1  ;;  %v17829_v39 = vld [vmem:[#allocation5] ss:$2 sm:$0x7]  ;;  %v8574_v31 = vunpack.c.0.s8 %v8573_v35 }
 0x63a   : > { %v12709_v30 = vpop.f32.mrb[243].mxu1  ;;  %v8547_v45 = vpack.c.bf16 %v17829_v39, %v17829_v39  ;;  %v13507_v35 = vld [vmem:[%s18439_s9 + $0x60] ss:$12 sps:$4 sm:$0xff]  }
 0x63b   : > { %v7950_v25 = vadd.f32 %v12729_v17, %v12707_v16  ;;  %v12710_v20 = vadd.f32 %v12709_v30, %v12708_v27  ;;  %v11682_v17 = vld [vmem:[%s18438_s8] ss:$0 sm:$0xff]  ;;  %v17837_v30 = vsub.s32 %v8574_v31, %v17395_v40  ;;  %v13511_v31 = vld [vmem:[%s18439_s9 + $0x68] ss:$12 sps:$4 sm:$0xff]  }
 0x63d   : > { %v7953_v23 = vadd.f32 %v12732_v18, %v12710_v20  ;;  %v8578_v20 = vrot.slane %v8547_v45, %v17837_v30  ;;  %v13515_v45 = vld [vmem:[%s18439_s9 + $0x140] ss:$12 sps:$4 sm:$0xff]  }
 0x63f   : > { %v8586_v50 = vrot.slane %v8578_v20, %v17837_v30 }
 0x641   : > { %v8632_v54 = vshrl.u32 %v8586_v50, 16 }
 0x64a   : > { %v12771_v59 = vpop.f32.mrb[252].mxu0 }
 0x64b   : > { %v12772_v49 = vpop.f32.mrb[253].mxu0 }
 0x64c   : > { %v12773_v6 = vadd.f32 %v12772_v49, %v12771_v59  ;;  %v12774_v12 = vpop.f32.mrb[254].mxu0 }
 0x64d   : > { %v12775_v5 = vpop.f32.mrb[255].mxu0 }
 0x64e   : > { %v12776_v4 = vadd.f32 %v12775_v5, %v12774_v12  ;;  %v8551_v12 = vld [vmem:[#allocation5 + $0x1] ss:$2 sm:$0x7] }
 0x657   : > { %v12749_v44 = vpop.f32.mrb[244].mxu1 }
 0x658   : > { %v12750_v60 = vpop.f32.mrb[245].mxu1 }
 0x659   : > { %v12751_v24 = vadd.f32 %v12750_v60, %v12749_v44  ;;  %v12752_v56 = vpop.f32.mrb[246].mxu1 }
 0x65a   : > { %v12753_v22 = vpop.f32.mrb[247].mxu1 }
 0x65b   : > { %v8165_v14 = vadd.f32 %v12751_v24, %v7950_v25  ;;  %v12754_v51 = vadd.f32 %v12753_v22, %v12752_v56  ;;  %v13487_v24 = vld [vmem:[%s18439_s9] ss:$12 sps:$4 sm:$0xff]   ;;  %v13491_v56 = vld [vmem:[%s18439_s9 + $0x8] ss:$12 sps:$4 sm:$0xff]  }
 0x65d   : > { %v8166_v26 = vadd.f32 %v12754_v51, %v7953_v23  ;;  %v8373_v36 = vadd.f32 %v12773_v6, %v8165_v14  ;;  %v8579_v23 = vcombine.high %v8578_v20, %v8578_v20  ;;  %v13494_v14 = vld [vmem:[%s18439_s9 + $0x1c] ss:$12 sps:$4 sm:$0xff]   ;;  %v13495_v51 = vld [vmem:[%s18439_s9 + $0xe0] ss:$12 sps:$4 sm:$0xff]  }
 0x65f   : > { %v8374_v62 = vadd.f32 %v12776_v4, %v8166_v26  ;;  %v8593_v10 = vrot.slane %v8579_v23, %v17837_v30 }
 0x661   : > { %v8637_v49 = vshll.u32 %v8593_v10, 16  ;;  %v13521_v10 = vld [vmem:[%s18439_s9 + $0x98] ss:$12 sps:$4 sm:$0xff]  }
 0x663   : > { %v8639_v4 = vsel %vm17856_vm11, %v8632_v54, %v8637_v49  ;;  %v13524_v54 = vld [vmem:[%s18439_s9 + $0xac] ss:$12 sps:$4 sm:$0xff]  }
 0x677   : > { %v8491_v33 = vpop.f32.mrb[248].mxu1 }
 0x678   : > { %v8498_v9 = vadd.f32 %v8491_v33, %v8373_v36  ;;  %v13105_v53 = vpop.f32.mrb[249].mxu1  ;;  %v13496_v33 = vld [vmem:[%s18439_s9 + $0x20] ss:$12 sps:$4 sm:$0xff]  }
 0x679   : > { %v8494_v15 = vpop.f32.mrb[250].mxu1 }
 0x67a   : > { %v8507_v63 = vadd.f32 %v11682_v17, %v8498_v9  ;;  %v8499_v18 = vadd.f32 %v8494_v15, %v8374_v62  ;;  %v13106_v42 = vpop.f32.mrb[251].mxu1  ;;  %v13492_v62 = vld [vmem:[%s18439_s9 + $0x18] ss:$12 sps:$4 sm:$0xff]  }
 0x67b   : > { %v13500_v9 = vld [vmem:[%s18439_s9 + $0xf8] ss:$12 sps:$4 sm:$0xff]  }
 0x67c   : > { %v11683_v29 = vmul.f32 -1.442695, %v8507_v63  ;;  %v8508_v61 = vadd.f32 %v11682_v17, %v8499_v18  ;;  %v13499_v17 = vld [vmem:[%s18439_s9 + $0x34] ss:$12 sps:$4 sm:$0xff]   ;;  %v13501_v18 = vld [vmem:[%s18439_s9 + $0x38] ss:$12 sps:$4 sm:$0xff]  }
 0x67d   : > { %v13504_v42 = vld [vmem:[%s18439_s9 + $0x4c] ss:$12 sps:$4 sm:$0xff]  }
 0x67e   : > { %14383 = vpow2.f32 %v11683_v29  ;;  %v11684_v55 = vmul.f32 -1.442695, %v8508_v61  ;;  %v13505_v29 = vld [vmem:[%s18439_s9 + $0x110] ss:$12 sps:$4 sm:$0xff]  }
 0x680   : > { %14385 = vpow2.f32 %v11684_v55 }
 0x688   : > { %v14384_v43 = vpop.eup %14383 }
 0x689   : > { %v8515_v46 = vadd.f32 1.0, %v14384_v43  ;;  %v13502_v43 = vld [vmem:[%s18439_s9 + $0x48] ss:$12 sps:$4 sm:$0xff]  }
 0x68a   : > { %v14386_v52 = vpop.eup %14385 }
 0x68b   : > { %14387 = vrcp.f32 %v8515_v46  ;;  %v8516_v38 = vadd.f32 1.0, %v14386_v52  ;;  %v13506_v46 = vld [vmem:[%s18439_s9 + $0x50] ss:$12 sps:$4 sm:$0xff]  }
 0x68c   : > { %v13509_v52 = vld [vmem:[%s18439_s9 + $0x64] ss:$12 sps:$4 sm:$0xff]  }
 0x68d   : > { %14389 = vrcp.f32 %v8516_v38  ;;  %v13510_v38 = vld [vmem:[%s18439_s9 + $0x128] ss:$12 sps:$4 sm:$0xff]  }
 0x695   : > { %v14388_v16 = vpop.eup %14387 }
 0x696   : > { %v8521_v27 = vmul.f32 %v14388_v16, %v8507_v63  ;;  %v13497_v63 = vld [vmem:[%s18439_s9 + $0x30] ss:$12 sps:$4 sm:$0xff]  }
 0x697   : > { %v14390_v41 = vpop.eup %14389 }
 0x698   : > { %8523 = vst [vmem:[%s499_s15] sm:$0xff] %v8521_v27  ;;  %v8533_v34 = vcombine.high %v8521_v27, %v8521_v27  ;;  %8538 = vst [vmem:[#allocation5 + $0x9] sm:$0xf] %v8521_v27  ;;  %v8522_v28 = vmul.f32 %v14390_v41, %v8508_v61  ;;  %v13514_v27 = vld [vmem:[%s18439_s9 + $0x7c] ss:$12 sps:$4 sm:$0xff]  }
 0x69a   : > { %8539 = vst [vmem:[#allocation5 + $0x11] sm:$0xf] %v8533_v34  ;;  %8524 = vst [vmem:[%s499_s15 + $0x8] sm:$0xff] %v8522_v28  ;;  %v8534_v25 = vcombine.high %v8522_v28, %v8522_v28 }
 0x69b   : > { %8540 = vst [vmem:[#allocation5 + $0x19] sm:$0xf] %v8522_v28  ;;  %v13512_v28 = vld [vmem:[%s18439_s9 + $0x78] ss:$12 sps:$4 sm:$0xff]  }
 0x69c   : > { %8541 = vst [vmem:[#allocation5 + $0x21] sm:$0xf] %v8534_v25  ;;  %v13516_v25 = vld [vmem:[%s18439_s9 + $0x80] ss:$12 sps:$4 sm:$0xff]  }
 0x69f   : > { %v17840_v58 = vld [vmem:[#allocation5 + $0x8] ss:$2 sm:$0x7] }
 0x6a0   : > { %v8562_v53 = vpack.c.bf16 %v17840_v58, %v17840_v58 }
 0x6a1   : > { %v17842_v32 = vld [vmem:[#allocation5 + $0x10] ss:$2 sm:$0x7]  ;;  %v17854_v5 = vld [vmem:[#allocation5 + $0x11] ss:$2 sm:$0x7] }
 0x6a2   : > { %v8561_v7 = vld [vmem:[#allocation5 + $0x18] ss:$2 sm:$0x7]  ;;  %v8548_v21 = vpack.c.bf16 %v17842_v32, %v17842_v32  ;;  %v11691_v47 = vpack.c.bf16 %v17854_v5, %v8551_v12  ;;  %v8657_v61 = vrot.slane %v8562_v53, %v17837_v30  ;;  %v13548_v53 = vld [vmem:[%s18439_s9 + $0x348] ss:$12 sps:$4 sm:$0xff]  }
 0x6a3   : > { %v11692_v13 = vpack.c.bf16 %v8561_v7, %v17840_v58  ;;  %v8563_v36 = vpack.c.bf16 %v8561_v7, %v8561_v7  ;;  %v13519_v58 = vld [vmem:[%s18439_s9 + $0x94] ss:$12 sps:$4 sm:$0xff]   ;;  %v13520_v7 = vld [vmem:[%s18439_s9 + $0x158] ss:$12 sps:$4 sm:$0xff]   ;;  %v13526_v12 = vld [vmem:[%s18439_s9 + $0xb0] ss:$12 sps:$4 sm:$0xff]  }
 0x6a4   : > { %v8600_v8 = vrot.slane %v8548_v21, %v17837_v30  ;;  %v8770_v60 = vrot.slane %v11691_v47, %v17837_v30  ;;  %v8658_v57 = vcombine.high %v8657_v61, %v8657_v61  ;;  %v8665_v20 = vrot.slane %v8657_v61, %v17837_v30  ;;  %v13527_v47 = vld [vmem:[%s18439_s9 + $0xc0] ss:$12 sps:$4 sm:$0xff]   ;;  %v13562_v61 = vld [vmem:[%s18439_s9 + $0x37c] ss:$12 sps:$4 sm:$0xff]  }
 0x6a5   : > { %v8866_v48 = vrot.slane %v11692_v13, %v17837_v30  ;;  %v8679_v15 = vrot.slane %v8563_v36, %v17837_v30  ;;  %v13517_v13 = vld [vmem:[%s18439_s9 + $0x90] ss:$12 sps:$4 sm:$0xff]  }
 0x6a6   : > { %v8601_v59 = vcombine.high %v8600_v8, %v8600_v8  ;;  %v8608_v2 = vrot.slane %v8600_v8, %v17837_v30  ;;  %v8777_v26 = vrot.slane %v8770_v60, %v17837_v30  ;;  %v8672_v41 = vrot.slane %v8658_v57, %v17837_v30  ;;  %v13535_v60 = vld [vmem:[%s18439_s9 + $0xdc] ss:$12 sps:$4 sm:$0xff]  }
 0x6a7   : > { %v8873_v3 = vrot.slane %v8866_v48, %v17837_v30  ;;  %v8680_v55 = vcombine.high %v8679_v15, %v8679_v15  ;;  %v8687_v34 = vrot.slane %v8679_v15, %v17837_v30  ;;  %v8696_v48 = vshrl.u32 %v8665_v20, 16  ;;  %v13539_v36 = vld [vmem:[%s18439_s9 + $0xf0] ss:$12 sps:$4 sm:$0xff]   ;;  %v13583_v20 = vld [vmem:[%s18439_s9 + $0x3e0] ss:$12 sps:$4 sm:$0xff]  }
 0x6a8   : > { %v8615_v6 = vrot.slane %v8601_v59, %v17837_v30  ;;  %v8641_v11 = vshrl.u32 %v8608_v2, 16  ;;  %v8701_v50 = vshll.u32 %v8672_v41, 16  ;;  %v11690_v59 = vpack.c.bf16 %v17842_v32, %v17829_v39  ;;  %v13529_v39 = vld [vmem:[%s18439_s9 + $0xc4] ss:$12 sps:$4 sm:$0xff]   ;;  %v13578_v41 = vld [vmem:[%s18439_s9 + $0x3c8] ss:$12 sps:$4 sm:$0xff]  }
 0x6a9   : > { %9227 = vmatprep.mubr.bf16.mxu0 %v8873_v3  ;;  %9268 = vmatprep.mubr.bf16.mxu1 %v8873_v3  ;;  %v8694_v16 = vrot.slane %v8680_v55, %v17837_v30  ;;  %v8705_v21 = vshrl.u32 %v8687_v34, 16  ;;  %v13525_v3 = vld [vmem:[%s18439_s9 + $0x170] ss:$12 sps:$4 sm:$0xff]   ;;  %v13557_v55 = vld [vmem:[%s18439_s9 + $0x138] ss:$12 sps:$4 sm:$0xff]  }
 0x6aa   : > { %v8646_v0 = vshll.u32 %v8615_v6, 16  ;;  %v8703_v2 = vsel %vm17856_vm11, %v8696_v48, %v8701_v50  ;;  %v13522_v6 = vld [vmem:[%s18439_s9 + $0xa8] ss:$12 sps:$4 sm:$0xff]   ;;  %v13553_v15 = vld [vmem:[%s18439_s9 + $0x124] ss:$12 sps:$4 sm:$0xff]  }
 0x6ab   : > { %v8710_v23 = vshll.u32 %v8694_v16, 16  ;;  %v13566_v57 = vld [vmem:[%s18439_s9 + $0x390] ss:$12 sps:$4 sm:$0xff]   ;;  %v13569_v16 = vld [vmem:[%s18439_s9 + $0x168] ss:$12 sps:$4 sm:$0xff]  }
 0x6ac   : > { %v17865_v19 = vsel %vm17856_vm11, %v8641_v11, %v8646_v0  ;;  %v13532_v11 = vld [vmem:[%s18439_s9 + $0x304] ss:$12 sps:$4 sm:$0xff]   ;;  %v13575_v34 = vld [vmem:[%s18439_s9 + $0x3c0] ss:$12 sps:$4 sm:$0xff]  }
 0x6ad   : > { %v8843_v1 = vcombine.low %v8639_v4, %v17865_v19  ;;  %v8712_v8 = vsel %vm17856_vm11, %v8705_v21, %v8710_v23  ;;  %v8752_v4 = vrot.slane %v11690_v59, %v17837_v30  ;;  %v13580_v23 = vld [vmem:[%s18439_s9 + $0x3d8] ss:$12 sps:$4 sm:$0xff]   ;;  %v13585_v21 = vld [vmem:[%s18439_s9 + $0x3f0] ss:$12 sps:$4 sm:$0xff]   ;;  %v13598_v59 = vld [vmem:[%s18439_s9 + $0x428] ss:$12 sps:$4 sm:$0xff]  }
 0x6ae   : > { %v9631_v49 = vcombine.low %v8703_v2, %v8712_v8  ;;  %v13588_v50 = vld [vmem:[%s18439_s9 + $0x3f8] ss:$12 sps:$4 sm:$0xff]   ;;  %v13593_v48 = vld [vmem:[%s18439_s9 + $0x410] ss:$12 sps:$4 sm:$0xff]   ;;  %v13590_v8 = vld [vmem:[%s18439_s9 + $0x408] ss:$12 sps:$4 sm:$0xff]  }
 0x6af   : > { %v8850_v44 = vrot.slane %v8843_v1, %v17837_v30  ;;  %v13530_v1 = vld [vmem:[%s18439_s9 + $0x300] ss:$12 sps:$4 sm:$0xff]  }
 0x6b0   : > { %v9638_v0 = vrot.slane %v9631_v49, %v17837_v30  ;;  %v13595_v2 = vld [vmem:[%s18439_s9 + $0x420] ss:$12 sps:$4 sm:$0xff]   ;;  %v13599_v49 = vld [vmem:[%s18439_s9 + $0x368] ss:$12 sps:$4 sm:$0xff]  }
 0x6b1   : > { %v8857_v22 = vrot.slane %v8850_v44, %v17837_v30  ;;  %v17991_v44 = vrot.slane %v8752_v4, %v17837_v30  ;;  %v13604_v4 = vld [vmem:[%s18439_s9 + $0x380] ss:$12 sps:$4 sm:$0xff]  }
 0x6b3   : > { %9228 = vmatmul.mubr.bf16.vlgmr.msra.gmra.mrb[0].mxu0 %v8857_v22  ;;  %9269 = vmatmul.mubr.bf16.vlgmr.msra.gmra.mrb[252].mxu1 %v8857_v22  ;;  %v13533_v22 = vld [vmem:[%s18439_s9 + $0xd8] ss:$12 sps:$4 sm:$0xff]  }
 0x6b4   : > { %9533 = vmatpush1.bf16.msra.mxu1 %v13487_v24  ;;  %12809 = vmatpush3.bf16.msra.mxu0 %v13491_v56  ;;  %v13538_v24 = vld [vmem:[%s18439_s9 + $0x31c] ss:$12 sps:$4 sm:$0xff]   ;;  %v18001_v56 = vrot.slane %v9638_v0, %v17837_v30  ;;  %v13608_v0 = vld [vmem:[%s18439_s9 + $0x458] ss:$12 sps:$4 sm:$0xff]  }
 0x6b5   : > { %9564 = vmatprep.mubr.bf16.mxu1 %v8777_v26  ;;  %9605 = vmatprep.mubr.bf16.mxu0 %v8777_v26  ;;  %v13544_v26 = vld [vmem:[%s18439_s9 + $0x334] ss:$12 sps:$4 sm:$0xff]  }
 0x6b6   : > { %9534 = vmatprep.subr.bf16.mxu1 %v13494_v14  ;;  %12810 = vmatprep.subr.bf16.mxu0 %v13495_v51  ;;  %v13536_v14 = vld [vmem:[%s18439_s9 + $0x318] ss:$12 sps:$4 sm:$0xff]   ;;  %v13541_v51 = vld [vmem:[%s18439_s9 + $0xf4] ss:$12 sps:$4 sm:$0xff]  }
 0x6b8   : > { %9535 = vmatpush1.bf16.msra.mxu1 %v13492_v62  ;;  %12811 = vmatpush3.bf16.msra.mxu0 %v13496_v33  ;;  %v13542_v62 = vld [vmem:[%s18439_s9 + $0x330] ss:$12 sps:$4 sm:$0xff]   ;;  %v13547_v33 = vld [vmem:[%s18439_s9 + $0x10c] ss:$12 sps:$4 sm:$0xff]  }
 0x6b9   : > { %9536 = vmatprep.subr.bf16.mxu1 %v13499_v17  ;;  %12812 = vmatprep.subr.bf16.mxu0 %v13500_v9  ;;  %v13550_v17 = vld [vmem:[%s18439_s9 + $0x34c] ss:$12 sps:$4 sm:$0xff]   ;;  %v13545_v9 = vld [vmem:[%s18439_s9 + $0x108] ss:$12 sps:$4 sm:$0xff]  }
 0x6bc   : > { %9537 = vmatpush1.bf16.msra.mxu1 %v13497_v63  ;;  %12813 = vmatpush3.bf16.msra.mxu0 %v13501_v18  ;;  %v13556_v63 = vld [vmem:[%s18439_s9 + $0x364] ss:$12 sps:$4 sm:$0xff]   ;;  %v13551_v18 = vld [vmem:[%s18439_s9 + $0x120] ss:$12 sps:$4 sm:$0xff]  }
 0x6bd   : > { %9538 = vmatprep.subr.bf16.mxu1 %v13504_v42  ;;  %12814 = vmatprep.subr.bf16.mxu0 %v13505_v29  ;;  %v13554_v42 = vld [vmem:[%s18439_s9 + $0x360] ss:$12 sps:$4 sm:$0xff]   ;;  %v13559_v29 = vld [vmem:[%s18439_s9 + $0x13c] ss:$12 sps:$4 sm:$0xff]  }
 0x6c0   : > { %9539 = vmatpush1.bf16.msra.mxu1 %v13502_v43  ;;  %12815 = vmatpush3.bf16.msra.mxu0 %v13506_v46  ;;  %v13560_v43 = vld [vmem:[%s18439_s9 + $0x378] ss:$12 sps:$4 sm:$0xff]   ;;  %v13565_v46 = vld [vmem:[%s18439_s9 + $0x154] ss:$12 sps:$4 sm:$0xff]  }
 0x6c1   : > { %9540 = vmatprep.subr.bf16.mxu1 %v13509_v52  ;;  %12816 = vmatprep.subr.bf16.mxu0 %v13510_v38  ;;  %v13568_v52 = vld [vmem:[%s18439_s9 + $0x394] ss:$12 sps:$4 sm:$0xff]   ;;  %v13563_v38 = vld [vmem:[%s18439_s9 + $0x150] ss:$12 sps:$4 sm:$0xff]  }
 0x6c4   : > { %9541 = vmatpush1.bf16.msra.mxu1 %v13507_v35  ;;  %12817 = vmatpush3.bf16.msra.mxu0 %v13511_v31  ;;  %v13571_v35 = vld [vmem:[%s18439_s9 + $0x16c] ss:$12 sps:$4 sm:$0xff]  }
 0x6c5   : > { %9542 = vmatprep.subr.bf16.mxu1 %v13514_v27  ;;  %12818 = vmatprep.subr.bf16.mxu0 %v13515_v45  ;;  %v13574_v31 = vld [vmem:[%s18439_s9 + $0x3ac] ss:$12 sps:$4 sm:$0xff]   ;;  %v13572_v27 = vld [vmem:[%s18439_s9 + $0x3a8] ss:$12 sps:$4 sm:$0xff]   ;;  %v13577_v45 = vld [vmem:[%s18439_s9 + $0x3c4] ss:$12 sps:$4 sm:$0xff]  }
 0x6c8   : > { %9543 = vmatpush1.bf16.msra.mxu1 %v13512_v28  ;;  %12819 = vmatpush3.bf16.msra.mxu0 %v13516_v25  ;;  %v13579_v28 = vld [vmem:[%s18439_s9 + $0x308] ss:$12 sps:$4 sm:$0xff]  }
 0x6c9   : > { %9544 = vmatprep.subr.bf16.mxu1 %v13519_v58  ;;  %12820 = vmatprep.subr.bf16.mxu0 %v13520_v7  ;;  %v13582_v25 = vld [vmem:[%s18439_s9 + $0x3dc] ss:$12 sps:$4 sm:$0xff]   ;;  %v13584_v58 = vld [vmem:[%s18439_s9 + $0x320] ss:$12 sps:$4 sm:$0xff]  }
 0x6ca   : > { %v13587_v7 = vld [vmem:[%s18439_s9 + $0x3f4] ss:$12 sps:$4 sm:$0xff]  }
 0x6cc   : > { %9545 = vmatpush1.bf16.msra.mxu1 %v13517_v13  ;;  %12821 = vmatpush3.bf16.msra.mxu0 %v13521_v10  ;;  %v13589_v13 = vld [vmem:[%s18439_s9 + $0x338] ss:$12 sps:$4 sm:$0xff]  }
 0x6cd   : > { %9546 = vmatprep.subr.bf16.mxu1 %v13524_v54  ;;  %12822 = vmatprep.subr.bf16.mxu0 %v13525_v3  ;;  %v13592_v10 = vld [vmem:[%s18439_s9 + $0x40c] ss:$12 sps:$4 sm:$0xff]   ;;  %v13594_v54 = vld [vmem:[%s18439_s9 + $0x350] ss:$12 sps:$4 sm:$0xff]  }
 0x6ce   : > { %v13597_v3 = vld [vmem:[%s18439_s9 + $0x424] ss:$12 sps:$4 sm:$0xff]  }
 0x6d0   : > { %9547 = vmatpush1.bf16.msra.mxu1 %v13522_v6  ;;  %12823 = vmatpush3.bf16.msra.mxu0 %v13526_v12  ;;  %v13602_v6 = vld [vmem:[%s18439_s9 + $0x43c] ss:$12 sps:$4 sm:$0xff]   ;;  %v13603_v12 = vld [vmem:[%s18439_s9 + $0x440] ss:$12 sps:$4 sm:$0xff]  }
 0x6d1   : > { %9548 = vmatprep.subr.bf16.mxu1 %v13529_v39  ;;  %9967 = vmatprep.subr.bf16.mxu0 %v13532_v11  ;;  %v13600_v39 = vld [vmem:[%s18439_s9 + $0x438] ss:$12 sps:$4 sm:$0xff]   ;;  %v13607_v11 = vld [vmem:[%s18439_s9 + $0x454] ss:$12 sps:$4 sm:$0xff]  }
 0x6d3   : > { %9606 = vmatmul.mubr.bf16.vlgmr.msra.gmra.mrb[4].mxu0 %v17991_v44 }
 0x6d4   : > { %9549 = vmatpush1.bf16.msra.mxu1 %v13527_v47  ;;  %9968 = vmatpush1.bf16.msra.mxu0 %v13530_v1  ;;  %v8567_v47 = vld [vmem:[#allocation5 + $0x19] ss:$2 sm:$0x7] }
 0x6d5   : > { %9999 = vmatprep.mubr.bf16.mxu0 %v18001_v56  ;;  %9550 = vmatprep.subr.bf16.mxu1 %v13535_v60  ;;  %v13605_v1 = vld [vmem:[%s18439_s9 + $0x450] ss:$12 sps:$4 sm:$0xff]   ;;  %v13609_v60 = vld [vmem:[%s18439_s9 + $0x398] ss:$12 sps:$4 sm:$0xff]  }
 0x6d6   : > { %9969 = vmatprep.subr.bf16.mxu0 %v13538_v24  ;;  %v8565_v24 = vld [vmem:[#allocation5 + $0x9] ss:$2 sm:$0x7] }
 0x6d8   : > { %9551 = vmatpush1.bf16.msra.mxu1 %v13533_v22  ;;  %9970 = vmatpush1.bf16.msra.mxu0 %v13536_v14  ;;  %v13613_v22 = vld [vmem:[%s18439_s9 + $0x470] ss:$12 sps:$4 sm:$0xff]   ;;  %v11789_v14 = vpack.c.bf16 %v8567_v47, %v8565_v24  ;;  %v13669_v47 = vld [vmem:[%s18439_s9 + $0x574] ss:$12 sps:$4 sm:$0xff]  }
 0x6d9   : > { %9552 = vmatprep.subr.bf16.mxu1 %v13541_v51  ;;  %9971 = vmatprep.subr.bf16.mxu0 %v13544_v26  ;;  %v13610_v26 = vld [vmem:[%s18439_s9 + $0x468] ss:$12 sps:$4 sm:$0xff]   ;;  %v13667_v24 = vld [vmem:[%s18439_s9 + $0x570] ss:$12 sps:$4 sm:$0xff]  }
 0x6dc   : > { %9553 = vmatpush1.bf16.msra.mxu1 %v13539_v36  ;;  %9972 = vmatpush1.bf16.msra.mxu0 %v13542_v62  ;;  %v13614_v36 = vld [vmem:[%s18439_s9 + $0x3b0] ss:$12 sps:$4 sm:$0xff]   ;;  %v9622_v62 = vrot.slane %v11789_v14, %v17837_v30  ;;  %v13678_v14 = vld [vmem:[%s18439_s9 + $0x64c] ss:$12 sps:$4 sm:$0xff]  }
 0x6dd   : > { %9554 = vmatprep.subr.bf16.mxu1 %v13547_v33  ;;  %9973 = vmatprep.subr.bf16.mxu0 %v13550_v17  ;;  %v13617_v33 = vld [vmem:[%s18439_s9 + $0x484] ss:$12 sps:$4 sm:$0xff]  }
 0x6e0   : > { %9555 = vmatpush1.bf16.msra.mxu1 %v13545_v9  ;;  %9974 = vmatpush1.bf16.msra.mxu0 %v13548_v53  ;;  %v13615_v9 = vld [vmem:[%s18439_s9 + $0x480] ss:$12 sps:$4 sm:$0xff]   ;;  %v9629_v53 = vrot.slane %v9622_v62, %v17837_v30  ;;  %v13681_v62 = vld [vmem:[%s18439_s9 + $0x5a4] ss:$12 sps:$4 sm:$0xff]  }
 0x6e1   : > { %9556 = vmatprep.subr.bf16.mxu1 %v13553_v15  ;;  %9975 = vmatprep.subr.bf16.mxu0 %v13556_v63  ;;  %v13619_v15 = vld [vmem:[%s18439_s9 + $0x488] ss:$12 sps:$4 sm:$0xff]  }
 0x6e4   : > { %9557 = vmatpush1.bf16.msra.mxu1 %v13551_v18  ;;  %9976 = vmatpush1.bf16.msra.mxu0 %v13554_v42  ;;  %v13622_v18 = vld [vmem:[%s18439_s9 + $0x49c] ss:$12 sps:$4 sm:$0xff]   ;;  %v13623_v42 = vld [vmem:[%s18439_s9 + $0x560] ss:$12 sps:$4 sm:$0xff]  }
 0x6e5   : > { %9558 = vmatprep.subr.bf16.mxu1 %v13559_v29  ;;  %9977 = vmatprep.subr.bf16.mxu0 %v13562_v61  ;;  %v13620_v29 = vld [vmem:[%s18439_s9 + $0x498] ss:$12 sps:$4 sm:$0xff]   ;;  %v13624_v61 = vld [vmem:[%s18439_s9 + $0x4a0] ss:$12 sps:$4 sm:$0xff]  }
 0x6e8   : > { %9559 = vmatpush1.bf16.msra.mxu1 %v13557_v55  ;;  %9978 = vmatpush1.bf16.msra.mxu0 %v13560_v43  ;;  %v13627_v55 = vld [vmem:[%s18439_s9 + $0x4b4] ss:$12 sps:$4 sm:$0xff]   ;;  %v13628_v43 = vld [vmem:[%s18439_s9 + $0x578] ss:$12 sps:$4 sm:$0xff]  }
 0x6e9   : > { %9560 = vmatprep.subr.bf16.mxu1 %v13565_v46  ;;  %9979 = vmatprep.subr.bf16.mxu0 %v13568_v52  ;;  %v13625_v46 = vld [vmem:[%s18439_s9 + $0x4b0] ss:$12 sps:$4 sm:$0xff]   ;;  %v13629_v52 = vld [vmem:[%s18439_s9 + $0x4b8] ss:$12 sps:$4 sm:$0xff]  }
 0x6ec   : > { %9561 = vmatpush1.bf16.msra.mxu1 %v13563_v38  ;;  %9980 = vmatpush1.bf16.msra.mxu0 %v13566_v57  ;;  %v13632_v38 = vld [vmem:[%s18439_s9 + $0x4cc] ss:$12 sps:$4 sm:$0xff]   ;;  %v13633_v57 = vld [vmem:[%s18439_s9 + $0x590] ss:$12 sps:$4 sm:$0xff]  }
 0x6ed   : > { %9562 = vmatprep.subr.bf16.mxu1 %v13571_v35  ;;  %9981 = vmatprep.subr.bf16.mxu0 %v13574_v31  ;;  %v13630_v35 = vld [vmem:[%s18439_s9 + $0x4c8] ss:$12 sps:$4 sm:$0xff]   ;;  %v13634_v31 = vld [vmem:[%s18439_s9 + $0x4d0] ss:$12 sps:$4 sm:$0xff]  }
 0x6f0   : > { %9563 = vmatpush1.bf16.msra.mxu1 %v13569_v16  ;;  %9982 = vmatpush1.bf16.msra.mxu0 %v13572_v27  ;;  %v13637_v16 = vld [vmem:[%s18439_s9 + $0x4e4] ss:$12 sps:$4 sm:$0xff]   ;;  %v13638_v27 = vld [vmem:[%s18439_s9 + $0x5a8] ss:$12 sps:$4 sm:$0xff]  }
 0x6f1   : > { %9983 = vmatprep.subr.bf16.mxu0 %v13577_v45  ;;  %12830 = vmatprep.subr.bf16.mxu1 %v13578_v41  ;;  %v13635_v45 = vld [vmem:[%s18439_s9 + $0x4e0] ss:$12 sps:$4 sm:$0xff]   ;;  %v13639_v41 = vld [vmem:[%s18439_s9 + $0x4e8] ss:$12 sps:$4 sm:$0xff]  }
 0x6f3   : > { %9565 = vmatmul.mubr.bf16.vlgmr.msra.gmra.mrb[0].mxu1 %v17991_v44  ;;  %v8555_v44 = vld [vmem:[#allocation5 + $0x21] ss:$2 sm:$0x7] }
 0x6f4   : > { %9984 = vmatpush1.bf16.msra.mxu0 %v13575_v34  ;;  %12831 = vmatpush3.bf16.msra.mxu1 %v13579_v28  ;;  %v11839_v51 = vpack.c.bf16 %v8555_v44, %v17854_v5  ;;  %v13618_v5 = vld [vmem:[%s18439_s9 + $0x548] ss:$12 sps:$4 sm:$0xff]   ;;  %v13643_v28 = vld [vmem:[%s18439_s9 + $0x5c0] ss:$12 sps:$4 sm:$0xff]   ;;  %v14423_v44 = vmov 0  }
 0x6f5   : > { %10040 = vmatprep.mubr.bf16.mxu1 %v18001_v56  ;;  %9985 = vmatprep.subr.bf16.mxu0 %v13582_v25  ;;  %v13612_v56 = vld [vmem:[%s18439_s9 + $0x46c] ss:$12 sps:$4 sm:$0xff]   ;;  %v13642_v34 = vld [vmem:[%s18439_s9 + $0x4fc] ss:$12 sps:$4 sm:$0xff]  }
 0x6f6   : > { %12832 = vmatprep.subr.bf16.mxu1 %v13583_v20  ;;  %v10075_v17 = vrot.slane %v11839_v51, %v17837_v30  ;;  %v13640_v25 = vld [vmem:[%s18439_s9 + $0x4f8] ss:$12 sps:$4 sm:$0xff]   ;;  %v13644_v20 = vld [vmem:[%s18439_s9 + $0x500] ss:$12 sps:$4 sm:$0xff]  }
 0x6f8   : > { %9986 = vmatpush1.bf16.msra.mxu0 %v13580_v23  ;;  %12833 = vmatpush3.bf16.msra.mxu1 %v13584_v58  ;;  %v10082_v63 = vrot.slane %v10075_v17, %v17837_v30  ;;  %v13647_v23 = vld [vmem:[%s18439_s9 + $0x514] ss:$12 sps:$4 sm:$0xff]   ;;  %v13648_v58 = vld [vmem:[%s18439_s9 + $0x5d8] ss:$12 sps:$4 sm:$0xff]  }
 0x6f9   : > { %9987 = vmatprep.subr.bf16.mxu0 %v13587_v7  ;;  %12834 = vmatprep.subr.bf16.mxu1 %v13588_v50  ;;  %v8546_v7 = vld [vmem:[#allocation5 + $0x20] ss:$2 sm:$0x7]  ;;  %v13645_v50 = vld [vmem:[%s18439_s9 + $0x510] ss:$12 sps:$4 sm:$0xff]  }
 0x6fa   : > { %v13679_v17 = vld [vmem:[%s18439_s9 + $0x5a0] ss:$12 sps:$4 sm:$0xff]  }
 0x6fc   : > { %9988 = vmatpush1.bf16.msra.mxu0 %v13585_v21  ;;  %12835 = vmatpush3.bf16.msra.mxu1 %v13589_v13  ;;  %v13649_v21 = vld [vmem:[%s18439_s9 + $0x518] ss:$12 sps:$4 sm:$0xff]  }
 0x6fd   : > { %9989 = vmatprep.subr.bf16.mxu0 %v13592_v10  ;;  %12836 = vmatprep.subr.bf16.mxu1 %v13593_v48  ;;  %v13652_v13 = vld [vmem:[%s18439_s9 + $0x52c] ss:$12 sps:$4 sm:$0xff]   ;;  %v13653_v10 = vld [vmem:[%s18439_s9 + $0x5f0] ss:$12 sps:$4 sm:$0xff]   ;;  %v11838_v48 = vpack.c.bf16 %v8546_v7, %v17842_v32 }
 0x6fe   : > { %v13660_v32 = vld [vmem:[%s18439_s9 + $0x604] ss:$12 sps:$4 sm:$0xff]  }
 0x700   : > { %9990 = vmatpush1.bf16.msra.mxu0 %v13590_v8  ;;  %12837 = vmatpush3.bf16.msra.mxu1 %v13594_v54  ;;  %v13650_v8 = vld [vmem:[%s18439_s9 + $0x528] ss:$12 sps:$4 sm:$0xff]   ;;  %v13654_v54 = vld [vmem:[%s18439_s9 + $0x530] ss:$12 sps:$4 sm:$0xff]  }
 0x701   : > { %9991 = vmatprep.subr.bf16.mxu0 %v13597_v3  ;;  %12838 = vmatprep.subr.bf16.mxu1 %v13598_v59  ;;  %v13657_v3 = vld [vmem:[%s18439_s9 + $0x544] ss:$12 sps:$4 sm:$0xff]   ;;  %v10058_v59 = vrot.slane %v11838_v48, %v17837_v30 }
 0x704   : > { %9992 = vmatpush1.bf16.msra.mxu0 %v13595_v2  ;;  %12839 = vmatpush3.bf16.msra.mxu1 %v13599_v49  ;;  %v13655_v2 = vld [vmem:[%s18439_s9 + $0x540] ss:$12 sps:$4 sm:$0xff]  }
 0x705   : > { %9993 = vmatprep.subr.bf16.mxu0 %v13602_v6  ;;  %12840 = vmatprep.subr.bf16.mxu1 %v13603_v12  ;;  %v13658_v49 = vld [vmem:[%s18439_s9 + $0x600] ss:$12 sps:$4 sm:$0xff]   ;;  %v13663_v6 = vld [vmem:[%s18439_s9 + $0x55c] ss:$12 sps:$4 sm:$0xff]   ;;  %v18299_v12 = vrot.slane %v10058_v59, %v17837_v30 }
 0x708   : > { %9994 = vmatpush1.bf16.msra.mxu0 %v13600_v39  ;;  %12841 = vmatpush3.bf16.msra.mxu1 %v13604_v4  ;;  %v13666_v39 = vld [vmem:[%s18439_s9 + $0x61c] ss:$12 sps:$4 sm:$0xff]   ;;  %v8549_v4 = vpack.c.bf16 %v8546_v7, %v8546_v7 }
 0x709   : > { %9995 = vmatprep.subr.bf16.mxu0 %v13607_v11  ;;  %12842 = vmatprep.subr.bf16.mxu1 %v13608_v0  ;;  %v13661_v11 = vld [vmem:[%s18439_s9 + $0x558] ss:$12 sps:$4 sm:$0xff]  }
 0x70a   : > { %v13664_v0 = vld [vmem:[%s18439_s9 + $0x618] ss:$12 sps:$4 sm:$0xff]  }
 0x70c   : > { %9996 = vmatpush1.bf16.msra.mxu0 %v13605_v1  ;;  %12843 = vmatpush3.bf16.msra.mxu1 %v13609_v60  ;;  %v13672_v1 = vld [vmem:[%s18439_s9 + $0x634] ss:$12 sps:$4 sm:$0xff]   ;;  %v8720_v60 = vrot.slane %v8549_v4, %v17837_v30 }
 0x70d   : > { %9997 = vmatprep.subr.bf16.mxu0 %v13612_v56  ;;  %12844 = vmatprep.subr.bf16.mxu1 %v13613_v22  ;;  %v13670_v56 = vld [vmem:[%s18439_s9 + $0x630] ss:$12 sps:$4 sm:$0xff]   ;;  %v13675_v22 = vld [vmem:[%s18439_s9 + $0x58c] ss:$12 sps:$4 sm:$0xff]  }
 0x70e   : > { %v8721_v51 = vcombine.high %v8720_v60, %v8720_v60 }
 0x710   : > { %9998 = vmatpush1.bf16.msra.mxu0 %v13610_v26  ;;  %12845 = vmatpush3.bf16.msra.mxu1 %v13614_v36  ;;  %v13673_v26 = vld [vmem:[%s18439_s9 + $0x588] ss:$12 sps:$4 sm:$0xff]  }
 0x711   : > { %10404 = vmatprep.subr.bf16.mxu1 %v13617_v33  ;;  %12852 = vmatprep.subr.bf16.mxu0 %v13618_v5  ;;  %v13676_v36 = vld [vmem:[%s18439_s9 + $0x648] ss:$12 sps:$4 sm:$0xff]   ;;  %v13684_v33 = vld [vmem:[%s18439_s9 + $0x664] ss:$12 sps:$4 sm:$0xff]   ;;  %v8735_v5 = vrot.slane %v8721_v51, %v17837_v30 }
 0x713   : > { %10000 = vmatmul.mubr.bf16.vlgmr.msra.gmra.mrb[8].mxu0 %v9629_v53  ;;  %10041 = vmatmul.mubr.bf16.vlgmr.msra.gmra.mrb[4].mxu1 %v9629_v53  ;;  %v13687_v53 = vld [vmem:[%s18439_s9 + $0x5bc] ss:$12 sps:$4 sm:$0xff]  }
 0x714   : > { %10405 = vmatpush1.bf16.msra.mxu1 %v13615_v9  ;;  %10436 = vmatprep.mubr.bf16.mxu1 %v10082_v63  ;;  %v13682_v9 = vld [vmem:[%s18439_s9 + $0x660] ss:$12 sps:$4 sm:$0xff]  }
 0x715   : > { %12853 = vmatpush3.bf16.msra.mxu0 %v13619_v15  ;;  %10477 = vmatprep.mubr.bf16.mxu0 %v10082_v63  ;;  %v8728_v15 = vrot.slane %v8720_v60, %v17837_v30  ;;  %v13690_v63 = vld [vmem:[%s18439_s9 + $0x67c] ss:$12 sps:$4 sm:$0xff]  }
 0x716   : > { %10406 = vmatprep.subr.bf16.mxu1 %v13622_v18  ;;  %12854 = vmatprep.subr.bf16.mxu0 %v13623_v42  ;;  %v8742_v18 = vshll.u32 %v8735_v5, 16  ;;  %v13685_v42 = vld [vmem:[%s18439_s9 + $0x5b8] ss:$12 sps:$4 sm:$0xff]  }
 0x718   : > { %10407 = vmatpush1.bf16.msra.mxu1 %v13620_v29  ;;  %v13688_v29 = vld [vmem:[%s18439_s9 + $0x678] ss:$12 sps:$4 sm:$0xff]  }
 0x719   : > { %12855 = vmatpush3.bf16.msra.mxu0 %v13624_v61  ;;  %10408 = vmatprep.subr.bf16.mxu1 %v13627_v55  ;;  %v13693_v61 = vld [vmem:[%s18439_s9 + $0x5d4] ss:$12 sps:$4 sm:$0xff]   ;;  %v8737_v55 = vshrl.u32 %v8728_v15, 16 }
 0x71a   : > { %12856 = vmatprep.subr.bf16.mxu0 %v13628_v43  ;;  %v13696_v43 = vld [vmem:[%s18439_s9 + $0x694] ss:$12 sps:$4 sm:$0xff]  }
 0x71c   : > { %10409 = vmatpush1.bf16.msra.mxu1 %v13625_v46  ;;  %v8744_v46 = vsel %vm17856_vm11, %v8737_v55, %v8742_v18 }
 0x71d   : > { %12857 = vmatpush3.bf16.msra.mxu0 %v13629_v52  ;;  %10410 = vmatprep.subr.bf16.mxu1 %v13632_v38  ;;  %v13691_v52 = vld [vmem:[%s18439_s9 + $0x5d0] ss:$12 sps:$4 sm:$0xff]  }
 0x71e   : > { %12858 = vmatprep.subr.bf16.mxu0 %v13633_v57  ;;  %v13694_v38 = vld [vmem:[%s18439_s9 + $0x690] ss:$12 sps:$4 sm:$0xff]   ;;  %v13699_v57 = vld [vmem:[%s18439_s9 + $0x5ec] ss:$12 sps:$4 sm:$0xff]  }
 0x720   : > { %10411 = vmatpush1.bf16.msra.mxu1 %v13630_v35  ;;  %v10520_v35 = vcombine.low %v17865_v19, %v8744_v46  ;;  %v14410_v19 = vld [vmem:[#allocation2] sm:$0xff] }
 0x721   : > { %12859 = vmatpush3.bf16.msra.mxu0 %v13634_v31  ;;  %10412 = vmatprep.subr.bf16.mxu1 %v13637_v16  ;;  %v13697_v31 = vld [vmem:[%s18439_s9 + $0x5e8] ss:$12 sps:$4 sm:$0xff]  }
 0x722   : > { %12860 = vmatprep.subr.bf16.mxu0 %v13638_v27  ;;  %v13700_v16 = vld [vmem:[%s18439_s9 + $0x6a8] ss:$12 sps:$4 sm:$0xff]   ;;  %v10527_v27 = vrot.slane %v10520_v35, %v17837_v30 }
 0x724   : > { %10413 = vmatpush1.bf16.msra.mxu1 %v13635_v45  ;;  %v13703_v45 = vld [vmem:[%s18439_s9 + $0x608] ss:$12 sps:$4 sm:$0xff]  }
 0x725   : > { %12861 = vmatpush3.bf16.msra.mxu0 %v13639_v41  ;;  %10414 = vmatprep.subr.bf16.mxu1 %v13642_v34  ;;  %v10534_v41 = vrot.slane %v10527_v27, %v17837_v30  ;;  %v13704_v34 = vld [vmem:[%s18439_s9 + $0x620] ss:$12 sps:$4 sm:$0xff]   ;;  %v13706_v30 = vld [vmem:[%s18439_s9 + $0x650] ss:$12 sps:$4 sm:$0xff]  }
 0x726   : > { %12862 = vmatprep.subr.bf16.mxu0 %v13643_v28  ;;  %v13705_v28 = vld [vmem:[%s18439_s9 + $0x638] ss:$12 sps:$4 sm:$0xff]  }
 0x728   : > { %10415 = vmatpush1.bf16.msra.mxu1 %v13640_v25  ;;  %v13707_v25 = vld [vmem:[%s18439_s9 + $0x668] ss:$12 sps:$4 sm:$0xff]  }
 0x729   : > { %12863 = vmatpush3.bf16.msra.mxu0 %v13644_v20  ;;  %10416 = vmatprep.subr.bf16.mxu1 %v13647_v23  ;;  %v13708_v20 = vld [vmem:[%s18439_s9 + $0x680] ss:$12 sps:$4 sm:$0xff]   ;;  %v13709_v23 = vld [vmem:[%s18439_s9 + $0x698] ss:$12 sps:$4 sm:$0xff]  }
 0x72a   : > { %12864 = vmatprep.subr.bf16.mxu0 %v13648_v58  ;;  %v13710_v58 = vld [vmem:[%s18439_s9 + $0x6b0] ss:$12 sps:$4 sm:$0xff]  }
 0x72c   : > { %10417 = vmatpush1.bf16.msra.mxu1 %v13645_v50 }
 0x72d   : > { %12865 = vmatpush3.bf16.msra.mxu0 %v13649_v21  ;;  %10418 = vmatprep.subr.bf16.mxu1 %v13652_v13 }
 0x72e   : > { %12866 = vmatprep.subr.bf16.mxu0 %v13653_v10 }
 0x730   : > { %10419 = vmatpush1.bf16.msra.mxu1 %v13650_v8 }
 0x731   : > { %12867 = vmatpush3.bf16.msra.mxu0 %v13654_v54  ;;  %10420 = vmatprep.subr.bf16.mxu1 %v13657_v3 }
 0x732   : > { %10664 = vmatprep.subr.bf16.mxu0 %v13660_v32 }
 0x734   : > { %10478 = vmatmul.mubr.bf16.vlgmr.msra.gmra.mrb[12].mxu0 %v18299_v12  ;;  %10421 = vmatpush1.bf16.msra.mxu1 %v13655_v2 }
 0x735   : > { %10665 = vmatpush1.bf16.msra.mxu0 %v13658_v49  ;;  %10422 = vmatprep.subr.bf16.mxu1 %v13663_v6 }
 0x736   : > { %10666 = vmatprep.subr.bf16.mxu0 %v13666_v39  ;;  %10696 = vmatprep.mubr.bf16.mxu0 %v14423_v44 }
 0x738   : > { %10423 = vmatpush1.bf16.msra.mxu1 %v13661_v11 }
 0x739   : > { %10667 = vmatpush1.bf16.msra.mxu0 %v13664_v0  ;;  %10424 = vmatprep.subr.bf16.mxu1 %v13669_v47 }
 0x73a   : > { %10668 = vmatprep.subr.bf16.mxu0 %v13672_v1 }
 0x73c   : > { %10425 = vmatpush1.bf16.msra.mxu1 %v13667_v24 }
 0x73d   : > { %10669 = vmatpush1.bf16.msra.mxu0 %v13670_v56  ;;  %10426 = vmatprep.subr.bf16.mxu1 %v13675_v22 }
 0x73e   : > { %10670 = vmatprep.subr.bf16.mxu0 %v13678_v14 }
 0x740   : > { %10427 = vmatpush1.bf16.msra.mxu1 %v13673_v26 }
 0x741   : > { %10671 = vmatpush1.bf16.msra.mxu0 %v13676_v36  ;;  %10428 = vmatprep.subr.bf16.mxu1 %v13681_v62 }
 0x742   : > { %10672 = vmatprep.subr.bf16.mxu0 %v13684_v33 }
 0x744   : > { %10429 = vmatpush1.bf16.msra.mxu1 %v13679_v17 }
 0x745   : > { %10673 = vmatpush1.bf16.msra.mxu0 %v13682_v9  ;;  %10430 = vmatprep.subr.bf16.mxu1 %v13687_v53 }
 0x746   : > { %10674 = vmatprep.subr.bf16.mxu0 %v13690_v63 }
 0x748   : > { %10431 = vmatpush1.bf16.msra.mxu1 %v13685_v42  ;;  %v10752_v42 = vsub.s32 0, %v17395_v40 }
 0x749   : > { %10675 = vmatpush1.bf16.msra.mxu0 %v13688_v29  ;;  %10432 = vmatprep.subr.bf16.mxu1 %v13693_v61  ;;  %v10748_v29 = vld [vmem:[%s18440_s10] sm:$0x7]  ;;  %v10756_v61 = vsub.s32 1, %v17395_v40 }
 0x74a   : > { %10676 = vmatprep.subr.bf16.mxu0 %v13696_v43 }
 0x74b   : > { %v10757_v35 = vrot.slane %v10748_v29, %v10756_v61 }
 0x74c   : > { %10433 = vmatpush1.bf16.msra.mxu1 %v13691_v52  ;;  %v10753_v52 = vrot.slane %v10748_v29, %v10752_v42 }
 0x74d   : > { %10677 = vmatpush1.bf16.msra.mxu0 %v13694_v38  ;;  %10434 = vmatprep.subr.bf16.mxu1 %v13699_v57 }
 0x74e   : > { %10678 = vmatprep.subr.bf16.mxu0 %v13702_v37 }
 0x750   : > { %10435 = vmatpush1.bf16.msra.mxu1 %v13697_v31 }
 0x751   : > { %10679 = vmatpush1.bf16.msra.mxu0 %v13700_v16  ;;  %13107 = vmatprep.subr.bf16.mxu1 %v14410_v19 }
 0x753   : > { %10437 = vmatmul.mubr.bf16.vlgmr.msra.gmra.mrb[8].mxu1 %v18299_v12 }
 0x754   : > { %10697 = vmatmul.mubr.bf16.vlgmr.msra.gmra.mrb[16].mxu0 %v10534_v41  ;;  %13108 = vmatpush3.bf16.msra.mxu1 %v13703_v45 }
 0x755   : > { %13109 = vmatprep.subr.bf16.mxu1 %v14410_v19  ;;  %13123 = vmatprep.mubr.msk.bf16.mxu1 %vm14421_vm12, %v14410_v19 }
 0x758   : > { %13110 = vmatpush3.bf16.msra.mxu1 %v13704_v34 }
 0x759   : > { %13111 = vmatprep.subr.bf16.mxu1 %v14410_v19 }
 0x75c   : > { %13112 = vmatpush3.bf16.msra.mxu1 %v13705_v28 }
 0x75d   : > { %13113 = vmatprep.subr.bf16.mxu1 %v14410_v19 }
 0x760   : > { %13114 = vmatpush3.bf16.msra.mxu1 %v13706_v30 }
 0x761   : > { %13115 = vmatprep.subr.bf16.mxu1 %v14410_v19 }
 0x764   : > { %13116 = vmatpush3.bf16.msra.mxu1 %v13707_v25 }
 0x765   : > { %13117 = vmatprep.subr.bf16.mxu1 %v14410_v19 }
 0x768   : > { %13118 = vmatpush3.bf16.msra.mxu1 %v13708_v20 }
 0x769   : > { %13119 = vmatprep.subr.bf16.mxu1 %v14410_v19 }
 0x76c   : > { %13120 = vmatpush3.bf16.msra.mxu1 %v13709_v23 }
 0x76d   : > { %13121 = vmatprep.subr.bf16.mxu1 %v14410_v19 }
 0x770   : > { %13122 = vmatpush3.bf16.msra.mxu1 %v13710_v58 }
 0x773   : > { %13124 = vmatmul.mubr.bf16.vlgmr.msra.gmra.mrb[12].mxu1 %v10534_v41 }
 0x786   : > { %v9229_v7 = vpop.f32.mrb[0].mxu0  ;;  %v12802_v50 = vpop.f32.mrb[252].mxu1 }
 0x787   : > { %v9231_v21 = vpop.f32.mrb[1].mxu0  ;;  %v12803_v13 = vpop.f32.mrb[253].mxu1 }
 0x788   : > { %v12804_v10 = vadd.f32 %v12803_v13, %v12802_v50  ;;  %v9233_v48 = vpop.f32.mrb[2].mxu0  ;;  %v12805_v8 = vpop.f32.mrb[254].mxu1  ;;  %v10760_v50 = vsub.s32 2, %v17395_v40 }
 0x789   : > { %v9234_v54 = vpop.f32.mrb[3].mxu0  ;;  %v12806_v3 = vpop.f32.mrb[255].mxu1 }
 0x7a6   : > { %v12824_v59 = vpop.f32.mrb[4].mxu0 }
 0x7a7   : > { %v12825_v32 = vpop.f32.mrb[5].mxu0 }
 0x7a8   : > { %v12826_v2 = vadd.f32 %v12825_v32, %v12824_v59  ;;  %v12827_v49 = vpop.f32.mrb[6].mxu0 }
 0x7a9   : > { %v12828_v6 = vpop.f32.mrb[7].mxu0 }
 0x7aa   : > { %v9608_v12 = vadd.f32 %v12826_v2, %v12804_v10 }
 0x7c6   : > { %v9566_v39 = vpop.f32.mrb[0].mxu1 }
 0x7c7   : > { %v9567_v4 = vadd.f32 %v9566_v39, %v9229_v7  ;;  %v9568_v11 = vpop.f32.mrb[1].mxu1 }
 0x7c8   : > { %v9569_v0 = vadd.f32 %v9568_v11, %v9231_v21  ;;  %v9570_v47 = vpop.f32.mrb[2].mxu1  ;;  %v10761_v21 = vrot.slane %v10748_v29, %v10760_v50 }
 0x7c9   : > { %v9571_v1 = vpop.f32.mrb[3].mxu1 }
 0x7e6   : > { %v10001_v44 = vpop.f32.mrb[8].mxu0  ;;  %v12846_v60 = vpop.f32.mrb[4].mxu1 }
 0x7e7   : > { %v10048_v24 = vadd.f32 %v10001_v44, %v9567_v4  ;;  %v10003_v56 = vpop.f32.mrb[9].mxu0  ;;  %v12847_v22 = vpop.f32.mrb[5].mxu1 }
 0x7e8   : > { %v10049_v14 = vadd.f32 %v10003_v56, %v9569_v0  ;;  %v12848_v51 = vadd.f32 %v12847_v22, %v12846_v60  ;;  %v10005_v26 = vpop.f32.mrb[10].mxu0  ;;  %v12849_v36 = vpop.f32.mrb[6].mxu1 }
 0x7e9   : > { %v10006_v62 = vpop.f32.mrb[11].mxu0  ;;  %v12850_v33 = vpop.f32.mrb[7].mxu1 }
 0x7ea   : > { %v10050_v5 = vadd.f32 %v12848_v51, %v9608_v12 }
 0x807   : > { %v12868_v17 = vpop.f32.mrb[12].mxu0 }
 0x808   : > { %v12869_v9 = vpop.f32.mrb[13].mxu0 }
 0x809   : > { %v12870_v53 = vadd.f32 %v12869_v9, %v12868_v17  ;;  %v12871_v15 = vpop.f32.mrb[14].mxu0 }
 0x80a   : > { %v12872_v63 = vpop.f32.mrb[15].mxu0 }
 0x80b   : > { %v10487_v18 = vadd.f32 %v12870_v53, %v10050_v5 }
 0x826   : > { %v10438_v55 = vpop.f32.mrb[8].mxu1 }
 0x827   : > { %v10485_v43 = vadd.f32 %v10438_v55, %v10048_v24  ;;  %v10698_v46 = vpop.f32.mrb[16].mxu0  ;;  %v10440_v38 = vpop.f32.mrb[9].mxu1 }
 0x828   : > { %v10486_v57 = vadd.f32 %v10440_v38, %v10049_v14  ;;  %v10700_v37 = vpop.f32.mrb[17].mxu0  ;;  %v10442_v31 = vpop.f32.mrb[10].mxu1 }
 0x829   : > { %v10745_v16 = vadd.f32 %v10698_v46, %v10485_v43  ;;  %v10702_v27 = vpop.f32.mrb[18].mxu0  ;;  %v10443_v45 = vpop.f32.mrb[11].mxu1 }
 0x82a   : > { %v10746_v19 = vadd.f32 %v10700_v37, %v10486_v57  ;;  %v10703_v41 = vpop.f32.mrb[19].mxu0 }
 0x82b   : > { %v10765_v34 = vadd.f32 %v10753_v52, %v10745_v16 }
 0x82c   : > { %v10766_v28 = vadd.f32 %v10757_v35, %v10746_v19 }
 0x82d   : > { %v11912_v30 = vmul.f32 -1.442695, %v10765_v34 }
 0x82e   : > { %v11913_v25 = vmul.f32 -1.442695, %v10766_v28 }
 0x82f   : > { %14391 = vpow2.f32 %v11912_v30 }
 0x830   : > { %14393 = vpow2.f32 %v11913_v25 }
 0x839   : > { %v14392_v20 = vpop.eup %14391 }
 0x83a   : > { %v14394_v23 = vpop.eup %14393  ;;  %v10777_v58 = vadd.f32 1.0, %v14392_v20 }
 0x83b   : > { %v10778_v7 = vadd.f32 1.0, %v14394_v23 }
 0x83c   : > { %14395 = vrcp.f32 %v10777_v58 }
 0x83d   : > { %14397 = vrcp.f32 %v10778_v7 }
 0x846   : > { %v14396_v13 = vpop.eup %14395  ;;  %v10739_v10 = vpop.f32.mrb[12].mxu1 }
 0x847   : > { %v14398_v48 = vpop.eup %14397  ;;  %v10786_v8 = vmul.f32 %v14396_v13, %v10765_v34  ;;  %v10747_v54 = vadd.f32 %v10739_v10, %v10487_v18  ;;  %v13125_v3 = vpop.f32.mrb[13].mxu1 }
 0x848   : > { %v10787_v59 = vmul.f32 %v14398_v48, %v10766_v28  ;;  %v10742_v32 = vpop.f32.mrb[14].mxu1 }
 0x849   : > { %v10767_v2 = vadd.f32 %v10761_v21, %v10747_v54  ;;  %v13126_v49 = vpop.f32.mrb[15].mxu1 }
 0x84a   : > { %v10791_v6 = vcombine.low %v10786_v8, %v10787_v59 }
 0x84b   : > { %v11914_v12 = vmul.f32 -1.442695, %v10767_v2 }
 0x84c   : > { %10793 = vst [vmem:[%s504_s17] sm:$0xff] %v10791_v6 }
 0x84d   : > { %14399 = vpow2.f32 %v11914_v12 }
 0x857   : > { %v14400_v40 = vpop.eup %14399 }
 0x858   : > { %v10779_v39 = vadd.f32 1.0, %v14400_v40 }
 0x85a   : > { %14401 = vrcp.f32 %v10779_v39 }
 0x864   : > { %v14402_v4 = vpop.eup %14401 }
 0x865   : > { %v10788_v11 = vmul.f32 %v14402_v4, %v10767_v2 }
 0x867   : > { %10794 = vst [vmem:[%s504_s17 + $0x8] sm:$0xf] %v10788_v11 }
 0x868 PF: > { %s25_s29 = sadd.s32 1, %s14417_s29  }
 0x869   : > { %p22_p4 = scmp.ge.s32.totalorder %s25_s29, 4  }
 0x86b   :  { %24 = sbr.rel (!%p22_p4) target bundleno = 1 (0x1), region = 387 }

</bundles_post_ra>
